<compile_context>
chip_gen: v5e
topology: v5e:2x2
jax: 0.10.0
libtpu: 0.0.40
codegen_flags: <defaults>
</compile_context>

<pallas_src>
import functools

import jax
import jax.numpy as jnp
from jax import lax
from jax.experimental import pallas as pl
from jax.experimental.pallas import tpu as pltpu

WEIGHT_DTYPE = jnp.bfloat16  # MXU operand dtype; accumulation stays f32


def _round_up(x, m):
    return (x + m - 1) // m * m


# ----------------------------- Pallas kernels ------------------------------

def _conv_lrelu_kernel(x_ref, w_ref, b_ref, o_ref, *, slope):
    acc = jnp.dot(x_ref[...].astype(w_ref.dtype), w_ref[...],
                  preferred_element_type=jnp.float32) + b_ref[...]
    o_ref[...] = jnp.where(acc >= 0.0, acc, slope * acc)


def _conv_bn_lrelu_kernel(x_ref, w_ref, b_ref, g_ref, be_ref, o_ref, *, eps, slope):
    # GEMM + bias + training-mode BatchNorm (stats over rows = N*OH*OW, biased var)
    # + LeakyReLU, all fused; stats computed on the f32 accumulator.
    acc = jnp.dot(x_ref[...].astype(w_ref.dtype), w_ref[...],
                  preferred_element_type=jnp.float32) + b_ref[...]
    mu = jnp.mean(acc, axis=0, keepdims=True)
    var = jnp.mean((acc - mu) ** 2, axis=0, keepdims=True)
    y = (acc - mu) * lax.rsqrt(var + eps) * g_ref[...] + be_ref[...]
    o_ref[...] = jnp.where(y >= 0.0, y, slope * y)


def _head_kernel(din_ref, ew_ref, eb_ref,
                 wv_ref, bv_ref, wo_ref, bo_ref,
                 g1_ref, b1_ref, w1_ref, bb1_ref,
                 w2_ref, bb2_ref, g2_ref, b2_ref,
                 fcw_ref, fcb_ref,
                 o_ref, h_sc, *, eps):
    """embedding Linear + one TransformerEncoderLayer per grid step + fc (last step).

    The hidden state h is carried across the (sequential) layer axis in VMEM scratch.
    """
    l = pl.program_id(0)
    cdt = wv_ref.dtype

    @pl.when(l == 0)
    def _():
        # embedding Linear fused at the first layer step
        h_sc[...] = jnp.dot(din_ref[...].astype(ew_ref.dtype), ew_ref[...],
                            preferred_element_type=jnp.float32) + eb_ref[...]

    h = h_sc[...]

    # seq_len == 1: softmax over the single key is 1 for every head, so
    # self-attention reduces exactly to out_proj(value_proj(h)).
    v = jnp.dot(h.astype(cdt), wv_ref[...],
                preferred_element_type=jnp.float32) + bv_ref[...]
    attn = jnp.dot(v.astype(cdt), wo_ref[...],
                   preferred_element_type=jnp.float32) + bo_ref[...]

    s = h + attn
    mu = jnp.mean(s, axis=-1, keepdims=True)
    var = jnp.mean((s - mu) ** 2, axis=-1, keepdims=True)
    h1 = (s - mu) * lax.rsqrt(var + eps) * g1_ref[...] + b1_ref[...]

    ff = jnp.dot(h1.astype(cdt), w1_ref[...],
                 preferred_element_type=jnp.float32) + bb1_ref[...]
    ff = jnp.maximum(ff, 0.0)
    ff2 = jnp.dot(ff.astype(cdt), w2_ref[...],
                  preferred_element_type=jnp.float32) + bb2_ref[...]

    s2 = h1 + ff2
    mu2 = jnp.mean(s2, axis=-1, keepdims=True)
    var2 = jnp.mean((s2 - mu2) ** 2, axis=-1, keepdims=True)
    h2 = (s2 - mu2) * lax.rsqrt(var2 + eps) * g2_ref[...] + b2_ref[...]

    h_sc[...] = h2

    @pl.when(l == pl.num_programs(0) - 1)
    def _():
        # fc Linear fused at the last layer step; output is lane-padded to 128 cols.
        o_ref[...] = jnp.dot(h2.astype(fcw_ref.dtype), fcw_ref[...],
                             preferred_element_type=jnp.float32) + fcb_ref[...]


# ------------------------------ kernel wrappers -----------------------------

def conv_layer(patches, w, b, gamma=None, beta=None, *, eps=0.8, slope=0.2):
    """Fused im2col-GEMM (+ bias) [+ BatchNorm(batch stats)] + LeakyReLU."""
    M, K = patches.shape
    Cout = w.shape[1]
    out_shape = jax.ShapeDtypeStruct((M, Cout), jnp.float32)
    x_spec = pl.BlockSpec((M, K), lambda i: (0, 0))
    w_spec = pl.BlockSpec((K, Cout), lambda i: (0, 0))
    v_spec = pl.BlockSpec((1, Cout), lambda i: (0, 0))
    o_spec = pl.BlockSpec((M, Cout), lambda i: (0, 0))
    cp = pltpu.CompilerParams(dimension_semantics=("arbitrary",))
    if gamma is None:
        return pl.pallas_call(
            functools.partial(_conv_lrelu_kernel, slope=slope),
            out_shape=out_shape, grid=(1,),
            in_specs=[x_spec, w_spec, v_spec],
            out_specs=o_spec, compiler_params=cp,
        )(patches, w, b)
    return pl.pallas_call(
        functools.partial(_conv_bn_lrelu_kernel, eps=eps, slope=slope),
        out_shape=out_shape, grid=(1,),
        in_specs=[x_spec, w_spec, v_spec, v_spec, v_spec],
        out_specs=o_spec, compiler_params=cp,
    )(patches, w, b, gamma, beta)


def head_stack(d_in_p, params, eps=1e-5):
    """embedding Linear + 6 encoder layers + fc in ONE pallas_call (grid over layers)."""
    M, Kp = d_in_p.shape
    tp = params["tr"]
    L = tp["wv"].shape[0]
    D = tp["wv"].shape[-1]
    F = tp["w1"].shape[-1]

    def lspec(a, b):
        # leading layer axis squeezed out; index_map selects layer l
        return pl.BlockSpec((None, a, b), lambda l: (l, 0, 0))

    def fixed(a, b):
        # constant block index -> DMA'd once, stays resident across layers
        return pl.BlockSpec((a, b), lambda l: (0, 0))

    in_specs = [
        fixed(M, Kp),                  # d_in (batch- and lane-padded)
        fixed(Kp, D), fixed(1, D),     # embedding w, b
        lspec(D, D), lspec(1, D),      # wv, bv
        lspec(D, D), lspec(1, D),      # wo, bo
        lspec(1, D), lspec(1, D),      # ln1 gamma, beta
        lspec(D, F), lspec(1, F),      # lin1 w, b
        lspec(F, D), lspec(1, D),      # lin2 w, b
        lspec(1, D), lspec(1, D),      # ln2 gamma, beta
        fixed(D, D), fixed(1, D),      # fc w (lane-padded), fc b
    ]
    return pl.pallas_call(
        functools.partial(_head_kernel, eps=eps),
        out_shape=jax.ShapeDtypeStruct((M, D), jnp.float32),
        grid=(L,),
        in_specs=in_specs,
        out_specs=pl.BlockSpec((M, D), lambda l: (0, 0)),
        scratch_shapes=[pltpu.VMEM((M, D), jnp.float32)],
        compiler_params=pltpu.CompilerParams(dimension_semantics=("arbitrary",)),
    )(d_in_p, params["emb_w"], params["emb_b"],
      tp["wv"], tp["bv"], tp["wo"], tp["bo"],
      tp["g1"], tp["b1"], tp["w1"], tp["bb1"],
      tp["w2"], tp["bb2"], tp["g2"], tp["b2"],
      params["fc_w"], params["fc_b"])


# ------------------------------ glue (jitted JAX) ----------------------------

def im2col_nhwc(x, kh=3, kw=3, stride=2, pad=1):
    """Channels-last im2col for Conv2d(kernel=3, stride=2, padding=1)."""
    N, H, W, C = x.shape
    OH = (H + 2 * pad - kh) // stride + 1
    OW = (W + 2 * pad - kw) // stride + 1
    xp = jnp.pad(x, ((0, 0), (pad, pad), (pad, pad), (0, 0)))
    cols = []
    for i in range(kh):
        for j in range(kw):
            cols.append(xp[:, i::stride, j::stride, :][:, :OH, :OW, :])
    p = jnp.stack(cols, axis=0)                  # (9, N, OH, OW, C)
    p = jnp.transpose(p, (1, 2, 3, 4, 0))        # (N, OH, OW, C, 9)
    patches = p.reshape(N * OH * OW, C * kh * kw)   # K index = ci*9 + i*3 + j
    return patches, OH, OW


def discriminator_forward(params, img, labels, counts):
    N = img.shape[0]
    x = jnp.transpose(img, (0, 2, 3, 1))          # NCHW -> NHWC (channels-last GEMMs)

    # conv1 + LeakyReLU(0.2) (fused)
    patches, OH, OW = im2col_nhwc(x)
    out = conv_layer(patches, params["conv1_w"], params["conv1_b"], slope=0.2)
    x = out.reshape(N, OH, OW, -1)

    # conv2..conv4, each a single fused GEMM + BatchNorm(eps=0.8) + LeakyReLU kernel
    for i in (2, 3, 4):
        patches, OH, OW = im2col_nhwc(x)
        out = conv_layer(patches, params[f"conv{i}_w"], params[f"conv{i}_b"],
                         params[f"bn{i}_g"], params[f"bn{i}_b"], eps=0.8, slope=0.2)
        x = out.reshape(N, OH, OW, -1)

    # flatten in NCHW order to match PyTorch .view(N, -1)
    conv_flat = jnp.transpose(x, (0, 3, 1, 2)).reshape(N, -1)
    lab = jnp.take(params["label_emb"], labels, axis=0)       # embedding gather (glue)
    d_in = jnp.concatenate([conv_flat, lab, counts], axis=-1)

    # pad batch rows to a sublane multiple and K to a lane multiple ONCE;
    # the padded weight rows are zero so the extra K columns contribute nothing.
    Mp = _round_up(N, 8)
    Kp = params["emb_w"].shape[0]
    d_in_p = jnp.zeros((Mp, Kp), jnp.float32).at[:N, :d_in.shape[1]].set(d_in)

    # embedding Linear + 6-layer transformer + fc, one fused pallas_call
    validity = head_stack(d_in_p, params)        # (Mp, 128); only [:N, :1] valid
    return validity[:N, :1]


forward = jax.jit(discriminator_forward)


# ------------------------------ parameters ---------------------------------

def init_raw_params(key, num_classes, img_shape):
    """PyTorch-layout parameters (as nn.Module state would store them)."""
    c_in, H, _ = img_shape
    ks = iter(jax.random.split(key, 256))

    def nrm(shape, scale=0.05):
        return (scale * jax.random.normal(next(ks), shape)).astype(jnp.float32)

    p = {"label_emb": nrm((num_classes, num_classes), 1.0)}
    chans = [c_in, 64, 128, 256, 512]
    for i in range(1, 5):
        p[f"conv{i}_w"] = nrm((chans[i], chans[i - 1], 3, 3))
        p[f"conv{i}_b"] = jnp.zeros((chans[i],), jnp.float32)
        if i >= 2:
            p[f"bn{i}_g"] = jnp.ones((chans[i],), jnp.float32)
            p[f"bn{i}_b"] = jnp.zeros((chans[i],), jnp.float32)

    in_feat = 512 * (H // 16) ** 2 + num_classes + 3
    p["emb_w"] = nrm((128, in_feat))
    p["emb_b"] = jnp.zeros((128,), jnp.float32)

    layers = []
    for _ in range(6):
        layers.append({
            "in_proj_w": nrm((3 * 128, 128)),
            "in_proj_b": jnp.zeros((3 * 128,), jnp.float32),
            "out_proj_w": nrm((128, 128)),
            "out_proj_b": jnp.zeros((128,), jnp.float32),
            "ln1_g": jnp.ones((128,), jnp.float32),
            "ln1_b": jnp.zeros((128,), jnp.float32),
            "lin1_w": nrm((2048, 128)),
            "lin1_b": jnp.zeros((2048,), jnp.float32),
            "lin2_w": nrm((128, 2048)),
            "lin2_b": jnp.zeros((128,), jnp.float32),
            "ln2_g": jnp.ones((128,), jnp.float32),
            "ln2_b": jnp.zeros((128,), jnp.float32),
        })
    p["layers"] = layers
    p["fc_w"] = nrm((1, 128))
    p["fc_b"] = jnp.zeros((1,), jnp.float32)
    return p


def prepare_params(raw):
    """One-time preprocessing: transposes, value-slice, layer stacking, padding, bf16."""
    p = {"label_emb": raw["label_emb"].astype(jnp.float32)}

    for i in range(1, 5):
        w = raw[f"conv{i}_w"]                              # (Cout, Cin, 3, 3)
        cout = w.shape[0]
        # GEMM layout (Cin*9, Cout); K ordering matches im2col (ci*9 + kh*3 + kw)
        p[f"conv{i}_w"] = jnp.transpose(w.reshape(cout, -1)).astype(WEIGHT_DTYPE)
        p[f"conv{i}_b"] = raw[f"conv{i}_b"].reshape(1, -1).astype(jnp.float32)
        if i >= 2:
            p[f"bn{i}_g"] = raw[f"bn{i}_g"].reshape(1, -1).astype(jnp.float32)
            p[f"bn{i}_b"] = raw[f"bn{i}_b"].reshape(1, -1).astype(jnp.float32)

    # embedding Linear: transpose and zero-pad K (rows) to a lane-dense multiple of 128
    emb_wt = jnp.transpose(raw["emb_w"]).astype(WEIGHT_DTYPE)       # (in_feat, 128)
    in_feat = emb_wt.shape[0]
    in_feat_p = _round_up(in_feat, 128)
    p["emb_w"] = jnp.zeros((in_feat_p, 128), WEIGHT_DTYPE).at[:in_feat].set(emb_wt)
    p["emb_b"] = raw["emb_b"].reshape(1, -1).astype(jnp.float32)

    def stack(fn):
        return jnp.stack([fn(lp) for lp in raw["layers"]], axis=0)

    p["tr"] = {
        # value slice of the packed qkv projection (seq_len == 1 attention)
        "wv":  stack(lambda lp: jnp.transpose(lp["in_proj_w"][256:384])).astype(WEIGHT_DTYPE),
        "bv":  stack(lambda lp: lp["in_proj_b"][256:384].reshape(1, -1)),
        "wo":  stack(lambda lp: jnp.transpose(lp["out_proj_w"])).astype(WEIGHT_DTYPE),
        "bo":  stack(lambda lp: lp["out_proj_b"].reshape(1, -1)),
        "g1":  stack(lambda lp: lp["ln1_g"].reshape(1, -1)),
        "b1":  stack(lambda lp: lp["ln1_b"].reshape(1, -1)),
        "w1":  stack(lambda lp: jnp.transpose(lp["lin1_w"])).astype(WEIGHT_DTYPE),
        "bb1": stack(lambda lp: lp["lin1_b"].reshape(1, -1)),
        "w2":  stack(lambda lp: jnp.transpose(lp["lin2_w"])).astype(WEIGHT_DTYPE),
        "bb2": stack(lambda lp: lp["lin2_b"].reshape(1, -1)),
        "g2":  stack(lambda lp: lp["ln2_g"].reshape(1, -1)),
        "b2":  stack(lambda lp: lp["ln2_b"].reshape(1, -1)),
    }

    # fc: pad the single output column to a lane-dense 128-wide slab once at init
    fc_wt = jnp.transpose(raw["fc_w"]).astype(WEIGHT_DTYPE)         # (128, 1)
    p["fc_w"] = jnp.zeros((128, 128), WEIGHT_DTYPE).at[:, :1].set(fc_wt)
    p["fc_b"] = jnp.zeros((1, 128), jnp.float32).at[:, :1].set(raw["fc_b"].reshape(1, 1))
    return p


# --------------------------------- main -------------------------------------

if __name__ == "__main__":
    num_classes = 10
    img_shape = (4, 16, 16)          # (C, H, W); H//16 == 1 => conv output is 512*1*1
    batch = 2

    key = jax.random.PRNGKey(0)
    kp, ki, kl, kc = jax.random.split(key, 4)
    raw = init_raw_params(kp, num_classes, img_shape)
    params = prepare_params(raw)     # one-time weight prep (outside jit)

    img = jax.random.normal(ki, (batch, *img_shape), jnp.float32)
    labels = jax.random.randint(kl, (batch,), 0, num_classes)
    counts = jax.random.uniform(kc, (batch, 3), jnp.float32)

    out = forward(params, img, labels, counts)
    out = jax.block_until_ready(out)
    assert out.shape == (batch, 1)
    assert bool(jnp.all(jnp.isfinite(out)))
    print("KERNEL_OK")
</pallas_src>

<mosaic_0001>
module attributes {stable_mosaic.version = 11 : i64} {
  func.func @_conv_lrelu_kernel(%arg0: i32, %arg1: memref<128x36xf32, #tpu.memory_space<vmem>>, %arg2: memref<36x64xbf16, #tpu.memory_space<vmem>>, %arg3: memref<1x64xf32, #tpu.memory_space<vmem>>, %arg4: memref<128x64xf32, #tpu.memory_space<vmem>>) attributes {dimension_semantics = [#tpu.dimension_semantics<arbitrary>], iteration_bounds = array<i64: 1>, scalar_prefetch = 0 : i64, scratch_operands = 0 : i64, tpu.core_type = #tpu.core_type<tc>, window_params = [{pipeline_mode = #tpu.pipeline_mode<synchronous>, transform_indices = @transform_0, window_bounds = array<i64: 128, 36>}, {pipeline_mode = #tpu.pipeline_mode<synchronous>, transform_indices = @transform_1, window_bounds = array<i64: 36, 64>}, {pipeline_mode = #tpu.pipeline_mode<synchronous>, transform_indices = @transform_2, window_bounds = array<i64: 1, 64>}, {pipeline_mode = #tpu.pipeline_mode<synchronous>, transform_indices = @transform_3, window_bounds = array<i64: 128, 64>}]} {
    %c0 = arith.constant 0 : index
    %c0_0 = arith.constant 0 : index
    %0 = vector.load %arg1[%c0, %c0_0] : memref<128x36xf32, #tpu.memory_space<vmem>>, vector<128x36xf32>
    %1 = arith.truncf %0 : vector<128x36xf32> to vector<128x36xbf16>
    %c0_1 = arith.constant 0 : index
    %c0_2 = arith.constant 0 : index
    %2 = vector.load %arg2[%c0_1, %c0_2] : memref<36x64xbf16, #tpu.memory_space<vmem>>, vector<36x64xbf16>
    %cst = arith.constant dense<0.000000e+00> : vector<128x64xf32>
    %3 = tpu.matmul %1, %2, %cst {dimension_numbers = #tpu.dot_dimension_numbers<[1], [0], [0], [1], [0, 0, 1, 1], [], []>} : vector<128x36xbf16>, vector<36x64xbf16>, vector<128x64xf32> -> vector<128x64xf32>
    %c0_3 = arith.constant 0 : index
    %c0_4 = arith.constant 0 : index
    %4 = vector.load %arg3[%c0_3, %c0_4] : memref<1x64xf32, #tpu.memory_space<vmem>>, vector<1x64xf32>
    %5 = vector.broadcast %4 : vector<1x64xf32> to vector<128x64xf32>
    %6 = arith.addf %3, %5 : vector<128x64xf32>
    %cst_5 = arith.constant 0.000000e+00 : f32
    %7 = vector.broadcast %cst_5 : f32 to vector<128x64xf32>
    %8 = arith.cmpf oge, %6, %7 : vector<128x64xf32>
    %cst_6 = arith.constant 2.000000e-01 : f32
    %9 = vector.broadcast %cst_6 : f32 to vector<128x64xf32>
    %10 = arith.mulf %9, %6 : vector<128x64xf32>
    %11 = arith.select %8, %6, %10 : vector<128x64xi1>, vector<128x64xf32>
    %c0_7 = arith.constant 0 : index
    %c0_8 = arith.constant 0 : index
    %12 = vector.load %arg4[%c0_7, %c0_8] : memref<128x64xf32, #tpu.memory_space<vmem>>, vector<128x64xf32>
    tpu.vector_store %arg4[%c0_7, %c0_8], %11 {strides = array<i32>} : memref<128x64xf32, #tpu.memory_space<vmem>>, vector<128x64xf32>,
    return
  }
  func.func @transform_0(%arg0: i32) -> (i32, i32) {
    %c0_i32 = arith.constant 0 : i32
    %c0_i32_0 = arith.constant 0 : i32
    %c0_i32_1 = arith.constant 0 : i32
    return %c0_i32, %c0_i32_0 : i32, i32
  }
  func.func @transform_1(%arg0: i32) -> (i32, i32) {
    %c0_i32 = arith.constant 0 : i32
    %c0_i32_0 = arith.constant 0 : i32
    %c0_i32_1 = arith.constant 0 : i32
    return %c0_i32, %c0_i32_0 : i32, i32
  }
  func.func @transform_2(%arg0: i32) -> (i32, i32) {
    %c0_i32 = arith.constant 0 : i32
    %c0_i32_0 = arith.constant 0 : i32
    %c0_i32_1 = arith.constant 0 : i32
    return %c0_i32, %c0_i32_0 : i32, i32
  }
  func.func @transform_3(%arg0: i32) -> (i32, i32) {
    %c0_i32 = arith.constant 0 : i32
    %c0_i32_0 = arith.constant 0 : i32
    %c0_i32_1 = arith.constant 0 : i32
    return %c0_i32, %c0_i32_0 : i32, i32
  }
}

module attributes {stable_mosaic.version = 11 : i64} {
  func.func @_conv_bn_lrelu_kernel(%arg0: i32, %arg1: memref<32x576xf32, #tpu.memory_space<vmem>>, %arg2: memref<576x128xbf16, #tpu.memory_space<vmem>>, %arg3: memref<1x128xf32, #tpu.memory_space<vmem>>, %arg4: memref<1x128xf32, #tpu.memory_space<vmem>>, %arg5: memref<1x128xf32, #tpu.memory_space<vmem>>, %arg6: memref<32x128xf32, #tpu.memory_space<vmem>>) attributes {dimension_semantics = [#tpu.dimension_semantics<arbitrary>], iteration_bounds = array<i64: 1>, scalar_prefetch = 0 : i64, scratch_operands = 0 : i64, tpu.core_type = #tpu.core_type<tc>, window_params = [{pipeline_mode = #tpu.pipeline_mode<synchronous>, transform_indices = @transform_0, window_bounds = array<i64: 32, 576>}, {pipeline_mode = #tpu.pipeline_mode<synchronous>, transform_indices = @transform_1, window_bounds = array<i64: 576, 128>}, {pipeline_mode = #tpu.pipeline_mode<synchronous>, transform_indices = @transform_2, window_bounds = array<i64: 1, 128>}, {pipeline_mode = #tpu.pipeline_mode<synchronous>, transform_indices = @transform_3, window_bounds = array<i64: 1, 128>}, {pipeline_mode = #tpu.pipeline_mode<synchronous>, transform_indices = @transform_4, window_bounds = array<i64: 1, 128>}, {pipeline_mode = #tpu.pipeline_mode<synchronous>, transform_indices = @transform_5, window_bounds = array<i64: 32, 128>}]} {
    %c0 = arith.constant 0 : index
    %c0_0 = arith.constant 0 : index
    %0 = vector.load %arg1[%c0, %c0_0] : memref<32x576xf32, #tpu.memory_space<vmem>>, vector<32x576xf32>
    %1 = arith.truncf %0 : vector<32x576xf32> to vector<32x576xbf16>
    %c0_1 = arith.constant 0 : index
    %c0_2 = arith.constant 0 : index
    %2 = vector.load %arg2[%c0_1, %c0_2] : memref<576x128xbf16, #tpu.memory_space<vmem>>, vector<576x128xbf16>
    %cst = arith.constant dense<0.000000e+00> : vector<32x128xf32>
    %3 = tpu.matmul %1, %2, %cst {dimension_numbers = #tpu.dot_dimension_numbers<[1], [0], [0], [1], [0, 0, 1, 1], [], []>} : vector<32x576xbf16>, vector<576x128xbf16>, vector<32x128xf32> -> vector<32x128xf32>
    %c0_3 = arith.constant 0 : index
    %c0_4 = arith.constant 0 : index
    %4 = vector.load %arg3[%c0_3, %c0_4] : memref<1x128xf32, #tpu.memory_space<vmem>>, vector<1x128xf32>
    %5 = vector.broadcast %4 : vector<1x128xf32> to vector<32x128xf32>
    %6 = arith.addf %3, %5 : vector<32x128xf32>
    %cst_5 = arith.constant dense<0.000000e+00> : vector<128xf32>
    %7 = vector.multi_reduction <add>, %6, %cst_5 [0] : vector<32x128xf32> to vector<128xf32>
    %8 = vector.shape_cast %7 : vector<128xf32> to vector<1x128xf32>
    %cst_6 = arith.constant 3.200000e+01 : f32
    %9 = vector.broadcast %cst_6 : f32 to vector<1x128xf32>
    %10 = arith.divf %8, %9 : vector<1x128xf32>
    %11 = vector.broadcast %10 : vector<1x128xf32> to vector<32x128xf32>
    %12 = arith.subf %6, %11 : vector<32x128xf32>
    %13 = arith.mulf %12, %12 : vector<32x128xf32>
    %cst_7 = arith.constant dense<0.000000e+00> : vector<128xf32>
    %14 = vector.multi_reduction <add>, %13, %cst_7 [0] : vector<32x128xf32> to vector<128xf32>
    %15 = vector.shape_cast %14 : vector<128xf32> to vector<1x128xf32>
    %cst_8 = arith.constant 3.200000e+01 : f32
    %16 = vector.broadcast %cst_8 : f32 to vector<1x128xf32>
    %17 = arith.divf %15, %16 : vector<1x128xf32>
    %18 = vector.broadcast %10 : vector<1x128xf32> to vector<32x128xf32>
    %19 = arith.subf %6, %18 : vector<32x128xf32>
    %cst_9 = arith.constant 8.000000e-01 : f32
    %20 = vector.broadcast %cst_9 : f32 to vector<1x128xf32>
    %21 = arith.addf %17, %20 : vector<1x128xf32>
    %22 = math.rsqrt %21 : vector<1x128xf32>
    %23 = vector.broadcast %22 : vector<1x128xf32> to vector<32x128xf32>
    %24 = arith.mulf %19, %23 : vector<32x128xf32>
    %c0_10 = arith.constant 0 : index
    %c0_11 = arith.constant 0 : index
    %25 = vector.load %arg4[%c0_10, %c0_11] : memref<1x128xf32, #tpu.memory_space<vmem>>, vector<1x128xf32>
    %26 = vector.broadcast %25 : vector<1x128xf32> to vector<32x128xf32>
    %27 = arith.mulf %24, %26 : vector<32x128xf32>
    %c0_12 = arith.constant 0 : index
    %c0_13 = arith.constant 0 : index
    %28 = vector.load %arg5[%c0_12, %c0_13] : memref<1x128xf32, #tpu.memory_space<vmem>>, vector<1x128xf32>
    %29 = vector.broadcast %28 : vector<1x128xf32> to vector<32x128xf32>
    %30 = arith.addf %27, %29 : vector<32x128xf32>
    %cst_14 = arith.constant 0.000000e+00 : f32
    %31 = vector.broadcast %cst_14 : f32 to vector<32x128xf32>
    %32 = arith.cmpf oge, %30, %31 : vector<32x128xf32>
    %cst_15 = arith.constant 2.000000e-01 : f32
    %33 = vector.broadcast %cst_15 : f32 to vector<32x128xf32>
    %34 = arith.mulf %33, %30 : vector<32x128xf32>
    %35 = arith.select %32, %30, %34 : vector<32x128xi1>, vector<32x128xf32>
    %c0_16 = arith.constant 0 : index
    %c0_17 = arith.constant 0 : index
    %36 = vector.load %arg6[%c0_16, %c0_17] : memref<32x128xf32, #tpu.memory_space<vmem>>, vector<32x128xf32>
    tpu.vector_store %arg6[%c0_16, %c0_17], %35 {strides = array<i32>} : memref<32x128xf32, #tpu.memory_space<vmem>>, vector<32x128xf32>,
    return
  }
  func.func @transform_0(%arg0: i32) -> (i32, i32) {
    %c0_i32 = arith.constant 0 : i32
    %c0_i32_0 = arith.constant 0 : i32
    %c0_i32_1 = arith.constant 0 : i32
    return %c0_i32, %c0_i32_0 : i32, i32
  }
  func.func @transform_1(%arg0: i32) -> (i32, i32) {
    %c0_i32 = arith.constant 0 : i32
    %c0_i32_0 = arith.constant 0 : i32
    %c0_i32_1 = arith.constant 0 : i32
    return %c0_i32, %c0_i32_0 : i32, i32
  }
  func.func @transform_2(%arg0: i32) -> (i32, i32) {
    %c0_i32 = arith.constant 0 : i32
    %c0_i32_0 = arith.constant 0 : i32
    %c0_i32_1 = arith.constant 0 : i32
    return %c0_i32, %c0_i32_0 : i32, i32
  }
  func.func @transform_3(%arg0: i32) -> (i32, i32) {
    %c0_i32 = arith.constant 0 : i32
    %c0_i32_0 = arith.constant 0 : i32
    %c0_i32_1 = arith.constant 0 : i32
    return %c0_i32, %c0_i32_0 : i32, i32
  }
  func.func @transform_4(%arg0: i32) -> (i32, i32) {
    %c0_i32 = arith.constant 0 : i32
    %c0_i32_0 = arith.constant 0 : i32
    %c0_i32_1 = arith.constant 0 : i32
    return %c0_i32, %c0_i32_0 : i32, i32
  }
  func.func @transform_5(%arg0: i32) -> (i32, i32) {
    %c0_i32 = arith.constant 0 : i32
    %c0_i32_0 = arith.constant 0 : i32
    %c0_i32_1 = arith.constant 0 : i32
    return %c0_i32, %c0_i32_0 : i32, i32
  }
}

module attributes {stable_mosaic.version = 11 : i64} {
  func.func @_conv_bn_lrelu_kernel(%arg0: i32, %arg1: memref<8x1152xf32, #tpu.memory_space<vmem>>, %arg2: memref<1152x256xbf16, #tpu.memory_space<vmem>>, %arg3: memref<1x256xf32, #tpu.memory_space<vmem>>, %arg4: memref<1x256xf32, #tpu.memory_space<vmem>>, %arg5: memref<1x256xf32, #tpu.memory_space<vmem>>, %arg6: memref<8x256xf32, #tpu.memory_space<vmem>>) attributes {dimension_semantics = [#tpu.dimension_semantics<arbitrary>], iteration_bounds = array<i64: 1>, scalar_prefetch = 0 : i64, scratch_operands = 0 : i64, tpu.core_type = #tpu.core_type<tc>, window_params = [{pipeline_mode = #tpu.pipeline_mode<synchronous>, transform_indices = @transform_0, window_bounds = array<i64: 8, 1152>}, {pipeline_mode = #tpu.pipeline_mode<synchronous>, transform_indices = @transform_1, window_bounds = array<i64: 1152, 256>}, {pipeline_mode = #tpu.pipeline_mode<synchronous>, transform_indices = @transform_2, window_bounds = array<i64: 1, 256>}, {pipeline_mode = #tpu.pipeline_mode<synchronous>, transform_indices = @transform_3, window_bounds = array<i64: 1, 256>}, {pipeline_mode = #tpu.pipeline_mode<synchronous>, transform_indices = @transform_4, window_bounds = array<i64: 1, 256>}, {pipeline_mode = #tpu.pipeline_mode<synchronous>, transform_indices = @transform_5, window_bounds = array<i64: 8, 256>}]} {
    %c0 = arith.constant 0 : index
    %c0_0 = arith.constant 0 : index
    %0 = vector.load %arg1[%c0, %c0_0] : memref<8x1152xf32, #tpu.memory_space<vmem>>, vector<8x1152xf32>
    %1 = arith.truncf %0 : vector<8x1152xf32> to vector<8x1152xbf16>
    %c0_1 = arith.constant 0 : index
    %c0_2 = arith.constant 0 : index
    %2 = vector.load %arg2[%c0_1, %c0_2] : memref<1152x256xbf16, #tpu.memory_space<vmem>>, vector<1152x256xbf16>
    %cst = arith.constant dense<0.000000e+00> : vector<8x256xf32>
    %3 = tpu.matmul %1, %2, %cst {dimension_numbers = #tpu.dot_dimension_numbers<[1], [0], [0], [1], [0, 0, 1, 1], [], []>} : vector<8x1152xbf16>, vector<1152x256xbf16>, vector<8x256xf32> -> vector<8x256xf32>
    %c0_3 = arith.constant 0 : index
    %c0_4 = arith.constant 0 : index
    %4 = vector.load %arg3[%c0_3, %c0_4] : memref<1x256xf32, #tpu.memory_space<vmem>>, vector<1x256xf32>
    %5 = vector.broadcast %4 : vector<1x256xf32> to vector<8x256xf32>
    %6 = arith.addf %3, %5 : vector<8x256xf32>
    %cst_5 = arith.constant dense<0.000000e+00> : vector<256xf32>
    %7 = vector.multi_reduction <add>, %6, %cst_5 [0] : vector<8x256xf32> to vector<256xf32>
    %8 = vector.shape_cast %7 : vector<256xf32> to vector<1x256xf32>
    %cst_6 = arith.constant 8.000000e+00 : f32
    %9 = vector.broadcast %cst_6 : f32 to vector<1x256xf32>
    %10 = arith.divf %8, %9 : vector<1x256xf32>
    %11 = vector.broadcast %10 : vector<1x256xf32> to vector<8x256xf32>
    %12 = arith.subf %6, %11 : vector<8x256xf32>
    %13 = arith.mulf %12, %12 : vector<8x256xf32>
    %cst_7 = arith.constant dense<0.000000e+00> : vector<256xf32>
    %14 = vector.multi_reduction <add>, %13, %cst_7 [0] : vector<8x256xf32> to vector<256xf32>
    %15 = vector.shape_cast %14 : vector<256xf32> to vector<1x256xf32>
    %cst_8 = arith.constant 8.000000e+00 : f32
    %16 = vector.broadcast %cst_8 : f32 to vector<1x256xf32>
    %17 = arith.divf %15, %16 : vector<1x256xf32>
    %18 = vector.broadcast %10 : vector<1x256xf32> to vector<8x256xf32>
    %19 = arith.subf %6, %18 : vector<8x256xf32>
    %cst_9 = arith.constant 8.000000e-01 : f32
    %20 = vector.broadcast %cst_9 : f32 to vector<1x256xf32>
    %21 = arith.addf %17, %20 : vector<1x256xf32>
    %22 = math.rsqrt %21 : vector<1x256xf32>
    %23 = vector.broadcast %22 : vector<1x256xf32> to vector<8x256xf32>
    %24 = arith.mulf %19, %23 : vector<8x256xf32>
    %c0_10 = arith.constant 0 : index
    %c0_11 = arith.constant 0 : index
    %25 = vector.load %arg4[%c0_10, %c0_11] : memref<1x256xf32, #tpu.memory_space<vmem>>, vector<1x256xf32>
    %26 = vector.broadcast %25 : vector<1x256xf32> to vector<8x256xf32>
    %27 = arith.mulf %24, %26 : vector<8x256xf32>
    %c0_12 = arith.constant 0 : index
    %c0_13 = arith.constant 0 : index
    %28 = vector.load %arg5[%c0_12, %c0_13] : memref<1x256xf32, #tpu.memory_space<vmem>>, vector<1x256xf32>
    %29 = vector.broadcast %28 : vector<1x256xf32> to vector<8x256xf32>
    %30 = arith.addf %27, %29 : vector<8x256xf32>
    %cst_14 = arith.constant 0.000000e+00 : f32
    %31 = vector.broadcast %cst_14 : f32 to vector<8x256xf32>
    %32 = arith.cmpf oge, %30, %31 : vector<8x256xf32>
    %cst_15 = arith.constant 2.000000e-01 : f32
    %33 = vector.broadcast %cst_15 : f32 to vector<8x256xf32>
    %34 = arith.mulf %33, %30 : vector<8x256xf32>
    %35 = arith.select %32, %30, %34 : vector<8x256xi1>, vector<8x256xf32>
    %c0_16 = arith.constant 0 : index
    %c0_17 = arith.constant 0 : index
    %36 = vector.load %arg6[%c0_16, %c0_17] : memref<8x256xf32, #tpu.memory_space<vmem>>, vector<8x256xf32>
    tpu.vector_store %arg6[%c0_16, %c0_17], %35 {strides = array<i32>} : memref<8x256xf32, #tpu.memory_space<vmem>>, vector<8x256xf32>,
    return
  }
  func.func @transform_0(%arg0: i32) -> (i32, i32) {
    %c0_i32 = arith.constant 0 : i32
    %c0_i32_0 = arith.constant 0 : i32
    %c0_i32_1 = arith.constant 0 : i32
    return %c0_i32, %c0_i32_0 : i32, i32
  }
  func.func @transform_1(%arg0: i32) -> (i32, i32) {
    %c0_i32 = arith.constant 0 : i32
    %c0_i32_0 = arith.constant 0 : i32
    %c0_i32_1 = arith.constant 0 : i32
    return %c0_i32, %c0_i32_0 : i32, i32
  }
  func.func @transform_2(%arg0: i32) -> (i32, i32) {
    %c0_i32 = arith.constant 0 : i32
    %c0_i32_0 = arith.constant 0 : i32
    %c0_i32_1 = arith.constant 0 : i32
    return %c0_i32, %c0_i32_0 : i32, i32
  }
  func.func @transform_3(%arg0: i32) -> (i32, i32) {
    %c0_i32 = arith.constant 0 : i32
    %c0_i32_0 = arith.constant 0 : i32
    %c0_i32_1 = arith.constant 0 : i32
    return %c0_i32, %c0_i32_0 : i32, i32
  }
  func.func @transform_4(%arg0: i32) -> (i32, i32) {
    %c0_i32 = arith.constant 0 : i32
    %c0_i32_0 = arith.constant 0 : i32
    %c0_i32_1 = arith.constant 0 : i32
    return %c0_i32, %c0_i32_0 : i32, i32
  }
  func.func @transform_5(%arg0: i32) -> (i32, i32) {
    %c0_i32 = arith.constant 0 : i32
    %c0_i32_0 = arith.constant 0 : i32
    %c0_i32_1 = arith.constant 0 : i32
    return %c0_i32, %c0_i32_0 : i32, i32
  }
}

module attributes {stable_mosaic.version = 11 : i64} {
  func.func @_conv_bn_lrelu_kernel(%arg0: i32, %arg1: memref<2x2304xf32, #tpu.memory_space<vmem>>, %arg2: memref<2304x512xbf16, #tpu.memory_space<vmem>>, %arg3: memref<1x512xf32, #tpu.memory_space<vmem>>, %arg4: memref<1x512xf32, #tpu.memory_space<vmem>>, %arg5: memref<1x512xf32, #tpu.memory_space<vmem>>, %arg6: memref<2x512xf32, #tpu.memory_space<vmem>>) attributes {dimension_semantics = [#tpu.dimension_semantics<arbitrary>], iteration_bounds = array<i64: 1>, scalar_prefetch = 0 : i64, scratch_operands = 0 : i64, tpu.core_type = #tpu.core_type<tc>, window_params = [{pipeline_mode = #tpu.pipeline_mode<synchronous>, transform_indices = @transform_0, window_bounds = array<i64: 2, 2304>}, {pipeline_mode = #tpu.pipeline_mode<synchronous>, transform_indices = @transform_1, window_bounds = array<i64: 2304, 512>}, {pipeline_mode = #tpu.pipeline_mode<synchronous>, transform_indices = @transform_2, window_bounds = array<i64: 1, 512>}, {pipeline_mode = #tpu.pipeline_mode<synchronous>, transform_indices = @transform_3, window_bounds = array<i64: 1, 512>}, {pipeline_mode = #tpu.pipeline_mode<synchronous>, transform_indices = @transform_4, window_bounds = array<i64: 1, 512>}, {pipeline_mode = #tpu.pipeline_mode<synchronous>, transform_indices = @transform_5, window_bounds = array<i64: 2, 512>}]} {
    %c0 = arith.constant 0 : index
    %c0_0 = arith.constant 0 : index
    %0 = vector.load %arg1[%c0, %c0_0] : memref<2x2304xf32, #tpu.memory_space<vmem>>, vector<2x2304xf32>
    %1 = arith.truncf %0 : vector<2x2304xf32> to vector<2x2304xbf16>
    %c0_1 = arith.constant 0 : index
    %c0_2 = arith.constant 0 : index
    %2 = vector.load %arg2[%c0_1, %c0_2] : memref<2304x512xbf16, #tpu.memory_space<vmem>>, vector<2304x512xbf16>
    %cst = arith.constant dense<0.000000e+00> : vector<2x512xf32>
    %3 = tpu.matmul %1, %2, %cst {dimension_numbers = #tpu.dot_dimension_numbers<[1], [0], [0], [1], [0, 0, 1, 1], [], []>} : vector<2x2304xbf16>, vector<2304x512xbf16>, vector<2x512xf32> -> vector<2x512xf32>
    %c0_3 = arith.constant 0 : index
    %c0_4 = arith.constant 0 : index
    %4 = vector.load %arg3[%c0_3, %c0_4] : memref<1x512xf32, #tpu.memory_space<vmem>>, vector<1x512xf32>
    %5 = vector.broadcast %4 : vector<1x512xf32> to vector<2x512xf32>
    %6 = arith.addf %3, %5 : vector<2x512xf32>
    %cst_5 = arith.constant dense<0.000000e+00> : vector<512xf32>
    %7 = vector.multi_reduction <add>, %6, %cst_5 [0] : vector<2x512xf32> to vector<512xf32>
    %8 = vector.shape_cast %7 : vector<512xf32> to vector<1x512xf32>
    %cst_6 = arith.constant 2.000000e+00 : f32
    %9 = vector.broadcast %cst_6 : f32 to vector<1x512xf32>
    %10 = arith.divf %8, %9 : vector<1x512xf32>
    %11 = vector.broadcast %10 : vector<1x512xf32> to vector<2x512xf32>
    %12 = arith.subf %6, %11 : vector<2x512xf32>
    %13 = arith.mulf %12, %12 : vector<2x512xf32>
    %cst_7 = arith.constant dense<0.000000e+00> : vector<512xf32>
    %14 = vector.multi_reduction <add>, %13, %cst_7 [0] : vector<2x512xf32> to vector<512xf32>
    %15 = vector.shape_cast %14 : vector<512xf32> to vector<1x512xf32>
    %cst_8 = arith.constant 2.000000e+00 : f32
    %16 = vector.broadcast %cst_8 : f32 to vector<1x512xf32>
    %17 = arith.divf %15, %16 : vector<1x512xf32>
    %18 = vector.broadcast %10 : vector<1x512xf32> to vector<2x512xf32>
    %19 = arith.subf %6, %18 : vector<2x512xf32>
    %cst_9 = arith.constant 8.000000e-01 : f32
    %20 = vector.broadcast %cst_9 : f32 to vector<1x512xf32>
    %21 = arith.addf %17, %20 : vector<1x512xf32>
    %22 = math.rsqrt %21 : vector<1x512xf32>
    %23 = vector.broadcast %22 : vector<1x512xf32> to vector<2x512xf32>
    %24 = arith.mulf %19, %23 : vector<2x512xf32>
    %c0_10 = arith.constant 0 : index
    %c0_11 = arith.constant 0 : index
    %25 = vector.load %arg4[%c0_10, %c0_11] : memref<1x512xf32, #tpu.memory_space<vmem>>, vector<1x512xf32>
    %26 = vector.broadcast %25 : vector<1x512xf32> to vector<2x512xf32>
    %27 = arith.mulf %24, %26 : vector<2x512xf32>
    %c0_12 = arith.constant 0 : index
    %c0_13 = arith.constant 0 : index
    %28 = vector.load %arg5[%c0_12, %c0_13] : memref<1x512xf32, #tpu.memory_space<vmem>>, vector<1x512xf32>
    %29 = vector.broadcast %28 : vector<1x512xf32> to vector<2x512xf32>
    %30 = arith.addf %27, %29 : vector<2x512xf32>
    %cst_14 = arith.constant 0.000000e+00 : f32
    %31 = vector.broadcast %cst_14 : f32 to vector<2x512xf32>
    %32 = arith.cmpf oge, %30, %31 : vector<2x512xf32>
    %cst_15 = arith.constant 2.000000e-01 : f32
    %33 = vector.broadcast %cst_15 : f32 to vector<2x512xf32>
    %34 = arith.mulf %33, %30 : vector<2x512xf32>
    %35 = arith.select %32, %30, %34 : vector<2x512xi1>, vector<2x512xf32>
    %c0_16 = arith.constant 0 : index
    %c0_17 = arith.constant 0 : index
    %36 = vector.load %arg6[%c0_16, %c0_17] : memref<2x512xf32, #tpu.memory_space<vmem>>, vector<2x512xf32>
    tpu.vector_store %arg6[%c0_16, %c0_17], %35 {strides = array<i32>} : memref<2x512xf32, #tpu.memory_space<vmem>>, vector<2x512xf32>,
    return
  }
  func.func @transform_0(%arg0: i32) -> (i32, i32) {
    %c0_i32 = arith.constant 0 : i32
    %c0_i32_0 = arith.constant 0 : i32
    %c0_i32_1 = arith.constant 0 : i32
    return %c0_i32, %c0_i32_0 : i32, i32
  }
  func.func @transform_1(%arg0: i32) -> (i32, i32) {
    %c0_i32 = arith.constant 0 : i32
    %c0_i32_0 = arith.constant 0 : i32
    %c0_i32_1 = arith.constant 0 : i32
    return %c0_i32, %c0_i32_0 : i32, i32
  }
  func.func @transform_2(%arg0: i32) -> (i32, i32) {
    %c0_i32 = arith.constant 0 : i32
    %c0_i32_0 = arith.constant 0 : i32
    %c0_i32_1 = arith.constant 0 : i32
    return %c0_i32, %c0_i32_0 : i32, i32
  }
  func.func @transform_3(%arg0: i32) -> (i32, i32) {
    %c0_i32 = arith.constant 0 : i32
    %c0_i32_0 = arith.constant 0 : i32
    %c0_i32_1 = arith.constant 0 : i32
    return %c0_i32, %c0_i32_0 : i32, i32
  }
  func.func @transform_4(%arg0: i32) -> (i32, i32) {
    %c0_i32 = arith.constant 0 : i32
    %c0_i32_0 = arith.constant 0 : i32
    %c0_i32_1 = arith.constant 0 : i32
    return %c0_i32, %c0_i32_0 : i32, i32
  }
  func.func @transform_5(%arg0: i32) -> (i32, i32) {
    %c0_i32 = arith.constant 0 : i32
    %c0_i32_0 = arith.constant 0 : i32
    %c0_i32_1 = arith.constant 0 : i32
    return %c0_i32, %c0_i32_0 : i32, i32
  }
}

module attributes {stable_mosaic.version = 11 : i64} {
  func.func @_head_kernel(%arg0: i32, %arg1: memref<8x640xf32, #tpu.memory_space<vmem>>, %arg2: memref<640x128xbf16, #tpu.memory_space<vmem>>, %arg3: memref<1x128xf32, #tpu.memory_space<vmem>>, %arg4: memref<1x128x128xbf16, #tpu.memory_space<vmem>>, %arg5: memref<1x1x128xf32, #tpu.memory_space<vmem>>, %arg6: memref<1x128x128xbf16, #tpu.memory_space<vmem>>, %arg7: memref<1x1x128xf32, #tpu.memory_space<vmem>>, %arg8: memref<1x1x128xf32, #tpu.memory_space<vmem>>, %arg9: memref<1x1x128xf32, #tpu.memory_space<vmem>>, %arg10: memref<1x128x2048xbf16, #tpu.memory_space<vmem>>, %arg11: memref<1x1x2048xf32, #tpu.memory_space<vmem>>, %arg12: memref<1x2048x128xbf16, #tpu.memory_space<vmem>>, %arg13: memref<1x1x128xf32, #tpu.memory_space<vmem>>, %arg14: memref<1x1x128xf32, #tpu.memory_space<vmem>>, %arg15: memref<1x1x128xf32, #tpu.memory_space<vmem>>, %arg16: memref<128x128xbf16, #tpu.memory_space<vmem>>, %arg17: memref<1x128xf32, #tpu.memory_space<vmem>>, %arg18: memref<8x128xf32, #tpu.memory_space<vmem>>, %arg19: memref<8x128xf32, #tpu.memory_space<vmem>>) attributes {dimension_semantics = [#tpu.dimension_semantics<arbitrary>], iteration_bounds = array<i64: 6>, scalar_prefetch = 0 : i64, scratch_operands = 1 : i64, tpu.core_type = #tpu.core_type<tc>, window_params = [{pipeline_mode = #tpu.pipeline_mode<synchronous>, transform_indices = @transform_0, window_bounds = array<i64: 8, 640>}, {pipeline_mode = #tpu.pipeline_mode<synchronous>, transform_indices = @transform_1, window_bounds = array<i64: 640, 128>}, {pipeline_mode = #tpu.pipeline_mode<synchronous>, transform_indices = @transform_2, window_bounds = array<i64: 1, 128>}, {transform_indices = @transform_3, window_bounds = array<i64: 1, 128, 128>}, {transform_indices = @transform_4, window_bounds = array<i64: 1, 1, 128>}, {transform_indices = @transform_5, window_bounds = array<i64: 1, 128, 128>}, {transform_indices = @transform_6, window_bounds = array<i64: 1, 1, 128>}, {transform_indices = @transform_7, window_bounds = array<i64: 1, 1, 128>}, {transform_indices = @transform_8, window_bounds = array<i64: 1, 1, 128>}, {transform_indices = @transform_9, window_bounds = array<i64: 1, 128, 2048>}, {transform_indices = @transform_10, window_bounds = array<i64: 1, 1, 2048>}, {transform_indices = @transform_11, window_bounds = array<i64: 1, 2048, 128>}, {transform_indices = @transform_12, window_bounds = array<i64: 1, 1, 128>}, {transform_indices = @transform_13, window_bounds = array<i64: 1, 1, 128>}, {transform_indices = @transform_14, window_bounds = array<i64: 1, 1, 128>}, {pipeline_mode = #tpu.pipeline_mode<synchronous>, transform_indices = @transform_15, window_bounds = array<i64: 128, 128>}, {pipeline_mode = #tpu.pipeline_mode<synchronous>, transform_indices = @transform_16, window_bounds = array<i64: 1, 128>}, {pipeline_mode = #tpu.pipeline_mode<synchronous>, transform_indices = @transform_17, window_bounds = array<i64: 8, 128>}]} {
    %c0_i32 = arith.constant 0 : i32
    %0 = arith.cmpi eq, %arg0, %c0_i32 : i32
    %1 = arith.extui %0 : i1 to i32
    %c0_i32_0 = arith.constant 0 : i32
    %2 = arith.cmpi ne, %1, %c0_i32_0 : i32
    scf.if %2 {
      %c0_55 = arith.constant 0 : index
      %c0_56 = arith.constant 0 : index
      %96 = vector.load %arg1[%c0_55, %c0_56] : memref<8x640xf32, #tpu.memory_space<vmem>>, vector<8x640xf32>
      %97 = arith.truncf %96 : vector<8x640xf32> to vector<8x640xbf16>
      %c0_57 = arith.constant 0 : index
      %c0_58 = arith.constant 0 : index
      %98 = vector.load %arg2[%c0_57, %c0_58] : memref<640x128xbf16, #tpu.memory_space<vmem>>, vector<640x128xbf16>
      %cst_59 = arith.constant dense<0.000000e+00> : vector<8x128xf32>
      %99 = tpu.matmul %97, %98, %cst_59 {dimension_numbers = #tpu.dot_dimension_numbers<[1], [0], [0], [1], [0, 0, 1, 1], [], []>} : vector<8x640xbf16>, vector<640x128xbf16>, vector<8x128xf32> -> vector<8x128xf32>
      %c0_60 = arith.constant 0 : index
      %c0_61 = arith.constant 0 : index
      %100 = vector.load %arg3[%c0_60, %c0_61] : memref<1x128xf32, #tpu.memory_space<vmem>>, vector<1x128xf32>
      %101 = vector.broadcast %100 : vector<1x128xf32> to vector<8x128xf32>
      %102 = arith.addf %99, %101 : vector<8x128xf32>
      %c0_62 = arith.constant 0 : index
      %c0_63 = arith.constant 0 : index
      %103 = vector.load %arg19[%c0_62, %c0_63] : memref<8x128xf32, #tpu.memory_space<vmem>>, vector<8x128xf32>
      tpu.vector_store %arg19[%c0_62, %c0_63], %102 {strides = array<i32>} : memref<8x128xf32, #tpu.memory_space<vmem>>, vector<8x128xf32>,
    } else {
    }
    %c0 = arith.constant 0 : index
    %c0_1 = arith.constant 0 : index
    %3 = vector.load %arg19[%c0, %c0_1] : memref<8x128xf32, #tpu.memory_space<vmem>>, vector<8x128xf32>
    %4 = arith.truncf %3 : vector<8x128xf32> to vector<8x128xbf16>
    %c0_2 = arith.constant 0 : index
    %c0_3 = arith.constant 0 : index
    %c0_4 = arith.constant 0 : index
    %5 = vector.load %arg4[%c0_2, %c0_3, %c0_4] : memref<1x128x128xbf16, #tpu.memory_space<vmem>>, vector<1x128x128xbf16>
    %6 = vector.shape_cast %5 : vector<1x128x128xbf16> to vector<128x128xbf16>
    %cst = arith.constant dense<0.000000e+00> : vector<8x128xf32>
    %7 = tpu.matmul %4, %6, %cst {dimension_numbers = #tpu.dot_dimension_numbers<[1], [0], [0], [1], [0, 0, 1, 1], [], []>} : vector<8x128xbf16>, vector<128x128xbf16>, vector<8x128xf32> -> vector<8x128xf32>
    %c0_5 = arith.constant 0 : index
    %c0_6 = arith.constant 0 : index
    %c0_7 = arith.constant 0 : index
    %8 = vector.load %arg5[%c0_5, %c0_6, %c0_7] : memref<1x1x128xf32, #tpu.memory_space<vmem>>, vector<1x1x128xf32>
    %9 = vector.shape_cast %8 : vector<1x1x128xf32> to vector<1x128xf32>
    %10 = vector.broadcast %9 : vector<1x128xf32> to vector<8x128xf32>
    %11 = arith.addf %7, %10 : vector<8x128xf32>
    %12 = arith.truncf %11 : vector<8x128xf32> to vector<8x128xbf16>
    %c0_8 = arith.constant 0 : index
    %c0_9 = arith.constant 0 : index
    %c0_10 = arith.constant 0 : index
    %13 = vector.load %arg6[%c0_8, %c0_9, %c0_10] : memref<1x128x128xbf16, #tpu.memory_space<vmem>>, vector<1x128x128xbf16>
    %14 = vector.shape_cast %13 : vector<1x128x128xbf16> to vector<128x128xbf16>
    %cst_11 = arith.constant dense<0.000000e+00> : vector<8x128xf32>
    %15 = tpu.matmul %12, %14, %cst_11 {dimension_numbers = #tpu.dot_dimension_numbers<[1], [0], [0], [1], [0, 0, 1, 1], [], []>} : vector<8x128xbf16>, vector<128x128xbf16>, vector<8x128xf32> -> vector<8x128xf32>
    %c0_12 = arith.constant 0 : index
    %c0_13 = arith.constant 0 : index
    %c0_14 = arith.constant 0 : index
    %16 = vector.load %arg7[%c0_12, %c0_13, %c0_14] : memref<1x1x128xf32, #tpu.memory_space<vmem>>, vector<1x1x128xf32>
    %17 = vector.shape_cast %16 : vector<1x1x128xf32> to vector<1x128xf32>
    %18 = vector.broadcast %17 : vector<1x128xf32> to vector<8x128xf32>
    %19 = arith.addf %15, %18 : vector<8x128xf32>
    %20 = arith.addf %3, %19 : vector<8x128xf32>
    %cst_15 = arith.constant dense<0.000000e+00> : vector<8xf32>
    %21 = vector.multi_reduction <add>, %20, %cst_15 [1] : vector<8x128xf32> to vector<8xf32>
    %22 = vector.shape_cast %21 : vector<8xf32> to vector<8x1xf32>
    %cst_16 = arith.constant 1.280000e+02 : f32
    %23 = vector.broadcast %cst_16 : f32 to vector<8x1xf32>
    %24 = arith.divf %22, %23 : vector<8x1xf32>
    %25 = vector.broadcast %24 : vector<8x1xf32> to vector<8x128xf32>
    %26 = arith.subf %20, %25 : vector<8x128xf32>
    %27 = arith.mulf %26, %26 : vector<8x128xf32>
    %cst_17 = arith.constant dense<0.000000e+00> : vector<8xf32>
    %28 = vector.multi_reduction <add>, %27, %cst_17 [1] : vector<8x128xf32> to vector<8xf32>
    %29 = vector.shape_cast %28 : vector<8xf32> to vector<8x1xf32>
    %cst_18 = arith.constant 1.280000e+02 : f32
    %30 = vector.broadcast %cst_18 : f32 to vector<8x1xf32>
    %31 = arith.divf %29, %30 : vector<8x1xf32>
    %32 = vector.broadcast %24 : vector<8x1xf32> to vector<8x128xf32>
    %33 = arith.subf %20, %32 : vector<8x128xf32>
    %cst_19 = arith.constant 9.99999974E-6 : f32
    %34 = vector.broadcast %cst_19 : f32 to vector<8x1xf32>
    %35 = arith.addf %31, %34 : vector<8x1xf32>
    %36 = math.rsqrt %35 : vector<8x1xf32>
    %37 = vector.broadcast %36 : vector<8x1xf32> to vector<8x128xf32>
    %38 = arith.mulf %33, %37 : vector<8x128xf32>
    %c0_20 = arith.constant 0 : index
    %c0_21 = arith.constant 0 : index
    %c0_22 = arith.constant 0 : index
    %39 = vector.load %arg8[%c0_20, %c0_21, %c0_22] : memref<1x1x128xf32, #tpu.memory_space<vmem>>, vector<1x1x128xf32>
    %40 = vector.shape_cast %39 : vector<1x1x128xf32> to vector<1x128xf32>
    %41 = vector.broadcast %40 : vector<1x128xf32> to vector<8x128xf32>
    %42 = arith.mulf %38, %41 : vector<8x128xf32>
    %c0_23 = arith.constant 0 : index
    %c0_24 = arith.constant 0 : index
    %c0_25 = arith.constant 0 : index
    %43 = vector.load %arg9[%c0_23, %c0_24, %c0_25] : memref<1x1x128xf32, #tpu.memory_space<vmem>>, vector<1x1x128xf32>
    %44 = vector.shape_cast %43 : vector<1x1x128xf32> to vector<1x128xf32>
    %45 = vector.broadcast %44 : vector<1x128xf32> to vector<8x128xf32>
    %46 = arith.addf %42, %45 : vector<8x128xf32>
    %47 = arith.truncf %46 : vector<8x128xf32> to vector<8x128xbf16>
    %c0_26 = arith.constant 0 : index
    %c0_27 = arith.constant 0 : index
    %c0_28 = arith.constant 0 : index
    %48 = vector.load %arg10[%c0_26, %c0_27, %c0_28] : memref<1x128x2048xbf16, #tpu.memory_space<vmem>>, vector<1x128x2048xbf16>
    %49 = vector.shape_cast %48 : vector<1x128x2048xbf16> to vector<128x2048xbf16>
    %cst_29 = arith.constant dense<0.000000e+00> : vector<8x2048xf32>
    %50 = tpu.matmul %47, %49, %cst_29 {dimension_numbers = #tpu.dot_dimension_numbers<[1], [0], [0], [1], [0, 0, 1, 1], [], []>} : vector<8x128xbf16>, vector<128x2048xbf16>, vector<8x2048xf32> -> vector<8x2048xf32>
    %c0_30 = arith.constant 0 : index
    %c0_31 = arith.constant 0 : index
    %c0_32 = arith.constant 0 : index
    %51 = vector.load %arg11[%c0_30, %c0_31, %c0_32] : memref<1x1x2048xf32, #tpu.memory_space<vmem>>, vector<1x1x2048xf32>
    %52 = vector.shape_cast %51 : vector<1x1x2048xf32> to vector<1x2048xf32>
    %53 = vector.broadcast %52 : vector<1x2048xf32> to vector<8x2048xf32>
    %54 = arith.addf %50, %53 : vector<8x2048xf32>
    %cst_33 = arith.constant 0.000000e+00 : f32
    %55 = vector.broadcast %cst_33 : f32 to vector<8x2048xf32>
    %56 = arith.maximumf %54, %55 : vector<8x2048xf32>
    %57 = arith.truncf %56 : vector<8x2048xf32> to vector<8x2048xbf16>
    %c0_34 = arith.constant 0 : index
    %c0_35 = arith.constant 0 : index
    %c0_36 = arith.constant 0 : index
    %58 = vector.load %arg12[%c0_34, %c0_35, %c0_36] : memref<1x2048x128xbf16, #tpu.memory_space<vmem>>, vector<1x2048x128xbf16>
    %59 = vector.shape_cast %58 : vector<1x2048x128xbf16> to vector<2048x128xbf16>
    %cst_37 = arith.constant dense<0.000000e+00> : vector<8x128xf32>
    %60 = tpu.matmul %57, %59, %cst_37 {dimension_numbers = #tpu.dot_dimension_numbers<[1], [0], [0], [1], [0, 0, 1, 1], [], []>} : vector<8x2048xbf16>, vector<2048x128xbf16>, vector<8x128xf32> -> vector<8x128xf32>
    %c0_38 = arith.constant 0 : index
    %c0_39 = arith.constant 0 : index
    %c0_40 = arith.constant 0 : index
    %61 = vector.load %arg13[%c0_38, %c0_39, %c0_40] : memref<1x1x128xf32, #tpu.memory_space<vmem>>, vector<1x1x128xf32>
    %62 = vector.shape_cast %61 : vector<1x1x128xf32> to vector<1x128xf32>
    %63 = vector.broadcast %62 : vector<1x128xf32> to vector<8x128xf32>
    %64 = arith.addf %60, %63 : vector<8x128xf32>
    %65 = arith.addf %46, %64 : vector<8x128xf32>
    %cst_41 = arith.constant dense<0.000000e+00> : vector<8xf32>
    %66 = vector.multi_reduction <add>, %65, %cst_41 [1] : vector<8x128xf32> to vector<8xf32>
    %67 = vector.shape_cast %66 : vector<8xf32> to vector<8x1xf32>
    %cst_42 = arith.constant 1.280000e+02 : f32
    %68 = vector.broadcast %cst_42 : f32 to vector<8x1xf32>
    %69 = arith.divf %67, %68 : vector<8x1xf32>
    %70 = vector.broadcast %69 : vector<8x1xf32> to vector<8x128xf32>
    %71 = arith.subf %65, %70 : vector<8x128xf32>
    %72 = arith.mulf %71, %71 : vector<8x128xf32>
    %cst_43 = arith.constant dense<0.000000e+00> : vector<8xf32>
    %73 = vector.multi_reduction <add>, %72, %cst_43 [1] : vector<8x128xf32> to vector<8xf32>
    %74 = vector.shape_cast %73 : vector<8xf32> to vector<8x1xf32>
    %cst_44 = arith.constant 1.280000e+02 : f32
    %75 = vector.broadcast %cst_44 : f32 to vector<8x1xf32>
    %76 = arith.divf %74, %75 : vector<8x1xf32>
    %77 = vector.broadcast %69 : vector<8x1xf32> to vector<8x128xf32>
    %78 = arith.subf %65, %77 : vector<8x128xf32>
    %cst_45 = arith.constant 9.99999974E-6 : f32
    %79 = vector.broadcast %cst_45 : f32 to vector<8x1xf32>
    %80 = arith.addf %76, %79 : vector<8x1xf32>
    %81 = math.rsqrt %80 : vector<8x1xf32>
    %82 = vector.broadcast %81 : vector<8x1xf32> to vector<8x128xf32>
    %83 = arith.mulf %78, %82 : vector<8x128xf32>
    %c0_46 = arith.constant 0 : index
    %c0_47 = arith.constant 0 : index
    %c0_48 = arith.constant 0 : index
    %84 = vector.load %arg14[%c0_46, %c0_47, %c0_48] : memref<1x1x128xf32, #tpu.memory_space<vmem>>, vector<1x1x128xf32>
    %85 = vector.shape_cast %84 : vector<1x1x128xf32> to vector<1x128xf32>
    %86 = vector.broadcast %85 : vector<1x128xf32> to vector<8x128xf32>
    %87 = arith.mulf %83, %86 : vector<8x128xf32>
    %c0_49 = arith.constant 0 : index
    %c0_50 = arith.constant 0 : index
    %c0_51 = arith.constant 0 : index
    %88 = vector.load %arg15[%c0_49, %c0_50, %c0_51] : memref<1x1x128xf32, #tpu.memory_space<vmem>>, vector<1x1x128xf32>
    %89 = vector.shape_cast %88 : vector<1x1x128xf32> to vector<1x128xf32>
    %90 = vector.broadcast %89 : vector<1x128xf32> to vector<8x128xf32>
    %91 = arith.addf %87, %90 : vector<8x128xf32>
    %c0_52 = arith.constant 0 : index
    %c0_53 = arith.constant 0 : index
    %92 = vector.load %arg19[%c0_52, %c0_53] : memref<8x128xf32, #tpu.memory_space<vmem>>, vector<8x128xf32>
    tpu.vector_store %arg19[%c0_52, %c0_53], %91 {strides = array<i32>} : memref<8x128xf32, #tpu.memory_space<vmem>>, vector<8x128xf32>,
    %c5_i32 = arith.constant 5 : i32
    %93 = arith.cmpi eq, %arg0, %c5_i32 : i32
    %94 = arith.extui %93 : i1 to i32
    %c0_i32_54 = arith.constant 0 : i32
    %95 = arith.cmpi ne, %94, %c0_i32_54 : i32
    scf.if %95 {
      %96 = arith.truncf %91 : vector<8x128xf32> to vector<8x128xbf16>
      %c0_55 = arith.constant 0 : index
      %c0_56 = arith.constant 0 : index
      %97 = vector.load %arg16[%c0_55, %c0_56] : memref<128x128xbf16, #tpu.memory_space<vmem>>, vector<128x128xbf16>
      %cst_57 = arith.constant dense<0.000000e+00> : vector<8x128xf32>
      %98 = tpu.matmul %96, %97, %cst_57 {dimension_numbers = #tpu.dot_dimension_numbers<[1], [0], [0], [1], [0, 0, 1, 1], [], []>} : vector<8x128xbf16>, vector<128x128xbf16>, vector<8x128xf32> -> vector<8x128xf32>
      %c0_58 = arith.constant 0 : index
      %c0_59 = arith.constant 0 : index
      %99 = vector.load %arg17[%c0_58, %c0_59] : memref<1x128xf32, #tpu.memory_space<vmem>>, vector<1x128xf32>
      %100 = vector.broadcast %99 : vector<1x128xf32> to vector<8x128xf32>
      %101 = arith.addf %98, %100 : vector<8x128xf32>
      %c0_60 = arith.constant 0 : index
      %c0_61 = arith.constant 0 : index
      %102 = vector.load %arg18[%c0_60, %c0_61] : memref<8x128xf32, #tpu.memory_space<vmem>>, vector<8x128xf32>
      tpu.vector_store %arg18[%c0_60, %c0_61], %101 {strides = array<i32>} : memref<8x128xf32, #tpu.memory_space<vmem>>, vector<8x128xf32>,
    } else {
    }
    return
  }
  func.func @transform_0(%arg0: i32) -> (i32, i32) {
    %c0_i32 = arith.constant 0 : i32
    %c0_i32_0 = arith.constant 0 : i32
    %c0_i32_1 = arith.constant 0 : i32
    return %c0_i32, %c0_i32_0 : i32, i32
  }
  func.func @transform_1(%arg0: i32) -> (i32, i32) {
    %c0_i32 = arith.constant 0 : i32
    %c0_i32_0 = arith.constant 0 : i32
    %c0_i32_1 = arith.constant 0 : i32
    return %c0_i32, %c0_i32_0 : i32, i32
  }
  func.func @transform_2(%arg0: i32) -> (i32, i32) {
    %c0_i32 = arith.constant 0 : i32
    %c0_i32_0 = arith.constant 0 : i32
    %c0_i32_1 = arith.constant 0 : i32
    return %c0_i32, %c0_i32_0 : i32, i32
  }
  func.func @transform_3(%arg0: i32) -> (i32, i32, i32) {
    %c0_i32 = arith.constant 0 : i32
    %c0_i32_0 = arith.constant 0 : i32
    %c0_i32_1 = arith.constant 0 : i32
    return %arg0, %c0_i32, %c0_i32_0 : i32, i32, i32
  }
  func.func @transform_4(%arg0: i32) -> (i32, i32, i32) {
    %c0_i32 = arith.constant 0 : i32
    %c0_i32_0 = arith.constant 0 : i32
    %c0_i32_1 = arith.constant 0 : i32
    return %arg0, %c0_i32, %c0_i32_0 : i32, i32, i32
  }
  func.func @transform_5(%arg0: i32) -> (i32, i32, i32) {
    %c0_i32 = arith.constant 0 : i32
    %c0_i32_0 = arith.constant 0 : i32
    %c0_i32_1 = arith.constant 0 : i32
    return %arg0, %c0_i32, %c0_i32_0 : i32, i32, i32
  }
  func.func @transform_6(%arg0: i32) -> (i32, i32, i32) {
    %c0_i32 = arith.constant 0 : i32
    %c0_i32_0 = arith.constant 0 : i32
    %c0_i32_1 = arith.constant 0 : i32
    return %arg0, %c0_i32, %c0_i32_0 : i32, i32, i32
  }
  func.func @transform_7(%arg0: i32) -> (i32, i32, i32) {
    %c0_i32 = arith.constant 0 : i32
    %c0_i32_0 = arith.constant 0 : i32
    %c0_i32_1 = arith.constant 0 : i32
    return %arg0, %c0_i32, %c0_i32_0 : i32, i32, i32
  }
  func.func @transform_8(%arg0: i32) -> (i32, i32, i32) {
    %c0_i32 = arith.constant 0 : i32
    %c0_i32_0 = arith.constant 0 : i32
    %c0_i32_1 = arith.constant 0 : i32
    return %arg0, %c0_i32, %c0_i32_0 : i32, i32, i32
  }
  func.func @transform_9(%arg0: i32) -> (i32, i32, i32) {
    %c0_i32 = arith.constant 0 : i32
    %c0_i32_0 = arith.constant 0 : i32
    %c0_i32_1 = arith.constant 0 : i32
    return %arg0, %c0_i32, %c0_i32_0 : i32, i32, i32
  }
  func.func @transform_10(%arg0: i32) -> (i32, i32, i32) {
    %c0_i32 = arith.constant 0 : i32
    %c0_i32_0 = arith.constant 0 : i32
    %c0_i32_1 = arith.constant 0 : i32
    return %arg0, %c0_i32, %c0_i32_0 : i32, i32, i32
  }
  func.func @transform_11(%arg0: i32) -> (i32, i32, i32) {
    %c0_i32 = arith.constant 0 : i32
    %c0_i32_0 = arith.constant 0 : i32
    %c0_i32_1 = arith.constant 0 : i32
    return %arg0, %c0_i32, %c0_i32_0 : i32, i32, i32
  }
  func.func @transform_12(%arg0: i32) -> (i32, i32, i32) {
    %c0_i32 = arith.constant 0 : i32
    %c0_i32_0 = arith.constant 0 : i32
    %c0_i32_1 = arith.constant 0 : i32
    return %arg0, %c0_i32, %c0_i32_0 : i32, i32, i32
  }
  func.func @transform_13(%arg0: i32) -> (i32, i32, i32) {
    %c0_i32 = arith.constant 0 : i32
    %c0_i32_0 = arith.constant 0 : i32
    %c0_i32_1 = arith.constant 0 : i32
    return %arg0, %c0_i32, %c0_i32_0 : i32, i32, i32
  }
  func.func @transform_14(%arg0: i32) -> (i32, i32, i32) {
    %c0_i32 = arith.constant 0 : i32
    %c0_i32_0 = arith.constant 0 : i32
    %c0_i32_1 = arith.constant 0 : i32
    return %arg0, %c0_i32, %c0_i32_0 : i32, i32, i32
  }
  func.func @transform_15(%arg0: i32) -> (i32, i32) {
    %c0_i32 = arith.constant 0 : i32
    %c0_i32_0 = arith.constant 0 : i32
    %c0_i32_1 = arith.constant 0 : i32
    return %c0_i32, %c0_i32_0 : i32, i32
  }
  func.func @transform_16(%arg0: i32) -> (i32, i32) {
    %c0_i32 = arith.constant 0 : i32
    %c0_i32_0 = arith.constant 0 : i32
    %c0_i32_1 = arith.constant 0 : i32
    return %c0_i32, %c0_i32_0 : i32, i32
  }
  func.func @transform_17(%arg0: i32) -> (i32, i32) {
    %c0_i32 = arith.constant 0 : i32
    %c0_i32_0 = arith.constant 0 : i32
    %c0_i32_1 = arith.constant 0 : i32
    return %c0_i32, %c0_i32_0 : i32, i32
  }
}

</mosaic_0001>

<bundles_post_ra>
// kernel: discriminator_forward.5
= control target key start
LH: loop header
LB: loop body
LE: loop exit
PB: predicated region body
PF: predicated region fallthrough
CT: control target
= control target key end

     0   :  { %8 = vsyncpa [#allocation3], 0  ;;  %s494_s0 = inlined_call_operand.vmem [shape: f32[128,36], index: 0, kind: input, shape index: {}]   ;;  %s495_s1 = inlined_call_operand.hbm [shape: bf16[36,64], index: 1, kind: input, shape index: {}]   ;;  %s496_s2 = inlined_call_operand.hbm [shape: f32[1,64], index: 2, kind: input, shape index: {}]   ;;  %s497_s3 = inlined_call_operand.vmem [shape: f32[128,64], index: 3, kind: output, shape index: {}]  }
   0x1   :  { %s16_s14 = sshll.u32 %s495_s1, 4  ;;  %s17_s14 = int_to_ptr.hbm [resolvable:$true] %s16_s14 }
   0x2   :  { %9 = vsyncpa [#allocation5], 0  ;;  %s326_s15 = smov [#allocation2]   ;;  %s30_s19 = sshll.u32 %s496_s2, 4  ;;  %s31_s19 = int_to_ptr.hbm [resolvable:$true] %s30_s19 }
   0x3   :  { %s18_s16 = sshll.u32 %s326_s15, 4  ;;  %s327_s20 = smov 64   ;;  %s19_s16 = int_to_ptr.vmem [resolvable:$true] %s18_s16 }
   0x4   :  { %s328_s21 = smov 4   ;;  %s329_s22 = smov [#allocation4]  }
   0x5   :  { %24 = dma.hbm_to_vmem [thread:$0]  %s17_s14, 320, %s19_s16, [#allocation3], %s327_s20, %s327_s20, %s328_s21  }
   0x6   :  { %s32_s23 = sshll.u32 %s329_s22, 4  ;;  %s33_s23 = int_to_ptr.vmem [resolvable:$true] %s32_s23 }
   0x7   :  { %35 = dma.hbm_to_vmem [thread:$0]  %s31_s19, 16, %s33_s23, [#allocation5]  }
   0x8   :  { %322 = dma.done.wait [#allocation3], 320  }
   0x9   :  { %323 = vsyncadd [#allocation3], 4294966976 }
   0xa   :  { %324 = dma.done.wait [#allocation5], 16  }
   0xb   :  { %325 = vsyncadd [#allocation5], 4294967280  ;;  %v73_v0 = vld [vmem:[#allocation2 + $0x10] sm:$0x3]  ;;  %vm118_vm0 = vcmask 1041408   ;;  %v259_v4 = vld [vmem:[#allocation2 + $0x8] sm:$0xff] }
   0xc   :  { %v87_v1 = vunpack.c.l.b16 %v73_v0  ;;  %v258_v5 = vld [vmem:[#allocation2] sm:$0xff]  ;;  %v46_v7 = vld [vmem:[%s494_s0 + $0x8] sm:$0xff]  ;;  %vm93_vm1 = vcmask 293888   ;;  %v47_v18 = vld [vmem:[%s494_s0 + $0x10] sm:$0xff]  ;;  %vm219_vm2 = vcmask 523264  }
   0xd   :  { %v45_v6 = vld [vmem:[%s494_s0] sm:$0xff]  ;;  %v50_v9 = vld [vmem:[%s494_s0 + $0x28] sm:$0xff]  ;;  %v48_v19 = vld [vmem:[%s494_s0 + $0x18] sm:$0xff] }
   0xe   :  { %v90_v2 = vpack.c.b16 %v87_v1, %v87_v1  ;;  %v49_v8 = vld [vmem:[%s494_s0 + $0x20] sm:$0xff]  ;;  %v54_v11 = vld [vmem:[%s494_s0 + $0x48] sm:$0xff]  ;;  %v61_v14 = vpack.c.bf16 %v46_v7, %v45_v6  ;;  %v51_v20 = vld [vmem:[%s494_s0 + $0x30] sm:$0xff]  ;;  %v62_v26 = vpack.c.bf16 %v48_v19, %v47_v18 }
   0xf   :  { %v53_v10 = vld [vmem:[%s494_s0 + $0x40] sm:$0xff]  ;;  %v58_v13 = vld [vmem:[%s494_s0 + $0x68] sm:$0xff]  ;;  %v63_v15 = vpack.c.bf16 %v50_v9, %v49_v8  ;;  %v52_v21 = vld [vmem:[%s494_s0 + $0x38] sm:$0xff] }
  0x10   :  { %v120_v3 = vsel %vm118_vm0, %v90_v2, 0  ;;  %v57_v12 = vld [vmem:[%s494_s0 + $0x60] sm:$0xff]  ;;  %v65_v16 = vpack.c.bf16 %v54_v11, %v53_v10  ;;  %v55_v22 = vld [vmem:[%s494_s0 + $0x50] sm:$0xff]  ;;  %v56_v23 = vld [vmem:[%s494_s0 + $0x58] sm:$0xff]  ;;  %v64_v27 = vpack.c.bf16 %v52_v21, %v51_v20 }
  0x11   :  { %127 = vmatpush.bf16.msra.mxu0 %v120_v3  ;;  %260 = vmatpush.bf16.msra.mxu1 %v120_v3  ;;  %v67_v17 = vpack.c.bf16 %v58_v13, %v57_v12  ;;  %v59_v24 = vld [vmem:[%s494_s0 + $0x70] sm:$0xff]  ;;  %v60_v25 = vld [vmem:[%s494_s0 + $0x78] sm:$0xff]  ;;  %v66_v28 = vpack.c.bf16 %v56_v23, %v55_v22 }
  0x12   :  { %261 = vmatpush.bf16.msra.mxu2 %v120_v3  ;;  %262 = vmatpush.bf16.msra.mxu3 %v120_v3  ;;  %v68_v29 = vpack.c.bf16 %v60_v25, %v59_v24  ;;  %v412_v30 = vld [vmem:[#allocation4] ss:$0 sm:$0xff] }
  0x15   :  { %128 = vmatpush.bf16.msra.mxu0 %v259_v4  ;;  %263 = vmatpush.bf16.msra.mxu1 %v259_v4 }
  0x16   :  { %264 = vmatpush.bf16.msra.mxu2 %v259_v4  ;;  %265 = vmatpush.bf16.msra.mxu3 %v259_v4 }
  0x19   :  { %129 = vmatpush.bf16.msra.mxu0 %v258_v5  ;;  %266 = vmatpush.bf16.msra.mxu1 %v258_v5 }
  0x1a   :  { %267 = vmatpush.bf16.msra.mxu2 %v258_v5  ;;  %268 = vmatpush.bf16.msra.mxu3 %v258_v5 }
  0x1c   :  { %250 = vmatmul.msk.bf16.vlgmr.msra.gmra.mxu0 %vm93_vm1, %v61_v14  ;;  %252 = vmatmul.msk.bf16.vlgmr.msra.gmra.mxu1 %vm93_vm1, %v63_v15 }
  0x1d   :  { %254 = vmatmul.msk.bf16.vlgmr.msra.gmra.mxu2 %vm93_vm1, %v65_v16  ;;  %256 = vmatmul.msk.bf16.vlgmr.msra.gmra.mxu3 %vm93_vm1, %v67_v17 }
  0x2c   :  { %251 = vmatmul.msk.bf16.gmra.mxu0 %vm93_vm1, %v62_v26  ;;  %253 = vmatmul.msk.bf16.gmra.mxu1 %vm93_vm1, %v64_v27 }
  0x2d   :  { %255 = vmatmul.msk.bf16.gmra.mxu2 %vm93_vm1, %v66_v28  ;;  %257 = vmatmul.msk.bf16.gmra.mxu3 %vm93_vm1, %v68_v29 }
  0x99   :  { %v131_v31 = vpop.f32.mrf.mxu0  ;;  %v141_v32 = vpop.f32.mrf.mxu1 }
  0x9a   :  { %v132_v33 = vadd.f32 %v412_v30, %v131_v31  ;;  %v142_v34 = vadd.f32 %v412_v30, %v141_v32 }
  0x9c   :  { %vm171_vm3 = vcmp.ge.f32.partialorder %v132_v33, 0.0  ;;  %v187_v35 = vmul.f32 0.2, %v132_v33  ;;  %vm175_vm4 = vcmp.ge.f32.partialorder %v142_v34, 0.0  ;;  %v191_v36 = vmul.f32 0.2, %v142_v34 }
  0x9e   :  { %v203_v37 = vsel %vm171_vm3, %v132_v33, %v187_v35  ;;  %v207_v38 = vsel %vm175_vm4, %v142_v34, %v191_v36 }
  0x9f   :  { %220 = vst.msk [vmem:[%s497_s3] sm:$0xff] %vm219_vm2, %v203_v37 }
  0xa0   :  { %224 = vst.msk [vmem:[%s497_s3 + $0x20] sm:$0xff] %vm219_vm2, %v207_v38  ;;  %v151_v39 = vpop.f32.mrf.mxu2  ;;  %v161_v40 = vpop.f32.mrf.mxu3 }
  0xa1   :  { %v152_v41 = vadd.f32 %v412_v30, %v151_v39  ;;  %v162_v42 = vadd.f32 %v412_v30, %v161_v40  ;;  %v133_v43 = vpop.f32.mrf.mxu0  ;;  %v143_v44 = vpop.f32.mrf.mxu1 }
  0xa2   :  { %v134_v45 = vadd.f32 %v412_v30, %v133_v43  ;;  %v144_v46 = vadd.f32 %v412_v30, %v143_v44 }
  0xa3   :  { %vm179_vm5 = vcmp.ge.f32.partialorder %v152_v41, 0.0  ;;  %v195_v47 = vmul.f32 0.2, %v152_v41  ;;  %vm183_vm6 = vcmp.ge.f32.partialorder %v162_v42, 0.0  ;;  %v199_v48 = vmul.f32 0.2, %v162_v42 }
  0xa4   :  { %vm172_vm7 = vcmp.ge.f32.partialorder %v134_v45, 0.0  ;;  %v188_v49 = vmul.f32 0.2, %v134_v45  ;;  %vm176_vm8 = vcmp.ge.f32.partialorder %v144_v46, 0.0  ;;  %v192_v50 = vmul.f32 0.2, %v144_v46 }
  0xa5   :  { %v211_v51 = vsel %vm179_vm5, %v152_v41, %v195_v47  ;;  %v215_v52 = vsel %vm183_vm6, %v162_v42, %v199_v48 }
  0xa6   :  { %228 = vst.msk [vmem:[%s497_s3 + $0x40] sm:$0xff] %vm219_vm2, %v211_v51  ;;  %v204_v53 = vsel %vm172_vm7, %v134_v45, %v188_v49  ;;  %v208_v54 = vsel %vm176_vm8, %v144_v46, %v192_v50 }
  0xa7   :  { %232 = vst.msk [vmem:[%s497_s3 + $0x60] sm:$0xff] %vm219_vm2, %v215_v52 }
  0xa8   :  { %221 = vst.msk [vmem:[%s497_s3 + $0x8] sm:$0xff] %vm219_vm2, %v204_v53  ;;  %v153_v55 = vpop.f32.mrf.mxu2  ;;  %v163_v56 = vpop.f32.mrf.mxu3 }
  0xa9   :  { %225 = vst.msk [vmem:[%s497_s3 + $0x28] sm:$0xff] %vm219_vm2, %v208_v54  ;;  %v154_v57 = vadd.f32 %v412_v30, %v153_v55  ;;  %v164_v58 = vadd.f32 %v412_v30, %v163_v56  ;;  %v136_v59 = vpop.f32.mrf.mxu0  ;;  %v146_v60 = vpop.f32.mrf.mxu1 }
  0xaa   :  { %v137_v61 = vadd.f32 %v412_v30, %v136_v59  ;;  %v147_v62 = vadd.f32 %v412_v30, %v146_v60 }
  0xab   :  { %vm180_vm9 = vcmp.ge.f32.partialorder %v154_v57, 0.0  ;;  %v196_v63 = vmul.f32 0.2, %v154_v57  ;;  %vm184_vm10 = vcmp.ge.f32.partialorder %v164_v58, 0.0  ;;  %v200_v0 = vmul.f32 0.2, %v164_v58 }
  0xac   :  { %vm173_vm11 = vcmp.ge.f32.partialorder %v137_v61, 0.0  ;;  %v189_v1 = vmul.f32 0.2, %v137_v61  ;;  %vm177_vm12 = vcmp.ge.f32.partialorder %v147_v62, 0.0  ;;  %v193_v2 = vmul.f32 0.2, %v147_v62 }
  0xad   :  { %v212_v3 = vsel %vm180_vm9, %v154_v57, %v196_v63  ;;  %v216_v4 = vsel %vm184_vm10, %v164_v58, %v200_v0 }
  0xae   :  { %229 = vst.msk [vmem:[%s497_s3 + $0x48] sm:$0xff] %vm219_vm2, %v212_v3  ;;  %v205_v5 = vsel %vm173_vm11, %v137_v61, %v189_v1  ;;  %v209_v6 = vsel %vm177_vm12, %v147_v62, %v193_v2 }
  0xaf   :  { %233 = vst.msk [vmem:[%s497_s3 + $0x68] sm:$0xff] %vm219_vm2, %v216_v4 }
  0xb0   :  { %222 = vst.msk [vmem:[%s497_s3 + $0x10] sm:$0xff] %vm219_vm2, %v205_v5  ;;  %v156_v7 = vpop.f32.mrf.mxu2  ;;  %v166_v8 = vpop.f32.mrf.mxu3 }
  0xb1   :  { %226 = vst.msk [vmem:[%s497_s3 + $0x30] sm:$0xff] %vm219_vm2, %v209_v6  ;;  %v157_v9 = vadd.f32 %v412_v30, %v156_v7  ;;  %v167_v10 = vadd.f32 %v412_v30, %v166_v8  ;;  %v138_v11 = vpop.f32.mrf.mxu0  ;;  %v148_v12 = vpop.f32.mrf.mxu1 }
  0xb2   :  { %v139_v13 = vadd.f32 %v412_v30, %v138_v11  ;;  %v149_v14 = vadd.f32 %v412_v30, %v148_v12 }
  0xb3   :  { %vm181_vm13 = vcmp.ge.f32.partialorder %v157_v9, 0.0  ;;  %v197_v15 = vmul.f32 0.2, %v157_v9  ;;  %vm185_vm14 = vcmp.ge.f32.partialorder %v167_v10, 0.0  ;;  %v201_v16 = vmul.f32 0.2, %v167_v10 }
  0xb4   :  { %vm174_vm15 = vcmp.ge.f32.partialorder %v139_v13, 0.0  ;;  %v190_v17 = vmul.f32 0.2, %v139_v13  ;;  %vm178_vm0 = vcmp.ge.f32.partialorder %v149_v14, 0.0  ;;  %v194_v18 = vmul.f32 0.2, %v149_v14 }
  0xb5   :  { %v213_v19 = vsel %vm181_vm13, %v157_v9, %v197_v15  ;;  %v217_v20 = vsel %vm185_vm14, %v167_v10, %v201_v16 }
  0xb6   :  { %230 = vst.msk [vmem:[%s497_s3 + $0x50] sm:$0xff] %vm219_vm2, %v213_v19  ;;  %v206_v21 = vsel %vm174_vm15, %v139_v13, %v190_v17  ;;  %v210_v22 = vsel %vm178_vm0, %v149_v14, %v194_v18 }
  0xb7   :  { %234 = vst.msk [vmem:[%s497_s3 + $0x70] sm:$0xff] %vm219_vm2, %v217_v20 }
  0xb8   :  { %223 = vst.msk [vmem:[%s497_s3 + $0x18] sm:$0xff] %vm219_vm2, %v206_v21  ;;  %v158_v23 = vpop.f32.mrf.mxu2  ;;  %v168_v24 = vpop.f32.mrf.mxu3 }
  0xb9   :  { %227 = vst.msk [vmem:[%s497_s3 + $0x38] sm:$0xff] %vm219_vm2, %v210_v22  ;;  %v159_v25 = vadd.f32 %v412_v30, %v158_v23  ;;  %v169_v26 = vadd.f32 %v412_v30, %v168_v24 }
  0xbb   :  { %vm182_vm1 = vcmp.ge.f32.partialorder %v159_v25, 0.0  ;;  %v198_v27 = vmul.f32 0.2, %v159_v25  ;;  %vm186_vm3 = vcmp.ge.f32.partialorder %v169_v26, 0.0  ;;  %v202_v28 = vmul.f32 0.2, %v169_v26 }
  0xbd   :  { %v214_v29 = vsel %vm182_vm1, %v159_v25, %v198_v27  ;;  %v218_v31 = vsel %vm186_vm3, %v169_v26, %v202_v28 }
  0xbe   :  { %231 = vst.msk [vmem:[%s497_s3 + $0x58] sm:$0xff] %vm219_vm2, %v214_v29 }
  0xbf   :  { %235 = vst.msk [vmem:[%s497_s3 + $0x78] sm:$0xff] %vm219_vm2, %v218_v31 }
  0xc0   :  { %240 = vsyncpa [#allocation3], 1 }
  0xc1   :  { %241 = vsyncpa [#allocation5], 1 }

// kernel: discriminator_forward.6
= control target key start
LH: loop header
LB: loop body
LE: loop exit
PB: predicated region body
PF: predicated region fallthrough
CT: control target
= control target key end

     0   :  { %vm343_vm0 = vcmask 523264   ;;  %s945_s1 = inlined_call_operand.vmem [shape: bf16[576,128], index: 1, kind: input, shape index: {}]   ;;  %s946_s2 = inlined_call_operand.vmem [shape: f32[1,128], index: 2, kind: input, shape index: {}]   ;;  %s947_s0 = inlined_call_operand.vmem [shape: f32[32,576], index: 0, kind: input, shape index: {}]   ;;  %s948_s3 = inlined_call_operand.vmem [shape: f32[1,128], index: 3, kind: input, shape index: {}]   ;;  %s949_s4 = inlined_call_operand.vmem [shape: f32[1,128], index: 4, kind: input, shape index: {}]   ;;  %s950_s5 = inlined_call_operand.vmem [shape: f32[32,128], index: 5, kind: output, shape index: {}]  }
   0x1   :  { %v684_v0 = vld [vmem:[%s945_s1 + $0x38] sm:$0xff]  ;;  %v683_v4 = vld [vmem:[%s945_s1 + $0x30] sm:$0xff]  ;;  %v682_v8 = vld [vmem:[%s945_s1 + $0x28] sm:$0xff] }
   0x2   :  { %v692_v1 = vld [vmem:[%s945_s1 + $0x78] sm:$0xff]  ;;  %350 = vmatpush.bf16.msra.mxu0 %v684_v0  ;;  %v691_v5 = vld [vmem:[%s945_s1 + $0x70] sm:$0xff]  ;;  %v690_v9 = vld [vmem:[%s945_s1 + $0x68] sm:$0xff] }
   0x3   :  { %v700_v2 = vld [vmem:[%s945_s1 + $0xb8] sm:$0xff]  ;;  %369 = vmatpush.bf16.msra.mxu1 %v692_v1  ;;  %v699_v6 = vld [vmem:[%s945_s1 + $0xb0] sm:$0xff]  ;;  %v698_v10 = vld [vmem:[%s945_s1 + $0xa8] sm:$0xff] }
   0x4   :  { %v708_v3 = vld [vmem:[%s945_s1 + $0xf8] sm:$0xff]  ;;  %388 = vmatpush.bf16.msra.mxu2 %v700_v2  ;;  %v707_v7 = vld [vmem:[%s945_s1 + $0xf0] sm:$0xff]  ;;  %v706_v11 = vld [vmem:[%s945_s1 + $0xe8] sm:$0xff] }
   0x5   :  { %407 = vmatpush.bf16.msra.mxu3 %v708_v3  ;;  %v681_v12 = vld [vmem:[%s945_s1 + $0x20] sm:$0xff]  ;;  %v680_v16 = vld [vmem:[%s945_s1 + $0x18] sm:$0xff]  ;;  %v679_v20 = vld [vmem:[%s945_s1 + $0x10] sm:$0xff] }
   0x6   :  { %351 = vmatpush.bf16.msra.mxu0 %v683_v4  ;;  %v689_v13 = vld [vmem:[%s945_s1 + $0x60] sm:$0xff]  ;;  %v688_v17 = vld [vmem:[%s945_s1 + $0x58] sm:$0xff]  ;;  %v687_v21 = vld [vmem:[%s945_s1 + $0x50] sm:$0xff] }
   0x7   :  { %370 = vmatpush.bf16.msra.mxu1 %v691_v5  ;;  %v697_v14 = vld [vmem:[%s945_s1 + $0xa0] sm:$0xff]  ;;  %v696_v18 = vld [vmem:[%s945_s1 + $0x98] sm:$0xff]  ;;  %v695_v22 = vld [vmem:[%s945_s1 + $0x90] sm:$0xff] }
   0x8   :  { %389 = vmatpush.bf16.msra.mxu2 %v699_v6  ;;  %v705_v15 = vld [vmem:[%s945_s1 + $0xe0] sm:$0xff]  ;;  %v704_v19 = vld [vmem:[%s945_s1 + $0xd8] sm:$0xff]  ;;  %v703_v23 = vld [vmem:[%s945_s1 + $0xd0] sm:$0xff] }
   0x9   :  { %408 = vmatpush.bf16.msra.mxu3 %v707_v7  ;;  %v678_v24 = vld [vmem:[%s945_s1 + $0x8] sm:$0xff]  ;;  %v677_v28 = vld [vmem:[%s945_s1] sm:$0xff]  ;;  %v27_v35 = vld [vmem:[%s947_s0 + $0x30] sm:$0xff] }
   0xa   :  { %352 = vmatpush.bf16.msra.mxu0 %v682_v8  ;;  %v686_v25 = vld [vmem:[%s945_s1 + $0x48] sm:$0xff]  ;;  %v685_v29 = vld [vmem:[%s945_s1 + $0x40] sm:$0xff]  ;;  %v23_v36 = vld [vmem:[%s947_s0 + $0x10] sm:$0xff] }
   0xb   :  { %371 = vmatpush.bf16.msra.mxu1 %v690_v9  ;;  %v694_v26 = vld [vmem:[%s945_s1 + $0x88] sm:$0xff]  ;;  %v693_v30 = vld [vmem:[%s945_s1 + $0x80] sm:$0xff]  ;;  %v28_v37 = vld [vmem:[%s947_s0 + $0x38] sm:$0xff] }
   0xc   :  { %390 = vmatpush.bf16.msra.mxu2 %v698_v10  ;;  %v702_v27 = vld [vmem:[%s945_s1 + $0xc8] sm:$0xff]  ;;  %v701_v31 = vld [vmem:[%s945_s1 + $0xc0] sm:$0xff]  ;;  %v24_v38 = vld [vmem:[%s947_s0 + $0x18] sm:$0xff]  ;;  %v43_v43 = vpack.c.bf16 %v28_v37, %v23_v36 }
   0xd   :  { %409 = vmatpush.bf16.msra.mxu3 %v706_v11  ;;  %v21_v32 = vld [vmem:[%s947_s0] sm:$0xff]  ;;  %v26_v33 = vld [vmem:[%s947_s0 + $0x28] sm:$0xff]  ;;  %v712_v40 = vld [vmem:[%s945_s1 + $0x118] sm:$0xff] }
   0xe   :  { %353 = vmatpush.bf16.msra.mxu0 %v681_v12  ;;  %v22_v34 = vld [vmem:[%s947_s0 + $0x8] sm:$0xff]  ;;  %v29_v39 = vld [vmem:[%s947_s0 + $0x40] sm:$0xff]  ;;  %v41_v41 = vpack.c.bf16 %v26_v33, %v21_v32  ;;  %v711_v45 = vld [vmem:[%s945_s1 + $0x110] sm:$0xff] }
   0xf   :  { %372 = vmatpush.bf16.msra.mxu1 %v689_v13  ;;  %v42_v42 = vpack.c.bf16 %v27_v35, %v22_v34  ;;  %v44_v44 = vpack.c.bf16 %v29_v39, %v24_v38  ;;  %v710_v46 = vld [vmem:[%s945_s1 + $0x108] sm:$0xff]  ;;  %v709_v47 = vld [vmem:[%s945_s1 + $0x100] sm:$0xff]  ;;  %v31_v48 = vld [vmem:[%s947_s0 + $0x50] sm:$0xff] }
  0x10   :  { %391 = vmatpush.bf16.msra.mxu2 %v697_v14  ;;  %v36_v49 = vld [vmem:[%s947_s0 + $0x78] sm:$0xff]  ;;  %v37_v51 = vld [vmem:[%s947_s0 + $0x80] sm:$0xff]  ;;  %v38_v53 = vld [vmem:[%s947_s0 + $0x88] sm:$0xff] }
  0x11   :  { %410 = vmatpush.bf16.msra.mxu3 %v705_v15  ;;  %v32_v50 = vld [vmem:[%s947_s0 + $0x58] sm:$0xff]  ;;  %v33_v52 = vld [vmem:[%s947_s0 + $0x60] sm:$0xff]  ;;  %v34_v54 = vld [vmem:[%s947_s0 + $0x68] sm:$0xff]  ;;  %v46_v56 = vpack.c.bf16 %v36_v49, %v31_v48 }
  0x12   :  { %354 = vmatpush.bf16.msra.mxu0 %v680_v16  ;;  %v39_v55 = vld [vmem:[%s947_s0 + $0x90] sm:$0xff]  ;;  %v47_v57 = vpack.c.bf16 %v37_v51, %v32_v50  ;;  %v48_v58 = vpack.c.bf16 %v38_v53, %v33_v52  ;;  %v25_v60 = vld [vmem:[%s947_s0 + $0x20] sm:$0xff]  ;;  %v30_v61 = vld [vmem:[%s947_s0 + $0x48] sm:$0xff] }
  0x13   :  { %373 = vmatpush.bf16.msra.mxu1 %v688_v17  ;;  %v49_v59 = vpack.c.bf16 %v39_v55, %v34_v54  ;;  %v35_v62 = vld [vmem:[%s947_s0 + $0x70] sm:$0xff]  ;;  %v40_v63 = vld [vmem:[%s947_s0 + $0x98] sm:$0xff]  ;;  %v45_v0 = vpack.c.bf16 %v30_v61, %v25_v60  ;;  %v718_v14 = vld [vmem:[%s946_s2] ss:$0 sm:$0xff] }
  0x14   :  { %392 = vmatpush.bf16.msra.mxu2 %v696_v18  ;;  %v50_v1 = vpack.c.bf16 %v40_v63, %v35_v62 }
  0x15   :  { %411 = vmatpush.bf16.msra.mxu3 %v704_v19 }
  0x16   :  { %355 = vmatpush.bf16.msra.mxu0 %v679_v20 }
  0x17   :  { %374 = vmatpush.bf16.msra.mxu1 %v687_v21 }
  0x18   :  { %393 = vmatpush.bf16.msra.mxu2 %v695_v22 }
  0x19   :  { %412 = vmatpush.bf16.msra.mxu3 %v703_v23 }
  0x1a   :  { %356 = vmatpush.bf16.msra.mxu0 %v678_v24 }
  0x1b   :  { %375 = vmatpush.bf16.msra.mxu1 %v686_v25  ;;  %v725_v25 = vmov 32.0  }
  0x1c   :  { %394 = vmatpush.bf16.msra.mxu2 %v694_v26  ;;  %721 = vrcp.f32 %v725_v25 }
  0x1d   :  { %413 = vmatpush.bf16.msra.mxu3 %v702_v27 }
  0x1e   :  { %357 = vmatpush.bf16.msra.mxu0 %v677_v28 }
  0x1f   :  { %376 = vmatpush.bf16.msra.mxu1 %v685_v29 }
  0x20   :  { %395 = vmatpush.bf16.msra.mxu2 %v693_v30 }
  0x21   :  { %414 = vmatpush.bf16.msra.mxu3 %v701_v31  ;;  %358 = vmatmul.bf16.vlgmr.msra.gmra.mxu0 %v41_v41 }
  0x22   :  { %430 = vmatpush.bf16.msrb.mxu0 %v712_v40  ;;  %377 = vmatmul.bf16.vlgmr.msra.gmra.mxu1 %v42_v42  ;;  %v722_v32 = vpop.eup %721 }
  0x23   :  { %713 = vmatpush.bf16.msrb.mxu1 %v712_v40  ;;  %396 = vmatmul.bf16.vlgmr.msra.gmra.mxu2 %v43_v43  ;;  %v455_v42 = vmul.f32 32.0, %v722_v32  ;;  %vm459_vm1 = vweird.f32 %v722_v32 }
  0x24   :  { %415 = vmatmul.bf16.vlgmr.msra.gmra.mxu3 %v44_v44 }
  0x25   :  { %v456_v48 = vsub.f32 1.0, %v455_v42 }
  0x26   :  { %431 = vmatpush.bf16.msrb.mxu0 %v711_v45 }
  0x27   :  { %714 = vmatpush.bf16.msrb.mxu1 %v711_v45  ;;  %v457_v51 = vmul.f32 %v722_v32, %v456_v48 }
  0x29   :  { %v458_v54 = vadd.f32 %v722_v32, %v457_v51 }
  0x2a   :  { %432 = vmatpush.bf16.msrb.mxu0 %v710_v46 }
  0x2b   :  { %715 = vmatpush.bf16.msrb.mxu1 %v710_v46 }
  0x2e   :  { %433 = vmatpush.bf16.msrb.mxu0 %v709_v47 }
  0x2f   :  { %716 = vmatpush.bf16.msrb.mxu1 %v709_v47 }
  0x31   :  { %363 = vmatmul.bf16.gmra.mxu0 %v46_v56 }
  0x32   :  { %382 = vmatmul.bf16.gmra.mxu1 %v47_v57  ;;  %v460_v57 = vsel %vm459_vm1, %v722_v32, %v458_v54 }
  0x33   :  { %401 = vmatmul.bf16.gmra.mxu2 %v48_v58 }
  0x34   :  { %420 = vmatmul.bf16.gmra.mxu3 %v49_v59 }
  0x41   :  { %675 = vmatmul.msk.bf16.vlgmr.msrb.gmra.mxu0 %vm343_vm0, %v45_v0 }
  0x42   :  { %676 = vmatmul.msk.bf16.vlgmr.msrb.gmra.mxu1 %vm343_vm0, %v50_v1 }
  0x9e   :  { %v359_v2 = vpop.f32.mrf.mxu0 }
  0x9f   :  { %v378_v3 = vpop.f32.mrf.mxu1  ;;  %v360_v16 = vadd.f32 %v718_v14, %v359_v2 }
  0xa1   :  { %v379_v22 = vadd.f32 %v378_v3, %v360_v16 }
  0xa6   :  { %v397_v4 = vpop.f32.mrf.mxu2  ;;  %v361_v5 = vpop.f32.mrf.mxu0 }
  0xa7   :  { %v380_v6 = vpop.f32.mrf.mxu1  ;;  %v416_v7 = vpop.f32.mrf.mxu3  ;;  %v362_v17 = vadd.f32 %v718_v14, %v361_v5  ;;  %v398_v26 = vadd.f32 %v397_v4, %v379_v22 }
  0xa9   :  { %v381_v23 = vadd.f32 %v380_v6, %v362_v17  ;;  %v417_v33 = vadd.f32 %v416_v7, %v398_v26 }
  0xae   :  { %v399_v8 = vpop.f32.mrf.mxu2  ;;  %v364_v9 = vpop.f32.mrf.mxu0 }
  0xaf   :  { %v383_v10 = vpop.f32.mrf.mxu1  ;;  %v418_v11 = vpop.f32.mrf.mxu3  ;;  %v365_v19 = vadd.f32 %v718_v14, %v364_v9  ;;  %v400_v27 = vadd.f32 %v399_v8, %v381_v23 }
  0xb1   :  { %v384_v28 = vadd.f32 %v383_v10, %v365_v19  ;;  %v419_v34 = vadd.f32 %v418_v11, %v400_v27  ;;  %v720_v27 = vld [vmem:[%s949_s4] ss:$0 sm:$0xff] }
  0xb6   :  { %v366_v12 = vpop.f32.mrf.mxu0  ;;  %v402_v15 = vpop.f32.mrf.mxu2 }
  0xb7   :  { %v385_v13 = vpop.f32.mrf.mxu1  ;;  %v421_v18 = vpop.f32.mrf.mxu3  ;;  %v367_v24 = vadd.f32 %v718_v14, %v366_v12  ;;  %v403_v30 = vadd.f32 %v402_v15, %v384_v28 }
  0xb9   :  { %v386_v31 = vadd.f32 %v385_v13, %v367_v24  ;;  %v422_v38 = vadd.f32 %v421_v18, %v403_v30 }
  0xbe   :  { %v435_v20 = vpop.f32.mrf.mxu0  ;;  %v404_v29 = vpop.f32.mrf.mxu2 }
  0xbf   :  { %v440_v21 = vpop.f32.mrf.mxu1  ;;  %v405_v35 = vadd.f32 %v404_v29, %v386_v31  ;;  %v423_v36 = vpop.f32.mrf.mxu3  ;;  %v436_v39 = vadd.f32 %v435_v20, %v417_v33 }
  0xc0   :  { %v441_v44 = vadd.f32 %v440_v21, %v422_v38  ;;  %v719_v21 = vld [vmem:[%s948_s3] ss:$0 sm:$0xff] }
  0xc1   :  { %v424_v43 = vadd.f32 %v423_v36, %v405_v35 }
  0xc6   :  { %v437_v37 = vpop.f32.mrf.mxu0 }
  0xc7   :  { %v438_v40 = vadd.f32 %v437_v37, %v419_v34  ;;  %v442_v41 = vpop.f32.mrf.mxu1 }
  0xc8   :  { %v443_v46 = vadd.f32 %v442_v41, %v424_v43 }
  0xc9   :  { %v445_v45 = vadd.f32 %v438_v40, %v436_v39 }
  0xcb   :  { %v446_v47 = vadd.f32 %v445_v45, %v441_v44 }
  0xcd   :  { %v447_v49 = vadd.f32 %v446_v47, %v443_v46 }
  0xcf   :  { %v448_v50 = vrot.slane %v447_v49, 4 }
  0xd1   :  { %v449_v52 = vadd.f32 %v448_v50, %v447_v49 }
  0xd3   :  { %v450_v53 = vrot.slane %v449_v52, 2 }
  0xd5   :  { %v451_v55 = vadd.f32 %v450_v53, %v449_v52 }
  0xd7   :  { %v452_v56 = vrot.slane %v451_v55, 1 }
  0xd9   :  { %v453_v58 = vadd.f32 %v452_v56, %v451_v55 }
  0xdb   :  { %v461_v59 = vmul.f32 %v460_v57, %v453_v58 }
  0xdd   :  { %v462_v60 = vsub.f32 %v436_v39, %v461_v59  ;;  %v463_v61 = vsub.f32 %v438_v40, %v461_v59  ;;  %v464_v62 = vsub.f32 %v441_v44, %v461_v59  ;;  %v465_v63 = vsub.f32 %v443_v46, %v461_v59 }
  0xdf   :  { %v466_v0 = vmul.f32 %v462_v60, %v462_v60  ;;  %v467_v1 = vmul.f32 %v463_v61, %v463_v61  ;;  %v468_v2 = vmul.f32 %v464_v62, %v464_v62  ;;  %v469_v4 = vmul.f32 %v465_v63, %v465_v63 }
  0xe1   :  { %v470_v3 = vadd.f32 %v467_v1, %v466_v0 }
  0xe3   :  { %v471_v5 = vadd.f32 %v470_v3, %v468_v2 }
  0xe5   :  { %v472_v6 = vadd.f32 %v471_v5, %v469_v4 }
  0xe7   :  { %v473_v7 = vrot.slane %v472_v6, 4 }
  0xe9   :  { %v474_v8 = vadd.f32 %v473_v7, %v472_v6 }
  0xeb   :  { %v475_v9 = vrot.slane %v474_v8, 2 }
  0xed   :  { %v476_v10 = vadd.f32 %v475_v9, %v474_v8 }
  0xef   :  { %v477_v11 = vrot.slane %v476_v10, 1 }
  0xf1   :  { %v478_v12 = vadd.f32 %v477_v11, %v476_v10 }
  0xf3   :  { %v479_v13 = vmul.f32 %v478_v12, %v460_v57 }
  0xf5   :  { %v480_v14 = vadd.f32 0.8, %v479_v13 }
  0xf7   :  { %723 = vrsqrt.f32 %v480_v14  ;;  %vm487_vm3 = vweird.f32 %v480_v14 }
  0xfd   :  { %v724_v15 = vpop.eup %723 }
  0xfe   :  { %v482_v16 = vmul.f32 %v724_v15, %v480_v14  ;;  %vm488_vm2 = vweird.f32 %v724_v15 }
  0xff   :  { %vm489_vm4 = vmor %vm487_vm3, %vm488_vm2 }
 0x100   :  { %v483_v17 = vmul.f32 %v724_v15, %v482_v16 }
 0x102   :  { %v484_v18 = vmul.f32 0.5, %v483_v17 }
 0x104   :  { %v485_v19 = vsub.f32 1.5, %v484_v18 }
 0x106   :  { %v486_v20 = vmul.f32 %v724_v15, %v485_v19 }
 0x108   :  { %v490_v22 = vsel %vm489_vm4, %v724_v15, %v486_v20 }
 0x109   :  { %v491_v23 = vmul.f32 %v490_v22, %v462_v60  ;;  %v492_v24 = vmul.f32 %v490_v22, %v463_v61  ;;  %v493_v25 = vmul.f32 %v490_v22, %v464_v62  ;;  %v494_v26 = vmul.f32 %v490_v22, %v465_v63 }
 0x10b   :  { %v499_v28 = vmul.f32 %v719_v21, %v491_v23  ;;  %v500_v29 = vmul.f32 %v719_v21, %v492_v24  ;;  %v501_v30 = vmul.f32 %v719_v21, %v493_v25  ;;  %v502_v31 = vmul.f32 %v719_v21, %v494_v26 }
 0x10d   :  { %v507_v32 = vadd.f32 %v720_v27, %v499_v28  ;;  %v508_v33 = vadd.f32 %v720_v27, %v500_v29  ;;  %v509_v34 = vadd.f32 %v720_v27, %v501_v30  ;;  %v510_v35 = vadd.f32 %v720_v27, %v502_v31 }
 0x10f   :  { %vm511_vm5 = vcmp.ge.f32.partialorder %v507_v32, 0.0  ;;  %vm512_vm6 = vcmp.ge.f32.partialorder %v508_v33, 0.0  ;;  %vm513_vm7 = vcmp.ge.f32.partialorder %v509_v34, 0.0  ;;  %vm514_vm8 = vcmp.ge.f32.partialorder %v510_v35, 0.0 }
 0x110   :  { %v515_v36 = vmul.f32 0.2, %v507_v32  ;;  %v516_v37 = vmul.f32 0.2, %v508_v33  ;;  %v517_v38 = vmul.f32 0.2, %v509_v34 }
 0x111   :  { %v518_v39 = vmul.f32 0.2, %v510_v35 }
 0x112   :  { %v519_v40 = vsel %vm511_vm5, %v507_v32, %v515_v36  ;;  %v520_v41 = vsel %vm512_vm6, %v508_v33, %v516_v37  ;;  %v521_v42 = vsel %vm513_vm7, %v509_v34, %v517_v38 }
 0x113   :  { %v522_v43 = vsel %vm514_vm8, %v510_v35, %v518_v39  ;;  %523 = vst [vmem:[%s950_s5] sm:$0xff] %v519_v40 }
 0x114   :  { %524 = vst [vmem:[%s950_s5 + $0x8] sm:$0xff] %v520_v41 }
 0x115   :  { %525 = vst [vmem:[%s950_s5 + $0x10] sm:$0xff] %v521_v42 }
 0x116   :  { %526 = vst [vmem:[%s950_s5 + $0x18] sm:$0xff] %v522_v43 }

// kernel: discriminator_forward.7
= control target key start
LH: loop header
LB: loop body
LE: loop exit
PB: predicated region body
PF: predicated region fallthrough
CT: control target
= control target key end

     0   :  { %s2939_s1 = inlined_call_operand.vmem [shape: bf16[1152,256], index: 1, kind: input, shape index: {}]   ;;  %s2940_s0 = inlined_call_operand.vmem [shape: f32[8,1152], index: 0, kind: input, shape index: {}]   ;;  %s2941_s2 = inlined_call_operand.vmem [shape: f32[1,256], index: 2, kind: input, shape index: {}]   ;;  %s2942_s3 = inlined_call_operand.vmem [shape: f32[1,256], index: 3, kind: input, shape index: {}]   ;;  %s2943_s4 = inlined_call_operand.vmem [shape: f32[1,256], index: 4, kind: input, shape index: {}]   ;;  %s2944_s5 = inlined_call_operand.vmem [shape: f32[8,256], index: 5, kind: output, shape index: {}]  }
   0x1   :  { %v1291_v0 = vld [vmem:[%s2939_s1 + $0x70] sm:$0xf]  ;;  %v1824_v1 = vld [vmem:[%s2939_s1 + $0x74] sm:$0xf0]  ;;  %v1283_v9 = vld [vmem:[%s2939_s1 + $0x60] sm:$0xf] }
   0x2   :  { %v1355_v2 = vld [vmem:[%s2939_s1 + $0xf0] sm:$0xf]  ;;  %v1292_v3 = vor.u32 %v1824_v1, %v1291_v0  ;;  %v1840_v4 = vld [vmem:[%s2939_s1 + $0xf4] sm:$0xf0]  ;;  %v1822_v10 = vld [vmem:[%s2939_s1 + $0x64] sm:$0xf0] }
   0x3   :  { %v1419_v5 = vld [vmem:[%s2939_s1 + $0x170] sm:$0xf]  ;;  %v1856_v6 = vld [vmem:[%s2939_s1 + $0x174] sm:$0xf0]  ;;  %v1356_v7 = vor.u32 %v1840_v4, %v1355_v2  ;;  %v1347_v11 = vld [vmem:[%s2939_s1 + $0xe0] sm:$0xf]  ;;  %v1284_v12 = vor.u32 %v1822_v10, %v1283_v9 }
   0x4   :  { %v1420_v8 = vor.u32 %v1856_v6, %v1419_v5  ;;  %908 = vmatpush.bf16.msra.mxu0 %v1292_v3  ;;  %v1838_v13 = vld [vmem:[%s2939_s1 + $0xe4] sm:$0xf0]  ;;  %v1483_v14 = vld [vmem:[%s2939_s1 + $0x1f0] sm:$0xf]  ;;  %v1872_v15 = vld [vmem:[%s2939_s1 + $0x1f4] sm:$0xf0] }
   0x5   :  { %921 = vmatpush.bf16.msra.mxu1 %v1356_v7  ;;  %v1348_v16 = vor.u32 %v1838_v13, %v1347_v11  ;;  %v1484_v17 = vor.u32 %v1872_v15, %v1483_v14  ;;  %v1411_v18 = vld [vmem:[%s2939_s1 + $0x160] sm:$0xf]  ;;  %v1854_v19 = vld [vmem:[%s2939_s1 + $0x164] sm:$0xf0]  ;;  %v1275_v20 = vld [vmem:[%s2939_s1 + $0x50] sm:$0xf] }
   0x6   :  { %934 = vmatpush.bf16.msra.mxu2 %v1420_v8  ;;  %v1412_v21 = vor.u32 %v1854_v19, %v1411_v18  ;;  %v1820_v22 = vld [vmem:[%s2939_s1 + $0x54] sm:$0xf0]  ;;  %v1339_v23 = vld [vmem:[%s2939_s1 + $0xd0] sm:$0xf]  ;;  %v1475_v25 = vld [vmem:[%s2939_s1 + $0x1e0] sm:$0xf] }
   0x7   :  { %v1836_v24 = vld [vmem:[%s2939_s1 + $0xd4] sm:$0xf0]  ;;  %947 = vmatpush.bf16.msra.mxu3 %v1484_v17  ;;  %v1870_v26 = vld [vmem:[%s2939_s1 + $0x1e4] sm:$0xf0]  ;;  %v1403_v27 = vld [vmem:[%s2939_s1 + $0x150] sm:$0xf]  ;;  %v1276_v28 = vor.u32 %v1820_v22, %v1275_v20 }
   0x8   :  { %909 = vmatpush.bf16.msra.mxu0 %v1284_v12  ;;  %v1476_v29 = vor.u32 %v1870_v26, %v1475_v25  ;;  %v1852_v30 = vld [vmem:[%s2939_s1 + $0x154] sm:$0xf0]  ;;  %v1267_v31 = vld [vmem:[%s2939_s1 + $0x40] sm:$0xf]  ;;  %v1818_v32 = vld [vmem:[%s2939_s1 + $0x44] sm:$0xf0]  ;;  %v1340_v33 = vor.u32 %v1836_v24, %v1339_v23 }
   0x9   :  { %922 = vmatpush.bf16.msra.mxu1 %v1348_v16  ;;  %v1404_v34 = vor.u32 %v1852_v30, %v1403_v27  ;;  %v1331_v35 = vld [vmem:[%s2939_s1 + $0xc0] sm:$0xf]  ;;  %v1834_v36 = vld [vmem:[%s2939_s1 + $0xc4] sm:$0xf0]  ;;  %v1467_v37 = vld [vmem:[%s2939_s1 + $0x1d0] sm:$0xf]  ;;  %v1268_v42 = vor.u32 %v1818_v32, %v1267_v31 }
   0xa   :  { %935 = vmatpush.bf16.msra.mxu2 %v1412_v21  ;;  %v1868_v38 = vld [vmem:[%s2939_s1 + $0x1d4] sm:$0xf0]  ;;  %v1395_v39 = vld [vmem:[%s2939_s1 + $0x140] sm:$0xf]  ;;  %v1850_v40 = vld [vmem:[%s2939_s1 + $0x144] sm:$0xf0]  ;;  %v1332_v45 = vor.u32 %v1834_v36, %v1331_v35 }
   0xb   :  { %948 = vmatpush.bf16.msra.mxu3 %v1476_v29  ;;  %v1468_v41 = vor.u32 %v1868_v38, %v1467_v37  ;;  %v1459_v43 = vld [vmem:[%s2939_s1 + $0x1c0] sm:$0xf]  ;;  %v1866_v44 = vld [vmem:[%s2939_s1 + $0x1c4] sm:$0xf0]  ;;  %v1396_v46 = vor.u32 %v1850_v40, %v1395_v39  ;;  %v1259_v47 = vld [vmem:[%s2939_s1 + $0x30] sm:$0xf] }
   0xc   :  { %910 = vmatpush.bf16.msra.mxu0 %v1276_v28  ;;  %v1816_v48 = vld [vmem:[%s2939_s1 + $0x34] sm:$0xf0]  ;;  %v1323_v49 = vld [vmem:[%s2939_s1 + $0xb0] sm:$0xf]  ;;  %v1460_v53 = vor.u32 %v1866_v44, %v1459_v43  ;;  %v1251_v59 = vld [vmem:[%s2939_s1 + $0x20] sm:$0xf] }
   0xd   :  { %923 = vmatpush.bf16.msra.mxu1 %v1340_v33  ;;  %v1832_v50 = vld [vmem:[%s2939_s1 + $0xb4] sm:$0xf0]  ;;  %v1387_v51 = vld [vmem:[%s2939_s1 + $0x130] sm:$0xf]  ;;  %v1260_v54 = vor.u32 %v1816_v48, %v1259_v47  ;;  %v1814_v60 = vld [vmem:[%s2939_s1 + $0x24] sm:$0xf0] }
   0xe   :  { %936 = vmatpush.bf16.msra.mxu2 %v1404_v34  ;;  %v1848_v52 = vld [vmem:[%s2939_s1 + $0x134] sm:$0xf0]  ;;  %v1451_v55 = vld [vmem:[%s2939_s1 + $0x1b0] sm:$0xf]  ;;  %v1324_v57 = vor.u32 %v1832_v50, %v1323_v49  ;;  %v1315_v61 = vld [vmem:[%s2939_s1 + $0xa0] sm:$0xf]  ;;  %v1252_v2 = vor.u32 %v1814_v60, %v1251_v59 }
   0xf   :  { %949 = vmatpush.bf16.msra.mxu3 %v1468_v41  ;;  %v1864_v56 = vld [vmem:[%s2939_s1 + $0x1b4] sm:$0xf0]  ;;  %v1388_v58 = vor.u32 %v1848_v52, %v1387_v51  ;;  %v1830_v62 = vld [vmem:[%s2939_s1 + $0xa4] sm:$0xf0]  ;;  %v1379_v63 = vld [vmem:[%s2939_s1 + $0x120] sm:$0xf] }
  0x10   :  { %911 = vmatpush.bf16.msra.mxu0 %v1268_v42  ;;  %v1846_v0 = vld [vmem:[%s2939_s1 + $0x124] sm:$0xf0]  ;;  %v1452_v1 = vor.u32 %v1864_v56, %v1451_v55  ;;  %v1443_v3 = vld [vmem:[%s2939_s1 + $0x1a0] sm:$0xf]  ;;  %v1316_v5 = vor.u32 %v1830_v62, %v1315_v61  ;;  %v1243_v7 = vld [vmem:[%s2939_s1 + $0x10] sm:$0xf] }
  0x11   :  { %924 = vmatpush.bf16.msra.mxu1 %v1332_v45  ;;  %v1862_v4 = vld [vmem:[%s2939_s1 + $0x1a4] sm:$0xf0]  ;;  %v1380_v6 = vor.u32 %v1846_v0, %v1379_v63  ;;  %v1812_v8 = vld [vmem:[%s2939_s1 + $0x14] sm:$0xf0]  ;;  %v1307_v9 = vld [vmem:[%s2939_s1 + $0x90] sm:$0xf] }
  0x12   :  { %937 = vmatpush.bf16.msra.mxu2 %v1396_v46  ;;  %v1828_v10 = vld [vmem:[%s2939_s1 + $0x94] sm:$0xf0]  ;;  %v1371_v11 = vld [vmem:[%s2939_s1 + $0x110] sm:$0xf]  ;;  %v1444_v13 = vor.u32 %v1862_v4, %v1443_v3  ;;  %v1235_v14 = vld [vmem:[%s2939_s1] sm:$0xf]  ;;  %v1244_v15 = vor.u32 %v1812_v8, %v1243_v7 }
  0x13   :  { %950 = vmatpush.bf16.msra.mxu3 %v1460_v53  ;;  %v1844_v12 = vld [vmem:[%s2939_s1 + $0x114] sm:$0xf0]  ;;  %v1810_v16 = vld [vmem:[%s2939_s1 + $0x4] sm:$0xf0]  ;;  %v1435_v17 = vld [vmem:[%s2939_s1 + $0x190] sm:$0xf]  ;;  %v1308_v19 = vor.u32 %v1828_v10, %v1307_v9 }
  0x14   :  { %912 = vmatpush.bf16.msra.mxu0 %v1260_v54  ;;  %v1860_v18 = vld [vmem:[%s2939_s1 + $0x194] sm:$0xf0]  ;;  %v1372_v20 = vor.u32 %v1844_v12, %v1371_v11  ;;  %v1299_v21 = vld [vmem:[%s2939_s1 + $0x80] sm:$0xf]  ;;  %v1826_v22 = vld [vmem:[%s2939_s1 + $0x84] sm:$0xf0]  ;;  %v1236_v31 = vor.u32 %v1810_v16, %v1235_v14 }
  0x15   :  { %925 = vmatpush.bf16.msra.mxu1 %v1324_v57  ;;  %v1547_v23 = vld [vmem:[%s2939_s1 + $0x270] sm:$0xf]  ;;  %v1888_v24 = vld [vmem:[%s2939_s1 + $0x274] sm:$0xf0]  ;;  %v1436_v27 = vor.u32 %v1860_v18, %v1435_v17  ;;  %v1363_v28 = vld [vmem:[%s2939_s1 + $0x100] sm:$0xf]  ;;  %v1300_v35 = vor.u32 %v1826_v22, %v1299_v21 }
  0x16   :  { %938 = vmatpush.bf16.msra.mxu2 %v1388_v58  ;;  %v1611_v25 = vld [vmem:[%s2939_s1 + $0x2f0] sm:$0xf]  ;;  %v1904_v26 = vld [vmem:[%s2939_s1 + $0x2f4] sm:$0xf0]  ;;  %v1842_v29 = vld [vmem:[%s2939_s1 + $0x104] sm:$0xf0]  ;;  %v1548_v36 = vor.u32 %v1888_v24, %v1547_v23 }
  0x17   :  { %951 = vmatpush.bf16.msra.mxu3 %v1452_v1  ;;  %v1675_v30 = vld [vmem:[%s2939_s1 + $0x370] sm:$0xf]  ;;  %v1920_v32 = vld [vmem:[%s2939_s1 + $0x374] sm:$0xf0]  ;;  %v1427_v33 = vld [vmem:[%s2939_s1 + $0x180] sm:$0xf]  ;;  %v1612_v39 = vor.u32 %v1904_v26, %v1611_v25  ;;  %v1364_v40 = vor.u32 %v1842_v29, %v1363_v28 }
  0x18   :  { %913 = vmatpush.bf16.msra.mxu0 %v1252_v2  ;;  %v1858_v34 = vld [vmem:[%s2939_s1 + $0x184] sm:$0xf0]  ;;  %v1739_v37 = vld [vmem:[%s2939_s1 + $0x3f0] sm:$0xf]  ;;  %v1936_v38 = vld [vmem:[%s2939_s1 + $0x3f4] sm:$0xf0]  ;;  %v1676_v43 = vor.u32 %v1920_v32, %v1675_v30 }
  0x19   :  { %926 = vmatpush.bf16.msra.mxu1 %v1316_v5  ;;  %v1539_v41 = vld [vmem:[%s2939_s1 + $0x260] sm:$0xf]  ;;  %v1886_v42 = vld [vmem:[%s2939_s1 + $0x264] sm:$0xf0]  ;;  %v1428_v44 = vor.u32 %v1858_v34, %v1427_v33  ;;  %v1740_v47 = vor.u32 %v1936_v38, %v1739_v37  ;;  %v1531_v54 = vld [vmem:[%s2939_s1 + $0x250] sm:$0xf] }
  0x1a   :  { %939 = vmatpush.bf16.msra.mxu2 %v1380_v6  ;;  %v1603_v45 = vld [vmem:[%s2939_s1 + $0x2e0] sm:$0xf]  ;;  %v1902_v46 = vld [vmem:[%s2939_s1 + $0x2e4] sm:$0xf0]  ;;  %v1540_v50 = vor.u32 %v1886_v42, %v1539_v41  ;;  %v1884_v55 = vld [vmem:[%s2939_s1 + $0x254] sm:$0xf0] }
  0x1b   :  { %952 = vmatpush.bf16.msra.mxu3 %v1444_v13  ;;  %v1667_v48 = vld [vmem:[%s2939_s1 + $0x360] sm:$0xf]  ;;  %v1918_v49 = vld [vmem:[%s2939_s1 + $0x364] sm:$0xf0]  ;;  %v1604_v53 = vor.u32 %v1902_v46, %v1603_v45  ;;  %v22_v56 = vld [vmem:[%s2940_s0 + $0x10] sm:$0xff]  ;;  %v1532_v1 = vor.u32 %v1884_v55, %v1531_v54 }
  0x1c   :  { %914 = vmatpush.bf16.msra.mxu0 %v1244_v15  ;;  %v1731_v51 = vld [vmem:[%s2939_s1 + $0x3e0] sm:$0xf]  ;;  %v1934_v52 = vld [vmem:[%s2939_s1 + $0x3e4] sm:$0xf0]  ;;  %v1668_v57 = vor.u32 %v1918_v49, %v1667_v48  ;;  %v1595_v58 = vld [vmem:[%s2939_s1 + $0x2d0] sm:$0xf]  ;;  %v2246_v60 = vpack.c.bf16 %v22_v56, %v22_v56 }
  0x1d   :  { %927 = vmatpush.bf16.msra.mxu1 %v1308_v19  ;;  %v1900_v59 = vld [vmem:[%s2939_s1 + $0x2d4] sm:$0xf0]  ;;  %v1732_v61 = vor.u32 %v1934_v52, %v1731_v51  ;;  %v1659_v62 = vld [vmem:[%s2939_s1 + $0x350] sm:$0xf]  ;;  %v20_v0 = vld [vmem:[%s2940_s0] sm:$0xff] }
  0x1e   :  { %940 = vmatpush.bf16.msra.mxu2 %v1372_v20  ;;  %v1916_v63 = vld [vmem:[%s2939_s1 + $0x354] sm:$0xf0]  ;;  %v1723_v2 = vld [vmem:[%s2939_s1 + $0x3d0] sm:$0xf]  ;;  %v2264_v4 = vpack.c.bf16 %v20_v0, %v20_v0  ;;  %v1596_v6 = vor.u32 %v1900_v59, %v1595_v58  ;;  %v1523_v7 = vld [vmem:[%s2939_s1 + $0x240] sm:$0xf] }
  0x1f   :  { %953 = vmatpush.bf16.msra.mxu3 %v1436_v27  ;;  %v1932_v3 = vld [vmem:[%s2939_s1 + $0x3d4] sm:$0xf0]  ;;  %v1882_v8 = vld [vmem:[%s2939_s1 + $0x244] sm:$0xf0]  ;;  %v1660_v11 = vor.u32 %v1916_v63, %v1659_v62  ;;  %v1587_v12 = vld [vmem:[%s2939_s1 + $0x2c0] sm:$0xf] }
  0x20   :  { %915 = vmatpush.bf16.msra.mxu0 %v1236_v31  ;;  %v23_v5 = vld [vmem:[%s2940_s0 + $0x18] sm:$0xff]  ;;  %v21_v10 = vld [vmem:[%s2940_s0 + $0x8] sm:$0xff]  ;;  %v1724_v15 = vor.u32 %v1932_v3, %v1723_v2  ;;  %v1651_v16 = vld [vmem:[%s2939_s1 + $0x340] sm:$0xf]  ;;  %v1524_v18 = vor.u32 %v1882_v8, %v1523_v7 }
  0x21   :  { %928 = vmatpush.bf16.msra.mxu1 %v1300_v35  ;;  %v2275_v9 = vpack.c.bf16 %v23_v5, %v23_v5  ;;  %v1898_v13 = vld [vmem:[%s2939_s1 + $0x2c4] sm:$0xf0]  ;;  %v2287_v14 = vpack.c.bf16 %v21_v10, %v21_v10  ;;  %v1715_v19 = vld [vmem:[%s2939_s1 + $0x3c0] sm:$0xf]  ;;  %v1515_v22 = vld [vmem:[%s2939_s1 + $0x230] sm:$0xf] }
  0x22   :  { %941 = vmatpush.bf16.msra.mxu2 %v1364_v40  ;;  %v1914_v17 = vld [vmem:[%s2939_s1 + $0x344] sm:$0xf0]  ;;  %v1588_v21 = vor.u32 %v1898_v13, %v1587_v12  ;;  %v1880_v23 = vld [vmem:[%s2939_s1 + $0x234] sm:$0xf0]  ;;  %v1579_v25 = vld [vmem:[%s2939_s1 + $0x2b0] sm:$0xf] }
  0x23   :  { %954 = vmatpush.bf16.msra.mxu3 %v1428_v44  ;;  %916 = vmatmul.bf16.vlgmr.msra.gmra.mxu0 %v2264_v4  ;;  %v1930_v20 = vld [vmem:[%s2939_s1 + $0x3c4] sm:$0xf0]  ;;  %v1652_v24 = vor.u32 %v1914_v17, %v1651_v16  ;;  %v1896_v26 = vld [vmem:[%s2939_s1 + $0x2b4] sm:$0xf0]  ;;  %v1643_v28 = vld [vmem:[%s2939_s1 + $0x330] sm:$0xf]  ;;  %v1516_v30 = vor.u32 %v1880_v23, %v1515_v22 }
  0x24   :  { %960 = vmatpush.bf16.msrb.mxu0 %v1548_v36  ;;  %929 = vmatmul.bf16.vlgmr.msra.gmra.mxu1 %v2287_v14  ;;  %v1716_v27 = vor.u32 %v1930_v20, %v1715_v19  ;;  %v1912_v29 = vld [vmem:[%s2939_s1 + $0x334] sm:$0xf0]  ;;  %v1707_v31 = vld [vmem:[%s2939_s1 + $0x3b0] sm:$0xf]  ;;  %v1580_v33 = vor.u32 %v1896_v26, %v1579_v25  ;;  %v1507_v34 = vld [vmem:[%s2939_s1 + $0x220] sm:$0xf] }
  0x25   :  { %973 = vmatpush.bf16.msrb.mxu1 %v1612_v39  ;;  %942 = vmatmul.bf16.vlgmr.msra.gmra.mxu2 %v2246_v60  ;;  %v1928_v32 = vld [vmem:[%s2939_s1 + $0x3b4] sm:$0xf0]  ;;  %v1878_v35 = vld [vmem:[%s2939_s1 + $0x224] sm:$0xf0]  ;;  %v1644_v36 = vor.u32 %v1912_v29, %v1643_v28  ;;  %v1571_v37 = vld [vmem:[%s2939_s1 + $0x2a0] sm:$0xf] }
  0x26   :  { %986 = vmatpush.bf16.msrb.mxu2 %v1676_v43  ;;  %955 = vmatmul.bf16.vlgmr.msra.gmra.mxu3 %v2275_v9  ;;  %v1894_v38 = vld [vmem:[%s2939_s1 + $0x2a4] sm:$0xf0]  ;;  %v1708_v39 = vor.u32 %v1928_v32, %v1707_v31  ;;  %v1635_v40 = vld [vmem:[%s2939_s1 + $0x320] sm:$0xf]  ;;  %v1508_v42 = vor.u32 %v1878_v35, %v1507_v34  ;;  %v1499_v46 = vld [vmem:[%s2939_s1 + $0x210] sm:$0xf] }
  0x27   :  { %999 = vmatpush.bf16.msrb.mxu3 %v1740_v47  ;;  %v1910_v41 = vld [vmem:[%s2939_s1 + $0x324] sm:$0xf0]  ;;  %v1699_v43 = vld [vmem:[%s2939_s1 + $0x3a0] sm:$0xf]  ;;  %v1572_v45 = vor.u32 %v1894_v38, %v1571_v37  ;;  %v1876_v47 = vld [vmem:[%s2939_s1 + $0x214] sm:$0xf0] }
  0x28   :  { %961 = vmatpush.bf16.msrb.mxu0 %v1540_v50  ;;  %v1926_v44 = vld [vmem:[%s2939_s1 + $0x3a4] sm:$0xf0]  ;;  %v1636_v48 = vor.u32 %v1910_v41, %v1635_v40  ;;  %v1563_v49 = vld [vmem:[%s2939_s1 + $0x290] sm:$0xf]  ;;  %v1892_v50 = vld [vmem:[%s2939_s1 + $0x294] sm:$0xf0]  ;;  %v1500_v55 = vor.u32 %v1876_v47, %v1499_v46 }
  0x29   :  { %974 = vmatpush.bf16.msrb.mxu1 %v1604_v53  ;;  %v1700_v51 = vor.u32 %v1926_v44, %v1699_v43  ;;  %v1627_v52 = vld [vmem:[%s2939_s1 + $0x310] sm:$0xf]  ;;  %v1908_v53 = vld [vmem:[%s2939_s1 + $0x314] sm:$0xf0]  ;;  %v1491_v54 = vld [vmem:[%s2939_s1 + $0x200] sm:$0xf]  ;;  %v1564_v59 = vor.u32 %v1892_v50, %v1563_v49 }
  0x2a   :  { %987 = vmatpush.bf16.msrb.mxu2 %v1668_v57  ;;  %v1874_v56 = vld [vmem:[%s2939_s1 + $0x204] sm:$0xf0]  ;;  %v1691_v57 = vld [vmem:[%s2939_s1 + $0x390] sm:$0xf]  ;;  %v1924_v58 = vld [vmem:[%s2939_s1 + $0x394] sm:$0xf0]  ;;  %v1628_v0 = vor.u32 %v1908_v53, %v1627_v52 }
  0x2b   :  { %1000 = vmatpush.bf16.msrb.mxu3 %v1732_v61  ;;  %v1555_v61 = vld [vmem:[%s2939_s1 + $0x280] sm:$0xf]  ;;  %v1890_v62 = vld [vmem:[%s2939_s1 + $0x284] sm:$0xf0]  ;;  %v1803_v63 = vld [vmem:[%s2939_s1 + $0x470] sm:$0xf]  ;;  %v1692_v5 = vor.u32 %v1924_v58, %v1691_v57  ;;  %v1492_v10 = vor.u32 %v1874_v56, %v1491_v54 }
  0x2c   :  { %962 = vmatpush.bf16.msrb.mxu0 %v1532_v1  ;;  %v1952_v1 = vld [vmem:[%s2939_s1 + $0x474] sm:$0xf0]  ;;  %v1823_v2 = vld [vmem:[%s2939_s1 + $0x74] sm:$0xf]  ;;  %v1293_v3 = vld [vmem:[%s2939_s1 + $0x78] sm:$0xf0] }
  0x2d   :  { %975 = vmatpush.bf16.msrb.mxu1 %v1596_v6  ;;  %v1619_v6 = vld [vmem:[%s2939_s1 + $0x300] sm:$0xf]  ;;  %v1906_v7 = vld [vmem:[%s2939_s1 + $0x304] sm:$0xf0]  ;;  %v1839_v8 = vld [vmem:[%s2939_s1 + $0xf4] sm:$0xf]  ;;  %v1804_v16 = vor.u32 %v1952_v1, %v1803_v63  ;;  %v1296_v20 = vor.u32 %v1823_v2, %v1293_v3 }
  0x2e   :  { %988 = vmatpush.bf16.msrb.mxu2 %v1660_v11  ;;  %v1357_v11 = vld [vmem:[%s2939_s1 + $0xf8] sm:$0xf0]  ;;  %v1683_v12 = vld [vmem:[%s2939_s1 + $0x380] sm:$0xf]  ;;  %v1922_v13 = vld [vmem:[%s2939_s1 + $0x384] sm:$0xf0] }
  0x2f   :  { %1001 = vmatpush.bf16.msrb.mxu3 %v1724_v15  ;;  %v1556_v15 = vor.u32 %v1890_v62, %v1555_v61  ;;  %v1855_v17 = vld [vmem:[%s2939_s1 + $0x174] sm:$0xf]  ;;  %v24_v19 = vld [vmem:[%s2940_s0 + $0x20] sm:$0xff]  ;;  %v1950_v23 = vld [vmem:[%s2939_s1 + $0x464] sm:$0xf0]  ;;  %v1360_v25 = vor.u32 %v1839_v8, %v1357_v11  ;;  %v1684_v26 = vor.u32 %v1922_v13, %v1683_v12 }
  0x30   :  { %963 = vmatpush.bf16.msrb.mxu0 %v1524_v18  ;;  %v1421_v18 = vld [vmem:[%s2939_s1 + $0x178] sm:$0xf0]  ;;  %v1795_v22 = vld [vmem:[%s2939_s1 + $0x460] sm:$0xf]  ;;  %v1285_v28 = vld [vmem:[%s2939_s1 + $0x68] sm:$0xf0] }
  0x31   :  { %976 = vmatpush.bf16.msrb.mxu1 %v1588_v21  ;;  %v1620_v21 = vor.u32 %v1906_v7, %v1619_v6  ;;  %v27_v29 = vld [vmem:[%s2940_s0 + $0x38] sm:$0xff]  ;;  %v1837_v31 = vld [vmem:[%s2939_s1 + $0xe4] sm:$0xf]  ;;  %v1349_v32 = vld [vmem:[%s2939_s1 + $0xe8] sm:$0xf0]  ;;  %v1796_v35 = vor.u32 %v1950_v23, %v1795_v22 }
  0x32   :  { %989 = vmatpush.bf16.msrb.mxu2 %v1652_v24  ;;  %v26_v24 = vld [vmem:[%s2940_s0 + $0x30] sm:$0xff]  ;;  %v25_v34 = vld [vmem:[%s2940_s0 + $0x28] sm:$0xff]  ;;  %v1853_v37 = vld [vmem:[%s2939_s1 + $0x164] sm:$0xf]  ;;  %v2463_v40 = vpack.c.bf16 %v27_v29, %v27_v29  ;;  %v1352_v43 = vor.u32 %v1837_v31, %v1349_v32 }
  0x33   :  { %1002 = vmatpush.bf16.msrb.mxu3 %v1716_v27  ;;  %v1821_v27 = vld [vmem:[%s2939_s1 + $0x64] sm:$0xf]  ;;  %v1413_v38 = vld [vmem:[%s2939_s1 + $0x168] sm:$0xf0]  ;;  %v1787_v41 = vld [vmem:[%s2939_s1 + $0x450] sm:$0xf]  ;;  %v2477_v46 = vpack.c.bf16 %v25_v34, %v25_v34 }
  0x34   :  { %964 = vmatpush.bf16.msrb.mxu0 %v1516_v30  ;;  %v1424_v30 = vor.u32 %v1855_v17, %v1421_v18  ;;  %v1819_v44 = vld [vmem:[%s2939_s1 + $0x54] sm:$0xf]  ;;  %v1416_v47 = vor.u32 %v1853_v37, %v1413_v38  ;;  %v1341_v49 = vld [vmem:[%s2939_s1 + $0xd8] sm:$0xf0]  ;;  %v1779_v54 = vld [vmem:[%s2939_s1 + $0x440] sm:$0xf] }
  0x35   :  { %977 = vmatpush.bf16.msrb.mxu1 %v1580_v33  ;;  %v2450_v33 = vpack.c.bf16 %v24_v19, %v24_v19  ;;  %v1405_v52 = vld [vmem:[%s2939_s1 + $0x158] sm:$0xf0]  ;;  %v1817_v57 = vld [vmem:[%s2939_s1 + $0x44] sm:$0xf]  ;;  %v1269_v58 = vld [vmem:[%s2939_s1 + $0x48] sm:$0xf0] }
  0x36   :  { %990 = vmatpush.bf16.msrb.mxu2 %v1644_v36  ;;  %v2455_v36 = vpack.c.bf16 %v26_v24, %v26_v24  ;;  %v1833_v61 = vld [vmem:[%s2939_s1 + $0xc4] sm:$0xf]  ;;  %v1333_v62 = vld [vmem:[%s2939_s1 + $0xc8] sm:$0xf0]  ;;  %v1272_v2 = vor.u32 %v1817_v57, %v1269_v58  ;;  %v1771_v3 = vld [vmem:[%s2939_s1 + $0x430] sm:$0xf] }
  0x37   :  { %1003 = vmatpush.bf16.msrb.mxu3 %v1708_v39  ;;  %v1288_v39 = vor.u32 %v1821_v27, %v1285_v28  ;;  %v1397_v1 = vld [vmem:[%s2939_s1 + $0x148] sm:$0xf0]  ;;  %v1336_v6 = vor.u32 %v1833_v61, %v1333_v62  ;;  %v1815_v7 = vld [vmem:[%s2939_s1 + $0x34] sm:$0xf]  ;;  %v1261_v8 = vld [vmem:[%s2939_s1 + $0x38] sm:$0xf0] }
  0x38   :  { %965 = vmatpush.bf16.msrb.mxu0 %v1508_v42  ;;  %v1948_v42 = vld [vmem:[%s2939_s1 + $0x454] sm:$0xf0]  ;;  %v1831_v11 = vld [vmem:[%s2939_s1 + $0xb4] sm:$0xf]  ;;  %v1325_v12 = vld [vmem:[%s2939_s1 + $0xb8] sm:$0xf0]  ;;  %v1264_v17 = vor.u32 %v1815_v7, %v1261_v8 }
  0x39   :  { %978 = vmatpush.bf16.msrb.mxu1 %v1572_v45  ;;  %v1277_v45 = vld [vmem:[%s2939_s1 + $0x58] sm:$0xf0]  ;;  %v1788_v50 = vor.u32 %v1948_v42, %v1787_v41  ;;  %v1763_v18 = vld [vmem:[%s2939_s1 + $0x420] sm:$0xf]  ;;  %v1942_v19 = vld [vmem:[%s2939_s1 + $0x424] sm:$0xf0] }
  0x3a   :  { %991 = vmatpush.bf16.msrb.mxu2 %v1636_v48  ;;  %v1835_v48 = vld [vmem:[%s2939_s1 + $0xd4] sm:$0xf]  ;;  %v1280_v53 = vor.u32 %v1819_v44, %v1277_v45  ;;  %v1253_v22 = vld [vmem:[%s2939_s1 + $0x28] sm:$0xf0]  ;;  %v1829_v24 = vld [vmem:[%s2939_s1 + $0xa4] sm:$0xf] }
  0x3b   :  { %1004 = vmatpush.bf16.msrb.mxu3 %v1700_v51  ;;  %v1851_v51 = vld [vmem:[%s2939_s1 + $0x154] sm:$0xf]  ;;  %v1344_v56 = vor.u32 %v1835_v48, %v1341_v49  ;;  %v1845_v27 = vld [vmem:[%s2939_s1 + $0x124] sm:$0xf]  ;;  %v1381_v28 = vld [vmem:[%s2939_s1 + $0x128] sm:$0xf0] }
  0x3c   :  { %966 = vmatpush.bf16.msrb.mxu0 %v1500_v55  ;;  %v1946_v55 = vld [vmem:[%s2939_s1 + $0x444] sm:$0xf0]  ;;  %v1940_v31 = vld [vmem:[%s2939_s1 + $0x414] sm:$0xf0]  ;;  %v1811_v34 = vld [vmem:[%s2939_s1 + $0x14] sm:$0xf]  ;;  %v1384_v37 = vor.u32 %v1845_v27, %v1381_v28 }
  0x3d   :  { %979 = vmatpush.bf16.msrb.mxu1 %v1564_v59  ;;  %v1408_v59 = vor.u32 %v1851_v51, %v1405_v52  ;;  %v1780_v63 = vor.u32 %v1946_v55, %v1779_v54  ;;  %v1827_v38 = vld [vmem:[%s2939_s1 + $0x94] sm:$0xf]  ;;  %v1747_v42 = vld [vmem:[%s2939_s1 + $0x400] sm:$0xf]  ;;  %v1373_v44 = vld [vmem:[%s2939_s1 + $0x118] sm:$0xf0] }
  0x3e   :  { %992 = vmatpush.bf16.msrb.mxu2 %v1628_v0  ;;  %v1849_v0 = vld [vmem:[%s2939_s1 + $0x144] sm:$0xf]  ;;  %v1237_v49 = vld [vmem:[%s2939_s1 + $0x8] sm:$0xf0]  ;;  %v1871_v51 = vld [vmem:[%s2939_s1 + $0x1f4] sm:$0xf] }
  0x3f   :  { %1005 = vmatpush.bf16.msrb.mxu3 %v1692_v5  ;;  %v1944_v5 = vld [vmem:[%s2939_s1 + $0x434] sm:$0xf0]  ;;  %v1809_v48 = vld [vmem:[%s2939_s1 + $0x4] sm:$0xf]  ;;  %v1485_v52 = vld [vmem:[%s2939_s1 + $0x1f8] sm:$0xf0] }
  0x40   :  { %967 = vmatpush.bf16.msrb.mxu0 %v1492_v10  ;;  %v1400_v10 = vor.u32 %v1849_v0, %v1397_v1  ;;  %v1772_v13 = vor.u32 %v1944_v5, %v1771_v3  ;;  %v1549_v55 = vld [vmem:[%s2939_s1 + $0x278] sm:$0xf0]  ;;  %v1301_v57 = vld [vmem:[%s2939_s1 + $0x88] sm:$0xf0]  ;;  %v1903_v61 = vld [vmem:[%s2939_s1 + $0x2f4] sm:$0xf]  ;;  %v1488_v0 = vor.u32 %v1871_v51, %v1485_v52 }
  0x41   :  { %980 = vmatpush.bf16.msrb.mxu1 %v1556_v15  ;;  %v1847_v15 = vld [vmem:[%s2939_s1 + $0x134] sm:$0xf]  ;;  %v1613_v62 = vld [vmem:[%s2939_s1 + $0x2f8] sm:$0xf0]  ;;  %v1841_v1 = vld [vmem:[%s2939_s1 + $0x104] sm:$0xf] }
  0x42   :  { %993 = vmatpush.bf16.msrb.mxu2 %v1620_v21  ;;  %v1813_v21 = vld [vmem:[%s2939_s1 + $0x24] sm:$0xf]  ;;  %v1477_v7 = vld [vmem:[%s2939_s1 + $0x1e8] sm:$0xf0]  ;;  %v1919_v8 = vld [vmem:[%s2939_s1 + $0x374] sm:$0xf] }
  0x43   :  { %1006 = vmatpush.bf16.msrb.mxu3 %v1684_v26  ;;  %968 = vmatmul.bf16.vlgmr.msrb.gmra.mxu0 %v2450_v33  ;;  %v1764_v26 = vor.u32 %v1942_v19, %v1763_v18  ;;  %v1256_v29 = vor.u32 %v1813_v21, %v1253_v22  ;;  %v1869_v3 = vld [vmem:[%s2939_s1 + $0x1e4] sm:$0xf]  ;;  %v1605_v18 = vld [vmem:[%s2939_s1 + $0x2e8] sm:$0xf0]  ;;  %v1867_v21 = vld [vmem:[%s2939_s1 + $0x1d4] sm:$0xf] }
  0x44   :  { %1012 = vmatpush.bf16.msra.mxu0 %v1804_v16  ;;  %981 = vmatmul.bf16.vlgmr.msrb.gmra.mxu1 %v2477_v46  ;;  %v1389_v16 = vld [vmem:[%s2939_s1 + $0x138] sm:$0xf0]  ;;  %v1480_v19 = vor.u32 %v1869_v3, %v1477_v7  ;;  %v1883_v27 = vld [vmem:[%s2939_s1 + $0x254] sm:$0xf]  ;;  %v1893_v3 = vld [vmem:[%s2939_s1 + $0x2a4] sm:$0xf] }
  0x45   :  { %1025 = vmatpush.bf16.msra.mxu1 %v1296_v20  ;;  %994 = vmatmul.bf16.vlgmr.msrb.gmra.mxu2 %v2455_v36  ;;  %v1328_v20 = vor.u32 %v1831_v11, %v1325_v12  ;;  %v1392_v23 = vor.u32 %v1847_v15, %v1389_v16  ;;  %v1616_v12 = vor.u32 %v1903_v61, %v1613_v62  ;;  %v1541_v15 = vld [vmem:[%s2939_s1 + $0x268] sm:$0xf0]  ;;  %v1533_v28 = vld [vmem:[%s2939_s1 + $0x258] sm:$0xf0]  ;;  %v1879_v52 = vld [vmem:[%s2939_s1 + $0x234] sm:$0xf] }
  0x46   :  { %1038 = vmatpush.bf16.msra.mxu2 %v1360_v25  ;;  %1007 = vmatmul.bf16.vlgmr.msrb.gmra.mxu3 %v2463_v40  ;;  %v1317_v25 = vld [vmem:[%s2939_s1 + $0xa8] sm:$0xf0]  ;;  %v1911_v62 = vld [vmem:[%s2939_s1 + $0x334] sm:$0xf] }
  0x47   :  { %1051 = vmatpush.bf16.msra.mxu3 %v1424_v30  ;;  %v1755_v30 = vld [vmem:[%s2939_s1 + $0x410] sm:$0xf]  ;;  %v1320_v32 = vor.u32 %v1829_v24, %v1317_v25  ;;  %v1917_v24 = vld [vmem:[%s2939_s1 + $0x364] sm:$0xf]  ;;  %v1669_v25 = vld [vmem:[%s2939_s1 + $0x368] sm:$0xf0] }
  0x48   :  { %1013 = vmatpush.bf16.msra.mxu0 %v1796_v35  ;;  %v1245_v35 = vld [vmem:[%s2939_s1 + $0x18] sm:$0xf0]  ;;  %v1756_v41 = vor.u32 %v1940_v31, %v1755_v30  ;;  %v1445_v61 = vld [vmem:[%s2939_s1 + $0x1a8] sm:$0xf0] }
  0x49   :  { %1026 = vmatpush.bf16.msra.mxu1 %v1288_v39  ;;  %v1309_v39 = vld [vmem:[%s2939_s1 + $0x98] sm:$0xf0]  ;;  %v1248_v45 = vor.u32 %v1811_v34, %v1245_v35  ;;  %v1865_v34 = vld [vmem:[%s2939_s1 + $0x1c4] sm:$0xf]  ;;  %v1536_v35 = vor.u32 %v1883_v27, %v1533_v28  ;;  %v1493_v27 = vld [vmem:[%s2939_s1 + $0x208] sm:$0xf0] }
  0x4a   :  { %1039 = vmatpush.bf16.msra.mxu2 %v1352_v43  ;;  %v1843_v43 = vld [vmem:[%s2939_s1 + $0x114] sm:$0xf]  ;;  %v1597_v30 = vld [vmem:[%s2939_s1 + $0x2d8] sm:$0xf0] }
  0x4b   :  { %1052 = vmatpush.bf16.msra.mxu3 %v1416_v47  ;;  %v1938_v47 = vld [vmem:[%s2939_s1 + $0x404] sm:$0xf0]  ;;  %v1376_v54 = vor.u32 %v1843_v43, %v1373_v44  ;;  %v1897_v43 = vld [vmem:[%s2939_s1 + $0x2c4] sm:$0xf]  ;;  %v1907_v28 = vld [vmem:[%s2939_s1 + $0x314] sm:$0xf] }
  0x4c   :  { %1014 = vmatpush.bf16.msra.mxu0 %v1788_v50  ;;  %v1312_v50 = vor.u32 %v1827_v38, %v1309_v39  ;;  %v1748_v58 = vor.u32 %v1938_v47, %v1747_v42  ;;  %v1915_v38 = vld [vmem:[%s2939_s1 + $0x354] sm:$0xf]  ;;  %v1525_v42 = vld [vmem:[%s2939_s1 + $0x248] sm:$0xf0] }
  0x4d   :  { %1027 = vmatpush.bf16.msra.mxu1 %v1280_v53  ;;  %v1887_v53 = vld [vmem:[%s2939_s1 + $0x274] sm:$0xf] }
  0x4e   :  { %1040 = vmatpush.bf16.msra.mxu2 %v1344_v56  ;;  %v1825_v56 = vld [vmem:[%s2939_s1 + $0x84] sm:$0xf]  ;;  %v1552_v5 = vor.u32 %v1887_v53, %v1549_v55  ;;  %v1863_v47 = vld [vmem:[%s2939_s1 + $0x1b4] sm:$0xf]  ;;  %v1517_v53 = vld [vmem:[%s2939_s1 + $0x238] sm:$0xf0] }
  0x4f   :  { %1053 = vmatpush.bf16.msra.mxu3 %v1408_v59  ;;  %v28_v59 = vld [vmem:[%s2940_s0 + $0x40] sm:$0xff]  ;;  %v1581_v55 = vld [vmem:[%s2939_s1 + $0x2b8] sm:$0xf0] }
  0x50   :  { %1015 = vmatpush.bf16.msra.mxu0 %v1780_v63  ;;  %v1240_v63 = vor.u32 %v1809_v48, %v1237_v49  ;;  %v2648_v11 = vpack.c.bf16 %v28_v59, %v28_v59  ;;  %v1913_v49 = vld [vmem:[%s2939_s1 + $0x344] sm:$0xf]  ;;  %v1520_v59 = vor.u32 %v1879_v52, %v1517_v53  ;;  %v1931_v53 = vld [vmem:[%s2939_s1 + $0x3d4] sm:$0xf] }
  0x51   :  { %1028 = vmatpush.bf16.msra.mxu1 %v1272_v2  ;;  %v1365_v2 = vld [vmem:[%s2939_s1 + $0x108] sm:$0xf0] }
  0x52   :  { %1041 = vmatpush.bf16.msra.mxu2 %v1336_v6  ;;  %v1304_v6 = vor.u32 %v1825_v56, %v1301_v57  ;;  %v1368_v16 = vor.u32 %v1841_v1, %v1365_v2  ;;  %v1877_v1 = vld [vmem:[%s2939_s1 + $0x224] sm:$0xf]  ;;  %v1509_v2 = vld [vmem:[%s2939_s1 + $0x228] sm:$0xf0] }
  0x53   :  { %1054 = vmatpush.bf16.msra.mxu3 %v1400_v10  ;;  %v1677_v10 = vld [vmem:[%s2939_s1 + $0x378] sm:$0xf0] }
  0x54   :  { %1016 = vmatpush.bf16.msra.mxu0 %v1772_v13  ;;  %v1885_v13 = vld [vmem:[%s2939_s1 + $0x264] sm:$0xf] }
  0x55   :  { %1029 = vmatpush.bf16.msra.mxu1 %v1264_v17  ;;  %v1901_v17 = vld [vmem:[%s2939_s1 + $0x2e4] sm:$0xf]  ;;  %v1544_v22 = vor.u32 %v1885_v13, %v1541_v15  ;;  %v1637_v15 = vld [vmem:[%s2939_s1 + $0x328] sm:$0xf0] }
  0x56   :  { %1042 = vmatpush.bf16.msra.mxu2 %v1328_v20  ;;  %v1680_v20 = vor.u32 %v1919_v8, %v1677_v10  ;;  %v1859_v8 = vld [vmem:[%s2939_s1 + $0x194] sm:$0xf]  ;;  %v1512_v10 = vor.u32 %v1877_v1, %v1509_v2  ;;  %v1909_v13 = vld [vmem:[%s2939_s1 + $0x324] sm:$0xf]  ;;  %v1773_v1 = vld [vmem:[%s2939_s1 + $0x438] sm:$0xf0] }
  0x57   :  { %1055 = vmatpush.bf16.msra.mxu3 %v1392_v23  ;;  %v1469_v23 = vld [vmem:[%s2939_s1 + $0x1d8] sm:$0xf0] }
  0x58   :  { %1017 = vmatpush.bf16.msra.mxu0 %v1764_v26  ;;  %v1608_v26 = vor.u32 %v1901_v17, %v1605_v18  ;;  %v1472_v31 = vor.u32 %v1867_v21, %v1469_v23  ;;  %v1875_v17 = vld [vmem:[%s2939_s1 + $0x214] sm:$0xf]  ;;  %v1501_v18 = vld [vmem:[%s2939_s1 + $0x218] sm:$0xf0]  ;;  %v1857_v23 = vld [vmem:[%s2939_s1 + $0x184] sm:$0xf] }
  0x59   :  { %1030 = vmatpush.bf16.msra.mxu1 %v1256_v29  ;;  %v1899_v29 = vld [vmem:[%s2939_s1 + $0x2d4] sm:$0xf] }
  0x5a   :  { %1043 = vmatpush.bf16.msra.mxu2 %v1320_v32  ;;  %v1672_v32 = vor.u32 %v1917_v24, %v1669_v25  ;;  %v1600_v39 = vor.u32 %v1899_v29, %v1597_v30  ;;  %v1429_v24 = vld [vmem:[%s2939_s1 + $0x188] sm:$0xf0]  ;;  %v1873_v25 = vld [vmem:[%s2939_s1 + $0x204] sm:$0xf]  ;;  %v1629_v29 = vld [vmem:[%s2939_s1 + $0x318] sm:$0xf0] }
  0x5b   :  { %1056 = vmatpush.bf16.msra.mxu3 %v1384_v37  ;;  %v1461_v37 = vld [vmem:[%s2939_s1 + $0x1c8] sm:$0xf0] }
  0x5c   :  { %1018 = vmatpush.bf16.msra.mxu0 %v1756_v41  ;;  %v1881_v41 = vld [vmem:[%s2939_s1 + $0x244] sm:$0xf]  ;;  %v1464_v44 = vor.u32 %v1865_v34, %v1461_v37  ;;  %v1951_v34 = vld [vmem:[%s2939_s1 + $0x474] sm:$0xf] }
  0x5d   :  { %1031 = vmatpush.bf16.msra.mxu1 %v1248_v45  ;;  %v1528_v48 = vor.u32 %v1881_v41, %v1525_v42  ;;  %v1889_v37 = vld [vmem:[%s2939_s1 + $0x284] sm:$0xf]  ;;  %v1496_v41 = vor.u32 %v1873_v25, %v1493_v27 }
  0x5e   :  { %1044 = vmatpush.bf16.msra.mxu2 %v1312_v50  ;;  %v1653_v50 = vld [vmem:[%s2939_s1 + $0x348] sm:$0xf0] }
  0x5f   :  { %1057 = vmatpush.bf16.msra.mxu3 %v1376_v54  ;;  %v1895_v54 = vld [vmem:[%s2939_s1 + $0x2b4] sm:$0xf]  ;;  %v1656_v57 = vor.u32 %v1913_v49, %v1653_v50  ;;  %v1797_v49 = vld [vmem:[%s2939_s1 + $0x468] sm:$0xf0] }
  0x60   :  { %1019 = vmatpush.bf16.msra.mxu0 %v1748_v58  ;;  %v1861_v58 = vld [vmem:[%s2939_s1 + $0x1a4] sm:$0xf] }
  0x61   :  { %1032 = vmatpush.bf16.msra.mxu1 %v1240_v63  ;;  %v1645_v63 = vld [vmem:[%s2939_s1 + $0x338] sm:$0xf0] }
  0x62   :  { %1045 = vmatpush.bf16.msra.mxu2 %v1304_v6  ;;  %v1448_v6 = vor.u32 %v1861_v58, %v1445_v61  ;;  %v1648_v7 = vor.u32 %v1911_v62, %v1645_v63  ;;  %v1927_v63 = vld [vmem:[%s2939_s1 + $0x3b4] sm:$0xf] }
  0x63   :  { %1020 = vmatmul.bf16.vlgmr.msra.gmra.mxu0 %v2648_v11  ;;  %1058 = vmatpush.bf16.msra.mxu3 %v1368_v16 }
  0x64   :  { %1064 = vmatpush.bf16.msrb.mxu0 %v1488_v0  ;;  %1033 = vmatmul.bf16.vlgmr.msra.gmra.mxu1 %v2264_v4  ;;  %v1661_v4 = vld [vmem:[%s2939_s1 + $0x358] sm:$0xf0]  ;;  %v1584_v0 = vor.u32 %v1895_v54, %v1581_v55  ;;  %v1947_v55 = vld [vmem:[%s2939_s1 + $0x454] sm:$0xf] }
  0x65   :  { %1077 = vmatpush.bf16.msrb.mxu1 %v1552_v5  ;;  %1046 = vmatmul.bf16.vlgmr.msra.gmra.mxu2 %v2287_v14  ;;  %v1589_v14 = vld [vmem:[%s2939_s1 + $0x2c8] sm:$0xf0]  ;;  %v1664_v45 = vor.u32 %v1915_v38, %v1661_v4  ;;  %v1432_v4 = vor.u32 %v1857_v23, %v1429_v24  ;;  %v1725_v54 = vld [vmem:[%s2939_s1 + $0x3d8] sm:$0xf0] }
  0x66   :  { %1090 = vmatpush.bf16.msrb.mxu2 %v1616_v12  ;;  %1059 = vmatmul.bf16.vlgmr.msra.gmra.mxu3 %v2246_v60  ;;  %v1453_v60 = vld [vmem:[%s2939_s1 + $0x1b8] sm:$0xf0]  ;;  %v1592_v51 = vor.u32 %v1897_v43, %v1589_v14  ;;  %v1573_v5 = vld [vmem:[%s2939_s1 + $0x2a8] sm:$0xf0]  ;;  %v1905_v43 = vld [vmem:[%s2939_s1 + $0x304] sm:$0xf] }
  0x67   :  { %1103 = vmatpush.bf16.msrb.mxu3 %v1680_v20  ;;  %v1456_v56 = vor.u32 %v1863_v47, %v1453_v60  ;;  %v1437_v12 = vld [vmem:[%s2939_s1 + $0x198] sm:$0xf0]  ;;  %v1576_v16 = vor.u32 %v1893_v3, %v1573_v5  ;;  %v1557_v38 = vld [vmem:[%s2939_s1 + $0x288] sm:$0xf0]  ;;  %v1933_v47 = vld [vmem:[%s2939_s1 + $0x3e4] sm:$0xf] }
  0x68   :  { %1065 = vmatpush.bf16.msrb.mxu0 %v1480_v19  ;;  %v1891_v19 = vld [vmem:[%s2939_s1 + $0x294] sm:$0xf]  ;;  %v1565_v20 = vld [vmem:[%s2939_s1 + $0x298] sm:$0xf0]  ;;  %v1440_v21 = vor.u32 %v1859_v8, %v1437_v12  ;;  %v1621_v14 = vld [vmem:[%s2939_s1 + $0x308] sm:$0xf0] }
  0x69   :  { %1078 = vmatpush.bf16.msrb.mxu1 %v1544_v22  ;;  %v1640_v22 = vor.u32 %v1909_v13, %v1637_v15  ;;  %v1568_v30 = vor.u32 %v1891_v19, %v1565_v20  ;;  %v1949_v60 = vld [vmem:[%s2939_s1 + $0x464] sm:$0xf]  ;;  %v1624_v50 = vor.u32 %v1905_v43, %v1621_v14  ;;  %v1765_v8 = vld [vmem:[%s2939_s1 + $0x428] sm:$0xf0]  ;;  %v1923_v13 = vld [vmem:[%s2939_s1 + $0x394] sm:$0xf] }
  0x6a   :  { %1091 = vmatpush.bf16.msrb.mxu2 %v1608_v26  ;;  %v1504_v26 = vor.u32 %v1875_v17, %v1501_v18  ;;  %v1800_v52 = vor.u32 %v1949_v60, %v1797_v49  ;;  %v1925_v5 = vld [vmem:[%s2939_s1 + $0x3a4] sm:$0xf]  ;;  %v1693_v15 = vld [vmem:[%s2939_s1 + $0x398] sm:$0xf0]  ;;  %v1749_v23 = vld [vmem:[%s2939_s1 + $0x408] sm:$0xf0] }
  0x6b   :  { %1104 = vmatpush.bf16.msrb.mxu3 %v1672_v32  ;;  %v1741_v32 = vld [vmem:[%s2939_s1 + $0x3f8] sm:$0xf0]  ;;  %v1696_v18 = vor.u32 %v1923_v13, %v1693_v15  ;;  %v1921_v20 = vld [vmem:[%s2939_s1 + $0x384] sm:$0xf] }
  0x6c   :  { %1066 = vmatpush.bf16.msrb.mxu0 %v1472_v31  ;;  %v1935_v31 = vld [vmem:[%s2939_s1 + $0x3f4] sm:$0xf]  ;;  %v1757_v17 = vld [vmem:[%s2939_s1 + $0x418] sm:$0xf0] }
  0x6d   :  { %1079 = vmatpush.bf16.msrb.mxu1 %v1536_v35  ;;  %v1805_v35 = vld [vmem:[%s2939_s1 + $0x478] sm:$0xf0]  ;;  %v1744_v42 = vor.u32 %v1935_v31, %v1741_v32 }
  0x6e   :  { %1092 = vmatpush.bf16.msrb.mxu2 %v1600_v39  ;;  %v1632_v39 = vor.u32 %v1907_v28, %v1629_v29 }
  0x6f   :  { %1105 = vmatpush.bf16.msrb.mxu3 %v1664_v45  ;;  %v1560_v45 = vor.u32 %v1889_v37, %v1557_v38 }
  0x70   :  { %1067 = vmatpush.bf16.msrb.mxu0 %v1464_v44  ;;  %v1808_v44 = vor.u32 %v1951_v34, %v1805_v35  ;;  %v182_v35 = vld [vmem:[%s2941_s2] sm:$0x3] }
  0x71   :  { %1080 = vmatpush.bf16.msrb.mxu1 %v1528_v48  ;;  %v1733_v48 = vld [vmem:[%s2939_s1 + $0x3e8] sm:$0xf0]  ;;  %v184_v37 = vperm.slane %v182_v35, 0 }
  0x72   :  { %1093 = vmatpush.bf16.msrb.mxu2 %v1592_v51  ;;  %v1736_v51 = vor.u32 %v1933_v47, %v1733_v48  ;;  %v1960_v47 = vmov 8.0  }
  0x73   :  { %1106 = vmatpush.bf16.msrb.mxu3 %v1656_v57  ;;  %v1728_v57 = vor.u32 %v1931_v53, %v1725_v54  ;;  %1954 = vrcp.f32 %v1960_v47 }
  0x74   :  { %1068 = vmatpush.bf16.msrb.mxu0 %v1456_v56  ;;  %v1789_v56 = vld [vmem:[%s2939_s1 + $0x458] sm:$0xf0] }
  0x75   :  { %1081 = vmatpush.bf16.msrb.mxu1 %v1520_v59  ;;  %v1792_v58 = vor.u32 %v1947_v55, %v1789_v56  ;;  %v1717_v59 = vld [vmem:[%s2939_s1 + $0x3c8] sm:$0xf0] }
  0x76   :  { %1094 = vmatpush.bf16.msrb.mxu2 %v1584_v0  ;;  %v1943_v0 = vld [vmem:[%s2939_s1 + $0x434] sm:$0xf] }
  0x77   :  { %1107 = vmatpush.bf16.msrb.mxu3 %v1648_v7  ;;  %v1776_v3 = vor.u32 %v1943_v0, %v1773_v1  ;;  %v1941_v7 = vld [vmem:[%s2939_s1 + $0x424] sm:$0xf] }
  0x78   :  { %1069 = vmatpush.bf16.msrb.mxu0 %v1448_v6  ;;  %v1701_v6 = vld [vmem:[%s2939_s1 + $0x3a8] sm:$0xf0]  ;;  %v1768_v12 = vor.u32 %v1941_v7, %v1765_v8 }
  0x79   :  { %1082 = vmatpush.bf16.msrb.mxu1 %v1512_v10  ;;  %v1704_v10 = vor.u32 %v1925_v5, %v1701_v6 }
  0x7a   :  { %1095 = vmatpush.bf16.msrb.mxu2 %v1576_v16  ;;  %v1939_v16 = vld [vmem:[%s2939_s1 + $0x414] sm:$0xf] }
  0x7b   :  { %1108 = vmatpush.bf16.msrb.mxu3 %v1640_v22  ;;  %v1760_v19 = vor.u32 %v1939_v16, %v1757_v17  ;;  %v1937_v22 = vld [vmem:[%s2939_s1 + $0x404] sm:$0xf] }
  0x7c   :  { %1070 = vmatpush.bf16.msrb.mxu0 %v1440_v21  ;;  %v1685_v21 = vld [vmem:[%s2939_s1 + $0x388] sm:$0xf0]  ;;  %v1752_v25 = vor.u32 %v1937_v22, %v1749_v23 }
  0x7d   :  { %1083 = vmatpush.bf16.msrb.mxu1 %v1504_v26  ;;  %v1688_v24 = vor.u32 %v1921_v20, %v1685_v21 }
  0x7e   :  { %1096 = vmatpush.bf16.msrb.mxu2 %v1568_v30 }
  0x7f   :  { %1109 = vmatpush.bf16.msrb.mxu3 %v1632_v39 }
  0x80   :  { %1071 = vmatpush.bf16.msrb.mxu0 %v1432_v4 }
  0x81   :  { %1084 = vmatpush.bf16.msrb.mxu1 %v1496_v41 }
  0x82   :  { %1097 = vmatpush.bf16.msrb.mxu2 %v1560_v45 }
  0x83   :  { %1072 = vmatmul.bf16.vlgmr.msrb.gmra.mxu0 %v2275_v9  ;;  %1110 = vmatpush.bf16.msrb.mxu3 %v1624_v50  ;;  %v1929_v9 = vld [vmem:[%s2939_s1 + $0x3c4] sm:$0xf]  ;;  %v1955_v50 = vpop.eup %1954 }
  0x84   :  { %1116 = vmatpush.bf16.msra.mxu0 %v1744_v42  ;;  %1085 = vmatmul.bf16.vlgmr.msrb.gmra.mxu1 %v2450_v33  ;;  %v1945_v33 = vld [vmem:[%s2939_s1 + $0x444] sm:$0xf]  ;;  %v1720_v61 = vor.u32 %v1929_v9, %v1717_v59  ;;  %vm1159_vm0 = vweird.f32 %v1955_v50 }
  0x85   :  { %1129 = vmatpush.bf16.msra.mxu1 %v1808_v44  ;;  %1098 = vmatmul.bf16.vlgmr.msrb.gmra.mxu2 %v2477_v46  ;;  %v1781_v46 = vld [vmem:[%s2939_s1 + $0x448] sm:$0xf0] }
  0x86   :  { %1111 = vmatmul.bf16.vlgmr.msrb.gmra.mxu3 %v2455_v36  ;;  %v1784_v62 = vor.u32 %v1945_v33, %v1781_v46  ;;  %v1709_v36 = vld [vmem:[%s2939_s1 + $0x3b8] sm:$0xf0] }
  0x87   :  { %v1712_v2 = vor.u32 %v1927_v63, %v1709_v36 }
  0x88   :  { %1117 = vmatpush.bf16.msra.mxu0 %v1736_v51 }
  0x89   :  { %1130 = vmatpush.bf16.msra.mxu1 %v1800_v52  ;;  %v1155_v52 = vmul.f32 8.0, %v1955_v50 }
  0x8b   :  { %v1156_v55 = vsub.f32 1.0, %v1155_v52 }
  0x8c   :  { %1118 = vmatpush.bf16.msra.mxu0 %v1728_v57 }
  0x8d   :  { %1131 = vmatpush.bf16.msra.mxu1 %v1792_v58  ;;  %v1157_v9 = vmul.f32 %v1955_v50, %v1156_v55 }
  0x8f   :  { %v1158_v46 = vadd.f32 %v1955_v50, %v1157_v9 }
  0x90   :  { %1119 = vmatpush.bf16.msra.mxu0 %v1720_v61 }
  0x91   :  { %1132 = vmatpush.bf16.msra.mxu1 %v1784_v62 }
  0x94   :  { %1120 = vmatpush.bf16.msra.mxu0 %v1712_v2  ;;  %v2921_v2 = vsel %vm1159_vm0, %v1955_v50, %v1158_v46 }
  0x95   :  { %1133 = vmatpush.bf16.msra.mxu1 %v1776_v3 }
  0x98   :  { %1121 = vmatpush.bf16.msra.mxu0 %v1704_v10 }
  0x99   :  { %1134 = vmatpush.bf16.msra.mxu1 %v1768_v12 }
  0x9c   :  { %1122 = vmatpush.bf16.msra.mxu0 %v1696_v18  ;;  %v185_v18 = vperm.slane %v182_v35, 1 }
  0x9d   :  { %1135 = vmatpush.bf16.msra.mxu1 %v1760_v19 }
  0xa0   :  { %1123 = vmatpush.bf16.msra.mxu0 %v1688_v24  ;;  %v917_v26 = vpop.f32.mrf.mxu0 }
  0xa1   :  { %1136 = vmatpush.bf16.msra.mxu1 %v1752_v25  ;;  %v930_v27 = vpop.f32.mrf.mxu1  ;;  %v918_v38 = vadd.f32 %v917_v26, %v184_v37 }
  0xa3   :  { %1124 = vmatmul.bf16.vlgmr.msra.gmra.mxu0 %v2463_v40  ;;  %v931_v39 = vadd.f32 %v930_v27, %v918_v38 }
  0xa4   :  { %1137 = vmatmul.bf16.vlgmr.msra.gmra.mxu1 %v2648_v11 }
  0xa8   :  { %v943_v28 = vpop.f32.mrf.mxu2  ;;  %v919_v30 = vpop.f32.mrf.mxu0 }
  0xa9   :  { %v956_v29 = vpop.f32.mrf.mxu3  ;;  %v932_v31 = vpop.f32.mrf.mxu1  ;;  %v944_v40 = vadd.f32 %v943_v28, %v931_v39 }
  0xab   :  { %v957_v14 = vadd.f32 %v956_v29, %v944_v40  ;;  %v1205_v40 = vld [vmem:[%s2942_s3] sm:$0x3] }
  0xb0   :  { %v945_v32 = vpop.f32.mrf.mxu2 }
  0xb1   :  { %v958_v34 = vpop.f32.mrf.mxu3 }
  0xc0   :  { %v969_v4 = vpop.f32.mrf.mxu0 }
  0xc1   :  { %v982_v41 = vpop.f32.mrf.mxu1  ;;  %v970_v45 = vadd.f32 %v969_v4, %v957_v14 }
  0xc3   :  { %v983_v49 = vadd.f32 %v982_v41, %v970_v45 }
  0xc8   :  { %v995_v42 = vpop.f32.mrf.mxu2  ;;  %v971_v43 = vpop.f32.mrf.mxu0 }
  0xc9   :  { %v1008_v11 = vpop.f32.mrf.mxu3  ;;  %v984_v44 = vpop.f32.mrf.mxu1  ;;  %v996_v51 = vadd.f32 %v995_v42, %v983_v49  ;;  %v1207_v43 = vperm.slane %v1205_v40, 0 }
  0xcb   :  { %v1009_v53 = vadd.f32 %v1008_v11, %v996_v51  ;;  %v1213_v11 = vld [vmem:[%s2943_s4] sm:$0x3] }
  0xcc   :  { %v1215_v47 = vperm.slane %v1213_v11, 0 }
  0xd0   :  { %v997_v48 = vpop.f32.mrf.mxu2 }
  0xd1   :  { %v1010_v60 = vpop.f32.mrf.mxu3 }
  0xe0   :  { %v1021_v54 = vpop.f32.mrf.mxu0 }
  0xe1   :  { %v1022_v56 = vadd.f32 %v1021_v54, %v1009_v53  ;;  %v1034_v57 = vpop.f32.mrf.mxu1 }
  0xe2   :  { %v1035_v23 = vadd.f32 %v1034_v57, %v185_v18 }
  0xe3   :  { %v1142_v58 = vrot.slane %v1022_v56, 4 }
  0xe5   :  { %v1143_v59 = vadd.f32 %v1142_v58, %v1022_v56 }
  0xe7   :  { %v1144_v33 = vrot.slane %v1143_v59, 2 }
  0xe8   :  { %v1023_v61 = vpop.f32.mrf.mxu0  ;;  %v1047_v63 = vpop.f32.mrf.mxu2 }
  0xe9   :  { %v1145_v62 = vadd.f32 %v1144_v33, %v1143_v59  ;;  %v1036_v36 = vpop.f32.mrf.mxu1  ;;  %v1060_v0 = vpop.f32.mrf.mxu3  ;;  %v1048_v25 = vadd.f32 %v1047_v63, %v1035_v23 }
  0xeb   :  { %v1146_v1 = vrot.slane %v1145_v62, 1  ;;  %v1061_v30 = vadd.f32 %v1060_v0, %v1048_v25 }
  0xed   :  { %v1147_v3 = vadd.f32 %v1146_v1, %v1145_v62 }
  0xef   :  { %v1161_v5 = vmul.f32 %v2921_v2, %v1147_v3 }
  0xf0   :  { %v1049_v7 = vpop.f32.mrf.mxu2 }
  0xf1   :  { %v1163_v6 = vsub.f32 %v1022_v56, %v1161_v5  ;;  %v1062_v8 = vpop.f32.mrf.mxu3 }
  0xf3   :  { %v1165_v10 = vmul.f32 %v1163_v6, %v1163_v6 }
  0xf5   :  { %v1167_v12 = vrot.slane %v1165_v10, 4 }
  0xf7   :  { %v1168_v13 = vadd.f32 %v1167_v12, %v1165_v10 }
  0xf9   :  { %v1169_v15 = vrot.slane %v1168_v13, 2 }
  0xfb   :  { %v1170_v16 = vadd.f32 %v1169_v15, %v1168_v13 }
  0xfd   :  { %v1171_v17 = vrot.slane %v1170_v16, 1 }
  0xff   :  { %v1172_v21 = vadd.f32 %v1171_v17, %v1170_v16 }
 0x100   :  { %v1073_v19 = vpop.f32.mrf.mxu0 }
 0x101   :  { %v1086_v20 = vpop.f32.mrf.mxu1  ;;  %v1179_v22 = vmul.f32 %v1172_v21, %v2921_v2  ;;  %v1074_v34 = vadd.f32 %v1073_v19, %v1061_v30  ;;  %v1208_v19 = vperm.slane %v1205_v40, 1 }
 0x103   :  { %v1181_v24 = vadd.f32 0.8, %v1179_v22  ;;  %v1087_v39 = vadd.f32 %v1086_v20, %v1074_v34  ;;  %v1216_v22 = vperm.slane %v1213_v11, 1 }
 0x105   :  { %1956 = vrsqrt.f32 %v1181_v24  ;;  %vm1189_vm2 = vweird.f32 %v1181_v24 }
 0x108   :  { %v1099_v26 = vpop.f32.mrf.mxu2  ;;  %v1075_v27 = vpop.f32.mrf.mxu0 }
 0x109   :  { %v1088_v28 = vpop.f32.mrf.mxu1  ;;  %v1112_v29 = vpop.f32.mrf.mxu3  ;;  %v1100_v14 = vadd.f32 %v1099_v26, %v1087_v39 }
 0x10b   :  { %v1957_v31 = vpop.eup %1956  ;;  %v1113_v60 = vadd.f32 %v1112_v29, %v1100_v14 }
 0x10c   :  { %v1184_v32 = vmul.f32 %v1957_v31, %v1181_v24  ;;  %vm1190_vm1 = vweird.f32 %v1957_v31 }
 0x10d   :  { %vm1191_vm3 = vmor %vm1189_vm2, %vm1190_vm1 }
 0x10e   :  { %v1185_v38 = vmul.f32 %v1957_v31, %v1184_v32 }
 0x110   :  { %v1101_v37 = vpop.f32.mrf.mxu2  ;;  %v1186_v4 = vmul.f32 0.5, %v1185_v38 }
 0x111   :  { %v1114_v35 = vpop.f32.mrf.mxu3 }
 0x112   :  { %v1187_v41 = vsub.f32 1.5, %v1186_v4 }
 0x114   :  { %v1188_v42 = vmul.f32 %v1957_v31, %v1187_v41 }
 0x116   :  { %v1192_v44 = vsel %vm1191_vm3, %v1957_v31, %v1188_v42 }
 0x117   :  { %v1203_v45 = vmul.f32 %v1192_v44, %v1163_v6 }
 0x119   :  { %v1211_v48 = vmul.f32 %v1207_v43, %v1203_v45 }
 0x11b   :  { %v1219_v50 = vadd.f32 %v1215_v47, %v1211_v48 }
 0x11d   :  { %vm1221_vm4 = vcmp.ge.f32.partialorder %v1219_v50, 0.0  ;;  %v1223_v53 = vmul.f32 0.2, %v1219_v50 }
 0x11f   :  { %v1225_v55 = vsel %vm1221_vm4, %v1219_v50, %v1223_v53 }
 0x120   :  { %v1125_v49 = vpop.f32.mrf.mxu0  ;;  %1227 = vst [vmem:[%s2944_s5] sm:$0xff] %v1225_v55 }
 0x121   :  { %v1126_v51 = vadd.f32 %v1125_v49, %v1113_v60  ;;  %v1138_v52 = vpop.f32.mrf.mxu1 }
 0x123   :  { %v1139_v54 = vadd.f32 %v1138_v52, %v1126_v51 }
 0x125   :  { %v1148_v56 = vrot.slane %v1139_v54, 4 }
 0x127   :  { %v1149_v57 = vadd.f32 %v1148_v56, %v1139_v54 }
 0x128   :  { %v1127_v58 = vpop.f32.mrf.mxu0 }
 0x129   :  { %v1150_v9 = vrot.slane %v1149_v57, 2  ;;  %v1140_v59 = vpop.f32.mrf.mxu1 }
 0x12b   :  { %v1151_v33 = vadd.f32 %v1150_v9, %v1149_v57 }
 0x12d   :  { %v1152_v46 = vrot.slane %v1151_v33, 1 }
 0x12f   :  { %v1153_v61 = vadd.f32 %v1152_v46, %v1151_v33 }
 0x131   :  { %v1162_v62 = vmul.f32 %v2921_v2, %v1153_v61 }
 0x133   :  { %v1164_v63 = vsub.f32 %v1139_v54, %v1162_v62 }
 0x135   :  { %v1166_v36 = vmul.f32 %v1164_v63, %v1164_v63 }
 0x137   :  { %v1173_v0 = vrot.slane %v1166_v36, 4 }
 0x139   :  { %v1174_v1 = vadd.f32 %v1173_v0, %v1166_v36 }
 0x13b   :  { %v1175_v3 = vrot.slane %v1174_v1, 2 }
 0x13d   :  { %v1176_v5 = vadd.f32 %v1175_v3, %v1174_v1 }
 0x13f   :  { %v1177_v6 = vrot.slane %v1176_v5, 1 }
 0x141   :  { %v1178_v7 = vadd.f32 %v1177_v6, %v1176_v5 }
 0x143   :  { %v1180_v8 = vmul.f32 %v1178_v7, %v2921_v2 }
 0x145   :  { %v1182_v10 = vadd.f32 0.8, %v1180_v8 }
 0x147   :  { %1958 = vrsqrt.f32 %v1182_v10  ;;  %vm1199_vm6 = vweird.f32 %v1182_v10 }
 0x14d   :  { %v1959_v12 = vpop.eup %1958 }
 0x14e   :  { %v1194_v13 = vmul.f32 %v1959_v12, %v1182_v10  ;;  %vm1200_vm5 = vweird.f32 %v1959_v12 }
 0x14f   :  { %vm1201_vm7 = vmor %vm1199_vm6, %vm1200_vm5 }
 0x150   :  { %v1195_v15 = vmul.f32 %v1959_v12, %v1194_v13 }
 0x152   :  { %v1196_v16 = vmul.f32 0.5, %v1195_v15 }
 0x154   :  { %v1197_v17 = vsub.f32 1.5, %v1196_v16 }
 0x156   :  { %v1198_v18 = vmul.f32 %v1959_v12, %v1197_v17 }
 0x158   :  { %v1202_v20 = vsel %vm1201_vm7, %v1959_v12, %v1198_v18 }
 0x159   :  { %v1204_v21 = vmul.f32 %v1202_v20, %v1164_v63 }
 0x15b   :  { %v1212_v23 = vmul.f32 %v1208_v19, %v1204_v21 }
 0x15d   :  { %v1220_v24 = vadd.f32 %v1216_v22, %v1212_v23 }
 0x15f   :  { %vm1222_vm8 = vcmp.ge.f32.partialorder %v1220_v24, 0.0  ;;  %v1224_v25 = vmul.f32 0.2, %v1220_v24 }
 0x161   :  { %v1226_v2 = vsel %vm1222_vm8, %v1220_v24, %v1224_v25 }
 0x162   :  { %1228 = vst [vmem:[%s2944_s5 + $0x8] sm:$0xff] %v1226_v2 }

// kernel: discriminator_forward.8
= control target key start
LH: loop header
LB: loop body
LE: loop exit
PB: predicated region body
PF: predicated region fallthrough
CT: control target
= control target key end

     0   :  { %10 = vsyncpa [#allocation3], 0  ;;  %s7620_s21 = smov [#allocation2]   ;;  %s7621_s23 = smov 256   ;;  %s7959_s0 = inlined_call_operand.vmem [shape: f32[2,2304], index: 0, kind: input, shape index: {}]   ;;  %s7960_s1 = inlined_call_operand.hbm [shape: bf16[2304,512], index: 1, kind: input, shape index: {}]   ;;  %s7961_s2 = inlined_call_operand.vmem [shape: f32[1,512], index: 2, kind: input, shape index: {}]   ;;  %s7962_s3 = inlined_call_operand.vmem [shape: f32[1,512], index: 3, kind: input, shape index: {}]   ;;  %s7963_s4 = inlined_call_operand.vmem [shape: f32[1,512], index: 4, kind: input, shape index: {}]   ;;  %s7964_s5 = inlined_call_operand.vmem [shape: f32[2,512], index: 5, kind: output, shape index: {}]  }
   0x1   :  { %s17_s20 = sshll.u32 %s7960_s1, 4  ;;  %s19_s22 = sshll.u32 %s7620_s21, 4  ;;  %s18_s20 = int_to_ptr.hbm [resolvable:$true] %s17_s20  ;;  %s20_s22 = int_to_ptr.vmem [resolvable:$true] %s19_s22 }
   0x2   :  { %s7622_s24 = smov 16  }
   0x3   :  { %25 = dma.hbm_to_vmem [thread:$0]  %s18_s20, 73728, %s20_s22, [#allocation3], %s7621_s23, %s7621_s23, %s7622_s24  }
   0x4   :  { %7618 = dma.done.wait [#allocation3], 73728  }
   0x5   :  { %7619 = vsyncadd [#allocation3], 4294893568  ;;  %v4809_v0 = vld [vmem:[#allocation2 + $0xe0] sm:$0xf]  ;;  %v7029_v1 = vld [vmem:[#allocation2 + $0xec] sm:$0xf0] }
   0x6   :  { %v4937_v2 = vld [vmem:[#allocation2 + $0x1e0] sm:$0xf]  ;;  %v4810_v3 = vor.u32 %v7029_v1, %v4809_v0  ;;  %v7061_v4 = vld [vmem:[#allocation2 + $0x1ec] sm:$0xf0]  ;;  %vm4508_vm0 = vcmask 1041408  }
   0x7   :  { %v5065_v5 = vld [vmem:[#allocation2 + $0x2e0] sm:$0xf]  ;;  %v7093_v6 = vld [vmem:[#allocation2 + $0x2ec] sm:$0xf0]  ;;  %v4938_v7 = vor.u32 %v7061_v4, %v4937_v2 }
   0x8   :  { %v5066_v8 = vor.u32 %v7093_v6, %v5065_v5  ;;  %v5193_v9 = vld [vmem:[#allocation2 + $0x3e0] sm:$0xf]  ;;  %v7125_v10 = vld [vmem:[#allocation2 + $0x3ec] sm:$0xf0]  ;;  %3572 = vmatpush.bf16.msra.mxu0 %v4810_v3 }
   0x9   :  { %v4793_v11 = vld [vmem:[#allocation2 + $0xc0] sm:$0xf]  ;;  %v5194_v12 = vor.u32 %v7125_v10, %v5193_v9  ;;  %v7025_v13 = vld [vmem:[#allocation2 + $0xcc] sm:$0xf0]  ;;  %3585 = vmatpush.bf16.msra.mxu1 %v4938_v7 }
   0xa   :  { %v4921_v14 = vld [vmem:[#allocation2 + $0x1c0] sm:$0xf]  ;;  %v7057_v15 = vld [vmem:[#allocation2 + $0x1cc] sm:$0xf0]  ;;  %3598 = vmatpush.bf16.msra.mxu2 %v5066_v8  ;;  %v4794_v16 = vor.u32 %v7025_v13, %v4793_v11 }
   0xb   :  { %v4922_v17 = vor.u32 %v7057_v15, %v4921_v14  ;;  %v5049_v18 = vld [vmem:[#allocation2 + $0x2c0] sm:$0xf]  ;;  %v7089_v19 = vld [vmem:[#allocation2 + $0x2cc] sm:$0xf0]  ;;  %3611 = vmatpush.bf16.msra.mxu3 %v5194_v12 }
   0xc   :  { %v5177_v20 = vld [vmem:[#allocation2 + $0x3c0] sm:$0xf]  ;;  %v5050_v21 = vor.u32 %v7089_v19, %v5049_v18  ;;  %v7121_v22 = vld [vmem:[#allocation2 + $0x3cc] sm:$0xf0]  ;;  %3573 = vmatpush.bf16.msra.mxu0 %v4794_v16 }
   0xd   :  { %v4777_v23 = vld [vmem:[#allocation2 + $0xa0] sm:$0xf]  ;;  %v7021_v24 = vld [vmem:[#allocation2 + $0xac] sm:$0xf0]  ;;  %v5178_v25 = vor.u32 %v7121_v22, %v5177_v20  ;;  %3586 = vmatpush.bf16.msra.mxu1 %v4922_v17 }
   0xe   :  { %v4905_v26 = vld [vmem:[#allocation2 + $0x1a0] sm:$0xf]  ;;  %v7053_v27 = vld [vmem:[#allocation2 + $0x1ac] sm:$0xf0]  ;;  %v4778_v29 = vor.u32 %v7021_v24, %v4777_v23  ;;  %3599 = vmatpush.bf16.msra.mxu2 %v5050_v21 }
   0xf   :  { %v5033_v28 = vld [vmem:[#allocation2 + $0x2a0] sm:$0xf]  ;;  %v7085_v30 = vld [vmem:[#allocation2 + $0x2ac] sm:$0xf0]  ;;  %v4906_v33 = vor.u32 %v7053_v27, %v4905_v26  ;;  %3612 = vmatpush.bf16.msra.mxu3 %v5178_v25 }
  0x10   :  { %v5161_v31 = vld [vmem:[#allocation2 + $0x3a0] sm:$0xf]  ;;  %v7117_v32 = vld [vmem:[#allocation2 + $0x3ac] sm:$0xf0]  ;;  %v5034_v34 = vor.u32 %v7085_v30, %v5033_v28  ;;  %3574 = vmatpush.bf16.msra.mxu0 %v4778_v29 }
  0x11   :  { %v4761_v35 = vld [vmem:[#allocation2 + $0x80] sm:$0xf]  ;;  %v7017_v36 = vld [vmem:[#allocation2 + $0x8c] sm:$0xf0]  ;;  %v5162_v38 = vor.u32 %v7117_v32, %v5161_v31  ;;  %3587 = vmatpush.bf16.msra.mxu1 %v4906_v33 }
  0x12   :  { %v4889_v37 = vld [vmem:[#allocation2 + $0x180] sm:$0xf]  ;;  %v7049_v39 = vld [vmem:[#allocation2 + $0x18c] sm:$0xf0]  ;;  %v4762_v44 = vor.u32 %v7017_v36, %v4761_v35  ;;  %3600 = vmatpush.bf16.msra.mxu2 %v5034_v34 }
  0x13   :  { %v5017_v40 = vld [vmem:[#allocation2 + $0x280] sm:$0xf]  ;;  %v7081_v41 = vld [vmem:[#allocation2 + $0x28c] sm:$0xf0]  ;;  %v4890_v45 = vor.u32 %v7049_v39, %v4889_v37  ;;  %3613 = vmatpush.bf16.msra.mxu3 %v5162_v38 }
  0x14   :  { %v5145_v42 = vld [vmem:[#allocation2 + $0x380] sm:$0xf]  ;;  %v7113_v43 = vld [vmem:[#allocation2 + $0x38c] sm:$0xf0]  ;;  %v5018_v46 = vor.u32 %v7081_v41, %v5017_v40  ;;  %3575 = vmatpush.bf16.msra.mxu0 %v4762_v44 }
  0x15   :  { %v4745_v47 = vld [vmem:[#allocation2 + $0x60] sm:$0xf]  ;;  %v7013_v48 = vld [vmem:[#allocation2 + $0x6c] sm:$0xf0]  ;;  %v5146_v50 = vor.u32 %v7113_v43, %v5145_v42  ;;  %3588 = vmatpush.bf16.msra.mxu1 %v4890_v45 }
  0x16   :  { %v4873_v49 = vld [vmem:[#allocation2 + $0x160] sm:$0xf]  ;;  %v7045_v51 = vld [vmem:[#allocation2 + $0x16c] sm:$0xf0]  ;;  %v4746_v56 = vor.u32 %v7013_v48, %v4745_v47  ;;  %3601 = vmatpush.bf16.msra.mxu2 %v5018_v46 }
  0x17   :  { %v5001_v52 = vld [vmem:[#allocation2 + $0x260] sm:$0xf]  ;;  %v7077_v53 = vld [vmem:[#allocation2 + $0x26c] sm:$0xf0]  ;;  %v4874_v57 = vor.u32 %v7045_v51, %v4873_v49  ;;  %3614 = vmatpush.bf16.msra.mxu3 %v5146_v50 }
  0x18   :  { %v5129_v54 = vld [vmem:[#allocation2 + $0x360] sm:$0xf]  ;;  %v7109_v55 = vld [vmem:[#allocation2 + $0x36c] sm:$0xf0]  ;;  %v5002_v58 = vor.u32 %v7077_v53, %v5001_v52  ;;  %3576 = vmatpush.bf16.msra.mxu0 %v4746_v56 }
  0x19   :  { %v4729_v59 = vld [vmem:[#allocation2 + $0x40] sm:$0xf]  ;;  %v7009_v60 = vld [vmem:[#allocation2 + $0x4c] sm:$0xf0]  ;;  %v5130_v62 = vor.u32 %v7109_v55, %v5129_v54  ;;  %3589 = vmatpush.bf16.msra.mxu1 %v4874_v57 }
  0x1a   :  { %v4857_v61 = vld [vmem:[#allocation2 + $0x140] sm:$0xf]  ;;  %v7041_v63 = vld [vmem:[#allocation2 + $0x14c] sm:$0xf0]  ;;  %v4730_v4 = vor.u32 %v7009_v60, %v4729_v59  ;;  %3602 = vmatpush.bf16.msra.mxu2 %v5002_v58 }
  0x1b   :  { %v4985_v0 = vld [vmem:[#allocation2 + $0x240] sm:$0xf]  ;;  %v7073_v1 = vld [vmem:[#allocation2 + $0x24c] sm:$0xf0]  ;;  %v4858_v5 = vor.u32 %v7041_v63, %v4857_v61  ;;  %3615 = vmatpush.bf16.msra.mxu3 %v5130_v62 }
  0x1c   :  { %v5113_v2 = vld [vmem:[#allocation2 + $0x340] sm:$0xf]  ;;  %v7105_v3 = vld [vmem:[#allocation2 + $0x34c] sm:$0xf0]  ;;  %v4986_v6 = vor.u32 %v7073_v1, %v4985_v0  ;;  %3577 = vmatpush.bf16.msra.mxu0 %v4730_v4 }
  0x1d   :  { %v4713_v7 = vld [vmem:[#allocation2 + $0x20] sm:$0xf]  ;;  %v7005_v8 = vld [vmem:[#allocation2 + $0x2c] sm:$0xf0]  ;;  %v5114_v10 = vor.u32 %v7105_v3, %v5113_v2  ;;  %3590 = vmatpush.bf16.msra.mxu1 %v4858_v5  ;;  %v36_v2 = vld [vmem:[%s7959_s0] sm:$0xff] }
  0x1e   :  { %v4841_v9 = vld [vmem:[#allocation2 + $0x120] sm:$0xf]  ;;  %v7037_v11 = vld [vmem:[#allocation2 + $0x12c] sm:$0xf0]  ;;  %v4714_v16 = vor.u32 %v7005_v8, %v4713_v7  ;;  %3603 = vmatpush.bf16.msra.mxu2 %v4986_v6  ;;  %46 = vst [vmem:[#allocation1] ss:$4 sm:$0xff] %v36_v2 }
  0x1f   :  { %v4969_v12 = vld [vmem:[#allocation2 + $0x220] sm:$0xf]  ;;  %v7069_v13 = vld [vmem:[#allocation2 + $0x22c] sm:$0xf0]  ;;  %v4842_v19 = vor.u32 %v7037_v11, %v4841_v9  ;;  %3616 = vmatpush.bf16.msra.mxu3 %v5114_v10 }
  0x20   :  { %v5097_v14 = vld [vmem:[#allocation2 + $0x320] sm:$0xf]  ;;  %v7101_v15 = vld [vmem:[#allocation2 + $0x32c] sm:$0xf0]  ;;  %v4970_v20 = vor.u32 %v7069_v13, %v4969_v12  ;;  %3578 = vmatpush.bf16.msra.mxu0 %v4714_v16 }
  0x21   :  { %v4697_v17 = vld [vmem:[#allocation2] sm:$0xf]  ;;  %v7001_v18 = vld [vmem:[#allocation2 + $0xc] sm:$0xf0]  ;;  %v5098_v24 = vor.u32 %v7101_v15, %v5097_v14  ;;  %3591 = vmatpush.bf16.msra.mxu1 %v4842_v19 }
  0x22   :  { %v4825_v21 = vld [vmem:[#allocation2 + $0x100] sm:$0xf]  ;;  %v7033_v22 = vld [vmem:[#allocation2 + $0x10c] sm:$0xf0]  ;;  %v4698_v31 = vor.u32 %v7001_v18, %v4697_v17  ;;  %3604 = vmatpush.bf16.msra.mxu2 %v4970_v20 }
  0x23   :  { %v4953_v23 = vld [vmem:[#allocation2 + $0x200] sm:$0xf]  ;;  %v7065_v25 = vld [vmem:[#allocation2 + $0x20c] sm:$0xf0]  ;;  %v4826_v35 = vor.u32 %v7033_v22, %v4825_v21  ;;  %3617 = vmatpush.bf16.msra.mxu3 %v5098_v24 }
  0x24   :  { %v5081_v26 = vld [vmem:[#allocation2 + $0x300] sm:$0xf]  ;;  %v7097_v27 = vld [vmem:[#allocation2 + $0x30c] sm:$0xf0]  ;;  %v4954_v36 = vor.u32 %v7065_v25, %v4953_v23  ;;  %3579 = vmatpush.bf16.msra.mxu0 %v4698_v31 }
  0x25   :  { %v5321_v28 = vld [vmem:[#allocation2 + $0x4e0] sm:$0xf]  ;;  %v7157_v29 = vld [vmem:[#allocation2 + $0x4ec] sm:$0xf0]  ;;  %v5082_v39 = vor.u32 %v7097_v27, %v5081_v26  ;;  %3592 = vmatpush.bf16.msra.mxu1 %v4826_v35  ;;  %v38_v27 = vld [vmem:[%s7959_s0 + $0x10] sm:$0xff] }
  0x26   :  { %v5449_v30 = vld [vmem:[#allocation2 + $0x5e0] sm:$0xf]  ;;  %v7189_v32 = vld [vmem:[#allocation2 + $0x5ec] sm:$0xf0]  ;;  %v5322_v40 = vor.u32 %v7157_v29, %v5321_v28  ;;  %3605 = vmatpush.bf16.msra.mxu2 %v4954_v36 }
  0x27   :  { %v5577_v33 = vld [vmem:[#allocation2 + $0x6e0] sm:$0xf]  ;;  %v7221_v34 = vld [vmem:[#allocation2 + $0x6ec] sm:$0xf0]  ;;  %v5450_v41 = vor.u32 %v7189_v32, %v5449_v30  ;;  %3618 = vmatpush.bf16.msra.mxu3 %v5082_v39 }
  0x28   :  { %v5705_v37 = vld [vmem:[#allocation2 + $0x7e0] sm:$0xf]  ;;  %v7253_v38 = vld [vmem:[#allocation2 + $0x7ec] sm:$0xf0]  ;;  %v5578_v42 = vor.u32 %v7221_v34, %v5577_v33  ;;  %3624 = vmatpush.bf16.msrb.mxu0 %v5322_v40 }
  0x29   :  { %v5305_v43 = vld [vmem:[#allocation2 + $0x4c0] sm:$0xf]  ;;  %v7153_v44 = vld [vmem:[#allocation2 + $0x4cc] sm:$0xf0]  ;;  %v5706_v46 = vor.u32 %v7253_v38, %v5705_v37  ;;  %3637 = vmatpush.bf16.msrb.mxu1 %v5450_v41 }
  0x2a   :  { %v5433_v45 = vld [vmem:[#allocation2 + $0x5c0] sm:$0xf]  ;;  %v7185_v47 = vld [vmem:[#allocation2 + $0x5cc] sm:$0xf0]  ;;  %v5306_v52 = vor.u32 %v7153_v44, %v5305_v43  ;;  %3650 = vmatpush.bf16.msrb.mxu2 %v5578_v42 }
  0x2b   :  { %v5561_v48 = vld [vmem:[#allocation2 + $0x6c0] sm:$0xf]  ;;  %v7217_v49 = vld [vmem:[#allocation2 + $0x6cc] sm:$0xf0]  ;;  %v5434_v53 = vor.u32 %v7185_v47, %v5433_v45  ;;  %3663 = vmatpush.bf16.msrb.mxu3 %v5706_v46 }
  0x2c   :  { %v5689_v50 = vld [vmem:[#allocation2 + $0x7c0] sm:$0xf]  ;;  %v7249_v51 = vld [vmem:[#allocation2 + $0x7cc] sm:$0xf0]  ;;  %v5562_v54 = vor.u32 %v7217_v49, %v5561_v48  ;;  %3625 = vmatpush.bf16.msrb.mxu0 %v5306_v52 }
  0x2d   :  { %v5289_v55 = vld [vmem:[#allocation2 + $0x4a0] sm:$0xf]  ;;  %v7149_v56 = vld [vmem:[#allocation2 + $0x4ac] sm:$0xf0]  ;;  %v5690_v58 = vor.u32 %v7249_v51, %v5689_v50  ;;  %3638 = vmatpush.bf16.msrb.mxu1 %v5434_v53 }
  0x2e   :  { %v5417_v57 = vld [vmem:[#allocation2 + $0x5a0] sm:$0xf]  ;;  %v7181_v59 = vld [vmem:[#allocation2 + $0x5ac] sm:$0xf0]  ;;  %v5290_v0 = vor.u32 %v7149_v56, %v5289_v55  ;;  %3651 = vmatpush.bf16.msrb.mxu2 %v5562_v54 }
  0x2f   :  { %v5545_v60 = vld [vmem:[#allocation2 + $0x6a0] sm:$0xf]  ;;  %v7213_v61 = vld [vmem:[#allocation2 + $0x6ac] sm:$0xf0]  ;;  %v5418_v3 = vor.u32 %v7181_v59, %v5417_v57  ;;  %3664 = vmatpush.bf16.msrb.mxu3 %v5690_v58 }
  0x30   :  { %v5673_v62 = vld [vmem:[#allocation2 + $0x7a0] sm:$0xf]  ;;  %v7245_v63 = vld [vmem:[#allocation2 + $0x7ac] sm:$0xf0]  ;;  %v5546_v4 = vor.u32 %v7213_v61, %v5545_v60  ;;  %3626 = vmatpush.bf16.msrb.mxu0 %v5290_v0 }
  0x31   :  { %v5273_v1 = vld [vmem:[#allocation2 + $0x480] sm:$0xf]  ;;  %v7145_v5 = vld [vmem:[#allocation2 + $0x48c] sm:$0xf0]  ;;  %v5674_v7 = vor.u32 %v7245_v63, %v5673_v62  ;;  %3639 = vmatpush.bf16.msrb.mxu1 %v5418_v3 }
  0x32   :  { %v5401_v6 = vld [vmem:[#allocation2 + $0x580] sm:$0xf]  ;;  %v7177_v8 = vld [vmem:[#allocation2 + $0x58c] sm:$0xf0]  ;;  %v5274_v13 = vor.u32 %v7145_v5, %v5273_v1  ;;  %3652 = vmatpush.bf16.msrb.mxu2 %v5546_v4 }
  0x33   :  { %v5529_v9 = vld [vmem:[#allocation2 + $0x680] sm:$0xf]  ;;  %v7209_v10 = vld [vmem:[#allocation2 + $0x68c] sm:$0xf0]  ;;  %v5402_v16 = vor.u32 %v7177_v8, %v5401_v6  ;;  %3665 = vmatpush.bf16.msrb.mxu3 %v5674_v7 }
  0x34   :  { %v5657_v11 = vld [vmem:[#allocation2 + $0x780] sm:$0xf]  ;;  %v7241_v12 = vld [vmem:[#allocation2 + $0x78c] sm:$0xf0]  ;;  %v5530_v17 = vor.u32 %v7209_v10, %v5529_v9  ;;  %3627 = vmatpush.bf16.msrb.mxu0 %v5274_v13 }
  0x35   :  { %v5257_v14 = vld [vmem:[#allocation2 + $0x460] sm:$0xf]  ;;  %v7141_v15 = vld [vmem:[#allocation2 + $0x46c] sm:$0xf0]  ;;  %v5658_v21 = vor.u32 %v7241_v12, %v5657_v11  ;;  %3640 = vmatpush.bf16.msrb.mxu1 %v5402_v16 }
  0x36   :  { %v5385_v18 = vld [vmem:[#allocation2 + $0x560] sm:$0xf]  ;;  %v7173_v19 = vld [vmem:[#allocation2 + $0x56c] sm:$0xf0]  ;;  %v5258_v28 = vor.u32 %v7141_v15, %v5257_v14  ;;  %3653 = vmatpush.bf16.msrb.mxu2 %v5530_v17 }
  0x37   :  { %v5513_v20 = vld [vmem:[#allocation2 + $0x660] sm:$0xf]  ;;  %v7205_v22 = vld [vmem:[#allocation2 + $0x66c] sm:$0xf0]  ;;  %v5386_v29 = vor.u32 %v7173_v19, %v5385_v18  ;;  %3666 = vmatpush.bf16.msrb.mxu3 %v5658_v21 }
  0x38   :  { %v5641_v23 = vld [vmem:[#allocation2 + $0x760] sm:$0xf]  ;;  %v7237_v24 = vld [vmem:[#allocation2 + $0x76c] sm:$0xf0]  ;;  %v5514_v34 = vor.u32 %v7205_v22, %v5513_v20  ;;  %3628 = vmatpush.bf16.msrb.mxu0 %v5258_v28 }
  0x39   :  { %v5241_v25 = vld [vmem:[#allocation2 + $0x440] sm:$0xf]  ;;  %v7137_v26 = vld [vmem:[#allocation2 + $0x44c] sm:$0xf0]  ;;  %v5642_v39 = vor.u32 %v7237_v24, %v5641_v23  ;;  %3641 = vmatpush.bf16.msrb.mxu1 %v5386_v29 }
  0x3a   :  { %v5369_v30 = vld [vmem:[#allocation2 + $0x540] sm:$0xf]  ;;  %v7169_v31 = vld [vmem:[#allocation2 + $0x54c] sm:$0xf0]  ;;  %v5242_v46 = vor.u32 %v7137_v26, %v5241_v25  ;;  %3654 = vmatpush.bf16.msrb.mxu2 %v5514_v34 }
  0x3b   :  { %v51_v32 = vld.sshfl [vmem:[#allocation1 + $0x10] sm:$0xff pattern:$0x73625140]  ;;  %v49_v33 = vld.sshfl [vmem:[#allocation1] sm:$0xff pattern:$0x73625140]  ;;  %v5370_v49 = vor.u32 %v7169_v31, %v5369_v30  ;;  %3667 = vmatpush.bf16.msrb.mxu3 %v5642_v39 }
  0x3c   :  { %v7663_v35 = vpack.c.bf16 %v51_v32, %v51_v32  ;;  %v7665_v36 = vpack.c.bf16 %v49_v33, %v49_v33  ;;  %v52_v37 = vld.sshfl [vmem:[#allocation1 + $0x18] sm:$0xff pattern:$0x73625140]  ;;  %v50_v38 = vld.sshfl [vmem:[#allocation1 + $0x8] sm:$0xff pattern:$0x73625140]  ;;  %3629 = vmatpush.bf16.msrb.mxu0 %v5242_v46 }
  0x3d   :  { %v5497_v40 = vld [vmem:[#allocation2 + $0x640] sm:$0xf]  ;;  %v7201_v41 = vld [vmem:[#allocation2 + $0x64c] sm:$0xf0]  ;;  %v7667_v42 = vpack.c.bf16 %v52_v37, %v52_v37  ;;  %57 = vst [vmem:[#allocation1] ss:$4 sm:$0xff] %v38_v27  ;;  %v7669_v43 = vpack.c.bf16 %v50_v38, %v50_v38  ;;  %3642 = vmatpush.bf16.msrb.mxu1 %v5370_v49 }
  0x3e   :  { %v5625_v44 = vld [vmem:[#allocation2 + $0x740] sm:$0xf]  ;;  %v7233_v45 = vld [vmem:[#allocation2 + $0x74c] sm:$0xf0]  ;;  %3606 = vmatmul.bf16.vlgmr.msra.gmra.mxu2 %v7663_v35  ;;  %3580 = vmatmul.bf16.vlgmr.msra.gmra.mxu0 %v7665_v36  ;;  %v5498_v50 = vor.u32 %v7201_v41, %v5497_v40 }
  0x3f   :  { %3619 = vmatmul.bf16.vlgmr.msra.gmra.mxu3 %v7667_v42  ;;  %v5225_v47 = vld [vmem:[#allocation2 + $0x420] sm:$0xf]  ;;  %v7133_v48 = vld [vmem:[#allocation2 + $0x42c] sm:$0xf0]  ;;  %v5626_v54 = vor.u32 %v7233_v45, %v5625_v44  ;;  %3593 = vmatmul.bf16.vlgmr.msra.gmra.mxu1 %v7669_v43 }
  0x40   :  { %v5353_v51 = vld [vmem:[#allocation2 + $0x520] sm:$0xf]  ;;  %v7165_v52 = vld [vmem:[#allocation2 + $0x52c] sm:$0xf0]  ;;  %v5226_v60 = vor.u32 %v7133_v48, %v5225_v47  ;;  %3655 = vmatpush.bf16.msrb.mxu2 %v5498_v50 }
  0x41   :  { %v5481_v53 = vld [vmem:[#allocation2 + $0x620] sm:$0xf]  ;;  %v7197_v55 = vld [vmem:[#allocation2 + $0x62c] sm:$0xf0]  ;;  %v5354_v0 = vor.u32 %v7165_v52, %v5353_v51  ;;  %3668 = vmatpush.bf16.msrb.mxu3 %v5626_v54 }
  0x42   :  { %v5609_v56 = vld [vmem:[#allocation2 + $0x720] sm:$0xf]  ;;  %v7229_v58 = vld [vmem:[#allocation2 + $0x72c] sm:$0xf0]  ;;  %v5482_v1 = vor.u32 %v7197_v55, %v5481_v53  ;;  %3630 = vmatpush.bf16.msrb.mxu0 %v5226_v60 }
  0x43   :  { %v37_v57 = vld [vmem:[%s7959_s0 + $0x8] sm:$0xff]  ;;  %v7129_v61 = vld [vmem:[#allocation2 + $0x40c] sm:$0xf0]  ;;  %v5610_v5 = vor.u32 %v7229_v58, %v5609_v56  ;;  %3643 = vmatpush.bf16.msrb.mxu1 %v5354_v0 }
  0x44   :  { %v5209_v59 = vld [vmem:[#allocation2 + $0x400] sm:$0xf]  ;;  %48 = vst [vmem:[#allocation1 + $0x20] ss:$4 sm:$0xff] %v37_v57  ;;  %v7161_v63 = vld [vmem:[#allocation2 + $0x50c] sm:$0xf0]  ;;  %3656 = vmatpush.bf16.msrb.mxu2 %v5482_v1 }
  0x45   :  { %v5337_v62 = vld [vmem:[#allocation2 + $0x500] sm:$0xf]  ;;  %v7193_v3 = vld [vmem:[#allocation2 + $0x60c] sm:$0xf0]  ;;  %v5210_v12 = vor.u32 %v7129_v61, %v5209_v59  ;;  %3669 = vmatpush.bf16.msrb.mxu3 %v5610_v5 }
  0x46   :  { %v5465_v2 = vld [vmem:[#allocation2 + $0x600] sm:$0xf]  ;;  %v7225_v6 = vld [vmem:[#allocation2 + $0x70c] sm:$0xf0]  ;;  %v5338_v16 = vor.u32 %v7161_v63, %v5337_v62 }
  0x47   :  { %v5593_v4 = vld [vmem:[#allocation2 + $0x700] sm:$0xf]  ;;  %v7285_v8 = vld [vmem:[#allocation2 + $0x8ec] sm:$0xf0]  ;;  %v5466_v17 = vor.u32 %v7193_v3, %v5465_v2  ;;  %3631 = vmatpush.bf16.msrb.mxu0 %v5210_v12 }
  0x48   :  { %v5833_v7 = vld [vmem:[#allocation2 + $0x8e0] sm:$0xf]  ;;  %v7317_v10 = vld [vmem:[#allocation2 + $0x9ec] sm:$0xf0]  ;;  %v5594_v21 = vor.u32 %v7225_v6, %v5593_v4  ;;  %3644 = vmatpush.bf16.msrb.mxu1 %v5338_v16 }
  0x49   :  { %v5961_v9 = vld [vmem:[#allocation2 + $0x9e0] sm:$0xf]  ;;  %v7349_v13 = vld [vmem:[#allocation2 + $0xaec] sm:$0xf0]  ;;  %v5834_v22 = vor.u32 %v7285_v8, %v5833_v7  ;;  %3657 = vmatpush.bf16.msrb.mxu2 %v5466_v17 }
  0x4a   :  { %v6089_v11 = vld [vmem:[#allocation2 + $0xae0] sm:$0xf]  ;;  %v7381_v15 = vld [vmem:[#allocation2 + $0xbec] sm:$0xf0]  ;;  %v5962_v27 = vor.u32 %v7317_v10, %v5961_v9  ;;  %3670 = vmatpush.bf16.msrb.mxu3 %v5594_v21  ;;  %v40_v21 = vld [vmem:[%s7959_s0 + $0x20] sm:$0xf] }
  0x4b   :  { %v6217_v14 = vld [vmem:[#allocation2 + $0xbe0] sm:$0xf]  ;;  %v7281_v19 = vld [vmem:[#allocation2 + $0x8cc] sm:$0xf0]  ;;  %v6090_v28 = vor.u32 %v7349_v13, %v6089_v11  ;;  %3676 = vmatpush.bf16.msra.mxu0 %v5834_v22 }
  0x4c   :  { %v5817_v18 = vld [vmem:[#allocation2 + $0x8c0] sm:$0xf]  ;;  %v39_v20 = vld [vmem:[%s7959_s0 + $0x18] sm:$0xff]  ;;  %v55_v25 = vld.sshfl [vmem:[#allocation1 + $0x30] sm:$0xff pattern:$0x73625140]  ;;  %v6218_v31 = vor.u32 %v7381_v15, %v6217_v14  ;;  %3689 = vmatpush.bf16.msra.mxu1 %v5962_v27 }
  0x4d   :  { %v5945_v23 = vld [vmem:[#allocation2 + $0x9c0] sm:$0xf]  ;;  %v7313_v24 = vld [vmem:[#allocation2 + $0x9cc] sm:$0xf0]  ;;  %v7681_v34 = vpack.c.bf16 %v55_v25, %v55_v25  ;;  %v5818_v41 = vor.u32 %v7281_v19, %v5817_v18  ;;  %3702 = vmatpush.bf16.msra.mxu2 %v6090_v28 }
  0x4e   :  { %v53_v26 = vld.sshfl [vmem:[#allocation1 + $0x20] sm:$0xff pattern:$0x73625140]  ;;  %v56_v29 = vld.sshfl [vmem:[#allocation1 + $0x38] sm:$0xff pattern:$0x73625140]  ;;  %v5946_v45 = vor.u32 %v7313_v24, %v5945_v23  ;;  %3715 = vmatpush.bf16.msra.mxu3 %v6218_v31 }
  0x4f   :  { %v54_v30 = vld.sshfl [vmem:[#allocation1 + $0x28] sm:$0xff pattern:$0x73625140]  ;;  %v7345_v33 = vld [vmem:[#allocation2 + $0xacc] sm:$0xf0]  ;;  %v7683_v39 = vpack.c.bf16 %v53_v26, %v53_v26  ;;  %v7685_v40 = vpack.c.bf16 %v56_v29, %v56_v29  ;;  %3658 = vmatmul.bf16.vlgmr.msrb.gmra.mxu2 %v7681_v34  ;;  %3677 = vmatpush.bf16.msra.mxu0 %v5818_v41 }
  0x50   :  { %v6073_v32 = vld [vmem:[#allocation2 + $0xac0] sm:$0xf]  ;;  %58 = vst [vmem:[#allocation1 + $0x20] ss:$4 sm:$0xff] %v39_v20  ;;  %v7377_v38 = vld [vmem:[#allocation2 + $0xbcc] sm:$0xf0]  ;;  %v7687_v44 = vpack.c.bf16 %v54_v30, %v54_v30  ;;  %3690 = vmatpush.bf16.msra.mxu1 %v5946_v45 }
  0x51   :  { %v6201_v37 = vld [vmem:[#allocation2 + $0xbc0] sm:$0xf]  ;;  %v6074_v46 = vor.u32 %v7345_v33, %v6073_v32  ;;  %v7277_v48 = vld [vmem:[#allocation2 + $0x8ac] sm:$0xf0]  ;;  %3632 = vmatmul.bf16.vlgmr.msrb.gmra.mxu0 %v7683_v39  ;;  %3671 = vmatmul.bf16.vlgmr.msrb.gmra.mxu3 %v7685_v40 }
  0x52   :  { %v5801_v47 = vld [vmem:[#allocation2 + $0x8a0] sm:$0xf]  ;;  %v6202_v50 = vor.u32 %v7377_v38, %v6201_v37  ;;  %v7309_v51 = vld [vmem:[#allocation2 + $0x9ac] sm:$0xf0]  ;;  %3645 = vmatmul.bf16.vlgmr.msrb.gmra.mxu1 %v7687_v44 }
  0x53   :  { %v5929_v49 = vld [vmem:[#allocation2 + $0x9a0] sm:$0xf]  ;;  %v7341_v53 = vld [vmem:[#allocation2 + $0xaac] sm:$0xf0]  ;;  %v5802_v56 = vor.u32 %v7277_v48, %v5801_v47  ;;  %3703 = vmatpush.bf16.msra.mxu2 %v6074_v46 }
  0x54   :  { %v6057_v52 = vld [vmem:[#allocation2 + $0xaa0] sm:$0xf]  ;;  %v7373_v55 = vld [vmem:[#allocation2 + $0xbac] sm:$0xf0]  ;;  %v5930_v57 = vor.u32 %v7309_v51, %v5929_v49  ;;  %3716 = vmatpush.bf16.msra.mxu3 %v6202_v50 }
  0x55   :  { %v6185_v54 = vld [vmem:[#allocation2 + $0xba0] sm:$0xf]  ;;  %v6058_v58 = vor.u32 %v7341_v53, %v6057_v52  ;;  %v7273_v60 = vld [vmem:[#allocation2 + $0x88c] sm:$0xf0]  ;;  %3678 = vmatpush.bf16.msra.mxu0 %v5802_v56 }
  0x56   :  { %v5785_v59 = vld [vmem:[#allocation2 + $0x880] sm:$0xf]  ;;  %v6186_v62 = vor.u32 %v7373_v55, %v6185_v54  ;;  %v7305_v63 = vld [vmem:[#allocation2 + $0x98c] sm:$0xf0]  ;;  %3691 = vmatpush.bf16.msra.mxu1 %v5930_v57 }
  0x57   :  { %v5913_v61 = vld [vmem:[#allocation2 + $0x980] sm:$0xf]  ;;  %v7337_v1 = vld [vmem:[#allocation2 + $0xa8c] sm:$0xf0]  ;;  %v5786_v5 = vor.u32 %v7273_v60, %v5785_v59  ;;  %3704 = vmatpush.bf16.msra.mxu2 %v6058_v58 }
  0x58   :  { %v6041_v0 = vld [vmem:[#allocation2 + $0xa80] sm:$0xf]  ;;  %v7369_v3 = vld [vmem:[#allocation2 + $0xb8c] sm:$0xf0]  ;;  %v5914_v9 = vor.u32 %v7305_v63, %v5913_v61  ;;  %3717 = vmatpush.bf16.msra.mxu3 %v6186_v62 }
  0x59   :  { %v6169_v2 = vld [vmem:[#allocation2 + $0xb80] sm:$0xf]  ;;  %v7269_v6 = vld [vmem:[#allocation2 + $0x86c] sm:$0xf0]  ;;  %v6042_v10 = vor.u32 %v7337_v1, %v6041_v0  ;;  %3679 = vmatpush.bf16.msra.mxu0 %v5786_v5 }
  0x5a   :  { %v5769_v4 = vld [vmem:[#allocation2 + $0x860] sm:$0xf]  ;;  %v7301_v8 = vld [vmem:[#allocation2 + $0x96c] sm:$0xf0]  ;;  %v6170_v14 = vor.u32 %v7369_v3, %v6169_v2  ;;  %3692 = vmatpush.bf16.msra.mxu1 %v5914_v9 }
  0x5b   :  { %v5897_v7 = vld [vmem:[#allocation2 + $0x960] sm:$0xf]  ;;  %v7333_v12 = vld [vmem:[#allocation2 + $0xa6c] sm:$0xf0]  ;;  %v5770_v20 = vor.u32 %v7269_v6, %v5769_v4  ;;  %3705 = vmatpush.bf16.msra.mxu2 %v6042_v10 }
  0x5c   :  { %v6025_v11 = vld [vmem:[#allocation2 + $0xa60] sm:$0xf]  ;;  %v7365_v15 = vld [vmem:[#allocation2 + $0xb6c] sm:$0xf0]  ;;  %v5898_v23 = vor.u32 %v7301_v8, %v5897_v7  ;;  %3718 = vmatpush.bf16.msra.mxu3 %v6170_v14 }
  0x5d   :  { %v6153_v13 = vld [vmem:[#allocation2 + $0xb60] sm:$0xf]  ;;  %v7693_v16 = vld.sshfl [vmem:[#allocation1] sm:$0xff pattern:$0x73625140]  ;;  %v6026_v24 = vor.u32 %v7333_v12, %v6025_v11  ;;  %3680 = vmatpush.bf16.msra.mxu0 %v5770_v20 }
  0x5e   :  { %v5753_v17 = vld [vmem:[#allocation2 + $0x840] sm:$0xf]  ;;  %v7695_v18 = vld.sshfl [vmem:[#allocation1 + $0x10] sm:$0xff pattern:$0x73625140]  ;;  %v6154_v27 = vor.u32 %v7365_v15, %v6153_v13  ;;  %3693 = vmatpush.bf16.msra.mxu1 %v5898_v23 }
  0x5f   :  { %v7697_v19 = vld.sshfl [vmem:[#allocation1 + $0x8] sm:$0xff pattern:$0x73625140]  ;;  %v7702_v22 = vld.sshfl [vmem:[#allocation1 + $0x18] sm:$0xff pattern:$0x73625140]  ;;  %3706 = vmatpush.bf16.msra.mxu2 %v6026_v24  ;;  %v7706_v24 = vpack.c.bf16 %v7693_v16, %v7693_v16 }
  0x60   :  { %v7265_v25 = vld [vmem:[#allocation2 + $0x84c] sm:$0xf0]  ;;  %v5881_v26 = vld [vmem:[#allocation2 + $0x940] sm:$0xf]  ;;  %67 = vst [vmem:[#allocation1] ss:$4 sm:$0xff] %v40_v21  ;;  %3719 = vmatpush.bf16.msra.mxu3 %v6154_v27  ;;  %v7718_v16 = vpack.c.bf16 %v7702_v22, %v7702_v22 }
  0x61   :  { %v7297_v28 = vld [vmem:[#allocation2 + $0x94c] sm:$0xf0]  ;;  %v6009_v29 = vld [vmem:[#allocation2 + $0xa40] sm:$0xf]  ;;  %v5754_v33 = vor.u32 %v7265_v25, %v5753_v17 }
  0x62   :  { %v7329_v30 = vld [vmem:[#allocation2 + $0xa4c] sm:$0xf0]  ;;  %v6137_v31 = vld [vmem:[#allocation2 + $0xb40] sm:$0xf]  ;;  %v5882_v37 = vor.u32 %v7297_v28, %v5881_v26  ;;  %v7710_v28 = vpack.c.bf16 %v7695_v18, %v7695_v18 }
  0x63   :  { %v7361_v32 = vld [vmem:[#allocation2 + $0xb4c] sm:$0xf0]  ;;  %v6010_v38 = vor.u32 %v7329_v30, %v6009_v29  ;;  %v5737_v41 = vld [vmem:[#allocation2 + $0x820] sm:$0xf]  ;;  %3681 = vmatpush.bf16.msra.mxu0 %v5754_v33  ;;  %v7714_v29 = vpack.c.bf16 %v7697_v19, %v7697_v19 }
  0x64   :  { %v7261_v45 = vld [vmem:[#allocation2 + $0x82c] sm:$0xf0]  ;;  %v5865_v46 = vld [vmem:[#allocation2 + $0x920] sm:$0xf]  ;;  %v6138_v47 = vor.u32 %v7361_v32, %v6137_v31  ;;  %3694 = vmatpush.bf16.msra.mxu1 %v5882_v37 }
  0x65   :  { %v7293_v48 = vld [vmem:[#allocation2 + $0x92c] sm:$0xf0]  ;;  %v5993_v49 = vld [vmem:[#allocation2 + $0xa20] sm:$0xf]  ;;  %v5738_v53 = vor.u32 %v7261_v45, %v5737_v41  ;;  %3707 = vmatpush.bf16.msra.mxu2 %v6010_v38 }
  0x66   :  { %v7325_v50 = vld [vmem:[#allocation2 + $0xa2c] sm:$0xf0]  ;;  %v6121_v51 = vld [vmem:[#allocation2 + $0xb20] sm:$0xf]  ;;  %v5866_v56 = vor.u32 %v7293_v48, %v5865_v46  ;;  %3720 = vmatpush.bf16.msra.mxu3 %v6138_v47 }
  0x67   :  { %v7357_v52 = vld [vmem:[#allocation2 + $0xb2c] sm:$0xf0]  ;;  %v5721_v54 = vld [vmem:[#allocation2 + $0x800] sm:$0xf]  ;;  %v5994_v57 = vor.u32 %v7325_v50, %v5993_v49  ;;  %3682 = vmatpush.bf16.msra.mxu0 %v5738_v53 }
  0x68   :  { %v7257_v55 = vld [vmem:[#allocation2 + $0x80c] sm:$0xf0]  ;;  %v5849_v58 = vld [vmem:[#allocation2 + $0x900] sm:$0xf]  ;;  %v6122_v61 = vor.u32 %v7357_v52, %v6121_v51  ;;  %3695 = vmatpush.bf16.msra.mxu1 %v5866_v56 }
  0x69   :  { %v7289_v59 = vld [vmem:[#allocation2 + $0x90c] sm:$0xf0]  ;;  %v5977_v60 = vld [vmem:[#allocation2 + $0xa00] sm:$0xf]  ;;  %v5722_v4 = vor.u32 %v7257_v55, %v5721_v54  ;;  %3708 = vmatpush.bf16.msra.mxu2 %v5994_v57 }
  0x6a   :  { %v7321_v62 = vld [vmem:[#allocation2 + $0xa0c] sm:$0xf0]  ;;  %v6105_v63 = vld [vmem:[#allocation2 + $0xb00] sm:$0xf]  ;;  %v5850_v8 = vor.u32 %v7289_v59, %v5849_v58  ;;  %3721 = vmatpush.bf16.msra.mxu3 %v6122_v61 }
  0x6b   :  { %v7353_v0 = vld [vmem:[#allocation2 + $0xb0c] sm:$0xf0]  ;;  %v6345_v1 = vld [vmem:[#allocation2 + $0xce0] sm:$0xf]  ;;  %v5978_v9 = vor.u32 %v7321_v62, %v5977_v60  ;;  %3683 = vmatpush.bf16.msra.mxu0 %v5722_v4 }
  0x6c   :  { %v7413_v2 = vld [vmem:[#allocation2 + $0xcec] sm:$0xf0]  ;;  %v6473_v3 = vld [vmem:[#allocation2 + $0xde0] sm:$0xf]  ;;  %v6106_v12 = vor.u32 %v7353_v0, %v6105_v63  ;;  %3696 = vmatpush.bf16.msra.mxu1 %v5850_v8 }
  0x6d   :  { %v7445_v5 = vld [vmem:[#allocation2 + $0xdec] sm:$0xf0]  ;;  %v6601_v6 = vld [vmem:[#allocation2 + $0xee0] sm:$0xf]  ;;  %v6346_v13 = vor.u32 %v7413_v2, %v6345_v1  ;;  %3709 = vmatpush.bf16.msra.mxu2 %v5978_v9 }
  0x6e   :  { %v7477_v7 = vld [vmem:[#allocation2 + $0xeec] sm:$0xf0]  ;;  %v6729_v10 = vld [vmem:[#allocation2 + $0xfe0] sm:$0xf]  ;;  %v6474_v14 = vor.u32 %v7445_v5, %v6473_v3  ;;  %3722 = vmatpush.bf16.msra.mxu3 %v6106_v12  ;;  %3684 = vmatmul.bf16.vlgmr.msra.gmra.mxu0 %v7706_v24 }
  0x6f   :  { %v7509_v11 = vld [vmem:[#allocation2 + $0xfec] sm:$0xf0]  ;;  %v6602_v15 = vor.u32 %v7477_v7, %v6601_v6  ;;  %v6329_v17 = vld [vmem:[#allocation2 + $0xcc0] sm:$0xf]  ;;  %3728 = vmatpush.bf16.msrb.mxu0 %v6346_v13  ;;  %3697 = vmatmul.bf16.vlgmr.msra.gmra.mxu1 %v7714_v29 }
  0x70   :  { %v7409_v20 = vld [vmem:[#allocation2 + $0xccc] sm:$0xf0]  ;;  %v6457_v21 = vld [vmem:[#allocation2 + $0xdc0] sm:$0xf]  ;;  %v6730_v23 = vor.u32 %v7509_v11, %v6729_v10  ;;  %3741 = vmatpush.bf16.msrb.mxu1 %v6474_v14  ;;  %3710 = vmatmul.bf16.vlgmr.msra.gmra.mxu2 %v7710_v28 }
  0x71   :  { %v7441_v25 = vld [vmem:[#allocation2 + $0xdcc] sm:$0xf0]  ;;  %v6585_v26 = vld [vmem:[#allocation2 + $0xec0] sm:$0xf]  ;;  %v6330_v32 = vor.u32 %v7409_v20, %v6329_v17  ;;  %3754 = vmatpush.bf16.msrb.mxu2 %v6602_v15  ;;  %3723 = vmatmul.bf16.vlgmr.msra.gmra.mxu3 %v7718_v16 }
  0x72   :  { %v7473_v27 = vld [vmem:[#allocation2 + $0xecc] sm:$0xf0]  ;;  %v6713_v30 = vld [vmem:[#allocation2 + $0xfc0] sm:$0xf]  ;;  %v6458_v33 = vor.u32 %v7441_v25, %v6457_v21  ;;  %3767 = vmatpush.bf16.msrb.mxu3 %v6730_v23 }
  0x73   :  { %v7505_v31 = vld [vmem:[#allocation2 + $0xfcc] sm:$0xf0]  ;;  %v6586_v37 = vor.u32 %v7473_v27, %v6585_v26  ;;  %v6313_v38 = vld [vmem:[#allocation2 + $0xca0] sm:$0xf]  ;;  %3729 = vmatpush.bf16.msrb.mxu0 %v6330_v32 }
  0x74   :  { %v7405_v18 = vld [vmem:[#allocation2 + $0xcac] sm:$0xf0]  ;;  %v6441_v41 = vld [vmem:[#allocation2 + $0xda0] sm:$0xf]  ;;  %v6714_v19 = vor.u32 %v7505_v31, %v6713_v30  ;;  %3742 = vmatpush.bf16.msrb.mxu1 %v6458_v33 }
  0x75   :  { %v7437_v45 = vld [vmem:[#allocation2 + $0xdac] sm:$0xf0]  ;;  %v6569_v46 = vld [vmem:[#allocation2 + $0xea0] sm:$0xf]  ;;  %v6314_v49 = vor.u32 %v7405_v18, %v6313_v38  ;;  %3755 = vmatpush.bf16.msrb.mxu2 %v6586_v37 }
  0x76   :  { %v7469_v47 = vld [vmem:[#allocation2 + $0xeac] sm:$0xf0]  ;;  %v6697_v22 = vld [vmem:[#allocation2 + $0xfa0] sm:$0xf]  ;;  %v6442_v50 = vor.u32 %v7437_v45, %v6441_v41  ;;  %3768 = vmatpush.bf16.msrb.mxu3 %v6714_v19 }
  0x77   :  { %v7501_v48 = vld [vmem:[#allocation2 + $0xfac] sm:$0xf0]  ;;  %v6570_v51 = vor.u32 %v7469_v47, %v6569_v46  ;;  %v6297_v52 = vld [vmem:[#allocation2 + $0xc80] sm:$0xf]  ;;  %3730 = vmatpush.bf16.msrb.mxu0 %v6314_v49 }
  0x78   :  { %v7401_v53 = vld [vmem:[#allocation2 + $0xc8c] sm:$0xf0]  ;;  %v6425_v54 = vld [vmem:[#allocation2 + $0xd80] sm:$0xf]  ;;  %v6698_v55 = vor.u32 %v7501_v48, %v6697_v22  ;;  %3743 = vmatpush.bf16.msrb.mxu1 %v6442_v50 }
  0x79   :  { %v7433_v56 = vld [vmem:[#allocation2 + $0xd8c] sm:$0xf0]  ;;  %v6553_v57 = vld [vmem:[#allocation2 + $0xe80] sm:$0xf]  ;;  %v6298_v61 = vor.u32 %v7401_v53, %v6297_v52  ;;  %3756 = vmatpush.bf16.msrb.mxu2 %v6570_v51 }
  0x7a   :  { %v7465_v58 = vld [vmem:[#allocation2 + $0xe8c] sm:$0xf0]  ;;  %v6681_v59 = vld [vmem:[#allocation2 + $0xf80] sm:$0xf]  ;;  %v6426_v62 = vor.u32 %v7433_v56, %v6425_v54  ;;  %3769 = vmatpush.bf16.msrb.mxu3 %v6698_v55 }
  0x7b   :  { %v7497_v60 = vld [vmem:[#allocation2 + $0xf8c] sm:$0xf0]  ;;  %v6554_v63 = vor.u32 %v7465_v58, %v6553_v57  ;;  %v6281_v0 = vld [vmem:[#allocation2 + $0xc60] sm:$0xf]  ;;  %3731 = vmatpush.bf16.msrb.mxu0 %v6298_v61  ;;  %v7027_v61 = vld [vmem:[#allocation2 + $0xe4] sm:$0xf] }
  0x7c   :  { %v7397_v1 = vld [vmem:[#allocation2 + $0xc6c] sm:$0xf0]  ;;  %v6409_v2 = vld [vmem:[#allocation2 + $0xd60] sm:$0xf]  ;;  %v6682_v3 = vor.u32 %v7497_v60, %v6681_v59  ;;  %3744 = vmatpush.bf16.msrb.mxu1 %v6426_v62 }
  0x7d   :  { %v7429_v4 = vld [vmem:[#allocation2 + $0xd6c] sm:$0xf0]  ;;  %v6537_v5 = vld [vmem:[#allocation2 + $0xe60] sm:$0xf]  ;;  %v6282_v9 = vor.u32 %v7397_v1, %v6281_v0  ;;  %3757 = vmatpush.bf16.msrb.mxu2 %v6554_v63  ;;  %v4811_v63 = vld [vmem:[#allocation2 + $0xf0] sm:$0xf0] }
  0x7e   :  { %v7461_v6 = vld [vmem:[#allocation2 + $0xe6c] sm:$0xf0]  ;;  %v6665_v7 = vld [vmem:[#allocation2 + $0xf60] sm:$0xf]  ;;  %v6410_v10 = vor.u32 %v7429_v4, %v6409_v2  ;;  %3770 = vmatpush.bf16.msrb.mxu3 %v6682_v3  ;;  %v7059_v0 = vld [vmem:[#allocation2 + $0x1e4] sm:$0xf] }
  0x7f   :  { %v7493_v8 = vld [vmem:[#allocation2 + $0xf6c] sm:$0xf0]  ;;  %v6538_v11 = vor.u32 %v7461_v6, %v6537_v5  ;;  %v6265_v12 = vld [vmem:[#allocation2 + $0xc40] sm:$0xf]  ;;  %3732 = vmatpush.bf16.msrb.mxu0 %v6282_v9  ;;  %v4939_v1 = vld [vmem:[#allocation2 + $0x1f0] sm:$0xf0] }
  0x80   :  { %v7393_v13 = vld [vmem:[#allocation2 + $0xc4c] sm:$0xf0]  ;;  %v6393_v14 = vld [vmem:[#allocation2 + $0xd40] sm:$0xf]  ;;  %v6666_v15 = vor.u32 %v7493_v8, %v6665_v7  ;;  %3745 = vmatpush.bf16.msrb.mxu1 %v6410_v10 }
  0x81   :  { %v7425_v17 = vld [vmem:[#allocation2 + $0xd4c] sm:$0xf0]  ;;  %v6521_v20 = vld [vmem:[#allocation2 + $0xe40] sm:$0xf]  ;;  %v6266_v26 = vor.u32 %v7393_v13, %v6265_v12  ;;  %3758 = vmatpush.bf16.msrb.mxu2 %v6538_v11  ;;  %v4814_v11 = vor.u32 %v7027_v61, %v4811_v63 }
  0x82   :  { %v7457_v21 = vld [vmem:[#allocation2 + $0xe4c] sm:$0xf0]  ;;  %v6649_v23 = vld [vmem:[#allocation2 + $0xf40] sm:$0xf]  ;;  %v6394_v27 = vor.u32 %v7425_v17, %v6393_v14  ;;  %3771 = vmatpush.bf16.msrb.mxu3 %v6666_v15  ;;  %v4942_v15 = vor.u32 %v7059_v0, %v4939_v1 }
  0x83   :  { %v7489_v25 = vld [vmem:[#allocation2 + $0xf4c] sm:$0xf0]  ;;  %v6522_v30 = vor.u32 %v7457_v21, %v6521_v20  ;;  %v6249_v31 = vld [vmem:[#allocation2 + $0xc20] sm:$0xf]  ;;  %3733 = vmatpush.bf16.msrb.mxu0 %v6266_v26  ;;  %v7023_v21 = vld [vmem:[#allocation2 + $0xc4] sm:$0xf] }
  0x84   :  { %v7389_v32 = vld [vmem:[#allocation2 + $0xc2c] sm:$0xf0]  ;;  %v6377_v33 = vld [vmem:[#allocation2 + $0xd20] sm:$0xf]  ;;  %v6650_v37 = vor.u32 %v7489_v25, %v6649_v23  ;;  %3746 = vmatpush.bf16.msrb.mxu1 %v6394_v27  ;;  %v4795_v23 = vld [vmem:[#allocation2 + $0xd0] sm:$0xf0] }
  0x85   :  { %v7421_v38 = vld [vmem:[#allocation2 + $0xd2c] sm:$0xf0]  ;;  %v6505_v18 = vld [vmem:[#allocation2 + $0xe20] sm:$0xf]  ;;  %v6250_v47 = vor.u32 %v7389_v32, %v6249_v31  ;;  %3759 = vmatpush.bf16.msrb.mxu2 %v6522_v30  ;;  %v7055_v27 = vld [vmem:[#allocation2 + $0x1c4] sm:$0xf] }
  0x86   :  { %v7453_v41 = vld [vmem:[#allocation2 + $0xe2c] sm:$0xf0]  ;;  %v6633_v19 = vld [vmem:[#allocation2 + $0xf20] sm:$0xf]  ;;  %v6378_v50 = vor.u32 %v7421_v38, %v6377_v33  ;;  %3772 = vmatpush.bf16.msrb.mxu3 %v6650_v37  ;;  %v4923_v30 = vld [vmem:[#allocation2 + $0x1d0] sm:$0xf0]  ;;  %v4798_v37 = vor.u32 %v7023_v21, %v4795_v23 }
  0x87   :  { %v7485_v45 = vld [vmem:[#allocation2 + $0xf2c] sm:$0xf0]  ;;  %v6233_v46 = vld [vmem:[#allocation2 + $0xc00] sm:$0xf]  ;;  %v6506_v51 = vor.u32 %v7453_v41, %v6505_v18  ;;  %3734 = vmatpush.bf16.msrb.mxu0 %v6250_v47  ;;  %v4779_v47 = vld [vmem:[#allocation2 + $0xb0] sm:$0xf0] }
  0x88   :  { %v7385_v22 = vld [vmem:[#allocation2 + $0xc0c] sm:$0xf0]  ;;  %v6361_v48 = vld [vmem:[#allocation2 + $0xd00] sm:$0xf]  ;;  %v6634_v55 = vor.u32 %v7485_v45, %v6633_v19  ;;  %3747 = vmatpush.bf16.msrb.mxu1 %v6378_v50  ;;  %v4926_v19 = vor.u32 %v7055_v27, %v4923_v30  ;;  %v7007_v21 = vld [vmem:[#allocation2 + $0x44] sm:$0xf] }
  0x89   :  { %v7417_v49 = vld [vmem:[#allocation2 + $0xd0c] sm:$0xf0]  ;;  %v6489_v52 = vld [vmem:[#allocation2 + $0xe00] sm:$0xf]  ;;  %v6234_v62 = vor.u32 %v7385_v22, %v6233_v46  ;;  %3760 = vmatpush.bf16.msrb.mxu2 %v6506_v51  ;;  %v7019_v46 = vld [vmem:[#allocation2 + $0xa4] sm:$0xf] }
  0x8a   :  { %v7449_v53 = vld [vmem:[#allocation2 + $0xe0c] sm:$0xf0]  ;;  %v6617_v54 = vld [vmem:[#allocation2 + $0xf00] sm:$0xf]  ;;  %v6362_v2 = vor.u32 %v7417_v49, %v6361_v48  ;;  %3773 = vmatpush.bf16.msrb.mxu3 %v6634_v55  ;;  %v7051_v22 = vld [vmem:[#allocation2 + $0x1a4] sm:$0xf]  ;;  %v4782_v51 = vor.u32 %v7019_v46, %v4779_v47 }
  0x8b   :  { %v7481_v56 = vld [vmem:[#allocation2 + $0xf0c] sm:$0xf0]  ;;  %v6857_v57 = vld [vmem:[#allocation2 + $0x10e0] sm:$0xf]  ;;  %v6490_v3 = vor.u32 %v7449_v53, %v6489_v52  ;;  %3735 = vmatpush.bf16.msrb.mxu0 %v6234_v62  ;;  %v4907_v48 = vld [vmem:[#allocation2 + $0x1b0] sm:$0xf0] }
  0x8c   :  { %v7541_v58 = vld [vmem:[#allocation2 + $0x10ec] sm:$0xf0]  ;;  %v6985_v59 = vld [vmem:[#allocation2 + $0x11e0] sm:$0xf]  ;;  %v6618_v6 = vor.u32 %v7481_v56, %v6617_v54  ;;  %3748 = vmatpush.bf16.msrb.mxu1 %v6362_v2  ;;  %v4910_v55 = vor.u32 %v7051_v22, %v4907_v48  ;;  %v4731_v23 = vld [vmem:[#allocation2 + $0x50] sm:$0xf0] }
  0x8d   :  { %v7573_v60 = vld [vmem:[#allocation2 + $0x11ec] sm:$0xf0]  ;;  %v63_v4 = vld.sshfl [vmem:[#allocation1 + $0x20] sm:$0xff pattern:$0x73625140]  ;;  %v6858_v7 = vor.u32 %v7541_v58, %v6857_v57  ;;  %3761 = vmatpush.bf16.msrb.mxu2 %v6490_v3 }
  0x8e   :  { %v65_v5 = vld.sshfl [vmem:[#allocation1 + $0x30] sm:$0xff pattern:$0x73625140]  ;;  %v64_v8 = vld.sshfl [vmem:[#allocation1 + $0x28] sm:$0xff pattern:$0x73625140]  ;;  %v6986_v10 = vor.u32 %v7573_v60, %v6985_v59  ;;  %v7724_v17 = vpack.c.bf16 %v63_v4, %v63_v4  ;;  %3774 = vmatpush.bf16.msrb.mxu3 %v6618_v6 }
  0x8f   :  { %v66_v9 = vld.sshfl [vmem:[#allocation1 + $0x38] sm:$0xff pattern:$0x73625140]  ;;  %v6841_v12 = vld [vmem:[#allocation2 + $0x10c0] sm:$0xf]  ;;  %v7726_v25 = vpack.c.bf16 %v65_v5, %v65_v5  ;;  %v7728_v26 = vpack.c.bf16 %v64_v8, %v64_v8  ;;  %3780 = vmatpush.bf16.msra.mxu0 %v6858_v7 }
  0x90   :  { %v7537_v13 = vld [vmem:[#allocation2 + $0x10cc] sm:$0xf0]  ;;  %v6969_v14 = vld [vmem:[#allocation2 + $0x11c0] sm:$0xf]  ;;  %v7730_v31 = vpack.c.bf16 %v66_v9, %v66_v9  ;;  %3793 = vmatpush.bf16.msra.mxu1 %v6986_v10  ;;  %3736 = vmatmul.bf16.vlgmr.msrb.gmra.mxu0 %v7724_v17  ;;  %v7015_v57 = vld [vmem:[#allocation2 + $0x84] sm:$0xf] }
  0x91   :  { %v7569_v20 = vld [vmem:[#allocation2 + $0x11cc] sm:$0xf0]  ;;  %v6842_v32 = vor.u32 %v7537_v13, %v6841_v12  ;;  %3806 = vmatpush.bf16.msra.mxu2 %v4814_v11  ;;  %v6825_v38 = vld [vmem:[#allocation2 + $0x10a0] sm:$0xf]  ;;  %3749 = vmatmul.bf16.vlgmr.msrb.gmra.mxu1 %v7728_v26  ;;  %v4763_v58 = vld [vmem:[#allocation2 + $0x90] sm:$0xf0] }
  0x92   :  { %v6970_v33 = vor.u32 %v7569_v20, %v6969_v14  ;;  %v7533_v18 = vld [vmem:[#allocation2 + $0x10ac] sm:$0xf0]  ;;  %v6953_v41 = vld [vmem:[#allocation2 + $0x11a0] sm:$0xf]  ;;  %3819 = vmatpush.bf16.msra.mxu3 %v4942_v15  ;;  %3762 = vmatmul.bf16.vlgmr.msrb.gmra.mxu2 %v7726_v25  ;;  %v7047_v59 = vld [vmem:[#allocation2 + $0x184] sm:$0xf]  ;;  %v4766_v63 = vor.u32 %v7015_v57, %v4763_v58 }
  0x93   :  { %v7565_v45 = vld [vmem:[#allocation2 + $0x11ac] sm:$0xf0]  ;;  %3775 = vmatmul.bf16.vlgmr.msrb.gmra.mxu3 %v7730_v31  ;;  %3781 = vmatpush.bf16.msra.mxu0 %v6842_v32  ;;  %v6826_v49 = vor.u32 %v7533_v18, %v6825_v38  ;;  %v6809_v52 = vld [vmem:[#allocation2 + $0x1080] sm:$0xf]  ;;  %v4891_v60 = vld [vmem:[#allocation2 + $0x190] sm:$0xf0] }
  0x94   :  { %3794 = vmatpush.bf16.msra.mxu1 %v6970_v33  ;;  %v6954_v50 = vor.u32 %v7565_v45, %v6953_v41  ;;  %v7529_v53 = vld [vmem:[#allocation2 + $0x108c] sm:$0xf0]  ;;  %v6937_v54 = vld [vmem:[#allocation2 + $0x1180] sm:$0xf]  ;;  %v4894_v3 = vor.u32 %v7047_v59, %v4891_v60  ;;  %v7011_v5 = vld [vmem:[#allocation2 + $0x64] sm:$0xf] }
  0x95   :  { %3807 = vmatpush.bf16.msra.mxu2 %v4798_v37  ;;  %v7561_v56 = vld [vmem:[#allocation2 + $0x118c] sm:$0xf0]  ;;  %v6810_v61 = vor.u32 %v7529_v53, %v6809_v52  ;;  %v6793_v0 = vld [vmem:[#allocation2 + $0x1060] sm:$0xf]  ;;  %v4747_v6 = vld [vmem:[#allocation2 + $0x70] sm:$0xf0]  ;;  %v4734_v37 = vor.u32 %v7007_v21, %v4731_v23 }
  0x96   :  { %3820 = vmatpush.bf16.msra.mxu3 %v4926_v19  ;;  %v6938_v62 = vor.u32 %v7561_v56, %v6937_v54  ;;  %v7525_v1 = vld [vmem:[#allocation2 + $0x106c] sm:$0xf0]  ;;  %v6921_v2 = vld [vmem:[#allocation2 + $0x1160] sm:$0xf]  ;;  %v7043_v7 = vld [vmem:[#allocation2 + $0x164] sm:$0xf]  ;;  %v4750_v11 = vor.u32 %v7011_v5, %v4747_v6 }
  0x97   :  { %3782 = vmatpush.bf16.msra.mxu0 %v6826_v49  ;;  %v7557_v4 = vld [vmem:[#allocation2 + $0x116c] sm:$0xf0]  ;;  %v4875_v8 = vld [vmem:[#allocation2 + $0x170] sm:$0xf0]  ;;  %v6794_v9 = vor.u32 %v7525_v1, %v6793_v0  ;;  %v6777_v12 = vld [vmem:[#allocation2 + $0x1040] sm:$0xf] }
  0x98   :  { %3795 = vmatpush.bf16.msra.mxu1 %v6954_v50  ;;  %v6922_v10 = vor.u32 %v7557_v4, %v6921_v2  ;;  %v7521_v13 = vld [vmem:[#allocation2 + $0x104c] sm:$0xf0]  ;;  %v6905_v14 = vld [vmem:[#allocation2 + $0x1140] sm:$0xf]  ;;  %v4878_v15 = vor.u32 %v7043_v7, %v4875_v8  ;;  %v7039_v27 = vld [vmem:[#allocation2 + $0x144] sm:$0xf] }
  0x99   :  { %3808 = vmatpush.bf16.msra.mxu2 %v4782_v51  ;;  %v7553_v20 = vld [vmem:[#allocation2 + $0x114c] sm:$0xf0]  ;;  %v4859_v30 = vld [vmem:[#allocation2 + $0x150] sm:$0xf0]  ;;  %v6778_v32 = vor.u32 %v7521_v13, %v6777_v12  ;;  %v6761_v38 = vld [vmem:[#allocation2 + $0x1020] sm:$0xf] }
  0x9a   :  { %3821 = vmatpush.bf16.msra.mxu3 %v4910_v55  ;;  %v6906_v33 = vor.u32 %v7553_v20, %v6905_v14  ;;  %v7517_v18 = vld [vmem:[#allocation2 + $0x102c] sm:$0xf0]  ;;  %v6889_v41 = vld [vmem:[#allocation2 + $0x1120] sm:$0xf]  ;;  %v4862_v19 = vor.u32 %v7039_v27, %v4859_v30  ;;  %v7003_v46 = vld [vmem:[#allocation2 + $0x24] sm:$0xf] }
  0x9b   :  { %3783 = vmatpush.bf16.msra.mxu0 %v6810_v61  ;;  %v7549_v45 = vld [vmem:[#allocation2 + $0x112c] sm:$0xf0]  ;;  %v4715_v47 = vld [vmem:[#allocation2 + $0x30] sm:$0xf0]  ;;  %v7035_v22 = vld [vmem:[#allocation2 + $0x124] sm:$0xf]  ;;  %v6762_v49 = vor.u32 %v7517_v18, %v6761_v38 }
  0x9c   :  { %3796 = vmatpush.bf16.msra.mxu1 %v6938_v62  ;;  %v4843_v48 = vld [vmem:[#allocation2 + $0x130] sm:$0xf0]  ;;  %v6745_v50 = vld [vmem:[#allocation2 + $0x1000] sm:$0xf]  ;;  %v7513_v51 = vld [vmem:[#allocation2 + $0x100c] sm:$0xf0]  ;;  %v6890_v53 = vor.u32 %v7549_v45, %v6889_v41  ;;  %v4718_v54 = vor.u32 %v7003_v46, %v4715_v47 }
  0x9d   :  { %3809 = vmatpush.bf16.msra.mxu2 %v4766_v63  ;;  %v6873_v52 = vld [vmem:[#allocation2 + $0x1100] sm:$0xf]  ;;  %v7545_v55 = vld [vmem:[#allocation2 + $0x110c] sm:$0xf0]  ;;  %v6999_v56 = vld [vmem:[#allocation2 + $0x4] sm:$0xf]  ;;  %v4846_v58 = vor.u32 %v7035_v22, %v4843_v48  ;;  %v6746_v1 = vor.u32 %v7513_v51, %v6745_v50 }
  0x9e   :  { %3822 = vmatpush.bf16.msra.mxu3 %v4894_v3  ;;  %v4699_v57 = vld [vmem:[#allocation2 + $0x10] sm:$0xf0]  ;;  %v7031_v59 = vld [vmem:[#allocation2 + $0x104] sm:$0xf]  ;;  %v6874_v5 = vor.u32 %v7545_v55, %v6873_v52 }
  0x9f   :  { %3784 = vmatpush.bf16.msra.mxu0 %v6794_v9  ;;  %v4827_v60 = vld [vmem:[#allocation2 + $0x110] sm:$0xf0]  ;;  %v7091_v61 = vld [vmem:[#allocation2 + $0x2e4] sm:$0xf]  ;;  %v4702_v6 = vor.u32 %v6999_v56, %v4699_v57 }
  0xa0   :  { %3797 = vmatpush.bf16.msra.mxu1 %v6922_v10  ;;  %v5067_v62 = vld [vmem:[#allocation2 + $0x2f0] sm:$0xf0]  ;;  %v7123_v63 = vld [vmem:[#allocation2 + $0x3e4] sm:$0xf]  ;;  %v4830_v9 = vor.u32 %v7031_v59, %v4827_v60 }
  0xa1   :  { %3810 = vmatpush.bf16.msra.mxu2 %v4750_v11  ;;  %v5195_v0 = vld [vmem:[#allocation2 + $0x3f0] sm:$0xf0]  ;;  %v7155_v2 = vld [vmem:[#allocation2 + $0x4e4] sm:$0xf]  ;;  %v5070_v10 = vor.u32 %v7091_v61, %v5067_v62 }
  0xa2   :  { %3823 = vmatpush.bf16.msra.mxu3 %v4878_v15  ;;  %v5323_v3 = vld [vmem:[#allocation2 + $0x4f0] sm:$0xf0]  ;;  %v7187_v4 = vld [vmem:[#allocation2 + $0x5e4] sm:$0xf]  ;;  %v5198_v12 = vor.u32 %v7123_v63, %v5195_v0 }
  0xa3   :  { %3785 = vmatpush.bf16.msra.mxu0 %v6778_v32  ;;  %v5451_v7 = vld [vmem:[#allocation2 + $0x5f0] sm:$0xf0]  ;;  %v68_v8 = vld.sshfl [vmem:[#allocation1] sm:$0xff pattern:$0x73625140]  ;;  %v5326_v13 = vor.u32 %v7155_v2, %v5323_v3 }
  0xa4   :  { %3798 = vmatpush.bf16.msra.mxu1 %v6906_v33  ;;  %v69_v11 = vld.sshfl [vmem:[#allocation1 + $0x8] sm:$0xff pattern:$0x73625140]  ;;  %v5051_v15 = vld [vmem:[#allocation2 + $0x2d0] sm:$0xf0]  ;;  %v5454_v21 = vor.u32 %v7187_v4, %v5451_v7  ;;  %v7736_v23 = vpack.c.bf16 %v68_v8, %v68_v8 }
  0xa5   :  { %3811 = vmatpush.bf16.msra.mxu2 %v4734_v37  ;;  %v7087_v14 = vld [vmem:[#allocation2 + $0x2c4] sm:$0xf]  ;;  %v5179_v27 = vld [vmem:[#allocation2 + $0x3d0] sm:$0xf0]  ;;  %v7738_v33 = vpack.c.bf16 %v69_v11, %v69_v11 }
  0xa6   :  { %3824 = vmatpush.bf16.msra.mxu3 %v4862_v19  ;;  %v7119_v20 = vld [vmem:[#allocation2 + $0x3c4] sm:$0xf]  ;;  %v5307_v32 = vld [vmem:[#allocation2 + $0x4d0] sm:$0xf0]  ;;  %v5054_v18 = vor.u32 %v7087_v14, %v5051_v15 }
  0xa7   :  { %3786 = vmatpush.bf16.msra.mxu0 %v6762_v49  ;;  %v7151_v30 = vld [vmem:[#allocation2 + $0x4c4] sm:$0xf]  ;;  %v5435_v38 = vld [vmem:[#allocation2 + $0x5d0] sm:$0xf0]  ;;  %v5182_v41 = vor.u32 %v7119_v20, %v5179_v27 }
  0xa8   :  { %3799 = vmatpush.bf16.msra.mxu1 %v6890_v53  ;;  %v7183_v37 = vld [vmem:[#allocation2 + $0x5c4] sm:$0xf]  ;;  %v5310_v19 = vor.u32 %v7151_v30, %v5307_v32  ;;  %v5035_v46 = vld [vmem:[#allocation2 + $0x2b0] sm:$0xf0] }
  0xa9   :  { %3812 = vmatpush.bf16.msra.mxu2 %v4718_v54  ;;  %v7083_v45 = vld [vmem:[#allocation2 + $0x2a4] sm:$0xf]  ;;  %v5438_v22 = vor.u32 %v7183_v37, %v5435_v38  ;;  %v5163_v48 = vld [vmem:[#allocation2 + $0x3b0] sm:$0xf0] }
  0xaa   :  { %3825 = vmatpush.bf16.msra.mxu3 %v4846_v58  ;;  %v7115_v47 = vld [vmem:[#allocation2 + $0x3a4] sm:$0xf]  ;;  %v5291_v50 = vld [vmem:[#allocation2 + $0x4b0] sm:$0xf0]  ;;  %v5038_v53 = vor.u32 %v7083_v45, %v5035_v46 }
  0xab   :  { %3787 = vmatpush.bf16.msra.mxu0 %v6746_v1  ;;  %v7147_v49 = vld [vmem:[#allocation2 + $0x4a4] sm:$0xf]  ;;  %v5419_v52 = vld [vmem:[#allocation2 + $0x5b0] sm:$0xf0]  ;;  %v5166_v54 = vor.u32 %v7115_v47, %v5163_v48 }
  0xac   :  { %3800 = vmatpush.bf16.msra.mxu1 %v6874_v5  ;;  %v7179_v51 = vld [vmem:[#allocation2 + $0x5a4] sm:$0xf]  ;;  %v5294_v55 = vor.u32 %v7147_v49, %v5291_v50  ;;  %v5019_v57 = vld [vmem:[#allocation2 + $0x290] sm:$0xf0] }
  0xad   :  { %3813 = vmatpush.bf16.msra.mxu2 %v4702_v6  ;;  %v7079_v56 = vld [vmem:[#allocation2 + $0x284] sm:$0xf]  ;;  %v5422_v59 = vor.u32 %v7179_v51, %v5419_v52  ;;  %v5147_v60 = vld [vmem:[#allocation2 + $0x390] sm:$0xf0] }
  0xae   :  { %3826 = vmatpush.bf16.msra.mxu3 %v4830_v9  ;;  %3788 = vmatmul.bf16.vlgmr.msra.gmra.mxu0 %v7736_v23  ;;  %v7111_v58 = vld [vmem:[#allocation2 + $0x384] sm:$0xf]  ;;  %v5275_v62 = vld [vmem:[#allocation2 + $0x490] sm:$0xf0]  ;;  %v5022_v1 = vor.u32 %v7079_v56, %v5019_v57 }
  0xaf   :  { %3832 = vmatpush.bf16.msrb.mxu0 %v5070_v10  ;;  %3801 = vmatmul.bf16.vlgmr.msra.gmra.mxu1 %v7738_v33  ;;  %v7143_v61 = vld [vmem:[#allocation2 + $0x484] sm:$0xf]  ;;  %v5403_v0 = vld [vmem:[#allocation2 + $0x590] sm:$0xf0]  ;;  %v5150_v2 = vor.u32 %v7111_v58, %v5147_v60 }
  0xb0   :  { %3845 = vmatpush.bf16.msrb.mxu1 %v5198_v12  ;;  %3814 = vmatmul.bf16.vlgmr.msra.gmra.mxu2 %v7665_v36  ;;  %v7175_v63 = vld [vmem:[#allocation2 + $0x584] sm:$0xf]  ;;  %v5278_v3 = vor.u32 %v7143_v61, %v5275_v62  ;;  %v5003_v5 = vld [vmem:[#allocation2 + $0x270] sm:$0xf0] }
  0xb1   :  { %3858 = vmatpush.bf16.msrb.mxu2 %v5326_v13  ;;  %3827 = vmatmul.bf16.vlgmr.msra.gmra.mxu3 %v7669_v43  ;;  %v7075_v4 = vld [vmem:[#allocation2 + $0x264] sm:$0xf]  ;;  %v5406_v7 = vor.u32 %v7175_v63, %v5403_v0  ;;  %v5131_v8 = vld [vmem:[#allocation2 + $0x370] sm:$0xf0] }
  0xb2   :  { %3871 = vmatpush.bf16.msrb.mxu3 %v5454_v21  ;;  %v7107_v6 = vld [vmem:[#allocation2 + $0x364] sm:$0xf]  ;;  %v5259_v10 = vld [vmem:[#allocation2 + $0x470] sm:$0xf0]  ;;  %v5006_v13 = vor.u32 %v7075_v4, %v5003_v5 }
  0xb3   :  { %3833 = vmatpush.bf16.msrb.mxu0 %v5054_v18  ;;  %v7139_v9 = vld [vmem:[#allocation2 + $0x464] sm:$0xf]  ;;  %v5387_v12 = vld [vmem:[#allocation2 + $0x570] sm:$0xf0]  ;;  %v5134_v15 = vor.u32 %v7107_v6, %v5131_v8  ;;  %v682_v18 = vld [vmem:[%s7961_s2] sm:$0xf] }
  0xb4   :  { %3846 = vmatpush.bf16.msrb.mxu1 %v5182_v41  ;;  %v7171_v11 = vld [vmem:[#allocation2 + $0x564] sm:$0xf]  ;;  %v5262_v20 = vor.u32 %v7139_v9, %v5259_v10  ;;  %v4987_v21 = vld [vmem:[#allocation2 + $0x250] sm:$0xf0]  ;;  %v684_v50 = vperm.slane %v682_v18, 0 }
  0xb5   :  { %3859 = vmatpush.bf16.msrb.mxu2 %v5310_v19  ;;  %v7071_v14 = vld [vmem:[#allocation2 + $0x244] sm:$0xf]  ;;  %v5115_v30 = vld [vmem:[#allocation2 + $0x350] sm:$0xf0]  ;;  %v5390_v32 = vor.u32 %v7171_v11, %v5387_v12 }
  0xb6   :  { %3872 = vmatpush.bf16.msrb.mxu3 %v5438_v22  ;;  %v7103_v27 = vld [vmem:[#allocation2 + $0x344] sm:$0xf]  ;;  %v5243_v38 = vld [vmem:[#allocation2 + $0x450] sm:$0xf0]  ;;  %v4990_v45 = vor.u32 %v7071_v14, %v4987_v21 }
  0xb7   :  { %3834 = vmatpush.bf16.msrb.mxu0 %v5038_v53  ;;  %v7135_v37 = vld [vmem:[#allocation2 + $0x444] sm:$0xf]  ;;  %v5371_v19 = vld [vmem:[#allocation2 + $0x550] sm:$0xf0]  ;;  %v5118_v47 = vor.u32 %v7103_v27, %v5115_v30 }
  0xb8   :  { %3847 = vmatpush.bf16.msrb.mxu1 %v5166_v54  ;;  %v7167_v41 = vld [vmem:[#allocation2 + $0x544] sm:$0xf]  ;;  %v5246_v22 = vor.u32 %v7135_v37, %v5243_v38  ;;  %v4971_v48 = vld [vmem:[#allocation2 + $0x230] sm:$0xf0] }
  0xb9   :  { %3860 = vmatpush.bf16.msrb.mxu2 %v5294_v55  ;;  %v7067_v46 = vld [vmem:[#allocation2 + $0x224] sm:$0xf]  ;;  %v5374_v51 = vor.u32 %v7167_v41, %v5371_v19  ;;  %v5099_v52 = vld [vmem:[#allocation2 + $0x330] sm:$0xf0] }
  0xba   :  { %3873 = vmatpush.bf16.msrb.mxu3 %v5422_v59  ;;  %v7099_v49 = vld [vmem:[#allocation2 + $0x324] sm:$0xf]  ;;  %v5227_v54 = vld [vmem:[#allocation2 + $0x430] sm:$0xf0]  ;;  %v4974_v57 = vor.u32 %v7067_v46, %v4971_v48 }
  0xbb   :  { %3835 = vmatpush.bf16.msrb.mxu0 %v5022_v1  ;;  %v7131_v53 = vld [vmem:[#allocation2 + $0x424] sm:$0xf]  ;;  %v5355_v56 = vld [vmem:[#allocation2 + $0x530] sm:$0xf0]  ;;  %v3581_v60 = vpop.f32.mrf.mxu0  ;;  %v5102_v61 = vor.u32 %v7099_v49, %v5099_v52 }
  0xbc   :  { %3848 = vmatpush.bf16.msrb.mxu1 %v5150_v2  ;;  %v7163_v55 = vld [vmem:[#allocation2 + $0x524] sm:$0xf]  ;;  %v4955_v59 = vld [vmem:[#allocation2 + $0x210] sm:$0xf0]  ;;  %v5230_v62 = vor.u32 %v7131_v53, %v5227_v54  ;;  %v3582_v2 = vadd.f32 %v3581_v60, %v684_v50  ;;  %v3594_v10 = vpop.f32.mrf.mxu1 }
  0xbd   :  { %3861 = vmatpush.bf16.msrb.mxu2 %v5278_v3  ;;  %v7063_v58 = vld [vmem:[#allocation2 + $0x204] sm:$0xf]  ;;  %v5083_v0 = vld [vmem:[#allocation2 + $0x310] sm:$0xf0]  ;;  %v5358_v3 = vor.u32 %v7163_v55, %v5355_v56 }
  0xbe   :  { %3874 = vmatpush.bf16.msrb.mxu3 %v5406_v7  ;;  %v7095_v63 = vld [vmem:[#allocation2 + $0x304] sm:$0xf]  ;;  %v5211_v4 = vld [vmem:[#allocation2 + $0x410] sm:$0xf0]  ;;  %v4958_v11 = vor.u32 %v7063_v58, %v4955_v59 }
  0xbf   :  { %3836 = vmatpush.bf16.msrb.mxu0 %v5006_v13  ;;  %v7127_v1 = vld [vmem:[#allocation2 + $0x404] sm:$0xf]  ;;  %v5339_v6 = vld [vmem:[#allocation2 + $0x510] sm:$0xf0] }
  0xc0   :  { %3849 = vmatpush.bf16.msrb.mxu1 %v5134_v15  ;;  %v7159_v5 = vld [vmem:[#allocation2 + $0x504] sm:$0xf]  ;;  %v5579_v8 = vld [vmem:[#allocation2 + $0x6f0] sm:$0xf0]  ;;  %v3595_v15 = vadd.f32 %v3594_v10, %v3582_v2  ;;  %v5214_v21 = vor.u32 %v7127_v1, %v5211_v4 }
  0xc1   :  { %3862 = vmatpush.bf16.msrb.mxu2 %v5262_v20  ;;  %v7219_v7 = vld [vmem:[#allocation2 + $0x6e4] sm:$0xf]  ;;  %v5707_v12 = vld [vmem:[#allocation2 + $0x7f0] sm:$0xf0]  ;;  %v5086_v20 = vor.u32 %v7095_v63, %v5083_v0  ;;  %v3607_v38 = vpop.f32.mrf.mxu2 }
  0xc2   :  { %3875 = vmatpush.bf16.msrb.mxu3 %v5390_v32  ;;  %v7251_v9 = vld [vmem:[#allocation2 + $0x7e4] sm:$0xf]  ;;  %v5835_v14 = vld [vmem:[#allocation2 + $0x8f0] sm:$0xf0]  ;;  %v5342_v32 = vor.u32 %v7159_v5, %v5339_v6  ;;  %v5582_v37 = vor.u32 %v7219_v7, %v5579_v8 }
  0xc3   :  { %3837 = vmatpush.bf16.msrb.mxu0 %v4990_v45  ;;  %v7283_v13 = vld [vmem:[#allocation2 + $0x8e4] sm:$0xf]  ;;  %v5963_v30 = vld [vmem:[#allocation2 + $0x9f0] sm:$0xf0]  ;;  %v5710_v18 = vor.u32 %v7251_v9, %v5707_v12  ;;  %v3583_v52 = vpop.f32.mrf.mxu0 }
  0xc4   :  { %3850 = vmatpush.bf16.msrb.mxu1 %v5118_v47  ;;  %v7315_v27 = vld [vmem:[#allocation2 + $0x9e4] sm:$0xf]  ;;  %v5838_v41 = vor.u32 %v7283_v13, %v5835_v14  ;;  %v5563_v45 = vld [vmem:[#allocation2 + $0x6d0] sm:$0xf0]  ;;  %v3608_v47 = vadd.f32 %v3607_v38, %v3595_v15 }
  0xc5   :  { %3863 = vmatpush.bf16.msrb.mxu2 %v5246_v22  ;;  %v7215_v19 = vld [vmem:[#allocation2 + $0x6c4] sm:$0xf]  ;;  %v3620_v22 = vpop.f32.mrf.mxu3  ;;  %v5966_v48 = vor.u32 %v7315_v27, %v5963_v30  ;;  %v5691_v49 = vld [vmem:[#allocation2 + $0x7d0] sm:$0xf0] }
  0xc6   :  { %3876 = vmatpush.bf16.msrb.mxu3 %v5374_v51  ;;  %v7247_v46 = vld [vmem:[#allocation2 + $0x7c4] sm:$0xf]  ;;  %v5819_v51 = vld [vmem:[#allocation2 + $0x8d0] sm:$0xf0]  ;;  %v3621_v55 = vadd.f32 %v3620_v22, %v3608_v47  ;;  %v5566_v56 = vor.u32 %v7215_v19, %v5563_v45 }
  0xc7   :  { %3838 = vmatpush.bf16.msrb.mxu0 %v4974_v57  ;;  %v7279_v50 = vld [vmem:[#allocation2 + $0x8c4] sm:$0xf]  ;;  %v5947_v54 = vld [vmem:[#allocation2 + $0x9d0] sm:$0xf0]  ;;  %v5694_v57 = vor.u32 %v7247_v46, %v5691_v49 }
  0xc8   :  { %3851 = vmatpush.bf16.msrb.mxu1 %v5102_v61  ;;  %v7311_v53 = vld [vmem:[#allocation2 + $0x9c4] sm:$0xf]  ;;  %v5822_v58 = vor.u32 %v7279_v50, %v5819_v51  ;;  %v5547_v60 = vld [vmem:[#allocation2 + $0x6b0] sm:$0xf0] }
  0xc9   :  { %3864 = vmatpush.bf16.msrb.mxu2 %v5230_v62  ;;  %v7211_v59 = vld [vmem:[#allocation2 + $0x6a4] sm:$0xf]  ;;  %v3596_v62 = vpop.f32.mrf.mxu1  ;;  %v5950_v63 = vor.u32 %v7311_v53, %v5947_v54  ;;  %v5675_v0 = vld [vmem:[#allocation2 + $0x7b0] sm:$0xf0]  ;;  %v3609_v6 = vpop.f32.mrf.mxu2 }
  0xca   :  { %3877 = vmatpush.bf16.msrb.mxu3 %v5358_v3  ;;  %v7243_v61 = vld [vmem:[#allocation2 + $0x7a4] sm:$0xf]  ;;  %v5803_v2 = vld [vmem:[#allocation2 + $0x8b0] sm:$0xf0]  ;;  %v5550_v5 = vor.u32 %v7211_v59, %v5547_v60 }
  0xcb   :  { %3839 = vmatpush.bf16.msrb.mxu0 %v4958_v11  ;;  %v7275_v1 = vld [vmem:[#allocation2 + $0x8a4] sm:$0xf]  ;;  %v5931_v4 = vld [vmem:[#allocation2 + $0x9b0] sm:$0xf0]  ;;  %v5678_v7 = vor.u32 %v7243_v61, %v5675_v0 }
  0xcc   :  { %3852 = vmatpush.bf16.msrb.mxu1 %v5086_v20  ;;  %v7307_v3 = vld [vmem:[#allocation2 + $0x9a4] sm:$0xf]  ;;  %v5806_v8 = vor.u32 %v7275_v1, %v5803_v2  ;;  %v5531_v10 = vld [vmem:[#allocation2 + $0x690] sm:$0xf0] }
  0xcd   :  { %3865 = vmatpush.bf16.msrb.mxu2 %v5214_v21  ;;  %v7207_v9 = vld [vmem:[#allocation2 + $0x684] sm:$0xf]  ;;  %v3622_v12 = vpop.f32.mrf.mxu3  ;;  %v5934_v13 = vor.u32 %v7307_v3, %v5931_v4  ;;  %v5659_v14 = vld [vmem:[#allocation2 + $0x790] sm:$0xf0] }
  0xce   :  { %3878 = vmatpush.bf16.msrb.mxu3 %v5342_v32  ;;  %3840 = vmatmul.bf16.vlgmr.msrb.gmra.mxu0 %v7663_v35  ;;  %v7239_v11 = vld [vmem:[#allocation2 + $0x784] sm:$0xf]  ;;  %v5787_v20 = vld [vmem:[#allocation2 + $0x890] sm:$0xf0]  ;;  %v5534_v30 = vor.u32 %v7207_v9, %v5531_v10  ;;  %v3633_v32 = vpop.f32.mrf.mxu0 }
  0xcf   :  { %3884 = vmatpush.bf16.msra.mxu0 %v5582_v37  ;;  %3853 = vmatmul.bf16.vlgmr.msrb.gmra.mxu1 %v7667_v42  ;;  %v7271_v15 = vld [vmem:[#allocation2 + $0x884] sm:$0xf]  ;;  %v5915_v27 = vld [vmem:[#allocation2 + $0x990] sm:$0xf0]  ;;  %v5662_v37 = vor.u32 %v7239_v11, %v5659_v14  ;;  %v3634_v45 = vadd.f32 %v3633_v32, %v3621_v55 }
  0xd0   :  { %3897 = vmatpush.bf16.msra.mxu1 %v5710_v18  ;;  %3866 = vmatmul.bf16.vlgmr.msrb.gmra.mxu2 %v7683_v39  ;;  %v7303_v21 = vld [vmem:[#allocation2 + $0x984] sm:$0xf]  ;;  %v5790_v38 = vor.u32 %v7271_v15, %v5787_v20  ;;  %v5643_v22 = vld [vmem:[#allocation2 + $0x770] sm:$0xf0] }
  0xd1   :  { %3910 = vmatpush.bf16.msra.mxu2 %v5838_v41  ;;  %3879 = vmatmul.bf16.vlgmr.msrb.gmra.mxu3 %v7687_v44  ;;  %v7203_v18 = vld [vmem:[#allocation2 + $0x664] sm:$0xf]  ;;  %v5515_v41 = vld [vmem:[#allocation2 + $0x670] sm:$0xf0]  ;;  %v3646_v46 = vpop.f32.mrf.mxu1  ;;  %v5918_v47 = vor.u32 %v7303_v21, %v5915_v27 }
  0xd2   :  { %3923 = vmatpush.bf16.msra.mxu3 %v5966_v48  ;;  %v7235_v19 = vld [vmem:[#allocation2 + $0x764] sm:$0xf]  ;;  %v5771_v49 = vld [vmem:[#allocation2 + $0x870] sm:$0xf0]  ;;  %v3647_v52 = vadd.f32 %v3646_v46, %v3634_v45  ;;  %v5518_v53 = vor.u32 %v7203_v18, %v5515_v41  ;;  %v3659_v60 = vpop.f32.mrf.mxu2 }
  0xd3   :  { %3885 = vmatpush.bf16.msra.mxu0 %v5566_v56  ;;  %v7267_v48 = vld [vmem:[#allocation2 + $0x864] sm:$0xf]  ;;  %v5899_v51 = vld [vmem:[#allocation2 + $0x970] sm:$0xf0]  ;;  %v5646_v54 = vor.u32 %v7235_v19, %v5643_v22 }
  0xd4   :  { %3898 = vmatpush.bf16.msra.mxu1 %v5694_v57  ;;  %v7299_v50 = vld [vmem:[#allocation2 + $0x964] sm:$0xf]  ;;  %v5774_v56 = vor.u32 %v7267_v48, %v5771_v49  ;;  %v5627_v61 = vld [vmem:[#allocation2 + $0x750] sm:$0xf0]  ;;  %v3660_v0 = vadd.f32 %v3659_v60, %v3647_v52 }
  0xd5   :  { %3911 = vmatpush.bf16.msra.mxu2 %v5822_v58  ;;  %v7199_v57 = vld [vmem:[#allocation2 + $0x644] sm:$0xf]  ;;  %v5499_v58 = vld [vmem:[#allocation2 + $0x650] sm:$0xf0]  ;;  %v5902_v55 = vor.u32 %v7299_v50, %v5899_v51  ;;  %v3672_v1 = vpop.f32.mrf.mxu3 }
  0xd6   :  { %3924 = vmatpush.bf16.msra.mxu3 %v5950_v63  ;;  %v7231_v59 = vld [vmem:[#allocation2 + $0x744] sm:$0xf]  ;;  %v5755_v63 = vld [vmem:[#allocation2 + $0x850] sm:$0xf0]  ;;  %v5502_v4 = vor.u32 %v7199_v57, %v5499_v58  ;;  %v3635_v6 = vpop.f32.mrf.mxu0 }
  0xd7   :  { %3886 = vmatpush.bf16.msra.mxu0 %v5550_v5  ;;  %v7263_v62 = vld [vmem:[#allocation2 + $0x844] sm:$0xf]  ;;  %v5883_v3 = vld [vmem:[#allocation2 + $0x950] sm:$0xf0]  ;;  %v7751_v5 = vadd.f32 %v3672_v1, %v3660_v0 }
  0xd8   :  { %3899 = vmatpush.bf16.msra.mxu1 %v5678_v7  ;;  %v7295_v2 = vld [vmem:[#allocation2 + $0x944] sm:$0xf]  ;;  %v5630_v7 = vor.u32 %v7231_v59, %v5627_v61  ;;  %v5483_v10 = vld [vmem:[#allocation2 + $0x630] sm:$0xf0] }
  0xd9   :  { %3912 = vmatpush.bf16.msra.mxu2 %v5806_v8  ;;  %v5758_v8 = vor.u32 %v7263_v62, %v5755_v63  ;;  %v7195_v9 = vld [vmem:[#allocation2 + $0x624] sm:$0xf]  ;;  %v3648_v12 = vpop.f32.mrf.mxu1  ;;  %v5611_v14 = vld [vmem:[#allocation2 + $0x730] sm:$0xf0] }
  0xda   :  { %3925 = vmatpush.bf16.msra.mxu3 %v5934_v13  ;;  %v7227_v11 = vld [vmem:[#allocation2 + $0x724] sm:$0xf]  ;;  %v5886_v13 = vor.u32 %v7295_v2, %v5883_v3  ;;  %v5739_v20 = vld [vmem:[#allocation2 + $0x830] sm:$0xf0]  ;;  %v3661_v46 = vpop.f32.mrf.mxu2 }
  0xdb   :  { %3887 = vmatpush.bf16.msra.mxu0 %v5534_v30  ;;  %v7259_v15 = vld [vmem:[#allocation2 + $0x824] sm:$0xf]  ;;  %v5867_v27 = vld [vmem:[#allocation2 + $0x930] sm:$0xf0]  ;;  %v5486_v30 = vor.u32 %v7195_v9, %v5483_v10 }
  0xdc   :  { %3900 = vmatpush.bf16.msra.mxu1 %v5662_v37  ;;  %v7291_v21 = vld [vmem:[#allocation2 + $0x924] sm:$0xf]  ;;  %v5467_v37 = vld [vmem:[#allocation2 + $0x610] sm:$0xf0]  ;;  %v5742_v18 = vor.u32 %v7259_v15, %v5739_v20 }
  0xdd   :  { %3913 = vmatpush.bf16.msra.mxu2 %v5790_v38  ;;  %v7191_v32 = vld [vmem:[#allocation2 + $0x604] sm:$0xf]  ;;  %v5614_v38 = vor.u32 %v7227_v11, %v5611_v14  ;;  %v5595_v19 = vld [vmem:[#allocation2 + $0x710] sm:$0xf0]  ;;  %v3674_v50 = vpop.f32.mrf.mxu3 }
  0xde   :  { %3926 = vmatpush.bf16.msra.mxu3 %v5918_v47  ;;  %v7223_v41 = vld [vmem:[#allocation2 + $0x704] sm:$0xf]  ;;  %v5870_v47 = vor.u32 %v7291_v21, %v5867_v27  ;;  %v5723_v22 = vld [vmem:[#allocation2 + $0x810] sm:$0xf0] }
  0xdf   :  { %3888 = vmatpush.bf16.msra.mxu0 %v5518_v53  ;;  %v7255_v45 = vld [vmem:[#allocation2 + $0x804] sm:$0xf]  ;;  %v5851_v49 = vld [vmem:[#allocation2 + $0x910] sm:$0xf0]  ;;  %v5598_v59 = vor.u32 %v7223_v41, %v5595_v19 }
  0xe0   :  { %3901 = vmatpush.bf16.msra.mxu1 %v5646_v54  ;;  %v7287_v48 = vld [vmem:[#allocation2 + $0x904] sm:$0xf]  ;;  %v6091_v52 = vld [vmem:[#allocation2 + $0xaf0] sm:$0xf0]  ;;  %v5470_v54 = vor.u32 %v7191_v32, %v5467_v37  ;;  %v5726_v60 = vor.u32 %v7255_v45, %v5723_v22 }
  0xe1   :  { %3914 = vmatpush.bf16.msra.mxu2 %v5774_v56  ;;  %v7347_v51 = vld [vmem:[#allocation2 + $0xae4] sm:$0xf]  ;;  %v6219_v56 = vld [vmem:[#allocation2 + $0xbf0] sm:$0xf0]  ;;  %v5854_v62 = vor.u32 %v7287_v48, %v5851_v49 }
  0xe2   :  { %3927 = vmatpush.bf16.msra.mxu3 %v5902_v55  ;;  %v7379_v53 = vld [vmem:[#allocation2 + $0xbe4] sm:$0xf]  ;;  %v6347_v58 = vld [vmem:[#allocation2 + $0xcf0] sm:$0xf0]  ;;  %v6094_v63 = vor.u32 %v7347_v51, %v6091_v52 }
  0xe3   :  { %3889 = vmatpush.bf16.msra.mxu0 %v5502_v4  ;;  %v7411_v57 = vld [vmem:[#allocation2 + $0xce4] sm:$0xf]  ;;  %v6475_v61 = vld [vmem:[#allocation2 + $0xdf0] sm:$0xf0]  ;;  %v6222_v0 = vor.u32 %v7379_v53, %v6219_v56 }
  0xe4   :  { %3902 = vmatpush.bf16.msra.mxu1 %v5630_v7  ;;  %v7443_v55 = vld [vmem:[#allocation2 + $0xde4] sm:$0xf]  ;;  %v6350_v1 = vor.u32 %v7411_v57, %v6347_v58  ;;  %v6075_v3 = vld [vmem:[#allocation2 + $0xad0] sm:$0xf0] }
  0xe5   :  { %3915 = vmatpush.bf16.msra.mxu2 %v5758_v8  ;;  %v7343_v2 = vld [vmem:[#allocation2 + $0xac4] sm:$0xf]  ;;  %v6478_v6 = vor.u32 %v7443_v55, %v6475_v61  ;;  %v6203_v7 = vld [vmem:[#allocation2 + $0xbd0] sm:$0xf0] }
  0xe6   :  { %3928 = vmatpush.bf16.msra.mxu3 %v5886_v13  ;;  %v7375_v4 = vld [vmem:[#allocation2 + $0xbc4] sm:$0xf]  ;;  %v6331_v9 = vld [vmem:[#allocation2 + $0xcd0] sm:$0xf0]  ;;  %v6078_v12 = vor.u32 %v7343_v2, %v6075_v3 }
  0xe7   :  { %3890 = vmatpush.bf16.msra.mxu0 %v5486_v30  ;;  %v7407_v8 = vld [vmem:[#allocation2 + $0xcc4] sm:$0xf]  ;;  %v6459_v11 = vld [vmem:[#allocation2 + $0xdd0] sm:$0xf0]  ;;  %v6206_v13 = vor.u32 %v7375_v4, %v6203_v7 }
  0xe8   :  { %3903 = vmatpush.bf16.msra.mxu1 %v5614_v38  ;;  %v7439_v10 = vld [vmem:[#allocation2 + $0xdc4] sm:$0xf]  ;;  %v6334_v14 = vor.u32 %v7407_v8, %v6331_v9  ;;  %v6059_v20 = vld [vmem:[#allocation2 + $0xab0] sm:$0xf0] }
  0xe9   :  { %3916 = vmatpush.bf16.msra.mxu2 %v5742_v18  ;;  %v7339_v15 = vld [vmem:[#allocation2 + $0xaa4] sm:$0xf]  ;;  %v6462_v27 = vor.u32 %v7439_v10, %v6459_v11  ;;  %v6187_v30 = vld [vmem:[#allocation2 + $0xbb0] sm:$0xf0] }
  0xea   :  { %3929 = vmatpush.bf16.msra.mxu3 %v5870_v47  ;;  %v7371_v21 = vld [vmem:[#allocation2 + $0xba4] sm:$0xf]  ;;  %v6315_v37 = vld [vmem:[#allocation2 + $0xcb0] sm:$0xf0]  ;;  %v6062_v41 = vor.u32 %v7339_v15, %v6059_v20 }
  0xeb   :  { %3891 = vmatpush.bf16.msra.mxu0 %v5470_v54  ;;  %v7403_v32 = vld [vmem:[#allocation2 + $0xca4] sm:$0xf]  ;;  %v6443_v18 = vld [vmem:[#allocation2 + $0xdb0] sm:$0xf0]  ;;  %v6190_v19 = vor.u32 %v7371_v21, %v6187_v30  ;;  %v3685_v52 = vpop.f32.mrf.mxu0 }
  0xec   :  { %3904 = vmatpush.bf16.msra.mxu1 %v5598_v59  ;;  %v7435_v38 = vld [vmem:[#allocation2 + $0xda4] sm:$0xf]  ;;  %v6318_v45 = vor.u32 %v7403_v32, %v6315_v37  ;;  %v6043_v47 = vld [vmem:[#allocation2 + $0xa90] sm:$0xf0]  ;;  %v3686_v56 = vadd.f32 %v3685_v52, %v7751_v5  ;;  %v3698_v58 = vpop.f32.mrf.mxu1 }
  0xed   :  { %3917 = vmatpush.bf16.msra.mxu2 %v5726_v60  ;;  %v7335_v46 = vld [vmem:[#allocation2 + $0xa84] sm:$0xf]  ;;  %v6446_v48 = vor.u32 %v7435_v38, %v6443_v18  ;;  %v6171_v49 = vld [vmem:[#allocation2 + $0xb90] sm:$0xf0] }
  0xee   :  { %3930 = vmatpush.bf16.msra.mxu3 %v5854_v62  ;;  %3892 = vmatmul.bf16.vlgmr.msra.gmra.mxu0 %v7681_v34  ;;  %v7367_v22 = vld [vmem:[#allocation2 + $0xb84] sm:$0xf]  ;;  %v6299_v51 = vld [vmem:[#allocation2 + $0xc90] sm:$0xf0]  ;;  %v6046_v57 = vor.u32 %v7335_v46, %v6043_v47 }
  0xef   :  { %3936 = vmatpush.bf16.msrb.mxu0 %v6094_v63  ;;  %3905 = vmatmul.bf16.vlgmr.msra.gmra.mxu1 %v7685_v40  ;;  %v7399_v50 = vld [vmem:[#allocation2 + $0xc84] sm:$0xf]  ;;  %v6427_v54 = vld [vmem:[#allocation2 + $0xd90] sm:$0xf0]  ;;  %v6174_v59 = vor.u32 %v7367_v22, %v6171_v49 }
  0xf0   :  { %3949 = vmatpush.bf16.msrb.mxu1 %v6222_v0  ;;  %3918 = vmatmul.bf16.vlgmr.msra.gmra.mxu2 %v7706_v24  ;;  %v7431_v53 = vld [vmem:[#allocation2 + $0xd84] sm:$0xf]  ;;  %v6302_v60 = vor.u32 %v7399_v50, %v6299_v51  ;;  %v6027_v61 = vld [vmem:[#allocation2 + $0xa70] sm:$0xf0]  ;;  %v3699_v0 = vadd.f32 %v3698_v58, %v3686_v56 }
  0xf1   :  { %3962 = vmatpush.bf16.msrb.mxu2 %v6350_v1  ;;  %3931 = vmatmul.bf16.vlgmr.msra.gmra.mxu3 %v7714_v29  ;;  %v7331_v55 = vld [vmem:[#allocation2 + $0xa64] sm:$0xf]  ;;  %v6430_v63 = vor.u32 %v7431_v53, %v6427_v54  ;;  %v6155_v1 = vld [vmem:[#allocation2 + $0xb70] sm:$0xf0] }
  0xf2   :  { %3975 = vmatpush.bf16.msrb.mxu3 %v6478_v6  ;;  %v7363_v62 = vld [vmem:[#allocation2 + $0xb64] sm:$0xf]  ;;  %v6283_v3 = vld [vmem:[#allocation2 + $0xc70] sm:$0xf0]  ;;  %v6030_v7 = vor.u32 %v7331_v55, %v6027_v61 }
  0xf3   :  { %3937 = vmatpush.bf16.msrb.mxu0 %v6078_v12  ;;  %v7395_v2 = vld [vmem:[#allocation2 + $0xc64] sm:$0xf]  ;;  %v6411_v6 = vld [vmem:[#allocation2 + $0xd70] sm:$0xf0]  ;;  %v6158_v5 = vor.u32 %v7363_v62, %v6155_v1  ;;  %v3687_v37 = vpop.f32.mrf.mxu0 }
  0xf4   :  { %3950 = vmatpush.bf16.msrb.mxu1 %v6206_v13  ;;  %v7427_v4 = vld [vmem:[#allocation2 + $0xd64] sm:$0xf]  ;;  %v6286_v8 = vor.u32 %v7395_v2, %v6283_v3  ;;  %v6011_v10 = vld [vmem:[#allocation2 + $0xa50] sm:$0xf0]  ;;  %v3711_v13 = vpop.f32.mrf.mxu2  ;;  %v3700_v18 = vpop.f32.mrf.mxu1 }
  0xf5   :  { %3963 = vmatpush.bf16.msrb.mxu2 %v6334_v14  ;;  %v7327_v9 = vld [vmem:[#allocation2 + $0xa44] sm:$0xf]  ;;  %v6414_v12 = vor.u32 %v7427_v4, %v6411_v6  ;;  %v6139_v14 = vld [vmem:[#allocation2 + $0xb50] sm:$0xf0]  ;;  %v3712_v21 = vadd.f32 %v3711_v13, %v3699_v0 }
  0xf6   :  { %3976 = vmatpush.bf16.msrb.mxu3 %v6462_v27  ;;  %v7359_v11 = vld [vmem:[#allocation2 + $0xb44] sm:$0xf]  ;;  %v6267_v20 = vld [vmem:[#allocation2 + $0xc50] sm:$0xf0]  ;;  %v3724_v27 = vpop.f32.mrf.mxu3  ;;  %v6014_v38 = vor.u32 %v7327_v9, %v6011_v10 }
  0xf7   :  { %3938 = vmatpush.bf16.msrb.mxu0 %v6062_v41  ;;  %v7391_v15 = vld [vmem:[#allocation2 + $0xc44] sm:$0xf]  ;;  %v6395_v32 = vld [vmem:[#allocation2 + $0xd50] sm:$0xf0]  ;;  %v7758_v41 = vadd.f32 %v3724_v27, %v3712_v21 }
  0xf8   :  { %3951 = vmatpush.bf16.msrb.mxu1 %v6190_v19  ;;  %v7423_v30 = vld [vmem:[#allocation2 + $0xd44] sm:$0xf]  ;;  %v6142_v19 = vor.u32 %v7359_v11, %v6139_v14  ;;  %v5995_v47 = vld [vmem:[#allocation2 + $0xa30] sm:$0xf0] }
  0xf9   :  { %3964 = vmatpush.bf16.msrb.mxu2 %v6318_v45  ;;  %v6270_v45 = vor.u32 %v7391_v15, %v6267_v20  ;;  %v7323_v46 = vld [vmem:[#allocation2 + $0xa24] sm:$0xf]  ;;  %v6123_v49 = vld [vmem:[#allocation2 + $0xb30] sm:$0xf0] }
  0xfa   :  { %3977 = vmatpush.bf16.msrb.mxu3 %v6446_v48  ;;  %v7355_v22 = vld [vmem:[#allocation2 + $0xb24] sm:$0xf]  ;;  %v6398_v48 = vor.u32 %v7423_v30, %v6395_v32  ;;  %v6251_v51 = vld [vmem:[#allocation2 + $0xc30] sm:$0xf0]  ;;  %v5998_v54 = vor.u32 %v7323_v46, %v5995_v47 }
  0xfb   :  { %3939 = vmatpush.bf16.msrb.mxu0 %v6046_v57  ;;  %v7387_v50 = vld [vmem:[#allocation2 + $0xc24] sm:$0xf]  ;;  %v6379_v53 = vld [vmem:[#allocation2 + $0xd30] sm:$0xf0]  ;;  %v6126_v58 = vor.u32 %v7355_v22, %v6123_v49 }
  0xfc   :  { %3952 = vmatpush.bf16.msrb.mxu1 %v6174_v59  ;;  %v7419_v52 = vld [vmem:[#allocation2 + $0xd24] sm:$0xf]  ;;  %v5979_v57 = vld [vmem:[#allocation2 + $0xa10] sm:$0xf0]  ;;  %v6254_v59 = vor.u32 %v7387_v50, %v6251_v51  ;;  %v3713_v2 = vpop.f32.mrf.mxu2 }
  0xfd   :  { %3965 = vmatpush.bf16.msrb.mxu2 %v6302_v60  ;;  %v7319_v56 = vld [vmem:[#allocation2 + $0xa04] sm:$0xf]  ;;  %v6107_v55 = vld [vmem:[#allocation2 + $0xb10] sm:$0xf0]  ;;  %v6382_v62 = vor.u32 %v7419_v52, %v6379_v53 }
  0xfe   :  { %3978 = vmatpush.bf16.msrb.mxu3 %v6430_v63  ;;  %v7351_v60 = vld [vmem:[#allocation2 + $0xb04] sm:$0xf]  ;;  %v6235_v63 = vld [vmem:[#allocation2 + $0xc10] sm:$0xf0] }
  0xff   :  { %3940 = vmatpush.bf16.msrb.mxu0 %v6030_v7  ;;  %v7383_v61 = vld [vmem:[#allocation2 + $0xc04] sm:$0xf]  ;;  %v6363_v1 = vld [vmem:[#allocation2 + $0xd10] sm:$0xf0]  ;;  %v3726_v7 = vpop.f32.mrf.mxu3  ;;  %v6110_v11 = vor.u32 %v7351_v60, %v6107_v55 }
 0x100   :  { %3953 = vmatpush.bf16.msrb.mxu1 %v6158_v5  ;;  %v7415_v0 = vld [vmem:[#allocation2 + $0xd04] sm:$0xf]  ;;  %v6603_v4 = vld [vmem:[#allocation2 + $0xef0] sm:$0xf0]  ;;  %v5982_v5 = vor.u32 %v7319_v56, %v5979_v57 }
 0x101   :  { %3966 = vmatpush.bf16.msrb.mxu2 %v6286_v8  ;;  %v7475_v3 = vld [vmem:[#allocation2 + $0xee4] sm:$0xf]  ;;  %v6731_v8 = vld [vmem:[#allocation2 + $0xff0] sm:$0xf0]  ;;  %v6366_v15 = vor.u32 %v7415_v0, %v6363_v1 }
 0x102   :  { %3979 = vmatpush.bf16.msrb.mxu3 %v6414_v12  ;;  %v7507_v6 = vld [vmem:[#allocation2 + $0xfe4] sm:$0xf]  ;;  %v6859_v10 = vld [vmem:[#allocation2 + $0x10f0] sm:$0xf0]  ;;  %v6238_v12 = vor.u32 %v7383_v61, %v6235_v63  ;;  %v6606_v20 = vor.u32 %v7475_v3, %v6603_v4 }
 0x103   :  { %3941 = vmatpush.bf16.msrb.mxu0 %v6014_v38  ;;  %v7539_v9 = vld [vmem:[#allocation2 + $0x10e4] sm:$0xf]  ;;  %v6987_v14 = vld [vmem:[#allocation2 + $0x11f0] sm:$0xf0]  ;;  %v6734_v21 = vor.u32 %v7507_v6, %v6731_v8 }
 0x104   :  { %3954 = vmatpush.bf16.msrb.mxu1 %v6142_v19  ;;  %v7571_v13 = vld [vmem:[#allocation2 + $0x11e4] sm:$0xf]  ;;  %v6862_v27 = vor.u32 %v7539_v9, %v6859_v10  ;;  %v6587_v32 = vld [vmem:[#allocation2 + $0xed0] sm:$0xf0] }
 0x105   :  { %3967 = vmatpush.bf16.msrb.mxu2 %v6270_v45  ;;  %v7471_v30 = vld [vmem:[#allocation2 + $0xec4] sm:$0xf]  ;;  %v6990_v38 = vor.u32 %v7571_v13, %v6987_v14  ;;  %v6715_v18 = vld [vmem:[#allocation2 + $0xfd0] sm:$0xf0] }
 0x106   :  { %3980 = vmatpush.bf16.msrb.mxu3 %v6398_v48  ;;  %v7503_v37 = vld [vmem:[#allocation2 + $0xfc4] sm:$0xf]  ;;  %v6843_v45 = vld [vmem:[#allocation2 + $0x10d0] sm:$0xf0]  ;;  %v6590_v22 = vor.u32 %v7471_v30, %v6587_v32 }
 0x107   :  { %3942 = vmatpush.bf16.msrb.mxu0 %v5998_v54  ;;  %v7535_v19 = vld [vmem:[#allocation2 + $0x10c4] sm:$0xf]  ;;  %v6971_v47 = vld [vmem:[#allocation2 + $0x11d0] sm:$0xf0]  ;;  %v6718_v48 = vor.u32 %v7503_v37, %v6715_v18 }
 0x108   :  { %3955 = vmatpush.bf16.msrb.mxu1 %v6126_v58  ;;  %v7567_v46 = vld [vmem:[#allocation2 + $0x11c4] sm:$0xf]  ;;  %v6846_v49 = vor.u32 %v7535_v19, %v6843_v45  ;;  %v6571_v51 = vld [vmem:[#allocation2 + $0xeb0] sm:$0xf0] }
 0x109   :  { %3968 = vmatpush.bf16.msrb.mxu2 %v6254_v59  ;;  %v7467_v50 = vld [vmem:[#allocation2 + $0xea4] sm:$0xf]  ;;  %v6974_v53 = vor.u32 %v7567_v46, %v6971_v47  ;;  %v6699_v54 = vld [vmem:[#allocation2 + $0xfb0] sm:$0xf0] }
 0x10a   :  { %3981 = vmatpush.bf16.msrb.mxu3 %v6382_v62  ;;  %v7499_v52 = vld [vmem:[#allocation2 + $0xfa4] sm:$0xf]  ;;  %v6827_v57 = vld [vmem:[#allocation2 + $0x10b0] sm:$0xf0]  ;;  %v6574_v60 = vor.u32 %v7467_v50, %v6571_v51 }
 0x10b   :  { %3943 = vmatpush.bf16.msrb.mxu0 %v5982_v5  ;;  %v7531_v56 = vld [vmem:[#allocation2 + $0x10a4] sm:$0xf]  ;;  %v6955_v59 = vld [vmem:[#allocation2 + $0x11b0] sm:$0xf0]  ;;  %v6702_v55 = vor.u32 %v7499_v52, %v6699_v54 }
 0x10c   :  { %3956 = vmatpush.bf16.msrb.mxu1 %v6110_v11  ;;  %v7563_v58 = vld [vmem:[#allocation2 + $0x11a4] sm:$0xf]  ;;  %v6830_v61 = vor.u32 %v7531_v56, %v6827_v57  ;;  %v6555_v63 = vld [vmem:[#allocation2 + $0xe90] sm:$0xf0] }
 0x10d   :  { %3969 = vmatpush.bf16.msrb.mxu2 %v6238_v12  ;;  %v7463_v62 = vld [vmem:[#allocation2 + $0xe84] sm:$0xf]  ;;  %v6958_v1 = vor.u32 %v7563_v58, %v6955_v59  ;;  %v6683_v2 = vld [vmem:[#allocation2 + $0xf90] sm:$0xf0]  ;;  %v3737_v6 = vpop.f32.mrf.mxu0 }
 0x10e   :  { %3982 = vmatpush.bf16.msrb.mxu3 %v6366_v15  ;;  %3944 = vmatmul.bf16.vlgmr.msrb.gmra.mxu0 %v7710_v28  ;;  %v7495_v0 = vld [vmem:[#allocation2 + $0xf84] sm:$0xf]  ;;  %v6811_v4 = vld [vmem:[#allocation2 + $0x1090] sm:$0xf0]  ;;  %v3738_v8 = vadd.f32 %v3737_v6, %v7758_v41  ;;  %v6558_v9 = vor.u32 %v7463_v62, %v6555_v63  ;;  %v3750_v10 = vpop.f32.mrf.mxu1 }
 0x10f   :  { %3988 = vmatpush.bf16.msra.mxu0 %v6606_v20  ;;  %3957 = vmatmul.bf16.vlgmr.msrb.gmra.mxu1 %v7718_v16  ;;  %v7527_v3 = vld [vmem:[#allocation2 + $0x1084] sm:$0xf]  ;;  %v6939_v5 = vld [vmem:[#allocation2 + $0x1190] sm:$0xf0]  ;;  %v6686_v11 = vor.u32 %v7495_v0, %v6683_v2 }
 0x110   :  { %4001 = vmatpush.bf16.msra.mxu1 %v6734_v21  ;;  %3970 = vmatmul.bf16.vlgmr.msrb.gmra.mxu2 %v7724_v17  ;;  %v7559_v7 = vld [vmem:[#allocation2 + $0x1184] sm:$0xf]  ;;  %v6814_v12 = vor.u32 %v7527_v3, %v6811_v4  ;;  %v6539_v14 = vld [vmem:[#allocation2 + $0xe70] sm:$0xf0]  ;;  %v3751_v21 = vadd.f32 %v3750_v10, %v3738_v8 }
 0x111   :  { %4014 = vmatpush.bf16.msra.mxu2 %v6862_v27  ;;  %3983 = vmatmul.bf16.vlgmr.msrb.gmra.mxu3 %v7728_v26  ;;  %v7459_v13 = vld [vmem:[#allocation2 + $0xe64] sm:$0xf]  ;;  %v6942_v20 = vor.u32 %v7559_v7, %v6939_v5  ;;  %v6667_v27 = vld [vmem:[#allocation2 + $0xf70] sm:$0xf0] }
 0x112   :  { %4027 = vmatpush.bf16.msra.mxu3 %v6990_v38  ;;  %v7491_v15 = vld [vmem:[#allocation2 + $0xf64] sm:$0xf]  ;;  %v6795_v32 = vld [vmem:[#allocation2 + $0x1070] sm:$0xf0]  ;;  %v6542_v18 = vor.u32 %v7459_v13, %v6539_v14 }
 0x113   :  { %3989 = vmatpush.bf16.msra.mxu0 %v6590_v22  ;;  %v7523_v30 = vld [vmem:[#allocation2 + $0x1064] sm:$0xf]  ;;  %v6923_v38 = vld [vmem:[#allocation2 + $0x1170] sm:$0xf0]  ;;  %v6670_v41 = vor.u32 %v7491_v15, %v6667_v27 }
 0x114   :  { %4002 = vmatpush.bf16.msra.mxu1 %v6718_v48  ;;  %v7555_v37 = vld [vmem:[#allocation2 + $0x1164] sm:$0xf]  ;;  %v6798_v19 = vor.u32 %v7523_v30, %v6795_v32  ;;  %v6523_v46 = vld [vmem:[#allocation2 + $0xe50] sm:$0xf0]  ;;  %v4817_v32 = vld [vmem:[#allocation2 + $0xe8] sm:$0xf] }
 0x115   :  { %4015 = vmatpush.bf16.msra.mxu2 %v6846_v49  ;;  %v7455_v45 = vld [vmem:[#allocation2 + $0xe44] sm:$0xf]  ;;  %v6926_v22 = vor.u32 %v7555_v37, %v6923_v38  ;;  %v3763_v48 = vpop.f32.mrf.mxu2  ;;  %v6651_v49 = vld [vmem:[#allocation2 + $0xf50] sm:$0xf0]  ;;  %v3739_v57 = vpop.f32.mrf.mxu0  ;;  %v7030_v37 = vld [vmem:[#allocation2 + $0xf4] sm:$0xf0] }
 0x116   :  { %4028 = vmatpush.bf16.msra.mxu3 %v6974_v53  ;;  %v7487_v47 = vld [vmem:[#allocation2 + $0xf44] sm:$0xf]  ;;  %v6779_v51 = vld [vmem:[#allocation2 + $0x1050] sm:$0xf0]  ;;  %v3764_v52 = vadd.f32 %v3763_v48, %v3751_v21  ;;  %v3776_v53 = vpop.f32.mrf.mxu3  ;;  %v6526_v58 = vor.u32 %v7455_v45, %v6523_v46  ;;  %v3752_v59 = vpop.f32.mrf.mxu1  ;;  %v4945_v38 = vld [vmem:[#allocation2 + $0x1e8] sm:$0xf] }
 0x117   :  { %3990 = vmatpush.bf16.msra.mxu0 %v6574_v60  ;;  %v7519_v50 = vld [vmem:[#allocation2 + $0x1044] sm:$0xf]  ;;  %v6907_v56 = vld [vmem:[#allocation2 + $0x1150] sm:$0xf0]  ;;  %v5073_v45 = vld [vmem:[#allocation2 + $0x2e8] sm:$0xf] }
 0x118   :  { %4003 = vmatpush.bf16.msra.mxu1 %v6702_v55  ;;  %v7551_v54 = vld [vmem:[#allocation2 + $0x1144] sm:$0xf]  ;;  %v7765_v60 = vadd.f32 %v3776_v53, %v3764_v52  ;;  %v6654_v55 = vor.u32 %v7487_v47, %v6651_v49  ;;  %v6507_v63 = vld [vmem:[#allocation2 + $0xe30] sm:$0xf0]  ;;  %v7094_v46 = vld [vmem:[#allocation2 + $0x2f4] sm:$0xf0] }
 0x119   :  { %4016 = vmatpush.bf16.msra.mxu2 %v6830_v61  ;;  %v6782_v61 = vor.u32 %v7519_v50, %v6779_v51  ;;  %v7451_v62 = vld [vmem:[#allocation2 + $0xe24] sm:$0xf]  ;;  %v6635_v2 = vld [vmem:[#allocation2 + $0xf30] sm:$0xf0]  ;;  %v5201_v48 = vld [vmem:[#allocation2 + $0x3e8] sm:$0xf]  ;;  %v4818_v51 = vor.u32 %v7030_v37, %v4817_v32  ;;  %v5074_v53 = vor.u32 %v7094_v46, %v5073_v45 }
 0x11a   :  { %4029 = vmatpush.bf16.msra.mxu3 %v6958_v1  ;;  %v7483_v0 = vld [vmem:[#allocation2 + $0xf24] sm:$0xf]  ;;  %v6910_v1 = vor.u32 %v7551_v54, %v6907_v56  ;;  %v6763_v4 = vld [vmem:[#allocation2 + $0x1030] sm:$0xf0]  ;;  %v6510_v5 = vor.u32 %v7451_v62, %v6507_v63  ;;  %v7126_v49 = vld [vmem:[#allocation2 + $0x3f4] sm:$0xf0] }
 0x11b   :  { %3991 = vmatpush.bf16.msra.mxu0 %v6558_v9  ;;  %v7515_v3 = vld [vmem:[#allocation2 + $0x1024] sm:$0xf]  ;;  %v6891_v7 = vld [vmem:[#allocation2 + $0x1130] sm:$0xf0]  ;;  %v6638_v10 = vor.u32 %v7483_v0, %v6635_v2  ;;  %v4801_v54 = vld [vmem:[#allocation2 + $0xc8] sm:$0xf] }
 0x11c   :  { %4004 = vmatpush.bf16.msra.mxu1 %v6686_v11  ;;  %v7547_v6 = vld [vmem:[#allocation2 + $0x1124] sm:$0xf]  ;;  %v6491_v9 = vld [vmem:[#allocation2 + $0xe10] sm:$0xf0]  ;;  %v6766_v11 = vor.u32 %v7515_v3, %v6763_v4  ;;  %v7026_v56 = vld [vmem:[#allocation2 + $0xd4] sm:$0xf0] }
 0x11d   :  { %4017 = vmatpush.bf16.msra.mxu2 %v6814_v12  ;;  %v7447_v8 = vld [vmem:[#allocation2 + $0xe04] sm:$0xf]  ;;  %v6619_v13 = vld [vmem:[#allocation2 + $0xf10] sm:$0xf0]  ;;  %v6894_v15 = vor.u32 %v7547_v6, %v6891_v7  ;;  %v3765_v30 = vpop.f32.mrf.mxu2  ;;  %v4929_v57 = vld [vmem:[#allocation2 + $0x1c8] sm:$0xf]  ;;  %v4802_v0 = vor.u32 %v7026_v56, %v4801_v54 }
 0x11e   :  { %4030 = vmatpush.bf16.msra.mxu3 %v6942_v20  ;;  %v7479_v12 = vld [vmem:[#allocation2 + $0xf04] sm:$0xf]  ;;  %v6747_v20 = vld [vmem:[#allocation2 + $0x1010] sm:$0xf0]  ;;  %v7058_v59 = vld [vmem:[#allocation2 + $0x1d4] sm:$0xf0] }
 0x11f   :  { %3992 = vmatpush.bf16.msra.mxu0 %v6542_v18  ;;  %v7511_v14 = vld [vmem:[#allocation2 + $0x1004] sm:$0xf]  ;;  %v6875_v27 = vld [vmem:[#allocation2 + $0x1110] sm:$0xf0]  ;;  %v3778_v18 = vpop.f32.mrf.mxu3  ;;  %v6622_v47 = vor.u32 %v7479_v12, %v6619_v13  ;;  %v5185_v62 = vld [vmem:[#allocation2 + $0x3c8] sm:$0xf] }
 0x120   :  { %4005 = vmatpush.bf16.msra.mxu1 %v6670_v41  ;;  %v7543_v21 = vld [vmem:[#allocation2 + $0x1104] sm:$0xf]  ;;  %v6494_v41 = vor.u32 %v7447_v8, %v6491_v9  ;;  %v7122_v63 = vld [vmem:[#allocation2 + $0x3d4] sm:$0xf0]  ;;  %v4785_v3 = vld [vmem:[#allocation2 + $0xa8] sm:$0xf] }
 0x121   :  { %4018 = vmatpush.bf16.msra.mxu2 %v6798_v19  ;;  %v7062_v19 = vld [vmem:[#allocation2 + $0x1f4] sm:$0xf0]  ;;  %v6878_v50 = vor.u32 %v7543_v21, %v6875_v27  ;;  %v4913_v6 = vld [vmem:[#allocation2 + $0x1a8] sm:$0xf]  ;;  %v5186_v7 = vor.u32 %v7122_v63, %v5185_v62 }
 0x122   :  { %4031 = vmatpush.bf16.msra.mxu3 %v6926_v22  ;;  %v6750_v22 = vor.u32 %v7511_v14, %v6747_v20  ;;  %v4946_v52 = vor.u32 %v7062_v19, %v4945_v38  ;;  %v7022_v4 = vld [vmem:[#allocation2 + $0xb4] sm:$0xf0]  ;;  %v5041_v8 = vld [vmem:[#allocation2 + $0x2a8] sm:$0xf] }
 0x123   :  { %3993 = vmatpush.bf16.msra.mxu0 %v6526_v58  ;;  %v5202_v58 = vor.u32 %v7126_v49, %v5201_v48  ;;  %v7086_v9 = vld [vmem:[#allocation2 + $0x2b4] sm:$0xf0]  ;;  %v4786_v12 = vor.u32 %v7022_v4, %v4785_v3  ;;  %v4897_v21 = vld [vmem:[#allocation2 + $0x188] sm:$0xf] }
 0x124   :  { %4006 = vmatpush.bf16.msra.mxu1 %v6654_v55  ;;  %v5057_v55 = vld [vmem:[#allocation2 + $0x2c8] sm:$0xf]  ;;  %v5042_v14 = vor.u32 %v7086_v9, %v5041_v8  ;;  %v7018_v20 = vld [vmem:[#allocation2 + $0x94] sm:$0xf0] }
 0x125   :  { %4019 = vmatpush.bf16.msra.mxu2 %v6782_v61  ;;  %v7090_v61 = vld [vmem:[#allocation2 + $0x2d4] sm:$0xf0]  ;;  %v5025_v32 = vld [vmem:[#allocation2 + $0x288] sm:$0xf] }
 0x126   :  { %4032 = vmatpush.bf16.msra.mxu3 %v6910_v1  ;;  %v4930_v1 = vor.u32 %v7058_v59, %v4929_v57  ;;  %v5058_v2 = vor.u32 %v7090_v61, %v5057_v55  ;;  %v7050_v30 = vld [vmem:[#allocation2 + $0x194] sm:$0xf0]  ;;  %v5153_v18 = vld [vmem:[#allocation2 + $0x388] sm:$0xf] }
 0x127   :  { %3994 = vmatpush.bf16.msra.mxu0 %v6510_v5  ;;  %v7054_v5 = vld [vmem:[#allocation2 + $0x1b4] sm:$0xf0]  ;;  %v4753_v48 = vld [vmem:[#allocation2 + $0x68] sm:$0xf] }
 0x128   :  { %4007 = vmatpush.bf16.msra.mxu1 %v6638_v10  ;;  %v5169_v10 = vld [vmem:[#allocation2 + $0x3a8] sm:$0xf]  ;;  %v4914_v13 = vor.u32 %v7054_v5, %v4913_v6  ;;  %v7082_v37 = vld [vmem:[#allocation2 + $0x294] sm:$0xf0] }
 0x129   :  { %4020 = vmatpush.bf16.msra.mxu2 %v6766_v11  ;;  %v7118_v11 = vld [vmem:[#allocation2 + $0x3b4] sm:$0xf0]  ;;  %v5009_v54 = vld [vmem:[#allocation2 + $0x268] sm:$0xf] }
 0x12a   :  { %4033 = vmatpush.bf16.msra.mxu3 %v6894_v15  ;;  %v4769_v15 = vld [vmem:[#allocation2 + $0x88] sm:$0xf]  ;;  %v5170_v27 = vor.u32 %v7118_v11, %v5169_v10  ;;  %v7014_v49 = vld [vmem:[#allocation2 + $0x74] sm:$0xf0] }
 0x12b   :  { %3995 = vmatpush.bf16.msra.mxu0 %v6494_v41  ;;  %v3789_v38 = vpop.f32.mrf.mxu0  ;;  %v7114_v41 = vld [vmem:[#allocation2 + $0x394] sm:$0xf0]  ;;  %v4770_v45 = vor.u32 %v7018_v20, %v4769_v15  ;;  %v5137_v57 = vld [vmem:[#allocation2 + $0x368] sm:$0xf] }
 0x12c   :  { %4008 = vmatpush.bf16.msra.mxu1 %v6622_v47  ;;  %v3790_v19 = vadd.f32 %v3789_v38, %v7765_v60  ;;  %v3802_v46 = vpop.f32.mrf.mxu1  ;;  %v4898_v47 = vor.u32 %v7050_v30, %v4897_v21  ;;  %v7078_v56 = vld [vmem:[#allocation2 + $0x274] sm:$0xf0]  ;;  %v4754_v60 = vor.u32 %v7014_v49, %v4753_v48  ;;  %v4737_v59 = vld [vmem:[#allocation2 + $0x48] sm:$0xf] }
 0x12d   :  { %4021 = vmatpush.bf16.msra.mxu2 %v6750_v22  ;;  %v5026_v22 = vor.u32 %v7082_v37, %v5025_v32  ;;  %v5010_v61 = vor.u32 %v7078_v56, %v5009_v54  ;;  %v7010_v62 = vld [vmem:[#allocation2 + $0x54] sm:$0xf0]  ;;  %v4865_v63 = vld [vmem:[#allocation2 + $0x148] sm:$0xf] }
 0x12e   :  { %4034 = vmatpush.bf16.msra.mxu3 %v6878_v50  ;;  %3996 = vmatmul.bf16.vlgmr.msra.gmra.mxu0 %v7726_v25  ;;  %v4881_v50 = vld [vmem:[#allocation2 + $0x168] sm:$0xf]  ;;  %v7074_v3 = vld [vmem:[#allocation2 + $0x254] sm:$0xf0]  ;;  %v4738_v11 = vor.u32 %v7010_v62, %v4737_v59 }
 0x12f   :  { %4040 = vmatpush.bf16.msrb.mxu0 %v4818_v51  ;;  %4009 = vmatmul.bf16.vlgmr.msra.gmra.mxu1 %v7730_v31  ;;  %v5154_v51 = vor.u32 %v7114_v41, %v5153_v18  ;;  %v7589_v4 = vld [vmem:[%s7961_s2] sm:$0xf]  ;;  %v5121_v5 = vld [vmem:[#allocation2 + $0x348] sm:$0xf] }
 0x130   :  { %4053 = vmatpush.bf16.msrb.mxu1 %v4946_v52  ;;  %4022 = vmatmul.bf16.vlgmr.msra.gmra.mxu2 %v7736_v23  ;;  %v7772_v52 = vadd.f32 %v3802_v46, %v3790_v19  ;;  %v685_v6 = vperm.slane %v7589_v4, 1  ;;  %v7106_v8 = vld [vmem:[#allocation2 + $0x354] sm:$0xf0]  ;;  %v4721_v20 = vld [vmem:[#allocation2 + $0x28] sm:$0xf] }
 0x131   :  { %4066 = vmatpush.bf16.msrb.mxu2 %v5074_v53  ;;  %4035 = vmatmul.bf16.vlgmr.msra.gmra.mxu3 %v7738_v33  ;;  %v7046_v53 = vld [vmem:[#allocation2 + $0x174] sm:$0xf0]  ;;  %v5122_v30 = vor.u32 %v7106_v8, %v5121_v5  ;;  %v4977_v37 = vld [vmem:[#allocation2 + $0x228] sm:$0xf] }
 0x132   :  { %4079 = vmatpush.bf16.msrb.mxu3 %v5202_v58  ;;  %v7110_v58 = vld [vmem:[#allocation2 + $0x374] sm:$0xf0]  ;;  %v4882_v55 = vor.u32 %v7046_v53, %v4881_v50  ;;  %v5105_v41 = vld [vmem:[#allocation2 + $0x328] sm:$0xf] }
 0x133   :  { %4041 = vmatpush.bf16.msrb.mxu0 %v4802_v0  ;;  %v7042_v0 = vld [vmem:[#allocation2 + $0x154] sm:$0xf0]  ;;  %v3791_v10 = vpop.f32.mrf.mxu0  ;;  %v4705_v46 = vld [vmem:[#allocation2 + $0x8] sm:$0xf] }
 0x134   :  { %4054 = vmatpush.bf16.msrb.mxu1 %v4930_v1  ;;  %v5138_v1 = vor.u32 %v7110_v58, %v5137_v57  ;;  %v3828_v9 = vpop.f32.mrf.mxu3  ;;  %v7006_v21 = vld [vmem:[#allocation2 + $0x34] sm:$0xf0]  ;;  %v4833_v49 = vld [vmem:[#allocation2 + $0x108] sm:$0xf] }
 0x135   :  { %4067 = vmatpush.bf16.msrb.mxu2 %v5058_v2  ;;  %v4993_v2 = vld [vmem:[#allocation2 + $0x248] sm:$0xf]  ;;  %v7038_v32 = vld [vmem:[#allocation2 + $0x134] sm:$0xf0] }
 0x136   :  { %4080 = vmatpush.bf16.msrb.mxu3 %v5186_v7  ;;  %v3815_v7 = vpop.f32.mrf.mxu2  ;;  %v4994_v15 = vor.u32 %v7074_v3, %v4993_v2  ;;  %v7070_v38 = vld [vmem:[#allocation2 + $0x234] sm:$0xf0]  ;;  %v5089_v56 = vld [vmem:[#allocation2 + $0x308] sm:$0xf] }
 0x137   :  { %4042 = vmatpush.bf16.msrb.mxu0 %v4786_v12  ;;  %v3816_v12 = vadd.f32 %v3815_v7, %v685_v6  ;;  %v7102_v19 = vld [vmem:[#allocation2 + $0x334] sm:$0xf0]  ;;  %v4978_v48 = vor.u32 %v7070_v38, %v4977_v37  ;;  %v5713_v4 = vld [vmem:[#allocation2 + $0x7e8] sm:$0xf] }
 0x138   :  { %4055 = vmatpush.bf16.msrb.mxu1 %v4914_v13  ;;  %v3804_v13 = vpop.f32.mrf.mxu1  ;;  %v7034_v50 = vld [vmem:[#allocation2 + $0x114] sm:$0xf0]  ;;  %v5106_v53 = vor.u32 %v7102_v19, %v5105_v41  ;;  %v5313_v10 = vld [vmem:[#allocation2 + $0x4c8] sm:$0xf] }
 0x139   :  { %4068 = vmatpush.bf16.msrb.mxu2 %v5042_v14  ;;  %v4866_v14 = vor.u32 %v7042_v0, %v4865_v63  ;;  %v7777_v18 = vadd.f32 %v3828_v9, %v3816_v12  ;;  %v7066_v54 = vld [vmem:[#allocation2 + $0x214] sm:$0xf0]  ;;  %v5585_v0 = vld [vmem:[#allocation2 + $0x6e8] sm:$0xf]  ;;  %v4834_v2 = vor.u32 %v7034_v50, %v4833_v49 }
 0x13a   :  { %4081 = vmatpush.bf16.msrb.mxu3 %v5170_v27  ;;  %v4849_v27 = vld [vmem:[#allocation2 + $0x128] sm:$0xf]  ;;  %v7098_v57 = vld [vmem:[#allocation2 + $0x314] sm:$0xf0] }
 0x13b   :  { %4043 = vmatpush.bf16.msrb.mxu0 %v4770_v45  ;;  %v4722_v45 = vor.u32 %v7006_v21, %v4721_v20  ;;  %v7158_v59 = vld [vmem:[#allocation2 + $0x4f4] sm:$0xf0]  ;;  %v5090_v7 = vor.u32 %v7098_v57, %v5089_v56  ;;  %v5441_v12 = vld [vmem:[#allocation2 + $0x5c8] sm:$0xf] }
 0x13c   :  { %4056 = vmatpush.bf16.msrb.mxu1 %v4898_v47  ;;  %v7002_v47 = vld [vmem:[#allocation2 + $0x14] sm:$0xf0]  ;;  %v5697_v21 = vld [vmem:[#allocation2 + $0x7c8] sm:$0xf] }
 0x13d   :  { %4069 = vmatpush.bf16.msrb.mxu2 %v5026_v22  ;;  %v4850_v22 = vor.u32 %v7038_v32, %v4849_v27  ;;  %v4706_v62 = vor.u32 %v7002_v47, %v4705_v46  ;;  %v7190_v63 = vld [vmem:[#allocation2 + $0x5f4] sm:$0xf0]  ;;  %v5297_v38 = vld [vmem:[#allocation2 + $0x4a8] sm:$0xf] }
 0x13e   :  { %4082 = vmatpush.bf16.msrb.mxu3 %v5154_v51  ;;  %v4961_v51 = vld [vmem:[#allocation2 + $0x208] sm:$0xf]  ;;  %v3817_v58 = vpop.f32.mrf.mxu2  ;;  %v7254_v6 = vld [vmem:[#allocation2 + $0x7f4] sm:$0xf0] }
 0x13f   :  { %4044 = vmatpush.bf16.msrb.mxu0 %v4754_v60  ;;  %v5329_v60 = vld [vmem:[#allocation2 + $0x4e8] sm:$0xf]  ;;  %v4962_v3 = vor.u32 %v7066_v54, %v4961_v51  ;;  %v5714_v13 = vor.u32 %v7254_v6, %v5713_v4  ;;  %v7218_v20 = vld [vmem:[#allocation2 + $0x6d4] sm:$0xf0] }
 0x140   :  { %4057 = vmatpush.bf16.msrb.mxu1 %v4882_v55  ;;  %v5457_v55 = vld [vmem:[#allocation2 + $0x5e8] sm:$0xf]  ;;  %v5330_v5 = vor.u32 %v7158_v59, %v5329_v60  ;;  %v7250_v27 = vld [vmem:[#allocation2 + $0x7d4] sm:$0xf0] }
 0x141   :  { %4070 = vmatpush.bf16.msrb.mxu2 %v5010_v61  ;;  %v3830_v61 = vpop.f32.mrf.mxu3  ;;  %v5458_v8 = vor.u32 %v7190_v63, %v5457_v55  ;;  %v7150_v41 = vld [vmem:[#allocation2 + $0x4b4] sm:$0xf0]  ;;  %v5425_v19 = vld [vmem:[#allocation2 + $0x5a8] sm:$0xf] }
 0x142   :  { %4083 = vmatpush.bf16.msrb.mxu3 %v5138_v1  ;;  %v7222_v1 = vld [vmem:[#allocation2 + $0x6f4] sm:$0xf0]  ;;  %v5553_v47 = vld [vmem:[#allocation2 + $0x6a8] sm:$0xf]  ;;  %v5298_v50 = vor.u32 %v7150_v41, %v5297_v38 }
 0x143   :  { %4045 = vmatpush.bf16.msrb.mxu0 %v4738_v11  ;;  %v5586_v9 = vor.u32 %v7222_v1, %v5585_v0  ;;  %v7154_v11 = vld [vmem:[#allocation2 + $0x4d4] sm:$0xf0]  ;;  %v5281_v54 = vld [vmem:[#allocation2 + $0x488] sm:$0xf] }
 0x144   :  { %4058 = vmatpush.bf16.msrb.mxu1 %v4866_v14  ;;  %v7186_v14 = vld [vmem:[#allocation2 + $0x5d4] sm:$0xf0]  ;;  %v5409_v57 = vld [vmem:[#allocation2 + $0x588] sm:$0xf] }
 0x145   :  { %4071 = vmatpush.bf16.msrb.mxu2 %v4994_v15  ;;  %v5569_v15 = vld [vmem:[#allocation2 + $0x6c8] sm:$0xf]  ;;  %v5442_v32 = vor.u32 %v7186_v14, %v5441_v12  ;;  %v7182_v46 = vld [vmem:[#allocation2 + $0x5b4] sm:$0xf0] }
 0x146   :  { %4084 = vmatpush.bf16.msrb.mxu3 %v5122_v30  ;;  %v5314_v30 = vor.u32 %v7154_v11, %v5313_v10  ;;  %v5570_v37 = vor.u32 %v7218_v20, %v5569_v15  ;;  %v7246_v49 = vld [vmem:[#allocation2 + $0x7b4] sm:$0xf0]  ;;  %v5426_v51 = vor.u32 %v7182_v46, %v5425_v19  ;;  %v5537_v59 = vld [vmem:[#allocation2 + $0x688] sm:$0xf] }
 0x147   :  { %4046 = vmatpush.bf16.msrb.mxu0 %v4722_v45  ;;  %v5698_v45 = vor.u32 %v7250_v27, %v5697_v21  ;;  %v7146_v56 = vld [vmem:[#allocation2 + $0x494] sm:$0xf0]  ;;  %v5665_v61 = vld [vmem:[#allocation2 + $0x788] sm:$0xf] }
 0x148   :  { %4059 = vmatpush.bf16.msrb.mxu1 %v4850_v22  ;;  %v7214_v22 = vld [vmem:[#allocation2 + $0x6b4] sm:$0xf0]  ;;  %v5282_v63 = vor.u32 %v7146_v56, %v5281_v54  ;;  %v5393_v6 = vld [vmem:[#allocation2 + $0x568] sm:$0xf] }
 0x149   :  { %4072 = vmatpush.bf16.msrb.mxu2 %v4978_v48  ;;  %v5681_v48 = vld [vmem:[#allocation2 + $0x7a8] sm:$0xf]  ;;  %v7178_v60 = vld [vmem:[#allocation2 + $0x594] sm:$0xf0] }
 0x14a   :  { %4085 = vmatpush.bf16.msrb.mxu3 %v5106_v53  ;;  %v5554_v53 = vor.u32 %v7214_v22, %v5553_v47  ;;  %v5682_v58 = vor.u32 %v7246_v49, %v5681_v48  ;;  %v7210_v55 = vld [vmem:[#allocation2 + $0x694] sm:$0xf0]  ;;  %v5410_v1 = vor.u32 %v7178_v60, %v5409_v57  ;;  %v5521_v10 = vld [vmem:[#allocation2 + $0x668] sm:$0xf] }
 0x14b   :  { %4047 = vmatpush.bf16.msrb.mxu0 %v4706_v62  ;;  %v7242_v62 = vld [vmem:[#allocation2 + $0x794] sm:$0xf0]  ;;  %v3841_v0 = vpop.f32.mrf.mxu0  ;;  %v5649_v12 = vld [vmem:[#allocation2 + $0x768] sm:$0xf] }
 0x14c   :  { %4060 = vmatpush.bf16.msrb.mxu1 %v4834_v2  ;;  %v5538_v2 = vor.u32 %v7210_v55, %v5537_v59  ;;  %v7142_v4 = vld [vmem:[#allocation2 + $0x474] sm:$0xf0]  ;;  %v5249_v27 = vld [vmem:[#allocation2 + $0x448] sm:$0xf] }
 0x14d   :  { %4073 = vmatpush.bf16.msrb.mxu2 %v4962_v3  ;;  %v5265_v3 = vld [vmem:[#allocation2 + $0x468] sm:$0xf]  ;;  %v7206_v11 = vld [vmem:[#allocation2 + $0x674] sm:$0xf0] }
 0x14e   :  { %4086 = vmatpush.bf16.msrb.mxu3 %v5090_v7  ;;  %4048 = vmatmul.bf16.vlgmr.msrb.gmra.mxu0 %v7665_v36  ;;  %v3842_v7 = vadd.f32 %v3841_v0, %v7777_v18  ;;  %v5266_v15 = vor.u32 %v7142_v4, %v5265_v3  ;;  %v5522_v21 = vor.u32 %v7206_v11, %v5521_v10  ;;  %v7170_v38 = vld [vmem:[#allocation2 + $0x554] sm:$0xf0]  ;;  %v5505_v41 = vld [vmem:[#allocation2 + $0x648] sm:$0xf] }
 0x14f   :  { %4092 = vmatpush.bf16.msra.mxu0 %v5330_v5  ;;  %4061 = vmatmul.bf16.vlgmr.msrb.gmra.mxu1 %v7669_v43  ;;  %v3854_v5 = vpop.f32.mrf.mxu1  ;;  %v7202_v19 = vld [vmem:[#allocation2 + $0x654] sm:$0xf0]  ;;  %v5633_v47 = vld [vmem:[#allocation2 + $0x748] sm:$0xf] }
 0x150   :  { %4105 = vmatpush.bf16.msra.mxu1 %v5458_v8  ;;  %4074 = vmatmul.bf16.vlgmr.msrb.gmra.mxu2 %v7663_v35  ;;  %v5666_v8 = vor.u32 %v7242_v62, %v5665_v61  ;;  %v3855_v14 = vadd.f32 %v3854_v5, %v3842_v7  ;;  %v7234_v22 = vld [vmem:[#allocation2 + $0x754] sm:$0xf0]  ;;  %v5233_v54 = vld [vmem:[#allocation2 + $0x428] sm:$0xf] }
 0x151   :  { %4118 = vmatpush.bf16.msra.mxu2 %v5586_v9  ;;  %4087 = vmatmul.bf16.vlgmr.msrb.gmra.mxu3 %v7667_v42  ;;  %v7174_v9 = vld [vmem:[#allocation2 + $0x574] sm:$0xf0]  ;;  %v5361_v57 = vld [vmem:[#allocation2 + $0x528] sm:$0xf]  ;;  %v5634_v60 = vor.u32 %v7234_v22, %v5633_v47 }
 0x152   :  { %4131 = vmatpush.bf16.msra.mxu3 %v5714_v13  ;;  %v7238_v13 = vld [vmem:[#allocation2 + $0x774] sm:$0xf0]  ;;  %v5394_v20 = vor.u32 %v7174_v9, %v5393_v6  ;;  %v5489_v55 = vld [vmem:[#allocation2 + $0x628] sm:$0xf] }
 0x153   :  { %4093 = vmatpush.bf16.msra.mxu0 %v5314_v30  ;;  %v7138_v30 = vld [vmem:[#allocation2 + $0x454] sm:$0xf0]  ;;  %v5650_v18 = vor.u32 %v7238_v13, %v5649_v12  ;;  %v5617_v62 = vld [vmem:[#allocation2 + $0x728] sm:$0xf] }
 0x154   :  { %4106 = vmatpush.bf16.msra.mxu1 %v5442_v32  ;;  %v5377_v32 = vld [vmem:[#allocation2 + $0x548] sm:$0xf]  ;;  %v3880_v46 = vpop.f32.mrf.mxu3  ;;  %v5250_v48 = vor.u32 %v7138_v30, %v5249_v27  ;;  %v7134_v56 = vld [vmem:[#allocation2 + $0x434] sm:$0xf0] }
 0x155   :  { %4119 = vmatpush.bf16.msra.mxu2 %v5570_v37  ;;  %v3867_v37 = vpop.f32.mrf.mxu2  ;;  %v7166_v59 = vld [vmem:[#allocation2 + $0x534] sm:$0xf0]  ;;  %v5234_v0 = vor.u32 %v7134_v56, %v5233_v54  ;;  %v5345_v6 = vld [vmem:[#allocation2 + $0x508] sm:$0xf] }
 0x156   :  { %4132 = vmatpush.bf16.msra.mxu3 %v5698_v45  ;;  %v3868_v45 = vadd.f32 %v3867_v37, %v3855_v14  ;;  %v7198_v61 = vld [vmem:[#allocation2 + $0x634] sm:$0xf0]  ;;  %v5362_v3 = vor.u32 %v7166_v59, %v5361_v57  ;;  %v5473_v5 = vld [vmem:[#allocation2 + $0x608] sm:$0xf] }
 0x157   :  { %4094 = vmatpush.bf16.msra.mxu0 %v5298_v50  ;;  %v3843_v50 = vpop.f32.mrf.mxu0  ;;  %v5490_v4 = vor.u32 %v7198_v61, %v5489_v55  ;;  %v7162_v7 = vld [vmem:[#allocation2 + $0x514] sm:$0xf0]  ;;  %v5601_v11 = vld [vmem:[#allocation2 + $0x708] sm:$0xf] }
 0x158   :  { %4107 = vmatpush.bf16.msra.mxu1 %v5426_v51  ;;  %v7784_v49 = vadd.f32 %v3880_v46, %v3868_v45  ;;  %v5378_v51 = vor.u32 %v7170_v38, %v5377_v32  ;;  %v7194_v10 = vld [vmem:[#allocation2 + $0x614] sm:$0xf0]  ;;  %v5841_v14 = vld [vmem:[#allocation2 + $0x8e8] sm:$0xf]  ;;  %v5346_v37 = vor.u32 %v7162_v7, %v5345_v6 }
 0x159   :  { %4120 = vmatpush.bf16.msra.mxu2 %v5554_v53  ;;  %v5506_v53 = vor.u32 %v7202_v19, %v5505_v41  ;;  %v7226_v12 = vld [vmem:[#allocation2 + $0x714] sm:$0xf0]  ;;  %v6097_v30 = vld [vmem:[#allocation2 + $0xae8] sm:$0xf] }
 0x15a   :  { %4133 = vmatpush.bf16.msra.mxu3 %v5682_v58  ;;  %v3856_v58 = vpop.f32.mrf.mxu1  ;;  %v7318_v27 = vld [vmem:[#allocation2 + $0x9f4] sm:$0xf0]  ;;  %v6225_v38 = vld [vmem:[#allocation2 + $0xbe8] sm:$0xf]  ;;  %v5602_v19 = vor.u32 %v7226_v12, %v5601_v11 }
 0x15b   :  { %4095 = vmatpush.bf16.msra.mxu0 %v5282_v63  ;;  %v7230_v63 = vld [vmem:[#allocation2 + $0x734] sm:$0xf0]  ;;  %v5825_v22 = vld [vmem:[#allocation2 + $0x8c8] sm:$0xf] }
 0x15c   :  { %4108 = vmatpush.bf16.msra.mxu1 %v5410_v1  ;;  %v5217_v1 = vld [vmem:[#allocation2 + $0x408] sm:$0xf]  ;;  %v5618_v9 = vor.u32 %v7230_v63, %v5617_v62  ;;  %v3882_v13 = vpop.f32.mrf.mxu3  ;;  %v7350_v32 = vld [vmem:[#allocation2 + $0xaf4] sm:$0xf0] }
 0x15d   :  { %4121 = vmatpush.bf16.msra.mxu2 %v5538_v2  ;;  %v7130_v2 = vld [vmem:[#allocation2 + $0x414] sm:$0xf0]  ;;  %v6098_v47 = vor.u32 %v7350_v32, %v6097_v30  ;;  %v5953_v50 = vld [vmem:[#allocation2 + $0x9c8] sm:$0xf] }
 0x15e   :  { %4134 = vmatpush.bf16.msra.mxu3 %v5666_v8  ;;  %v3869_v8 = vpop.f32.mrf.mxu2  ;;  %v7382_v41 = vld [vmem:[#allocation2 + $0xbf4] sm:$0xf0]  ;;  %v6081_v54 = vld [vmem:[#allocation2 + $0xac8] sm:$0xf] }
 0x15f   :  { %4096 = vmatpush.bf16.msra.mxu0 %v5266_v15  ;;  %v7286_v15 = vld [vmem:[#allocation2 + $0x8f4] sm:$0xf0]  ;;  %v6209_v57 = vld [vmem:[#allocation2 + $0xbc8] sm:$0xf] }
 0x160   :  { %4109 = vmatpush.bf16.msra.mxu1 %v5394_v20  ;;  %v5969_v20 = vld [vmem:[#allocation2 + $0x9e8] sm:$0xf]  ;;  %v5842_v45 = vor.u32 %v7286_v15, %v5841_v14  ;;  %v7346_v56 = vld [vmem:[#allocation2 + $0xad4] sm:$0xf0] }
 0x161   :  { %4122 = vmatpush.bf16.msra.mxu2 %v5522_v21  ;;  %v5218_v21 = vor.u32 %v7130_v2, %v5217_v1  ;;  %v5970_v46 = vor.u32 %v7318_v27, %v5969_v20  ;;  %v7378_v58 = vld [vmem:[#allocation2 + $0xbd4] sm:$0xf0]  ;;  %v6082_v61 = vor.u32 %v7346_v56, %v6081_v54  ;;  %v5809_v62 = vld [vmem:[#allocation2 + $0x8a8] sm:$0xf]  ;;  %v7623_v1 = vmov 2.0  }
 0x162   :  { %4135 = vmatpush.bf16.msra.mxu3 %v5650_v18  ;;  %v5474_v18 = vor.u32 %v7194_v10, %v5473_v5  ;;  %v7278_v63 = vld [vmem:[#allocation2 + $0x8b4] sm:$0xf0]  ;;  %7579 = vrcp.f32 %v7623_v1  ;;  %v6210_v2 = vor.u32 %v7378_v58, %v6209_v57  ;;  %v6193_v7 = vld [vmem:[#allocation2 + $0xba8] sm:$0xf] }
 0x163   :  { %4097 = vmatpush.bf16.msra.mxu0 %v5250_v48  ;;  %v7282_v48 = vld [vmem:[#allocation2 + $0x8d4] sm:$0xf0]  ;;  %v5793_v12 = vld [vmem:[#allocation2 + $0x888] sm:$0xf] }
 0x164   :  { %4110 = vmatpush.bf16.msra.mxu1 %v5378_v51  ;;  %v6226_v51 = vor.u32 %v7382_v41, %v6225_v38  ;;  %v5826_v59 = vor.u32 %v7282_v48, %v5825_v22  ;;  %v7342_v6 = vld [vmem:[#allocation2 + $0xab4] sm:$0xf0]  ;;  %v5921_v14 = vld [vmem:[#allocation2 + $0x988] sm:$0xf] }
 0x165   :  { %4123 = vmatpush.bf16.msra.mxu2 %v5506_v53  ;;  %v7314_v53 = vld [vmem:[#allocation2 + $0x9d4] sm:$0xf0]  ;;  %v6177_v32 = vld [vmem:[#allocation2 + $0xb88] sm:$0xf] }
 0x166   :  { %4136 = vmatpush.bf16.msra.mxu3 %v5634_v60  ;;  %v4509_v60 = vsel %vm4508_vm0, %v7772_v52, 0.0  ;;  %v5954_v55 = vor.u32 %v7314_v53, %v5953_v50  ;;  %v7374_v5 = vld [vmem:[#allocation2 + $0xbb4] sm:$0xf0]  ;;  %v5777_v22 = vld [vmem:[#allocation2 + $0x868] sm:$0xf] }
 0x167   :  { %4098 = vmatpush.bf16.msra.mxu0 %v5234_v0  ;;  %v5937_v0 = vld [vmem:[#allocation2 + $0x9a8] sm:$0xf]  ;;  %v4510_v8 = vrot.slane %v4509_v60, 4  ;;  %v7274_v13 = vld [vmem:[#allocation2 + $0x894] sm:$0xf0]  ;;  %v6194_v15 = vor.u32 %v7374_v5, %v6193_v7 }
 0x168   :  { %4111 = vmatpush.bf16.msra.mxu1 %v5362_v3  ;;  %v7310_v3 = vld [vmem:[#allocation2 + $0x9b4] sm:$0xf0]  ;;  %v5905_v50 = vld [vmem:[#allocation2 + $0x968] sm:$0xf] }
 0x169   :  { %4124 = vmatpush.bf16.msra.mxu2 %v5490_v4  ;;  %v6065_v4 = vld [vmem:[#allocation2 + $0xaa8] sm:$0xf]  ;;  %v5938_v10 = vor.u32 %v7310_v3, %v5937_v0  ;;  %v7306_v20 = vld [vmem:[#allocation2 + $0x994] sm:$0xf0]  ;;  %v4511_v38 = vadd.f32 %v4510_v8, %v4509_v60 }
 0x16a   :  { %4137 = vmatpush.bf16.msra.mxu3 %v5618_v9  ;;  %v5810_v9 = vor.u32 %v7278_v63, %v5809_v62  ;;  %v6066_v11 = vor.u32 %v7342_v6, %v6065_v4  ;;  %v7338_v27 = vld [vmem:[#allocation2 + $0xa94] sm:$0xf0]  ;;  %v6033_v56 = vld [vmem:[#allocation2 + $0xa68] sm:$0xf] }
 0x16b   :  { %4099 = vmatpush.bf16.msra.mxu0 %v5218_v21  ;;  %v6049_v21 = vld [vmem:[#allocation2 + $0xa88] sm:$0xf]  ;;  %v3893_v30 = vpop.f32.mrf.mxu0  ;;  %v7270_v48 = vld [vmem:[#allocation2 + $0x874] sm:$0xf0] }
 0x16c   :  { %4112 = vmatpush.bf16.msra.mxu1 %v5346_v37  ;;  %v7370_v37 = vld [vmem:[#allocation2 + $0xb94] sm:$0xf0]  ;;  %v3894_v41 = vadd.f32 %v3893_v30, %v7784_v49  ;;  %v6161_v60 = vld [vmem:[#allocation2 + $0xb68] sm:$0xf]  ;;  %v4512_v49 = vrot.slane %v4511_v38, 2 }
 0x16d   :  { %4125 = vmatpush.bf16.msra.mxu2 %v5474_v18  ;;  %v7792_v18 = vpop.eup %7579  ;;  %v7302_v54 = vld [vmem:[#allocation2 + $0x974] sm:$0xf0]  ;;  %v5761_v63 = vld [vmem:[#allocation2 + $0x848] sm:$0xf] }
 0x16e   :  { %4138 = vmatpush.bf16.msra.mxu3 %v5602_v19  ;;  %4100 = vmatmul.bf16.vlgmr.msra.gmra.mxu0 %v7683_v39  ;;  %v5794_v19 = vor.u32 %v7274_v13, %v5793_v12  ;;  %v7334_v57 = vld [vmem:[#allocation2 + $0xa74] sm:$0xf0]  ;;  %v4538_v58 = vmul.f32 2.0, %v7792_v18  ;;  %v5889_v1 = vld [vmem:[#allocation2 + $0x948] sm:$0xf]  ;;  %v4513_v13 = vadd.f32 %v4512_v49, %v4511_v38  ;;  %vm4542_vm1 = vweird.f32 %v7792_v18 }
 0x16f   :  { %4144 = vmatpush.bf16.msrb.mxu0 %v5842_v45  ;;  %4113 = vmatmul.bf16.vlgmr.msra.gmra.mxu1 %v7687_v44  ;;  %v3906_v45 = vpop.f32.mrf.mxu1  ;;  %v6034_v62 = vor.u32 %v7334_v57, %v6033_v56  ;;  %v7266_v0 = vld [vmem:[#allocation2 + $0x854] sm:$0xf0]  ;;  %v6017_v6 = vld [vmem:[#allocation2 + $0xa48] sm:$0xf] }
 0x170   :  { %4157 = vmatpush.bf16.msrb.mxu1 %v5970_v46  ;;  %4126 = vmatmul.bf16.vlgmr.msra.gmra.mxu2 %v7681_v34  ;;  %v5922_v46 = vor.u32 %v7306_v20, %v5921_v14  ;;  %v3907_v53 = vadd.f32 %v3906_v45, %v3894_v41  ;;  %v7298_v4 = vld [vmem:[#allocation2 + $0x954] sm:$0xf0]  ;;  %v4539_v5 = vsub.f32 1.0, %v4538_v58  ;;  %v5762_v14 = vor.u32 %v7266_v0, %v5761_v63  ;;  %v5745_v30 = vld [vmem:[#allocation2 + $0x828] sm:$0xf] }
 0x171   :  { %4170 = vmatpush.bf16.msrb.mxu2 %v6098_v47  ;;  %4139 = vmatmul.bf16.vlgmr.msra.gmra.mxu3 %v7685_v40  ;;  %v6050_v47 = vor.u32 %v7338_v27, %v6049_v21  ;;  %v7330_v7 = vld [vmem:[#allocation2 + $0xa54] sm:$0xf0]  ;;  %v5890_v21 = vor.u32 %v7298_v4, %v5889_v1  ;;  %v6001_v45 = vld [vmem:[#allocation2 + $0xa28] sm:$0xf] }
 0x172   :  { %4183 = vmatpush.bf16.msrb.mxu3 %v6226_v51  ;;  %v6178_v51 = vor.u32 %v7370_v37, %v6177_v32  ;;  %v6018_v27 = vor.u32 %v7330_v7, %v6017_v6  ;;  %v7262_v32 = vld [vmem:[#allocation2 + $0x834] sm:$0xf0]  ;;  %v5873_v37 = vld [vmem:[#allocation2 + $0x928] sm:$0xf] }
 0x173   :  { %4145 = vmatpush.bf16.msrb.mxu0 %v5826_v59  ;;  %v7366_v59 = vld [vmem:[#allocation2 + $0xb74] sm:$0xf0]  ;;  %v3919_v3 = vpop.f32.mrf.mxu2  ;;  %v3895_v12 = vpop.f32.mrf.mxu0  ;;  %v6129_v38 = vld [vmem:[#allocation2 + $0xb28] sm:$0xf] }
 0x174   :  { %4158 = vmatpush.bf16.msrb.mxu1 %v5954_v55  ;;  %v5778_v55 = vor.u32 %v7270_v48, %v5777_v22  ;;  %v3920_v8 = vadd.f32 %v3919_v3, %v3907_v53  ;;  %v7358_v22 = vld [vmem:[#allocation2 + $0xb34] sm:$0xf0]  ;;  %v4514_v48 = vrot.slane %v4513_v13, 1  ;;  %v5857_v57 = vld [vmem:[#allocation2 + $0x908] sm:$0xf] }
 0x175   :  { %4171 = vmatpush.bf16.msrb.mxu2 %v6082_v61  ;;  %v5906_v61 = vor.u32 %v7302_v54, %v5905_v50  ;;  %v5746_v50 = vor.u32 %v7262_v32, %v5745_v30  ;;  %v7258_v53 = vld [vmem:[#allocation2 + $0x814] sm:$0xf0]  ;;  %v6353_v0 = vld [vmem:[#allocation2 + $0xce8] sm:$0xf] }
 0x176   :  { %4184 = vmatpush.bf16.msrb.mxu3 %v6210_v2  ;;  %v6162_v2 = vor.u32 %v7366_v59, %v6161_v60  ;;  %v7290_v58 = vld [vmem:[#allocation2 + $0x914] sm:$0xf0]  ;;  %v5985_v60 = vld [vmem:[#allocation2 + $0xa08] sm:$0xf]  ;;  %v6130_v59 = vor.u32 %v7358_v22, %v6129_v38  ;;  %v4515_v12 = vadd.f32 %v4514_v48, %v4513_v13 }
 0x177   :  { %4146 = vmatpush.bf16.msrb.mxu0 %v5810_v9  ;;  %v3932_v9 = vpop.f32.mrf.mxu3  ;;  %v7322_v49 = vld [vmem:[#allocation2 + $0xa14] sm:$0xf0]  ;;  %v6609_v7 = vld [vmem:[#allocation2 + $0xee8] sm:$0xf] }
 0x178   :  { %4159 = vmatpush.bf16.msrb.mxu1 %v5938_v10  ;;  %v6145_v10 = vld [vmem:[#allocation2 + $0xb48] sm:$0xf]  ;;  %v7796_v20 = vadd.f32 %v3932_v9, %v3920_v8  ;;  %v7414_v1 = vld [vmem:[#allocation2 + $0xcf4] sm:$0xf0]  ;;  %v5858_v8 = vor.u32 %v7290_v58, %v5857_v57  ;;  %v5986_v9 = vor.u32 %v7322_v49, %v5985_v60 }
 0x179   :  { %4172 = vmatpush.bf16.msrb.mxu2 %v6066_v11  ;;  %v7362_v11 = vld [vmem:[#allocation2 + $0xb54] sm:$0xf0]  ;;  %v6337_v32 = vld [vmem:[#allocation2 + $0xcc8] sm:$0xf] }
 0x17a   :  { %4185 = vmatpush.bf16.msrb.mxu3 %v6194_v15  ;;  %v3908_v15 = vpop.f32.mrf.mxu1  ;;  %v6146_v41 = vor.u32 %v7362_v11, %v6145_v10  ;;  %v7446_v6 = vld [vmem:[#allocation2 + $0xdf4] sm:$0xf0]  ;;  %v6737_v10 = vld [vmem:[#allocation2 + $0xfe8] sm:$0xf] }
 0x17b   :  { %4147 = vmatpush.bf16.msrb.mxu0 %v5794_v19  ;;  %v7294_v19 = vld [vmem:[#allocation2 + $0x934] sm:$0xf0]  ;;  %v6354_v15 = vor.u32 %v7414_v1, %v6353_v0  ;;  %v6721_v13 = vld [vmem:[#allocation2 + $0xfc8] sm:$0xf] }
 0x17c   :  { %4160 = vmatpush.bf16.msrb.mxu1 %v5922_v46  ;;  %v7326_v46 = vld [vmem:[#allocation2 + $0xa34] sm:$0xf0]  ;;  %v5874_v54 = vor.u32 %v7294_v19, %v5873_v37  ;;  %v6577_v58 = vld [vmem:[#allocation2 + $0xea8] sm:$0xf] }
 0x17d   :  { %4173 = vmatpush.bf16.msrb.mxu2 %v6050_v47  ;;  %v4540_v47 = vmul.f32 %v7792_v18, %v4539_v5  ;;  %v6002_v56 = vor.u32 %v7326_v46, %v6001_v45  ;;  %v7478_v5 = vld [vmem:[#allocation2 + $0xef4] sm:$0xf0]  ;;  %v6593_v46 = vld [vmem:[#allocation2 + $0xec8] sm:$0xf] }
 0x17e   :  { %4186 = vmatpush.bf16.msrb.mxu3 %v6178_v51  ;;  %v5729_v51 = vld [vmem:[#allocation2 + $0x808] sm:$0xf]  ;;  %v7510_v11 = vld [vmem:[#allocation2 + $0xff4] sm:$0xf0]  ;;  %v6610_v30 = vor.u32 %v7478_v5, %v6609_v7 }
 0x17f   :  { %4148 = vmatpush.bf16.msrb.mxu0 %v5778_v55  ;;  %v6113_v55 = vld [vmem:[#allocation2 + $0xb08] sm:$0xf]  ;;  %v4541_v63 = vadd.f32 %v7792_v18, %v4540_v47  ;;  %v3934_v3 = vpop.f32.mrf.mxu3  ;;  %v5730_v4 = vor.u32 %v7258_v53, %v5729_v51  ;;  %v7410_v37 = vld [vmem:[#allocation2 + $0xcd4] sm:$0xf0]  ;;  %v6738_v19 = vor.u32 %v7510_v11, %v6737_v10 }
 0x180   :  { %4161 = vmatpush.bf16.msrb.mxu1 %v5906_v61  ;;  %v7354_v61 = vld [vmem:[#allocation2 + $0xb14] sm:$0xf0]  ;;  %v6321_v51 = vld [vmem:[#allocation2 + $0xca8] sm:$0xf] }
 0x181   :  { %4174 = vmatpush.bf16.msrb.mxu2 %v6034_v62  ;;  %v3921_v62 = vpop.f32.mrf.mxu2  ;;  %v7442_v45 = vld [vmem:[#allocation2 + $0xdd4] sm:$0xf0]  ;;  %v6305_v0 = vld [vmem:[#allocation2 + $0xc88] sm:$0xf] }
 0x182   :  { %4187 = vmatpush.bf16.msrb.mxu3 %v6162_v2  ;;  %v6481_v2 = vld [vmem:[#allocation2 + $0xde8] sm:$0xf]  ;;  %v7474_v47 = vld [vmem:[#allocation2 + $0xed4] sm:$0xf0] }
 0x183   :  { %4149 = vmatpush.bf16.msrb.mxu0 %v5762_v14  ;;  %v6114_v14 = vor.u32 %v7354_v61, %v6113_v55  ;;  %v7506_v38 = vld [vmem:[#allocation2 + $0xfd4] sm:$0xf0] }
 0x184   :  { %4162 = vmatpush.bf16.msrb.mxu1 %v5890_v21  ;;  %v7804_v21 = vsel %vm4542_vm1, %v7792_v18, %v4541_v63  ;;  %v6338_v18 = vor.u32 %v7410_v37, %v6337_v32  ;;  %v7406_v53 = vld [vmem:[#allocation2 + $0xcb4] sm:$0xf0]  ;;  %v6417_v32 = vld [vmem:[#allocation2 + $0xd68] sm:$0xf] }
 0x185   :  { %4175 = vmatpush.bf16.msrb.mxu2 %v6018_v27  ;;  %v6482_v27 = vor.u32 %v7446_v6, %v6481_v2  ;;  %v4544_v22 = vmul.f32 %v7804_v21, %v4515_v12  ;;  %v7438_v57 = vld [vmem:[#allocation2 + $0xdb4] sm:$0xf0]  ;;  %v6322_v61 = vor.u32 %v7406_v53, %v6321_v51  ;;  %v6433_v2 = vld [vmem:[#allocation2 + $0xd88] sm:$0xf] }
 0x186   :  { %4188 = vmatpush.bf16.msrb.mxu3 %v6146_v41  ;;  %v6465_v41 = vld [vmem:[#allocation2 + $0xdc8] sm:$0xf]  ;;  %v7470_v60 = vld [vmem:[#allocation2 + $0xeb4] sm:$0xf0] }
 0x187   :  { %4150 = vmatpush.bf16.msrb.mxu0 %v5746_v50  ;;  %v6466_v48 = vor.u32 %v7442_v45, %v6465_v41  ;;  %v6594_v50 = vor.u32 %v7474_v47, %v6593_v46  ;;  %v7502_v49 = vld [vmem:[#allocation2 + $0xfb4] sm:$0xf0]  ;;  %v7811_v55 = vsub.f32 %v7772_v52, %v4544_v22  ;;  %v6578_v63 = vor.u32 %v7470_v60, %v6577_v58  ;;  %v6561_v6 = vld [vmem:[#allocation2 + $0xe88] sm:$0xf] }
 0x188   :  { %4163 = vmatpush.bf16.msrb.mxu1 %v5874_v54  ;;  %v6449_v54 = vld [vmem:[#allocation2 + $0xda8] sm:$0xf]  ;;  %v7402_v1 = vld [vmem:[#allocation2 + $0xc94] sm:$0xf0] }
 0x189   :  { %4176 = vmatpush.bf16.msrb.mxu2 %v6002_v56  ;;  %v6722_v56 = vor.u32 %v7506_v38, %v6721_v13  ;;  %v6450_v62 = vor.u32 %v7438_v57, %v6449_v54  ;;  %v7466_v7 = vld [vmem:[#allocation2 + $0xe94] sm:$0xf0]  ;;  %v6306_v11 = vor.u32 %v7402_v1, %v6305_v0  ;;  %v6545_v45 = vld [vmem:[#allocation2 + $0xe68] sm:$0xf] }
 0x18a   :  { %4189 = vmatpush.bf16.msrb.mxu3 %v6130_v59  ;;  %v6705_v59 = vld [vmem:[#allocation2 + $0xfa8] sm:$0xf]  ;;  %v7498_v52 = vld [vmem:[#allocation2 + $0xf94] sm:$0xf0] }
 0x18b   :  { %4151 = vmatpush.bf16.msrb.mxu0 %v5730_v4  ;;  %v6706_v3 = vor.u32 %v7502_v49, %v6705_v59  ;;  %v7434_v4 = vld [vmem:[#allocation2 + $0xd94] sm:$0xf0]  ;;  %v3945_v5 = vpop.f32.mrf.mxu0  ;;  %v6673_v47 = vld [vmem:[#allocation2 + $0xf68] sm:$0xf] }
 0x18c   :  { %4164 = vmatpush.bf16.msrb.mxu1 %v5858_v8  ;;  %v6689_v8 = vld [vmem:[#allocation2 + $0xf88] sm:$0xf]  ;;  %v3946_v10 = vadd.f32 %v3945_v5, %v7796_v20  ;;  %v3958_v12 = vpop.f32.mrf.mxu1  ;;  %v7462_v46 = vld [vmem:[#allocation2 + $0xe74] sm:$0xf0] }
 0x18d   :  { %4177 = vmatpush.bf16.msrb.mxu2 %v5986_v9  ;;  %v4552_v9 = vmul.f32 %v7811_v55, %v7811_v55  ;;  %v6690_v37 = vor.u32 %v7498_v52, %v6689_v8  ;;  %v7494_v13 = vld [vmem:[#allocation2 + $0xf74] sm:$0xf0]  ;;  %v6401_v51 = vld [vmem:[#allocation2 + $0xd48] sm:$0xf] }
 0x18e   :  { %4190 = vmatpush.bf16.msrb.mxu3 %v6114_v14  ;;  %4152 = vmatmul.bf16.vlgmr.msrb.gmra.mxu0 %v7706_v24  ;;  %v6434_v14 = vor.u32 %v7434_v4, %v6433_v2  ;;  %v3959_v41 = vadd.f32 %v3958_v12, %v3946_v10  ;;  %v6674_v53 = vor.u32 %v7494_v13, %v6673_v47  ;;  %v6529_v57 = vld [vmem:[#allocation2 + $0xe48] sm:$0xf]  ;;  %v7458_v58 = vld [vmem:[#allocation2 + $0xe54] sm:$0xf0] }
 0x18f   :  { %4196 = vmatpush.bf16.msra.mxu0 %v6354_v15  ;;  %4165 = vmatmul.bf16.vlgmr.msrb.gmra.mxu1 %v7714_v29  ;;  %v6562_v15 = vor.u32 %v7466_v7, %v6561_v6  ;;  %v4556_v38 = vsel %vm4508_vm0, %v4552_v9, 0.0  ;;  %v6657_v49 = vld [vmem:[#allocation2 + $0xf48] sm:$0xf]  ;;  %v6530_v4 = vor.u32 %v7458_v58, %v6529_v57  ;;  %v7390_v7 = vld [vmem:[#allocation2 + $0xc34] sm:$0xf0] }
 0x190   :  { %4209 = vmatpush.bf16.msra.mxu1 %v6482_v27  ;;  %4178 = vmatmul.bf16.vlgmr.msrb.gmra.mxu2 %v7710_v28  ;;  %v6289_v27 = vld [vmem:[#allocation2 + $0xc68] sm:$0xf]  ;;  %v7422_v52 = vld [vmem:[#allocation2 + $0xd34] sm:$0xf0]  ;;  %v4819_v57 = vld [vmem:[#allocation2 + $0xf8] sm:$0xf0] }
 0x191   :  { %4222 = vmatpush.bf16.msra.mxu2 %v6610_v30  ;;  %4191 = vmatmul.bf16.vlgmr.msrb.gmra.mxu3 %v7718_v16  ;;  %v7398_v30 = vld [vmem:[#allocation2 + $0xc74] sm:$0xf0]  ;;  %v6257_v6 = vld [vmem:[#allocation2 + $0xc28] sm:$0xf] }
 0x192   :  { %4235 = vmatpush.bf16.msra.mxu3 %v6738_v19  ;;  %v7430_v19 = vld [vmem:[#allocation2 + $0xd74] sm:$0xf0]  ;;  %v6290_v20 = vor.u32 %v7398_v30, %v6289_v27  ;;  %v6385_v5 = vld [vmem:[#allocation2 + $0xd28] sm:$0xf] }
 0x193   :  { %4197 = vmatpush.bf16.msra.mxu0 %v6338_v18  ;;  %v6418_v22 = vor.u32 %v7430_v19, %v6417_v32  ;;  %v6546_v18 = vor.u32 %v7462_v46, %v6545_v45  ;;  %v3971_v54 = vpop.f32.mrf.mxu2  ;;  %v6513_v9 = vld [vmem:[#allocation2 + $0xe28] sm:$0xf]  ;;  %v7454_v10 = vld [vmem:[#allocation2 + $0xe34] sm:$0xf0]  ;;  %v6386_v30 = vor.u32 %v7422_v52, %v6385_v5  ;;  %v7024_v5 = vld [vmem:[#allocation2 + $0xcc] sm:$0xf] }
 0x194   :  { %4210 = vmatpush.bf16.msra.mxu1 %v6466_v48  ;;  %v6273_v48 = vld [vmem:[#allocation2 + $0xc48] sm:$0xf]  ;;  %v3972_v60 = vadd.f32 %v3971_v54, %v3959_v41  ;;  %v3984_v59 = vpop.f32.mrf.mxu3  ;;  %v3960_v1 = vpop.f32.mrf.mxu1  ;;  %v7486_v12 = vld [vmem:[#allocation2 + $0xf34] sm:$0xf0]  ;;  %v6514_v32 = vor.u32 %v7454_v10, %v6513_v9  ;;  %v7056_v52 = vld [vmem:[#allocation2 + $0x1cc] sm:$0xf] }
 0x195   :  { %4223 = vmatpush.bf16.msra.mxu2 %v6594_v50  ;;  %v7394_v50 = vld [vmem:[#allocation2 + $0xc54] sm:$0xf0]  ;;  %v6497_v19 = vld [vmem:[#allocation2 + $0xe08] sm:$0xf]  ;;  %v4931_v9 = vld [vmem:[#allocation2 + $0x1d8] sm:$0xf0] }
 0x196   :  { %4236 = vmatpush.bf16.msra.mxu3 %v6722_v56  ;;  %v7426_v56 = vld [vmem:[#allocation2 + $0xd54] sm:$0xf0]  ;;  %v6274_v0 = vor.u32 %v7394_v50, %v6273_v48  ;;  %v7818_v2 = vadd.f32 %v3984_v59, %v3972_v60  ;;  %v6625_v13 = vld [vmem:[#allocation2 + $0xf08] sm:$0xf]  ;;  %v4947_v59 = vld [vmem:[#allocation2 + $0x1f8] sm:$0xf0] }
 0x197   :  { %4198 = vmatpush.bf16.msra.mxu0 %v6322_v61  ;;  %v7490_v61 = vld [vmem:[#allocation2 + $0xf54] sm:$0xf0]  ;;  %v6993_v50 = vld [vmem:[#allocation2 + $0x11e8] sm:$0xf] }
 0x198   :  { %4211 = vmatpush.bf16.msra.mxu1 %v6450_v62  ;;  %v3947_v62 = vpop.f32.mrf.mxu0  ;;  %v6658_v8 = vor.u32 %v7490_v61, %v6657_v49  ;;  %v7386_v27 = vld [vmem:[#allocation2 + $0xc14] sm:$0xf0]  ;;  %v6849_v1 = vld [vmem:[#allocation2 + $0x10c8] sm:$0xf] }
 0x199   :  { %4224 = vmatpush.bf16.msra.mxu2 %v6578_v63  ;;  %v4557_v63 = vrot.slane %v4556_v38, 4  ;;  %v7418_v41 = vld [vmem:[#allocation2 + $0xd14] sm:$0xf0] }
 0x19a   :  { %4237 = vmatpush.bf16.msra.mxu3 %v6706_v3  ;;  %v6402_v3 = vor.u32 %v7426_v56, %v6401_v51  ;;  %v7450_v47 = vld [vmem:[#allocation2 + $0xe14] sm:$0xf0]  ;;  %v7028_v56 = vld [vmem:[#allocation2 + $0xec] sm:$0xf] }
 0x19b   :  { %4199 = vmatpush.bf16.msra.mxu0 %v6306_v11  ;;  %v6641_v11 = vld [vmem:[#allocation2 + $0xf28] sm:$0xf]  ;;  %v4558_v45 = vadd.f32 %v4557_v63, %v4556_v38  ;;  %v7542_v48 = vld [vmem:[#allocation2 + $0x10f4] sm:$0xf0]  ;;  %v6498_v60 = vor.u32 %v7450_v47, %v6497_v19  ;;  %v7060_v38 = vld [vmem:[#allocation2 + $0x1ec] sm:$0xf] }
 0x19c   :  { %4212 = vmatpush.bf16.msra.mxu1 %v6434_v14  ;;  %v6258_v14 = vor.u32 %v7390_v7, %v6257_v6  ;;  %v6642_v46 = vor.u32 %v7486_v12, %v6641_v11  ;;  %v3986_v51 = vpop.f32.mrf.mxu3  ;;  %v7574_v54 = vld [vmem:[#allocation2 + $0x11f4] sm:$0xf0]  ;;  %v4950_v6 = vor.u32 %v7060_v38, %v4947_v59  ;;  %v4787_v19 = vld [vmem:[#allocation2 + $0xb8] sm:$0xf0] }
 0x19d   :  { %4225 = vmatpush.bf16.msra.mxu2 %v6562_v15  ;;  %v6241_v15 = vld [vmem:[#allocation2 + $0xc08] sm:$0xf]  ;;  %v4559_v49 = vrot.slane %v4558_v45, 2  ;;  %v6994_v63 = vor.u32 %v7574_v54, %v6993_v50  ;;  %v7570_v7 = vld [vmem:[#allocation2 + $0x11d4] sm:$0xf0] }
 0x19e   :  { %4238 = vmatpush.bf16.msra.mxu3 %v6690_v37  ;;  %v6369_v37 = vld [vmem:[#allocation2 + $0xd08] sm:$0xf]  ;;  %v7016_v54 = vld [vmem:[#allocation2 + $0x8c] sm:$0xf] }
 0x19f   :  { %4200 = vmatpush.bf16.msra.mxu0 %v6290_v20  ;;  %v7482_v20 = vld [vmem:[#allocation2 + $0xf14] sm:$0xf0]  ;;  %v6370_v58 = vor.u32 %v7418_v41, %v6369_v37  ;;  %v4560_v10 = vadd.f32 %v4559_v49, %v4558_v45  ;;  %v7020_v41 = vld [vmem:[#allocation2 + $0xac] sm:$0xf]  ;;  %v6945_v50 = vld [vmem:[#allocation2 + $0x1188] sm:$0xf] }
 0x1a0   :  { %4213 = vmatpush.bf16.msra.mxu1 %v6418_v22  ;;  %v3973_v22 = vpop.f32.mrf.mxu2  ;;  %v6626_v61 = vor.u32 %v7482_v20, %v6625_v13  ;;  %v7566_v37 = vld [vmem:[#allocation2 + $0x11b4] sm:$0xf0]  ;;  %v7052_v45 = vld [vmem:[#allocation2 + $0x1ac] sm:$0xf] }
 0x1a1   :  { %4226 = vmatpush.bf16.msra.mxu2 %v6546_v18  ;;  %v6865_v18 = vld [vmem:[#allocation2 + $0x10e8] sm:$0xf]  ;;  %v4561_v47 = vrot.slane %v4560_v10, 1  ;;  %v4790_v22 = vor.u32 %v7020_v41, %v4787_v19  ;;  %v7008_v41 = vld [vmem:[#allocation2 + $0x4c] sm:$0xf] }
 0x1a2   :  { %4239 = vmatpush.bf16.msra.mxu3 %v6674_v53  ;;  %v6242_v53 = vor.u32 %v7386_v27, %v6241_v15  ;;  %v6866_v62 = vor.u32 %v7542_v48, %v6865_v18  ;;  %v6833_v15 = vld [vmem:[#allocation2 + $0x10a8] sm:$0xf]  ;;  %v7534_v27 = vld [vmem:[#allocation2 + $0x10b4] sm:$0xf0]  ;;  %v4739_v19 = vld [vmem:[#allocation2 + $0x58] sm:$0xf0] }
 0x1a3   :  { %4201 = vmatpush.bf16.msra.mxu0 %v6274_v0  ;;  %v4822_v0 = vor.u32 %v7028_v56, %v4819_v57  ;;  %v6834_v13 = vor.u32 %v7534_v27, %v6833_v15  ;;  %v6817_v18 = vld [vmem:[#allocation2 + $0x1088] sm:$0xf]  ;;  %v7530_v48 = vld [vmem:[#allocation2 + $0x1094] sm:$0xf0]  ;;  %v4771_v56 = vld [vmem:[#allocation2 + $0x98] sm:$0xf0]  ;;  %v4562_v38 = vadd.f32 %v4561_v47, %v4560_v10 }
 0x1a4   :  { %4214 = vmatpush.bf16.msra.mxu1 %v6402_v3  ;;  %v7538_v3 = vld [vmem:[#allocation2 + $0x10d4] sm:$0xf0]  ;;  %v6818_v49 = vor.u32 %v7530_v48, %v6817_v18  ;;  %v6913_v27 = vld [vmem:[#allocation2 + $0x1148] sm:$0xf]  ;;  %v7040_v47 = vld [vmem:[#allocation2 + $0x14c] sm:$0xf] }
 0x1a5   :  { %4227 = vmatpush.bf16.msra.mxu2 %v6530_v4  ;;  %v6977_v4 = vld [vmem:[#allocation2 + $0x11c8] sm:$0xf]  ;;  %v6850_v11 = vor.u32 %v7538_v3, %v6849_v1  ;;  %v7526_v1 = vld [vmem:[#allocation2 + $0x1074] sm:$0xf0]  ;;  %v4584_v10 = vmul.f32 %v4562_v38, %v7804_v21  ;;  %v7004_v38 = vld [vmem:[#allocation2 + $0x2c] sm:$0xf] }
 0x1a6   :  { %4240 = vmatpush.bf16.msra.mxu3 %v6658_v8  ;;  %v4803_v8 = vld [vmem:[#allocation2 + $0xd8] sm:$0xf0]  ;;  %v6978_v12 = vor.u32 %v7570_v7, %v6977_v4  ;;  %v6929_v3 = vld [vmem:[#allocation2 + $0x1168] sm:$0xf]  ;;  %v7558_v7 = vld [vmem:[#allocation2 + $0x1174] sm:$0xf0] }
 0x1a7   :  { %4202 = vmatpush.bf16.msra.mxu0 %v6258_v14  ;;  %v4806_v14 = vor.u32 %v7024_v5, %v4803_v8  ;;  %v7012_v5 = vld [vmem:[#allocation2 + $0x6c] sm:$0xf]  ;;  %v4755_v8 = vld [vmem:[#allocation2 + $0x78] sm:$0xf0]  ;;  %v7522_v15 = vld [vmem:[#allocation2 + $0x1054] sm:$0xf0] }
 0x1a8   :  { %4215 = vmatpush.bf16.msra.mxu1 %v6386_v30  ;;  %v6961_v30 = vld [vmem:[#allocation2 + $0x11a8] sm:$0xf] }
 0x1a9   :  { %4228 = vmatpush.bf16.msra.mxu2 %v6514_v32  ;;  %v4934_v32 = vor.u32 %v7056_v52, %v4931_v9  ;;  %v6962_v20 = vor.u32 %v7566_v37, %v6961_v30  ;;  %v7044_v52 = vld [vmem:[#allocation2 + $0x16c] sm:$0xf]  ;;  %v4883_v9 = vld [vmem:[#allocation2 + $0x178] sm:$0xf0]  ;;  %v7554_v37 = vld [vmem:[#allocation2 + $0x1154] sm:$0xf0] }
 0x1aa   :  { %4241 = vmatpush.bf16.msra.mxu3 %v6642_v46  ;;  %v4915_v46 = vld [vmem:[#allocation2 + $0x1b8] sm:$0xf0]  ;;  %v4886_v30 = vor.u32 %v7044_v52, %v4883_v9  ;;  %v6769_v48 = vld [vmem:[#allocation2 + $0x1028] sm:$0xf] }
 0x1ab   :  { %4203 = vmatpush.bf16.msra.mxu0 %v6242_v53  ;;  %v4918_v51 = vor.u32 %v7052_v45, %v4915_v46  ;;  %v7562_v53 = vld [vmem:[#allocation2 + $0x1194] sm:$0xf0]  ;;  %v3997_v57 = vpop.f32.mrf.mxu0  ;;  %v4707_v52 = vld [vmem:[#allocation2 + $0x18] sm:$0xf0] }
 0x1ac   :  { %4216 = vmatpush.bf16.msra.mxu1 %v6370_v58  ;;  %v7048_v58 = vld [vmem:[#allocation2 + $0x18c] sm:$0xf]  ;;  %v3998_v59 = vadd.f32 %v3997_v57, %v7818_v2  ;;  %v6897_v57 = vld [vmem:[#allocation2 + $0x1128] sm:$0xf] }
 0x1ad   :  { %4229 = vmatpush.bf16.msra.mxu2 %v6498_v60  ;;  %v4899_v60 = vld [vmem:[#allocation2 + $0x198] sm:$0xf0] }
 0x1ae   :  { %4242 = vmatpush.bf16.msra.mxu3 %v6626_v61  ;;  %4204 = vmatmul.bf16.vlgmr.msra.gmra.mxu0 %v7724_v17  ;;  %v4010_v61 = vpop.f32.mrf.mxu1  ;;  %v4902_v4 = vor.u32 %v7048_v58, %v4899_v60  ;;  %v7550_v58 = vld [vmem:[#allocation2 + $0x1134] sm:$0xf0] }
 0x1af   :  { %4248 = vmatpush.bf16.msrb.mxu0 %v6866_v62  ;;  %4217 = vmatmul.bf16.vlgmr.msra.gmra.mxu1 %v7728_v26  ;;  %v6946_v62 = vor.u32 %v7562_v53, %v6945_v50  ;;  %v6914_v53 = vor.u32 %v7554_v37, %v6913_v27  ;;  %v7124_v27 = vld [vmem:[#allocation2 + $0x3ec] sm:$0xf] }
 0x1b0   :  { %4261 = vmatpush.bf16.msrb.mxu1 %v6994_v63  ;;  %4230 = vmatmul.bf16.vlgmr.msra.gmra.mxu2 %v7726_v25  ;;  %v4774_v63 = vor.u32 %v7016_v54, %v4771_v56  ;;  %v4742_v54 = vor.u32 %v7008_v41, %v4739_v19  ;;  %v7518_v56 = vld [vmem:[#allocation2 + $0x1034] sm:$0xf0]  ;;  %v7156_v19 = vld [vmem:[#allocation2 + $0x4ec] sm:$0xf] }
 0x1b1   :  { %4274 = vmatpush.bf16.msrb.mxu2 %v4822_v0  ;;  %4243 = vmatmul.bf16.vlgmr.msra.gmra.mxu3 %v7730_v31  ;;  %v6801_v0 = vld [vmem:[#allocation2 + $0x1068] sm:$0xf] }
 0x1b2   :  { %4287 = vmatpush.bf16.msrb.mxu3 %v4950_v6  ;;  %v4011_v6 = vadd.f32 %v4010_v61, %v3998_v59  ;;  %v6802_v2 = vor.u32 %v7526_v1, %v6801_v0  ;;  %v4723_v59 = vld [vmem:[#allocation2 + $0x38] sm:$0xf0]  ;;  %v6770_v1 = vor.u32 %v7518_v56, %v6769_v48 }
 0x1b3   :  { %4249 = vmatpush.bf16.msrb.mxu0 %v6850_v11  ;;  %v6930_v11 = vor.u32 %v7558_v7, %v6929_v3  ;;  %v7514_v3 = vld [vmem:[#allocation2 + $0x1014] sm:$0xf0]  ;;  %v4726_v7 = vor.u32 %v7004_v38, %v4723_v59 }
 0x1b4   :  { %4262 = vmatpush.bf16.msrb.mxu1 %v6978_v12  ;;  %v4758_v12 = vor.u32 %v7012_v5, %v4755_v8  ;;  %v4036_v46 = vpop.f32.mrf.mxu3  ;;  %v7546_v5 = vld [vmem:[#allocation2 + $0x1114] sm:$0xf0]  ;;  %v7000_v8 = vld [vmem:[#allocation2 + $0xc] sm:$0xf] }
 0x1b5   :  { %4275 = vmatpush.bf16.msrb.mxu2 %v4806_v14  ;;  %v6785_v14 = vld [vmem:[#allocation2 + $0x1048] sm:$0xf] }
 0x1b6   :  { %4288 = vmatpush.bf16.msrb.mxu3 %v4934_v32  ;;  %v4023_v32 = vpop.f32.mrf.mxu2  ;;  %v6786_v18 = vor.u32 %v7522_v15, %v6785_v14  ;;  %v4012_v50 = vpop.f32.mrf.mxu1  ;;  %v5075_v15 = vld [vmem:[#allocation2 + $0x2f8] sm:$0xf0] }
 0x1b7   :  { %4250 = vmatpush.bf16.msrb.mxu0 %v6834_v13  ;;  %v4024_v45 = vadd.f32 %v4023_v32, %v4011_v6  ;;  %v4867_v13 = vld [vmem:[#allocation2 + $0x158] sm:$0xf0]  ;;  %v6898_v6 = vor.u32 %v7550_v58, %v6897_v57  ;;  %v7120_v58 = vld [vmem:[#allocation2 + $0x3cc] sm:$0xf] }
 0x1b8   :  { %4263 = vmatpush.bf16.msrb.mxu1 %v6962_v20  ;;  %v3999_v20 = vpop.f32.mrf.mxu0  ;;  %v4870_v60 = vor.u32 %v7040_v47, %v4867_v13  ;;  %v4710_v47 = vor.u32 %v7000_v8, %v4707_v52  ;;  %v7188_v13 = vld [vmem:[#allocation2 + $0x5ec] sm:$0xf]  ;;  %v5059_v57 = vld [vmem:[#allocation2 + $0x2d8] sm:$0xf0] }
 0x1b9   :  { %4276 = vmatpush.bf16.msrb.mxu2 %v4790_v22  ;;  %v7826_v22 = vadd.f32 0.8, %v4584_v10  ;;  %v5459_v20 = vld [vmem:[#allocation2 + $0x5f8] sm:$0xf0] }
 0x1ba   :  { %4289 = vmatpush.bf16.msrb.mxu3 %v4918_v51  ;;  %v7828_v51 = vadd.f32 %v4036_v46, %v4024_v45  ;;  %v5331_v45 = vld [vmem:[#allocation2 + $0x4f8] sm:$0xf0]  ;;  %v5462_v59 = vor.u32 %v7188_v13, %v5459_v20  ;;  %v7176_v20 = vld [vmem:[#allocation2 + $0x58c] sm:$0xf] }
 0x1bb   :  { %4251 = vmatpush.bf16.msrb.mxu0 %v6818_v49  ;;  %v7036_v49 = vld [vmem:[#allocation2 + $0x12c] sm:$0xf]  ;;  %v5334_v56 = vor.u32 %v7156_v19, %v5331_v45  ;;  %7581 = vrsqrt.f32 %v7826_v22  ;;  %vm4598_vm3 = vweird.f32 %v7826_v22 }
 0x1bc   :  { %4264 = vmatpush.bf16.msrb.mxu1 %v6946_v62  ;;  %v4516_v61 = vsel %vm4508_vm0, %v7828_v51, 0.0  ;;  %v4851_v62 = vld [vmem:[#allocation2 + $0x138] sm:$0xf0]  ;;  %v4038_v32 = vpop.f32.mrf.mxu3  ;;  %v7112_v19 = vld [vmem:[#allocation2 + $0x38c] sm:$0xf] }
 0x1bd   :  { %4277 = vmatpush.bf16.msrb.mxu2 %v4774_v63  ;;  %v6753_v63 = vld [vmem:[#allocation2 + $0x1008] sm:$0xf]  ;;  %v4517_v0 = vrot.slane %v4516_v61, 4  ;;  %v4854_v10 = vor.u32 %v7036_v49, %v4851_v62  ;;  %v7152_v49 = vld [vmem:[#allocation2 + $0x4cc] sm:$0xf] }
 0x1be   :  { %4290 = vmatpush.bf16.msrb.mxu3 %v4902_v4  ;;  %v6881_v4 = vld [vmem:[#allocation2 + $0x1108] sm:$0xf]  ;;  %v4025_v14 = vpop.f32.mrf.mxu2  ;;  %v6754_v41 = vor.u32 %v7514_v3, %v6753_v63  ;;  %v7184_v62 = vld [vmem:[#allocation2 + $0x5cc] sm:$0xf]  ;;  %v5443_v63 = vld [vmem:[#allocation2 + $0x5d8] sm:$0xf0] }
 0x1bf   :  { %4252 = vmatpush.bf16.msrb.mxu0 %v6802_v2  ;;  %v4518_v9 = vadd.f32 %v4517_v0, %v4516_v61  ;;  %v7032_v2 = vld [vmem:[#allocation2 + $0x10c] sm:$0xf]  ;;  %v6882_v46 = vor.u32 %v7546_v5, %v6881_v4  ;;  %v5315_v61 = vld [vmem:[#allocation2 + $0x4d8] sm:$0xf0]  ;;  %v5446_v52 = vor.u32 %v7184_v62, %v5443_v63  ;;  %v7590_v63 = vld [vmem:[%s7961_s2] sm:$0xf] }
 0x1c0   :  { %4265 = vmatpush.bf16.msrb.mxu1 %v6930_v11  ;;  %v4835_v11 = vld [vmem:[#allocation2 + $0x118] sm:$0xf0]  ;;  %v5318_v4 = vor.u32 %v7152_v49, %v5315_v61  ;;  %v7116_v5 = vld [vmem:[#allocation2 + $0x3ac] sm:$0xf] }
 0x1c1   :  { %4278 = vmatpush.bf16.msrb.mxu2 %v4758_v12  ;;  %v7092_v12 = vld [vmem:[#allocation2 + $0x2ec] sm:$0xf]  ;;  %v4519_v37 = vrot.slane %v4518_v9, 2  ;;  %v4838_v48 = vor.u32 %v7032_v2, %v4835_v11  ;;  %v5299_v2 = vld [vmem:[#allocation2 + $0x4b8] sm:$0xf0]  ;;  %v7837_v14 = vpop.eup %7581 }
 0x1c2   :  { %4291 = vmatpush.bf16.msrb.mxu3 %v4886_v30  ;;  %v5203_v30 = vld [vmem:[#allocation2 + $0x3f8] sm:$0xf0]  ;;  %v5078_v50 = vor.u32 %v7092_v12, %v5075_v15  ;;  %v7180_v11 = vld [vmem:[#allocation2 + $0x5ac] sm:$0xf]  ;;  %v4593_v13 = vmul.f32 %v7837_v14, %v7826_v22  ;;  %vm4599_vm2 = vweird.f32 %v7837_v14 }
 0x1c3   :  { %4253 = vmatpush.bf16.msrb.mxu0 %v6786_v18  ;;  %v4520_v18 = vadd.f32 %v4519_v37, %v4518_v9  ;;  %v5171_v9 = vld [vmem:[#allocation2 + $0x3b8] sm:$0xf0]  ;;  %v7080_v37 = vld [vmem:[#allocation2 + $0x28c] sm:$0xf]  ;;  %vm7866_vm4 = vmor %vm4598_vm3, %vm4599_vm2  ;;  %vm4684_vm2 = vcmask 1045508   ;;  %vm4686_vm3 = vcmask 1043456  }
 0x1c4   :  { %4266 = vmatpush.bf16.msrb.mxu1 %v6914_v53  ;;  %v7088_v53 = vld [vmem:[#allocation2 + $0x2cc] sm:$0xf]  ;;  %v5427_v12 = vld [vmem:[#allocation2 + $0x5b8] sm:$0xf0] }
 0x1c5   :  { %4279 = vmatpush.bf16.msrb.mxu2 %v4742_v54  ;;  %v5206_v54 = vor.u32 %v7124_v27, %v5203_v30  ;;  %v4521_v38 = vrot.slane %v4520_v18, 1  ;;  %v5174_v30 = vor.u32 %v7116_v5, %v5171_v9  ;;  %v7140_v61 = vld [vmem:[#allocation2 + $0x46c] sm:$0xf]  ;;  %v5267_v62 = vld [vmem:[#allocation2 + $0x478] sm:$0xf0] }
 0x1c6   :  { %4292 = vmatpush.bf16.msrb.mxu3 %v4870_v60  ;;  %v5187_v60 = vld [vmem:[#allocation2 + $0x3d8] sm:$0xf0]  ;;  %v7072_v5 = vld [vmem:[#allocation2 + $0x24c] sm:$0xf] }
 0x1c7   :  { %4254 = vmatpush.bf16.msrb.mxu0 %v6770_v1  ;;  %v4522_v0 = vadd.f32 %v4521_v38, %v4520_v18  ;;  %v5062_v1 = vor.u32 %v7088_v53, %v5059_v57  ;;  %v5190_v3 = vor.u32 %v7120_v58, %v5187_v60  ;;  %v5011_v53 = vld [vmem:[#allocation2 + $0x278] sm:$0xf0]  ;;  %v7108_v60 = vld [vmem:[#allocation2 + $0x36c] sm:$0xf] }
 0x1c8   :  { %4267 = vmatpush.bf16.msrb.mxu1 %v6898_v6  ;;  %v7084_v6 = vld [vmem:[#allocation2 + $0x2ac] sm:$0xf]  ;;  %v5139_v38 = vld [vmem:[#allocation2 + $0x378] sm:$0xf0] }
 0x1c9   :  { %4280 = vmatpush.bf16.msrb.mxu2 %v4726_v7  ;;  %v5043_v7 = vld [vmem:[#allocation2 + $0x2b8] sm:$0xf0]  ;;  %v4545_v8 = vmul.f32 %v7804_v21, %v4522_v0  ;;  %v686_v0 = vperm.slane %v7590_v63, 2  ;;  %v5142_v9 = vor.u32 %v7108_v60, %v5139_v38  ;;  %v7132_v60 = vld [vmem:[#allocation2 + $0x42c] sm:$0xf] }
 0x1ca   :  { %4293 = vmatpush.bf16.msrb.mxu3 %v4854_v10  ;;  %v7148_v10 = vld [vmem:[#allocation2 + $0x4ac] sm:$0xf]  ;;  %v5046_v27 = vor.u32 %v7084_v6, %v5043_v7  ;;  %v5395_v6 = vld [vmem:[#allocation2 + $0x578] sm:$0xf0] }
 0x1cb   :  { %4255 = vmatpush.bf16.msrb.mxu0 %v6754_v41  ;;  %v7840_v15 = vsub.f32 %v7828_v51, %v4545_v8  ;;  %v5302_v32 = vor.u32 %v7148_v10, %v5299_v2  ;;  %v5027_v41 = vld [vmem:[#allocation2 + $0x298] sm:$0xf0]  ;;  %v5270_v10 = vor.u32 %v7140_v61, %v5267_v62  ;;  %v7164_v62 = vld [vmem:[#allocation2 + $0x52c] sm:$0xf] }
 0x1cc   :  { %4268 = vmatpush.bf16.msrb.mxu1 %v6882_v46  ;;  %v5155_v46 = vld [vmem:[#allocation2 + $0x398] sm:$0xf0] }
 0x1cd   :  { %4281 = vmatpush.bf16.msrb.mxu2 %v4710_v47  ;;  %v4553_v45 = vmul.f32 %v7840_v15, %v7840_v15  ;;  %v7144_v47 = vld [vmem:[#allocation2 + $0x48c] sm:$0xf]  ;;  %v5283_v51 = vld [vmem:[#allocation2 + $0x498] sm:$0xf0]  ;;  %v5158_v57 = vor.u32 %v7112_v19, %v5155_v46 }
 0x1ce   :  { %4294 = vmatpush.bf16.msrb.mxu3 %v4838_v48  ;;  %4256 = vmatmul.bf16.vlgmr.msrb.gmra.mxu0 %v7736_v23  ;;  %v5030_v48 = vor.u32 %v7080_v37, %v5027_v41  ;;  %v5286_v58 = vor.u32 %v7144_v47, %v5283_v51  ;;  %v4995_v2 = vld [vmem:[#allocation2 + $0x258] sm:$0xf0]  ;;  %v7168_v46 = vld [vmem:[#allocation2 + $0x54c] sm:$0xf] }
 0x1cf   :  { %4300 = vmatpush.bf16.msra.mxu0 %v5078_v50  ;;  %4269 = vmatmul.bf16.vlgmr.msrb.gmra.mxu1 %v7738_v33  ;;  %v4563_v18 = vsel %vm4508_vm0, %v4553_v45, 0.0  ;;  %v7076_v50 = vld [vmem:[#allocation2 + $0x26c] sm:$0xf]  ;;  %v5251_v37 = vld [vmem:[#allocation2 + $0x458] sm:$0xf0]  ;;  %v4998_v51 = vor.u32 %v7072_v5, %v4995_v2 }
 0x1d0   :  { %4313 = vmatpush.bf16.msra.mxu1 %v5206_v54  ;;  %4282 = vmatmul.bf16.vlgmr.msrb.gmra.mxu2 %v7665_v36  ;;  %v5430_v36 = vor.u32 %v7180_v11, %v5427_v12  ;;  %v4049_v54 = vpop.f32.mrf.mxu0  ;;  %v5014_v7 = vor.u32 %v7076_v50, %v5011_v53  ;;  %v7104_v11 = vld [vmem:[#allocation2 + $0x34c] sm:$0xf]  ;;  %v5379_v47 = vld [vmem:[#allocation2 + $0x558] sm:$0xf0] }
 0x1d1   :  { %4326 = vmatpush.bf16.msra.mxu2 %v5334_v56  ;;  %4295 = vmatmul.bf16.vlgmr.msrb.gmra.mxu3 %v7669_v43  ;;  %v5411_v43 = vld [vmem:[#allocation2 + $0x598] sm:$0xf0]  ;;  %v4564_v56 = vrot.slane %v4563_v18, 4  ;;  %v4050_v8 = vadd.f32 %v4049_v54, %v686_v0  ;;  %v7100_v54 = vld [vmem:[#allocation2 + $0x32c] sm:$0xf] }
 0x1d2   :  { %4339 = vmatpush.bf16.msra.mxu3 %v5462_v59  ;;  %v4062_v59 = vpop.f32.mrf.mxu1  ;;  %v5414_v49 = vor.u32 %v7176_v20, %v5411_v43  ;;  %v4979_v53 = vld [vmem:[#allocation2 + $0x238] sm:$0xf0] }
 0x1d3   :  { %4301 = vmatpush.bf16.msra.mxu0 %v5062_v1  ;;  %v4594_v1 = vmul.f32 %v7837_v14, %v4593_v13  ;;  %v4075_v12 = vpop.f32.mrf.mxu2  ;;  %v4063_v41 = vadd.f32 %v4062_v59, %v4050_v8  ;;  %v7068_v13 = vld [vmem:[#allocation2 + $0x22c] sm:$0xf]  ;;  %v5235_v38 = vld [vmem:[#allocation2 + $0x438] sm:$0xf0] }
 0x1d4   :  { %4314 = vmatpush.bf16.msra.mxu1 %v5190_v3  ;;  %v4565_v3 = vadd.f32 %v4564_v56, %v4563_v18  ;;  %v4088_v19 = vpop.f32.mrf.mxu3  ;;  %v5363_v63 = vld [vmem:[#allocation2 + $0x538] sm:$0xf0]  ;;  %v4982_v0 = vor.u32 %v7068_v13, %v4979_v53  ;;  %v5238_v5 = vor.u32 %v7132_v60, %v5235_v38  ;;  %v7316_v13 = vld [vmem:[#allocation2 + $0x9ec] sm:$0xf] }
 0x1d5   :  { %4327 = vmatpush.bf16.msra.mxu2 %v5318_v4  ;;  %v7172_v4 = vld [vmem:[#allocation2 + $0x56c] sm:$0xf]  ;;  %v7852_v45 = vmul.f32 0.5, %v4594_v1  ;;  %v4076_v20 = vadd.f32 %v4075_v12, %v4063_v41  ;;  %v5091_v8 = vld [vmem:[#allocation2 + $0x318] sm:$0xf0]  ;;  %v5366_v2 = vor.u32 %v7164_v62, %v5363_v63 }
 0x1d6   :  { %4340 = vmatpush.bf16.msra.mxu3 %v5446_v52  ;;  %v4566_v52 = vrot.slane %v4565_v3, 2  ;;  %v7064_v1 = vld [vmem:[#allocation2 + $0x20c] sm:$0xf]  ;;  %v5347_v12 = vld [vmem:[#allocation2 + $0x518] sm:$0xf0] }
 0x1d7   :  { %4302 = vmatpush.bf16.msra.mxu0 %v5046_v27  ;;  %v5398_v27 = vor.u32 %v7172_v4, %v5395_v6  ;;  %v7854_v59 = vadd.f32 %v4088_v19, %v4076_v20  ;;  %v7096_v4 = vld [vmem:[#allocation2 + $0x30c] sm:$0xf]  ;;  %v5971_v20 = vld [vmem:[#allocation2 + $0x9f8] sm:$0xf0] }
 0x1d8   :  { %4315 = vmatpush.bf16.msra.mxu1 %v5174_v30  ;;  %v5123_v30 = vld [vmem:[#allocation2 + $0x358] sm:$0xf0]  ;;  %v4051_v43 = vpop.f32.mrf.mxu0  ;;  %v7252_v41 = vld [vmem:[#allocation2 + $0x7ec] sm:$0xf] }
 0x1d9   :  { %4328 = vmatpush.bf16.msra.mxu2 %v5302_v32  ;;  %v7136_v32 = vld [vmem:[#allocation2 + $0x44c] sm:$0xf]  ;;  %v5699_v60 = vld [vmem:[#allocation2 + $0x7d8] sm:$0xf0] }
 0x1da   :  { %4341 = vmatpush.bf16.msra.mxu3 %v5430_v36  ;;  %v4567_v36 = vadd.f32 %v4566_v52, %v4565_v3  ;;  %v5254_v50 = vor.u32 %v7136_v32, %v5251_v37  ;;  %v4064_v56 = vpop.f32.mrf.mxu1  ;;  %v4963_v3 = vld [vmem:[#allocation2 + $0x218] sm:$0xf0]  ;;  %v7128_v52 = vld [vmem:[#allocation2 + $0x40c] sm:$0xf] }
 0x1db   :  { %4303 = vmatpush.bf16.msra.mxu0 %v5030_v48  ;;  %v5126_v48 = vor.u32 %v7104_v11, %v5123_v30  ;;  %v7160_v11 = vld [vmem:[#allocation2 + $0x50c] sm:$0xf]  ;;  %v5587_v37 = vld [vmem:[#allocation2 + $0x6f8] sm:$0xf0]  ;;  %v4966_v19 = vor.u32 %v7064_v1, %v4963_v3 }
 0x1dc   :  { %4316 = vmatpush.bf16.msra.mxu1 %v5158_v57  ;;  %v4568_v18 = vrot.slane %v4567_v36, 1  ;;  %v5382_v57 = vor.u32 %v7168_v46, %v5379_v47  ;;  %v4090_v30 = vpop.f32.mrf.mxu3  ;;  %v5843_v46 = vld [vmem:[#allocation2 + $0x8f8] sm:$0xf0]  ;;  %v5094_v47 = vor.u32 %v7096_v4, %v5091_v8  ;;  %v5350_v43 = vor.u32 %v7160_v11, %v5347_v12  ;;  %v7280_v38 = vld [vmem:[#allocation2 + $0x8cc] sm:$0xf] }
 0x1dd   :  { %4329 = vmatpush.bf16.msra.mxu2 %v5286_v58  ;;  %v5107_v58 = vld [vmem:[#allocation2 + $0x338] sm:$0xf0]  ;;  %v7312_v62 = vld [vmem:[#allocation2 + $0x9cc] sm:$0xf] }
 0x1de   :  { %4342 = vmatpush.bf16.msra.mxu3 %v5414_v49  ;;  %v4596_v49 = vsub.f32 1.5, %v7852_v45  ;;  %v4569_v61 = vadd.f32 %v4568_v18, %v4567_v36  ;;  %v5715_v45 = vld [vmem:[#allocation2 + $0x7f8] sm:$0xf0]  ;;  %v7284_v36 = vld [vmem:[#allocation2 + $0x8ec] sm:$0xf] }
 0x1df   :  { %4304 = vmatpush.bf16.msra.mxu0 %v5014_v7  ;;  %v5110_v7 = vor.u32 %v7100_v54, %v5107_v58  ;;  %v5846_v53 = vor.u32 %v7284_v36, %v5843_v46  ;;  %v7216_v54 = vld [vmem:[#allocation2 + $0x6cc] sm:$0xf]  ;;  %v5571_v56 = vld [vmem:[#allocation2 + $0x6d8] sm:$0xf0]  ;;  %v5974_v58 = vor.u32 %v7316_v13, %v5971_v20 }
 0x1e0   :  { %4317 = vmatpush.bf16.msra.mxu1 %v5142_v9  ;;  %v4585_v6 = vmul.f32 %v4569_v61, %v7804_v21  ;;  %v5219_v9 = vld [vmem:[#allocation2 + $0x418] sm:$0xf0]  ;;  %v5574_v1 = vor.u32 %v7216_v54, %v5571_v56  ;;  %v7244_v8 = vld [vmem:[#allocation2 + $0x7ac] sm:$0xf] }
 0x1e1   :  { %4330 = vmatpush.bf16.msra.mxu2 %v5270_v10  ;;  %v4077_v10 = vpop.f32.mrf.mxu2  ;;  %v5827_v61 = vld [vmem:[#allocation2 + $0x8d8] sm:$0xf0]  ;;  %v7308_v12 = vld [vmem:[#allocation2 + $0x9ac] sm:$0xf] }
 0x1e2   :  { %4343 = vmatpush.bf16.msra.mxu3 %v5398_v27  ;;  %v7220_v27 = vld [vmem:[#allocation2 + $0x6ec] sm:$0xf]  ;;  %v7858_v32 = vadd.f32 0.8, %v4585_v6  ;;  %v5955_v63 = vld [vmem:[#allocation2 + $0x9d8] sm:$0xf0]  ;;  %v5830_v6 = vor.u32 %v7280_v38, %v5827_v61 }
 0x1e3   :  { %4305 = vmatpush.bf16.msra.mxu0 %v4998_v51  ;;  %v5222_v51 = vor.u32 %v7128_v52, %v5219_v9  ;;  %v5590_v18 = vor.u32 %v7220_v27, %v5587_v37  ;;  %v5958_v9 = vor.u32 %v7312_v62, %v5955_v63  ;;  %v5683_v10 = vld [vmem:[#allocation2 + $0x7b8] sm:$0xf0]  ;;  %v7890_v37 = vld [vmem:[%s7963_s4] sm:$0xf] }
 0x1e4   :  { %4318 = vmatpush.bf16.msra.mxu1 %v5126_v48  ;;  %7583 = vrsqrt.f32 %v7858_v32  ;;  %v4597_v48 = vmul.f32 %v7837_v14, %v4596_v49  ;;  %v5811_v11 = vld [vmem:[#allocation2 + $0x8b8] sm:$0xf0]  ;;  %v4652_v20 = vperm.slane %v7890_v37, 0  ;;  %vm4608_vm6 = vweird.f32 %v7858_v32 }
 0x1e5   :  { %4331 = vmatpush.bf16.msra.mxu2 %v5254_v50  ;;  %v5718_v50 = vor.u32 %v7252_v41, %v5715_v45  ;;  %v5939_v27 = vld [vmem:[#allocation2 + $0x9b8] sm:$0xf0] }
 0x1e6   :  { %4344 = vmatpush.bf16.msra.mxu3 %v5382_v57  ;;  %v7248_v57 = vld [vmem:[#allocation2 + $0x7cc] sm:$0xf]  ;;  %v4601_v22 = vsel %vm7866_vm4, %v7837_v14, %v4597_v48  ;;  %v5539_v45 = vld [vmem:[#allocation2 + $0x698] sm:$0xf0] }
 0x1e7   :  { %4306 = vmatpush.bf16.msra.mxu0 %v4982_v0  ;;  %v7873_v0 = vld [vmem:[%s7962_s3] sm:$0xf]  ;;  %v5702_v4 = vor.u32 %v7248_v57, %v5699_v60  ;;  %v4632_v14 = vmul.f32 %v4601_v22, %v7811_v55  ;;  %v7240_v55 = vld [vmem:[#allocation2 + $0x78c] sm:$0xf]  ;;  %v5667_v36 = vld [vmem:[#allocation2 + $0x798] sm:$0xf0] }
 0x1e8   :  { %4319 = vmatpush.bf16.msra.mxu1 %v5110_v7  ;;  %v7212_v7 = vld [vmem:[#allocation2 + $0x6ac] sm:$0xf]  ;;  %v4638_v30 = vperm.slane %v7873_v0, 0  ;;  %v5795_v13 = vld [vmem:[#allocation2 + $0x898] sm:$0xf0]  ;;  %v5670_v54 = vor.u32 %v7240_v55, %v5667_v36 }
 0x1e9   :  { %4332 = vmatpush.bf16.msra.mxu2 %v5238_v5  ;;  %v5555_v5 = vld [vmem:[#allocation2 + $0x6b8] sm:$0xf0]  ;;  %v7204_v57 = vld [vmem:[#allocation2 + $0x66c] sm:$0xf] }
 0x1ea   :  { %4345 = vmatpush.bf16.msra.mxu3 %v5366_v2  ;;  %v7875_v3 = vpop.eup %7583  ;;  %v7276_v2 = vld [vmem:[#allocation2 + $0x8ac] sm:$0xf]  ;;  %v5558_v41 = vor.u32 %v7212_v7, %v5555_v5  ;;  %v4646_v48 = vmul.f32 %v4638_v30, %v4632_v14  ;;  %v5651_v49 = vld [vmem:[#allocation2 + $0x778] sm:$0xf0] }
 0x1eb   :  { %4307 = vmatpush.bf16.msra.mxu0 %v4966_v19  ;;  %v4603_v52 = vmul.f32 %v7875_v3, %v7858_v32  ;;  %v7208_v19 = vld [vmem:[#allocation2 + $0x68c] sm:$0xf]  ;;  %vm4609_vm5 = vweird.f32 %v7875_v3  ;;  %v5779_v22 = vld [vmem:[#allocation2 + $0x878] sm:$0xf0] }
 0x1ec   :  { %4320 = vmatpush.bf16.msra.mxu1 %v5094_v47  ;;  %v5942_v47 = vor.u32 %v7308_v12, %v5939_v27  ;;  %v7236_v60 = vld [vmem:[#allocation2 + $0x76c] sm:$0xf]  ;;  %v4114_v61 = vpop.f32.mrf.mxu1  ;;  %vm4610_vm7 = vmor %vm4608_vm6, %vm4609_vm5  ;;  %v5907_v7 = vld [vmem:[#allocation2 + $0x978] sm:$0xf0] }
 0x1ed   :  { %4333 = vmatpush.bf16.msra.mxu2 %v5222_v51  ;;  %v7272_v51 = vld [vmem:[#allocation2 + $0x88c] sm:$0xf]  ;;  %v5507_v12 = vld [vmem:[#allocation2 + $0x658] sm:$0xf0] }
 0x1ee   :  { %4346 = vmatpush.bf16.msra.mxu3 %v5350_v43  ;;  %4308 = vmatmul.bf16.vlgmr.msra.gmra.mxu0 %v7663_v35  ;;  %v5686_v35 = vor.u32 %v7244_v8, %v5683_v10  ;;  %v7304_v43 = vld [vmem:[#allocation2 + $0x98c] sm:$0xf]  ;;  %v5798_v56 = vor.u32 %v7272_v51, %v5795_v13  ;;  %v7902_v8 = vadd.f32 %v4652_v20, %v4646_v48  ;;  %v5635_v30 = vld [vmem:[#allocation2 + $0x758] sm:$0xf0] }
 0x1ef   :  { %4352 = vmatpush.bf16.msrb.mxu0 %v5590_v18  ;;  %4321 = vmatmul.bf16.vlgmr.msra.gmra.mxu1 %v7667_v42  ;;  %v5923_v18 = vld [vmem:[#allocation2 + $0x998] sm:$0xf0]  ;;  %v5542_v42 = vor.u32 %v7208_v19, %v5539_v45  ;;  %v5654_v10 = vor.u32 %v7236_v60, %v5651_v49  ;;  %v7196_v55 = vld [vmem:[#allocation2 + $0x62c] sm:$0xf] }
 0x1f0   :  { %4365 = vmatpush.bf16.msrb.mxu1 %v5718_v50  ;;  %4334 = vmatmul.bf16.vlgmr.msra.gmra.mxu2 %v7683_v39  ;;  %v4604_v39 = vmul.f32 %v7875_v3, %v4603_v52  ;;  %v5926_v63 = vor.u32 %v7304_v43, %v5923_v18  ;;  %v4653_v52 = vperm.slane %v7890_v37, 1  ;;  %v5491_v20 = vld [vmem:[#allocation2 + $0x638] sm:$0xf0]  ;;  %v7228_v43 = vld [vmem:[#allocation2 + $0x72c] sm:$0xf]  ;;  %vm4664_vm8 = vcmp.ge.f32.partialorder %v7902_v8, 0.0 }
 0x1f1   :  { %4378 = vmatpush.bf16.msrb.mxu2 %v5846_v53  ;;  %4347 = vmatmul.bf16.vlgmr.msra.gmra.mxu3 %v7687_v44  ;;  %v5814_v44 = vor.u32 %v7276_v2, %v5811_v11  ;;  %v4101_v53 = vpop.f32.mrf.mxu0  ;;  %v7200_v11 = vld [vmem:[#allocation2 + $0x64c] sm:$0xf]  ;;  %v5619_v18 = vld [vmem:[#allocation2 + $0x738] sm:$0xf0] }
 0x1f2   :  { %4391 = vmatpush.bf16.msrb.mxu3 %v5974_v58  ;;  %v4605_v46 = vmul.f32 0.5, %v4604_v39  ;;  %v5523_v58 = vld [vmem:[#allocation2 + $0x678] sm:$0xf0]  ;;  %v4102_v38 = vadd.f32 %v4101_v53, %v7854_v59  ;;  %v7264_v39 = vld [vmem:[#allocation2 + $0x84c] sm:$0xf]  ;;  %v5510_v45 = vor.u32 %v7200_v11, %v5507_v12 }
 0x1f3   :  { %4353 = vmatpush.bf16.msrb.mxu0 %v5574_v1  ;;  %v7268_v1 = vld [vmem:[#allocation2 + $0x86c] sm:$0xf]  ;;  %v5526_v32 = vor.u32 %v7204_v57, %v5523_v58  ;;  %v4127_v27 = vpop.f32.mrf.mxu2  ;;  %v5747_v53 = vld [vmem:[#allocation2 + $0x838] sm:$0xf0]  ;;  %v5494_v58 = vor.u32 %v7196_v55, %v5491_v20 }
 0x1f4   :  { %4366 = vmatpush.bf16.msrb.mxu1 %v5702_v4  ;;  %v4606_v50 = vsub.f32 1.5, %v4605_v46  ;;  %v4639_v4 = vperm.slane %v7873_v0, 1  ;;  %v4115_v5 = vadd.f32 %v4114_v61, %v4102_v38  ;;  %v5782_v2 = vor.u32 %v7268_v1, %v5779_v22  ;;  %v7232_v0 = vld [vmem:[#allocation2 + $0x74c] sm:$0xf]  ;;  %v4140_v19 = vpop.f32.mrf.mxu3  ;;  %v4116_v48 = vpop.f32.mrf.mxu1  ;;  %v5875_v57 = vld [vmem:[#allocation2 + $0x938] sm:$0xf0] }
 0x1f5   :  { %4379 = vmatpush.bf16.msrb.mxu2 %v5830_v6  ;;  %v7300_v6 = vld [vmem:[#allocation2 + $0x96c] sm:$0xf]  ;;  %v5638_v51 = vor.u32 %v7232_v0, %v5635_v30  ;;  %v5475_v38 = vld [vmem:[#allocation2 + $0x618] sm:$0xf0] }
 0x1f6   :  { %4392 = vmatpush.bf16.msrb.mxu3 %v5958_v9  ;;  %v4607_v62 = vmul.f32 %v7875_v3, %v4606_v50  ;;  %v5910_v14 = vor.u32 %v7300_v6, %v5907_v7  ;;  %v7192_v60 = vld [vmem:[#allocation2 + $0x60c] sm:$0xf]  ;;  %v5603_v1 = vld [vmem:[#allocation2 + $0x718] sm:$0xf0] }
 0x1f7   :  { %4354 = vmatpush.bf16.msrb.mxu0 %v5558_v41  ;;  %v5763_v41 = vld [vmem:[#allocation2 + $0x858] sm:$0xf0]  ;;  %v7224_v61 = vld [vmem:[#allocation2 + $0x70c] sm:$0xf]  ;;  %v5478_v0 = vor.u32 %v7192_v60, %v5475_v38 }
 0x1f8   :  { %4367 = vmatpush.bf16.msrb.mxu1 %v5686_v35  ;;  %v4611_v59 = vsel %vm4610_vm7, %v7875_v3, %v4607_v62  ;;  %v4128_v3 = vadd.f32 %v4127_v27, %v4115_v5  ;;  %v7296_v35 = vld [vmem:[#allocation2 + $0x94c] sm:$0xf]  ;;  %v5766_v13 = vor.u32 %v7264_v39, %v5763_v41  ;;  %v6227_v27 = vld [vmem:[#allocation2 + $0xbf8] sm:$0xf0]  ;;  %v5606_v39 = vor.u32 %v7224_v61, %v5603_v1 }
 0x1f9   :  { %4380 = vmatpush.bf16.msrb.mxu2 %v5814_v44  ;;  %v4633_v9 = vmul.f32 %v4611_v59, %v7840_v15  ;;  %v5891_v44 = vld [vmem:[#allocation2 + $0x958] sm:$0xf0]  ;;  %v4668_v15 = vmul.f32 0.2, %v7902_v8  ;;  %v4103_v46 = vpop.f32.mrf.mxu0  ;;  %v7256_v22 = vld [vmem:[#allocation2 + $0x80c] sm:$0xf] }
 0x1fa   :  { %4393 = vmatpush.bf16.msrb.mxu3 %v5942_v47  ;;  %v7908_v36 = vadd.f32 %v4140_v19, %v4128_v3  ;;  %v5894_v50 = vor.u32 %v7296_v35, %v5891_v44  ;;  %v7288_v59 = vld [vmem:[#allocation2 + $0x90c] sm:$0xf]  ;;  %v6355_v30 = vld [vmem:[#allocation2 + $0xcf8] sm:$0xf0] }
 0x1fb   :  { %4355 = vmatpush.bf16.msrb.mxu0 %v5542_v42  ;;  %v4647_v37 = vmul.f32 %v4639_v4, %v4633_v9  ;;  %v7260_v42 = vld [vmem:[#allocation2 + $0x82c] sm:$0xf]  ;;  %v5731_v4 = vld [vmem:[#allocation2 + $0x818] sm:$0xf0]  ;;  %v4129_v6 = vpop.f32.mrf.mxu2  ;;  %v4672_v9 = vsel %vm4664_vm8, %v7902_v8, %v4668_v15 }
 0x1fc   :  { %4368 = vmatpush.bf16.msrb.mxu1 %v5670_v54  ;;  %v7292_v54 = vld [vmem:[#allocation2 + $0x92c] sm:$0xf]  ;;  %v5750_v49 = vor.u32 %v7260_v42, %v5747_v53  ;;  %v5734_v41 = vor.u32 %v7256_v22, %v5731_v4  ;;  %v6483_v19 = vld [vmem:[#allocation2 + $0xdf8] sm:$0xf0] }
 0x1fd   :  { %4381 = vmatpush.bf16.msrb.mxu2 %v5798_v56  ;;  %v4661_v47 = vadd.f32 %v4653_v52, %v4647_v37  ;;  %v5878_v5 = vor.u32 %v7292_v54, %v5875_v57  ;;  %v5859_v52 = vld [vmem:[#allocation2 + $0x918] sm:$0xf0]  ;;  %v7380_v11 = vld [vmem:[#allocation2 + $0xbec] sm:$0xf] }
 0x1fe   :  { %4394 = vmatpush.bf16.msrb.mxu3 %v5926_v63  ;;  %v5622_v63 = vor.u32 %v7228_v43, %v5619_v18  ;;  %v7444_v3 = vld [vmem:[#allocation2 + $0xdec] sm:$0xf]  ;;  %v5862_v37 = vor.u32 %v7288_v59, %v5859_v52  ;;  %v6230_v35 = vor.u32 %v7380_v11, %v6227_v27  ;;  %v6467_v43 = vld [vmem:[#allocation2 + $0xdd8] sm:$0xf0] }
 0x1ff   :  { %4356 = vmatpush.bf16.msrb.mxu0 %v5526_v32  ;;  %vm4665_vm9 = vcmp.ge.f32.partialorder %v4661_v47, 0.0  ;;  %v4669_v56 = vmul.f32 0.2, %v4661_v47  ;;  %v4142_v32 = vpop.f32.mrf.mxu3  ;;  %v7344_v15 = vld [vmem:[#allocation2 + $0xacc] sm:$0xf]  ;;  %v6486_v46 = vor.u32 %v7444_v3, %v6483_v19 }
 0x200   :  { %4369 = vmatpush.bf16.msrb.mxu1 %v5654_v10  ;;  %v7348_v10 = vld [vmem:[#allocation2 + $0xaec] sm:$0xf]  ;;  %v6067_v53 = vld [vmem:[#allocation2 + $0xab8] sm:$0xf0] }
 0x201   :  { %4382 = vmatpush.bf16.msrb.mxu2 %v5782_v2  ;;  %v4673_v62 = vsel %vm4665_vm9, %v4661_v47, %v4669_v56  ;;  %v6099_v2 = vld [vmem:[#allocation2 + $0xaf8] sm:$0xf0]  ;;  %v7376_v55 = vld [vmem:[#allocation2 + $0xbcc] sm:$0xf] }
 0x202   :  { %4395 = vmatpush.bf16.msrb.mxu3 %v5910_v14  ;;  %v4680_v7 = vrot.slane %v4673_v62, 6  ;;  %v7412_v14 = vld [vmem:[#allocation2 + $0xcec] sm:$0xf]  ;;  %v6102_v8 = vor.u32 %v7348_v10, %v6099_v2  ;;  %v6211_v47 = vld [vmem:[#allocation2 + $0xbd8] sm:$0xf0] }
 0x203   :  { %4357 = vmatpush.bf16.msrb.mxu0 %v5510_v45  ;;  %v6358_v44 = vor.u32 %v7412_v14, %v6355_v30  ;;  %v6083_v45 = vld [vmem:[#allocation2 + $0xad8] sm:$0xf0]  ;;  %v7440_v20 = vld [vmem:[#allocation2 + $0xdcc] sm:$0xf]  ;;  %v6214_v48 = vor.u32 %v7376_v55, %v6211_v47 }
 0x204   :  { %4370 = vmatpush.bf16.msrb.mxu1 %v5638_v51  ;;  %v7915_v12 = vsel %vm4508_vm0, %v4672_v9, %v4680_v7  ;;  %v7408_v51 = vld [vmem:[#allocation2 + $0xccc] sm:$0xf]  ;;  %v6086_v18 = vor.u32 %v7344_v15, %v6083_v45  ;;  %v6470_v56 = vor.u32 %v7440_v20, %v6467_v43  ;;  %v6195_v57 = vld [vmem:[#allocation2 + $0xbb8] sm:$0xf0] }
 0x205   :  { %4383 = vmatpush.bf16.msrb.mxu2 %v5766_v13  ;;  %v6339_v13 = vld [vmem:[#allocation2 + $0xcd8] sm:$0xf0]  ;;  %v7340_v42 = vld [vmem:[#allocation2 + $0xaac] sm:$0xf] }
 0x206   :  { %4396 = vmatpush.bf16.msrb.mxu3 %v5894_v50  ;;  %v6342_v50 = vor.u32 %v7408_v51, %v6339_v13  ;;  %v7372_v54 = vld [vmem:[#allocation2 + $0xbac] sm:$0xf]  ;;  %v6323_v60 = vld [vmem:[#allocation2 + $0xcb8] sm:$0xf0]  ;;  %v6070_v62 = vor.u32 %v7340_v42, %v6067_v53 }
 0x207   :  { %4358 = vmatpush.bf16.msrb.mxu0 %v5494_v58  ;;  %v7404_v58 = vld [vmem:[#allocation2 + $0xcac] sm:$0xf]  ;;  %v6451_v61 = vld [vmem:[#allocation2 + $0xdb8] sm:$0xf0] }
 0x208   :  { %4371 = vmatpush.bf16.msrb.mxu1 %v5622_v63  ;;  %v7436_v38 = vld [vmem:[#allocation2 + $0xdac] sm:$0xf]  ;;  %v6198_v63 = vor.u32 %v7372_v54, %v6195_v57  ;;  %v6179_v6 = vld [vmem:[#allocation2 + $0xb98] sm:$0xf0] }
 0x209   :  { %4384 = vmatpush.bf16.msrb.mxu2 %v5750_v49  ;;  %v6326_v49 = vor.u32 %v7404_v58, %v6323_v60  ;;  %v7336_v1 = vld [vmem:[#allocation2 + $0xa8c] sm:$0xf]  ;;  %v6454_v4 = vor.u32 %v7436_v38, %v6451_v61  ;;  %v6435_v59 = vld [vmem:[#allocation2 + $0xd98] sm:$0xf0] }
 0x20a   :  { %4397 = vmatpush.bf16.msrb.mxu3 %v5878_v5  ;;  %v7368_v22 = vld [vmem:[#allocation2 + $0xb8c] sm:$0xf]  ;;  %v6035_v11 = vld [vmem:[#allocation2 + $0xa78] sm:$0xf0] }
 0x20b   :  { %4359 = vmatpush.bf16.msrb.mxu0 %v5478_v0  ;;  %v7400_v7 = vld [vmem:[#allocation2 + $0xc8c] sm:$0xf]  ;;  %v4153_v5 = vpop.f32.mrf.mxu0  ;;  %v6182_v9 = vor.u32 %v7368_v22, %v6179_v6  ;;  %v6163_v30 = vld [vmem:[#allocation2 + $0xb78] sm:$0xf0] }
 0x20c   :  { %4372 = vmatpush.bf16.msrb.mxu1 %v5606_v39  ;;  %v4166_v32 = vpop.f32.mrf.mxu1  ;;  %v7332_v2 = vld [vmem:[#allocation2 + $0xa6c] sm:$0xf]  ;;  %v6419_v19 = vld [vmem:[#allocation2 + $0xd78] sm:$0xf0] }
 0x20d   :  { %4385 = vmatpush.bf16.msrb.mxu2 %v5734_v41  ;;  %v7364_v0 = vld [vmem:[#allocation2 + $0xb6c] sm:$0xf]  ;;  %v6291_v41 = vld [vmem:[#allocation2 + $0xc78] sm:$0xf0] }
 0x20e   :  { %4398 = vmatpush.bf16.msrb.mxu3 %v5862_v37  ;;  %4360 = vmatmul.bf16.vlgmr.msrb.gmra.mxu0 %v7681_v34  ;;  %v6051_v34 = vld [vmem:[#allocation2 + $0xa98] sm:$0xf0]  ;;  %v7396_v39 = vld [vmem:[#allocation2 + $0xc6c] sm:$0xf]  ;;  %v6038_v37 = vor.u32 %v7332_v2, %v6035_v11 }
 0x20f   :  { %4404 = vmatpush.bf16.msra.mxu0 %v6102_v8  ;;  %4373 = vmatmul.bf16.vlgmr.msrb.gmra.mxu1 %v7685_v40  ;;  %v7432_v40 = vld [vmem:[#allocation2 + $0xd8c] sm:$0xf]  ;;  %v6054_v52 = vor.u32 %v7336_v1, %v6051_v34  ;;  %v6294_v8 = vor.u32 %v7396_v39, %v6291_v41  ;;  %v6275_v51 = vld [vmem:[#allocation2 + $0xc58] sm:$0xf0] }
 0x210   :  { %4417 = vmatpush.bf16.msra.mxu1 %v6230_v35  ;;  %4386 = vmatmul.bf16.vlgmr.msrb.gmra.mxu2 %v7706_v24  ;;  %v6307_v24 = vld [vmem:[#allocation2 + $0xc98] sm:$0xf0]  ;;  %v6438_v27 = vor.u32 %v7432_v40, %v6435_v59  ;;  %v7428_v3 = vld [vmem:[#allocation2 + $0xd6c] sm:$0xf] }
 0x211   :  { %4430 = vmatpush.bf16.msra.mxu2 %v6358_v44  ;;  %4399 = vmatmul.bf16.vlgmr.msrb.gmra.mxu3 %v7714_v29  ;;  %v4154_v29 = vadd.f32 %v4153_v5, %v7908_v36  ;;  %v6310_v10 = vor.u32 %v7400_v7, %v6307_v24  ;;  %v6166_v36 = vor.u32 %v7364_v0, %v6163_v30  ;;  %v7328_v35 = vld [vmem:[#allocation2 + $0xa4c] sm:$0xf]  ;;  %v6019_v44 = vld [vmem:[#allocation2 + $0xa58] sm:$0xf0] }
 0x212   :  { %4443 = vmatpush.bf16.msra.mxu3 %v6486_v46  ;;  %v7360_v15 = vld [vmem:[#allocation2 + $0xb4c] sm:$0xf]  ;;  %v6422_v45 = vor.u32 %v7428_v3, %v6419_v19  ;;  %v6147_v46 = vld [vmem:[#allocation2 + $0xb58] sm:$0xf0] }
 0x213   :  { %4405 = vmatpush.bf16.msra.mxu0 %v6086_v18  ;;  %v4167_v14 = vadd.f32 %v4166_v32, %v4154_v29  ;;  %v4179_v55 = vpop.f32.mrf.mxu2  ;;  %v7392_v47 = vld [vmem:[#allocation2 + $0xc4c] sm:$0xf]  ;;  %v6403_v18 = vld [vmem:[#allocation2 + $0xd58] sm:$0xf0]  ;;  %v6150_v54 = vor.u32 %v7360_v15, %v6147_v46 }
 0x214   :  { %4418 = vmatpush.bf16.msra.mxu1 %v6214_v48  ;;  %v4192_v20 = vpop.f32.mrf.mxu3  ;;  %v7424_v43 = vld [vmem:[#allocation2 + $0xd4c] sm:$0xf]  ;;  %v4155_v48 = vpop.f32.mrf.mxu0  ;;  %v6003_v58 = vld [vmem:[#allocation2 + $0xa38] sm:$0xf0] }
 0x215   :  { %4431 = vmatpush.bf16.msra.mxu2 %v6342_v50  ;;  %v4180_v13 = vadd.f32 %v4179_v55, %v4167_v14  ;;  %v6022_v50 = vor.u32 %v7328_v35, %v6019_v44  ;;  %v4168_v42 = vpop.f32.mrf.mxu1  ;;  %v7324_v57 = vld [vmem:[#allocation2 + $0xa2c] sm:$0xf]  ;;  %v6406_v38 = vor.u32 %v7424_v43, %v6403_v18  ;;  %v6131_v61 = vld [vmem:[#allocation2 + $0xb38] sm:$0xf0] }
 0x216   :  { %4444 = vmatpush.bf16.msra.mxu3 %v6470_v56  ;;  %v6278_v56 = vor.u32 %v7392_v47, %v6275_v51  ;;  %v7356_v60 = vld [vmem:[#allocation2 + $0xb2c] sm:$0xf]  ;;  %v6387_v1 = vld [vmem:[#allocation2 + $0xd38] sm:$0xf0]  ;;  %v6006_v34 = vor.u32 %v7324_v57, %v6003_v58 }
 0x217   :  { %4406 = vmatpush.bf16.msra.mxu0 %v6070_v62  ;;  %v7922_v53 = vadd.f32 %v4192_v20, %v4180_v13  ;;  %v7388_v62 = vld [vmem:[#allocation2 + $0xc2c] sm:$0xf]  ;;  %v6134_v6 = vor.u32 %v7356_v60, %v6131_v61  ;;  %v6115_v5 = vld [vmem:[#allocation2 + $0xb18] sm:$0xf0] }
 0x218   :  { %4419 = vmatpush.bf16.msra.mxu1 %v6198_v63  ;;  %v6259_v63 = vld [vmem:[#allocation2 + $0xc38] sm:$0xf0]  ;;  %v7320_v22 = vld [vmem:[#allocation2 + $0xa0c] sm:$0xf] }
 0x219   :  { %4432 = vmatpush.bf16.msra.mxu2 %v6326_v49  ;;  %v7420_v49 = vld [vmem:[#allocation2 + $0xd2c] sm:$0xf]  ;;  %v6262_v7 = vor.u32 %v7388_v62, %v6259_v63  ;;  %v6243_v29 = vld [vmem:[#allocation2 + $0xc18] sm:$0xf0] }
 0x21a   :  { %4445 = vmatpush.bf16.msra.mxu3 %v6454_v4  ;;  %v5987_v4 = vld [vmem:[#allocation2 + $0xa18] sm:$0xf0]  ;;  %v7352_v24 = vld [vmem:[#allocation2 + $0xb0c] sm:$0xf]  ;;  %v6390_v59 = vor.u32 %v7420_v49, %v6387_v1 }
 0x21b   :  { %4407 = vmatpush.bf16.msra.mxu0 %v6054_v52  ;;  %v7384_v40 = vld [vmem:[#allocation2 + $0xc0c] sm:$0xf]  ;;  %v6371_v32 = vld [vmem:[#allocation2 + $0xd18] sm:$0xf0]  ;;  %v6118_v41 = vor.u32 %v7352_v24, %v6115_v5 }
 0x21c   :  { %4420 = vmatpush.bf16.msra.mxu1 %v6182_v9  ;;  %v7416_v52 = vld [vmem:[#allocation2 + $0xd0c] sm:$0xf]  ;;  %v4181_v9 = vpop.f32.mrf.mxu2  ;;  %v6611_v2 = vld [vmem:[#allocation2 + $0xef8] sm:$0xf0]  ;;  %v4194_v0 = vpop.f32.mrf.mxu3  ;;  %v6246_v3 = vor.u32 %v7384_v40, %v6243_v29 }
 0x21d   :  { %4433 = vmatpush.bf16.msra.mxu2 %v6310_v10  ;;  %v7476_v10 = vld [vmem:[#allocation2 + $0xeec] sm:$0xf]  ;;  %v6739_v14 = vld [vmem:[#allocation2 + $0xff8] sm:$0xf0] }
 0x21e   :  { %4446 = vmatpush.bf16.msra.mxu3 %v6438_v27  ;;  %v7508_v11 = vld [vmem:[#allocation2 + $0xfec] sm:$0xf]  ;;  %v5990_v27 = vor.u32 %v7320_v22, %v5987_v4  ;;  %v6867_v39 = vld [vmem:[#allocation2 + $0x10f8] sm:$0xf0] }
 0x21f   :  { %4408 = vmatpush.bf16.msra.mxu0 %v6038_v37  ;;  %v7540_v30 = vld [vmem:[#allocation2 + $0x10ec] sm:$0xf]  ;;  %v6995_v37 = vld [vmem:[#allocation2 + $0x11f8] sm:$0xf0]  ;;  %v6742_v35 = vor.u32 %v7508_v11, %v6739_v14 }
 0x220   :  { %4421 = vmatpush.bf16.msra.mxu1 %v6166_v36  ;;  %v7572_v19 = vld [vmem:[#allocation2 + $0x11ec] sm:$0xf]  ;;  %v6374_v36 = vor.u32 %v7416_v52, %v6371_v32  ;;  %v6870_v44 = vor.u32 %v7540_v30, %v6867_v39  ;;  %v6723_v47 = vld [vmem:[#allocation2 + $0xfd8] sm:$0xf0] }
 0x221   :  { %4434 = vmatpush.bf16.msra.mxu2 %v6294_v8  ;;  %v6614_v8 = vor.u32 %v7476_v10, %v6611_v2  ;;  %v7472_v15 = vld [vmem:[#allocation2 + $0xecc] sm:$0xf]  ;;  %v6998_v46 = vor.u32 %v7572_v19, %v6995_v37  ;;  %v6851_v13 = vld [vmem:[#allocation2 + $0x10d8] sm:$0xf0] }
 0x222   :  { %4447 = vmatpush.bf16.msra.mxu3 %v6422_v45  ;;  %v6595_v45 = vld [vmem:[#allocation2 + $0xed8] sm:$0xf0]  ;;  %v7504_v55 = vld [vmem:[#allocation2 + $0xfcc] sm:$0xf] }
 0x223   :  { %4409 = vmatpush.bf16.msra.mxu0 %v6022_v50  ;;  %v7536_v51 = vld [vmem:[#allocation2 + $0x10cc] sm:$0xf]  ;;  %v6979_v43 = vld [vmem:[#allocation2 + $0x11d8] sm:$0xf0]  ;;  %v6598_v18 = vor.u32 %v7472_v15, %v6595_v45  ;;  %v6726_v48 = vor.u32 %v7504_v55, %v6723_v47 }
 0x224   :  { %4422 = vmatpush.bf16.msra.mxu1 %v6150_v54  ;;  %v7568_v20 = vld [vmem:[#allocation2 + $0x11cc] sm:$0xf]  ;;  %v6854_v50 = vor.u32 %v7536_v51, %v6851_v13  ;;  %v6579_v54 = vld [vmem:[#allocation2 + $0xeb8] sm:$0xf0] }
 0x225   :  { %4435 = vmatpush.bf16.msra.mxu2 %v6278_v56  ;;  %v7468_v42 = vld [vmem:[#allocation2 + $0xeac] sm:$0xf]  ;;  %v6982_v57 = vor.u32 %v7568_v20, %v6979_v43  ;;  %v6707_v58 = vld [vmem:[#allocation2 + $0xfb8] sm:$0xf0] }
 0x226   :  { %4448 = vmatpush.bf16.msra.mxu3 %v6406_v38  ;;  %v7500_v56 = vld [vmem:[#allocation2 + $0xfac] sm:$0xf]  ;;  %v6835_v38 = vld [vmem:[#allocation2 + $0x10b8] sm:$0xf0]  ;;  %v6582_v63 = vor.u32 %v7468_v42, %v6579_v54 }
 0x227   :  { %4410 = vmatpush.bf16.msra.mxu0 %v6006_v34  ;;  %v7532_v60 = vld [vmem:[#allocation2 + $0x10ac] sm:$0xf]  ;;  %v6963_v62 = vld [vmem:[#allocation2 + $0x11b8] sm:$0xf0]  ;;  %v6710_v49 = vor.u32 %v7500_v56, %v6707_v58 }
 0x228   :  { %4423 = vmatpush.bf16.msra.mxu1 %v6134_v6  ;;  %v7564_v61 = vld [vmem:[#allocation2 + $0x11ac] sm:$0xf]  ;;  %v6838_v1 = vor.u32 %v7532_v60, %v6835_v38  ;;  %v6691_v6 = vld [vmem:[#allocation2 + $0xf98] sm:$0xf0] }
 0x229   :  { %4436 = vmatpush.bf16.msra.mxu2 %v6262_v7  ;;  %v7464_v34 = vld [vmem:[#allocation2 + $0xe8c] sm:$0xf]  ;;  %v6966_v4 = vor.u32 %v7564_v61, %v6963_v62  ;;  %v6947_v5 = vld [vmem:[#allocation2 + $0x1198] sm:$0xf0] }
 0x22a   :  { %4449 = vmatpush.bf16.msra.mxu3 %v6390_v59  ;;  %v7496_v22 = vld [vmem:[#allocation2 + $0xf8c] sm:$0xf]  ;;  %v6547_v9 = vld [vmem:[#allocation2 + $0xe78] sm:$0xf0] }
 0x22b   :  { %4411 = vmatpush.bf16.msra.mxu0 %v5990_v27  ;;  %v7528_v7 = vld [vmem:[#allocation2 + $0x108c] sm:$0xf]  ;;  %v4205_v24 = vpop.f32.mrf.mxu0  ;;  %v6694_v29 = vor.u32 %v7496_v22, %v6691_v6  ;;  %v6675_v0 = vld [vmem:[#allocation2 + $0xf78] sm:$0xf0] }
 0x22c   :  { %4424 = vmatpush.bf16.msra.mxu1 %v6118_v41  ;;  %v4218_v59 = vpop.f32.mrf.mxu1  ;;  %v7460_v32 = vld [vmem:[#allocation2 + $0xe6c] sm:$0xf]  ;;  %v6803_v14 = vld [vmem:[#allocation2 + $0x1078] sm:$0xf0] }
 0x22d   :  { %4437 = vmatpush.bf16.msra.mxu2 %v6246_v3  ;;  %v7492_v10 = vld [vmem:[#allocation2 + $0xf6c] sm:$0xf]  ;;  %v6931_v39 = vld [vmem:[#allocation2 + $0x1178] sm:$0xf0]  ;;  %v6550_v41 = vor.u32 %v7460_v32, %v6547_v9 }
 0x22e   :  { %4450 = vmatpush.bf16.msra.mxu3 %v6374_v36  ;;  %4412 = vmatmul.bf16.vlgmr.msra.gmra.mxu0 %v7710_v28  ;;  %v6563_v28 = vld [vmem:[#allocation2 + $0xe98] sm:$0xf0]  ;;  %v7524_v27 = vld [vmem:[#allocation2 + $0x106c] sm:$0xf] }
 0x22f   :  { %4456 = vmatpush.bf16.msrb.mxu0 %v6614_v8  ;;  %4425 = vmatmul.bf16.vlgmr.msra.gmra.mxu1 %v7718_v16  ;;  %v7560_v16 = vld [vmem:[#allocation2 + $0x118c] sm:$0xf]  ;;  %v6566_v40 = vor.u32 %v7464_v34, %v6563_v28  ;;  %v6806_v3 = vor.u32 %v7524_v27, %v6803_v14  ;;  %v6531_v37 = vld [vmem:[#allocation2 + $0xe58] sm:$0xf0] }
 0x230   :  { %4469 = vmatpush.bf16.msrb.mxu1 %v6742_v35  ;;  %4438 = vmatmul.bf16.vlgmr.msra.gmra.mxu2 %v7724_v17  ;;  %v6819_v17 = vld [vmem:[#allocation2 + $0x1098] sm:$0xf0]  ;;  %v6950_v2 = vor.u32 %v7560_v16, %v6947_v5  ;;  %v7556_v30 = vld [vmem:[#allocation2 + $0x116c] sm:$0xf] }
 0x231   :  { %4482 = vmatpush.bf16.msrb.mxu2 %v6870_v44  ;;  %4451 = vmatmul.bf16.vlgmr.msra.gmra.mxu3 %v7728_v26  ;;  %v4206_v26 = vadd.f32 %v4205_v24, %v7922_v53  ;;  %v6822_v52 = vor.u32 %v7528_v7, %v6819_v17  ;;  %v6678_v53 = vor.u32 %v7492_v10, %v6675_v0  ;;  %v7456_v19 = vld [vmem:[#allocation2 + $0xe4c] sm:$0xf]  ;;  %v6659_v44 = vld [vmem:[#allocation2 + $0xf58] sm:$0xf0] }
 0x232   :  { %4495 = vmatpush.bf16.msrb.mxu3 %v6998_v46  ;;  %v7488_v36 = vld [vmem:[#allocation2 + $0xf4c] sm:$0xf]  ;;  %v6934_v8 = vor.u32 %v7556_v30, %v6931_v39  ;;  %v6787_v45 = vld [vmem:[#allocation2 + $0x1058] sm:$0xf0]  ;;  %v6534_v20 = vor.u32 %v7456_v19, %v6531_v37 }
 0x233   :  { %4457 = vmatpush.bf16.msrb.mxu0 %v6598_v18  ;;  %v4219_v11 = vadd.f32 %v4218_v59, %v4206_v26  ;;  %v4231_v35 = vpop.f32.mrf.mxu2  ;;  %v7520_v15 = vld [vmem:[#allocation2 + $0x104c] sm:$0xf]  ;;  %v6915_v51 = vld [vmem:[#allocation2 + $0x1158] sm:$0xf0]  ;;  %v4207_v13 = vpop.f32.mrf.mxu0 }
 0x234   :  { %4470 = vmatpush.bf16.msrb.mxu1 %v6726_v48  ;;  %v4244_v46 = vpop.f32.mrf.mxu3  ;;  %v7552_v47 = vld [vmem:[#allocation2 + $0x114c] sm:$0xf]  ;;  %v4220_v43 = vpop.f32.mrf.mxu1  ;;  %v6662_v48 = vor.u32 %v7488_v36, %v6659_v44  ;;  %v6515_v54 = vld [vmem:[#allocation2 + $0xe38] sm:$0xf0] }
 0x235   :  { %4483 = vmatpush.bf16.msrb.mxu2 %v6854_v50  ;;  %v4232_v55 = vadd.f32 %v4231_v35, %v4219_v11  ;;  %v6790_v50 = vor.u32 %v7520_v15, %v6787_v45  ;;  %v7452_v42 = vld [vmem:[#allocation2 + $0xe2c] sm:$0xf]  ;;  %v6643_v58 = vld [vmem:[#allocation2 + $0xf38] sm:$0xf0]  ;;  %v7591_v11 = vld [vmem:[%s7961_s2] sm:$0xf] }
 0x236   :  { %4496 = vmatpush.bf16.msrb.mxu3 %v6982_v57  ;;  %v7484_v56 = vld [vmem:[#allocation2 + $0xf2c] sm:$0xf]  ;;  %v6918_v57 = vor.u32 %v7552_v47, %v6915_v51  ;;  %v6771_v38 = vld [vmem:[#allocation2 + $0x1038] sm:$0xf0]  ;;  %v687_v0 = vperm.slane %v7591_v11, 3 }
 0x237   :  { %4458 = vmatpush.bf16.msrb.mxu0 %v6582_v63  ;;  %v4245_v18 = vadd.f32 %v4244_v46, %v4232_v55  ;;  %v7516_v60 = vld [vmem:[#allocation2 + $0x102c] sm:$0xf]  ;;  %v6899_v62 = vld [vmem:[#allocation2 + $0x1138] sm:$0xf0]  ;;  %v6518_v63 = vor.u32 %v7452_v42, %v6515_v54 }
 0x238   :  { %4471 = vmatpush.bf16.msrb.mxu1 %v6710_v49  ;;  %v7548_v61 = vld [vmem:[#allocation2 + $0x112c] sm:$0xf]  ;;  %v6646_v49 = vor.u32 %v7484_v56, %v6643_v58  ;;  %v6499_v28 = vld [vmem:[#allocation2 + $0xe18] sm:$0xf0] }
 0x239   :  { %4484 = vmatpush.bf16.msrb.mxu2 %v6838_v1  ;;  %v6774_v1 = vor.u32 %v7516_v60, %v6771_v38  ;;  %v7448_v34 = vld [vmem:[#allocation2 + $0xe0c] sm:$0xf]  ;;  %v6627_v6 = vld [vmem:[#allocation2 + $0xf18] sm:$0xf0] }
 0x23a   :  { %4497 = vmatpush.bf16.msrb.mxu3 %v6966_v4  ;;  %v7480_v22 = vld [vmem:[#allocation2 + $0xf0c] sm:$0xf]  ;;  %v6902_v4 = vor.u32 %v7548_v61, %v6899_v62  ;;  %v6755_v17 = vld [vmem:[#allocation2 + $0x1018] sm:$0xf0] }
 0x23b   :  { %4459 = vmatpush.bf16.msrb.mxu0 %v6566_v40  ;;  %v7512_v7 = vld [vmem:[#allocation2 + $0x100c] sm:$0xf]  ;;  %v4233_v24 = vpop.f32.mrf.mxu2  ;;  %v6883_v5 = vld [vmem:[#allocation2 + $0x1118] sm:$0xf0]  ;;  %v6502_v40 = vor.u32 %v7448_v34, %v6499_v28  ;;  %v6630_v59 = vor.u32 %v7480_v22, %v6627_v6 }
 0x23c   :  { %4472 = vmatpush.bf16.msrb.mxu1 %v6694_v29  ;;  %v7544_v16 = vld [vmem:[#allocation2 + $0x110c] sm:$0xf]  ;;  %v4246_v26 = vpop.f32.mrf.mxu3  ;;  %v6758_v29 = vor.u32 %v7512_v7, %v6755_v17 }
 0x23d   :  { %4485 = vmatpush.bf16.msrb.mxu2 %v6822_v52  ;;  %v6886_v52 = vor.u32 %v7544_v16, %v6883_v5 }
 0x23e   :  { %4498 = vmatpush.bf16.msrb.mxu3 %v6950_v2 }
 0x23f   :  { %4460 = vmatpush.bf16.msrb.mxu0 %v6550_v41 }
 0x240   :  { %4473 = vmatpush.bf16.msrb.mxu1 %v6678_v53 }
 0x241   :  { %4486 = vmatpush.bf16.msrb.mxu2 %v6806_v3 }
 0x242   :  { %4499 = vmatpush.bf16.msrb.mxu3 %v6934_v8 }
 0x243   :  { %4461 = vmatpush.bf16.msrb.mxu0 %v6534_v20 }
 0x244   :  { %4474 = vmatpush.bf16.msrb.mxu1 %v6662_v48 }
 0x245   :  { %4487 = vmatpush.bf16.msrb.mxu2 %v6790_v50 }
 0x246   :  { %4500 = vmatpush.bf16.msrb.mxu3 %v6918_v57 }
 0x247   :  { %4462 = vmatpush.bf16.msrb.mxu0 %v6518_v63 }
 0x248   :  { %4475 = vmatpush.bf16.msrb.mxu1 %v6646_v49 }
 0x249   :  { %4488 = vmatpush.bf16.msrb.mxu2 %v6774_v1 }
 0x24a   :  { %4501 = vmatpush.bf16.msrb.mxu3 %v6902_v4 }
 0x24b   :  { %4463 = vmatpush.bf16.msrb.mxu0 %v6502_v40  ;;  %v4257_v32 = vpop.f32.mrf.mxu0 }
 0x24c   :  { %4476 = vmatpush.bf16.msrb.mxu1 %v6630_v59  ;;  %v4258_v9 = vadd.f32 %v4257_v32, %v4245_v18  ;;  %v4270_v10 = vpop.f32.mrf.mxu1 }
 0x24d   :  { %4489 = vmatpush.bf16.msrb.mxu2 %v6758_v29 }
 0x24e   :  { %4502 = vmatpush.bf16.msrb.mxu3 %v6886_v52  ;;  %4464 = vmatmul.bf16.vlgmr.msrb.gmra.mxu0 %v7726_v25  ;;  %v4271_v2 = vadd.f32 %v4270_v10, %v4258_v9 }
 0x24f   :  { %4477 = vmatmul.bf16.vlgmr.msrb.gmra.mxu1 %v7730_v31 }
 0x250   :  { %4490 = vmatmul.bf16.vlgmr.msrb.gmra.mxu2 %v7736_v23  ;;  %v4523_v43 = vsel %vm4508_vm0, %v4271_v2, 0.0 }
 0x251   :  { %4503 = vmatmul.bf16.vlgmr.msrb.gmra.mxu3 %v7738_v33  ;;  %v4524_v48 = vrot.slane %v4523_v43, 4 }
 0x253   :  { %v4283_v27 = vpop.f32.mrf.mxu2  ;;  %v4259_v39 = vpop.f32.mrf.mxu0  ;;  %v4525_v42 = vadd.f32 %v4524_v48, %v4523_v43 }
 0x254   :  { %v4284_v14 = vadd.f32 %v4283_v27, %v687_v0  ;;  %v4296_v30 = vpop.f32.mrf.mxu3  ;;  %v4272_v25 = vpop.f32.mrf.mxu1 }
 0x255   :  { %v4526_v56 = vrot.slane %v4525_v42, 2 }
 0x256   :  { %v4297_v41 = vadd.f32 %v4296_v30, %v4284_v14 }
 0x257   :  { %v4527_v57 = vadd.f32 %v4526_v56, %v4525_v42 }
 0x259   :  { %v4528_v58 = vrot.slane %v4527_v57, 1 }
 0x25b   :  { %v4285_v31 = vpop.f32.mrf.mxu2  ;;  %v4529_v61 = vadd.f32 %v4528_v58, %v4527_v57 }
 0x25c   :  { %v4298_v53 = vpop.f32.mrf.mxu3 }
 0x25d   :  { %v4546_v62 = vmul.f32 %v7804_v21, %v4529_v61 }
 0x25f   :  { %v7938_v22 = vsub.f32 %v4271_v2, %v4546_v62 }
 0x261   :  { %v4554_v7 = vmul.f32 %v7938_v22, %v7938_v22 }
 0x263   :  { %v4570_v5 = vsel %vm4508_vm0, %v4554_v7, 0.0 }
 0x264   :  { %v4571_v40 = vrot.slane %v4570_v5, 4 }
 0x266   :  { %v4572_v29 = vadd.f32 %v4571_v40, %v4570_v5 }
 0x268   :  { %v4573_v32 = vrot.slane %v4572_v29, 2 }
 0x26a   :  { %v4574_v0 = vadd.f32 %v4573_v32, %v4572_v29 }
 0x26b   :  { %v4309_v23 = vpop.f32.mrf.mxu0 }
 0x26c   :  { %v4310_v3 = vadd.f32 %v4309_v23, %v4297_v41  ;;  %v4322_v33 = vpop.f32.mrf.mxu1  ;;  %v4575_v30 = vrot.slane %v4574_v0, 1 }
 0x26e   :  { %v4323_v19 = vadd.f32 %v4322_v33, %v4310_v3  ;;  %v4576_v23 = vadd.f32 %v4575_v30, %v4574_v0 }
 0x273   :  { %v4335_v37 = vpop.f32.mrf.mxu2  ;;  %v4311_v44 = vpop.f32.mrf.mxu0 }
 0x274   :  { %v4336_v36 = vadd.f32 %v4335_v37, %v4323_v19  ;;  %v4348_v8 = vpop.f32.mrf.mxu3  ;;  %v4324_v15 = vpop.f32.mrf.mxu1 }
 0x276   :  { %v4349_v35 = vadd.f32 %v4348_v8, %v4336_v36  ;;  %v4586_v36 = vmul.f32 %v4576_v23, %v7804_v21 }
 0x278   :  { %v4590_v15 = vadd.f32 0.8, %v4586_v36 }
 0x27a   :  { %7585 = vrsqrt.f32 %v4590_v15  ;;  %vm4618_vm11 = vweird.f32 %v4590_v15 }
 0x27b   :  { %v4337_v45 = vpop.f32.mrf.mxu2 }
 0x27c   :  { %v4350_v55 = vpop.f32.mrf.mxu3 }
 0x28b   :  { %v4361_v46 = vpop.f32.mrf.mxu0 }
 0x28c   :  { %v4374_v47 = vpop.f32.mrf.mxu1  ;;  %v4362_v63 = vadd.f32 %v4361_v46, %v4349_v35 }
 0x28e   :  { %v4375_v4 = vadd.f32 %v4374_v47, %v4362_v63 }
 0x293   :  { %v4387_v51 = vpop.f32.mrf.mxu2  ;;  %v4363_v20 = vpop.f32.mrf.mxu0 }
 0x294   :  { %v4400_v13 = vpop.f32.mrf.mxu3  ;;  %v4376_v18 = vpop.f32.mrf.mxu1  ;;  %v4388_v6 = vadd.f32 %v4387_v51, %v4375_v4 }
 0x296   :  { %v4401_v16 = vadd.f32 %v4400_v13, %v4388_v6  ;;  %v7586_v13 = vpop.eup %7585 }
 0x297   :  { %v4613_v18 = vmul.f32 %v7586_v13, %v4590_v15  ;;  %vm4619_vm10 = vweird.f32 %v7586_v13 }
 0x298   :  { %vm4620_vm12 = vmor %vm4618_vm11, %vm4619_vm10 }
 0x299   :  { %v4614_v42 = vmul.f32 %v7586_v13, %v4613_v18 }
 0x29b   :  { %v4389_v50 = vpop.f32.mrf.mxu2  ;;  %v4615_v57 = vmul.f32 0.5, %v4614_v42 }
 0x29c   :  { %v4402_v54 = vpop.f32.mrf.mxu3 }
 0x2ab   :  { %v4413_v60 = vpop.f32.mrf.mxu0 }
 0x2ac   :  { %v4426_v38 = vpop.f32.mrf.mxu1  ;;  %v4414_v26 = vadd.f32 %v4413_v60, %v4401_v16 }
 0x2ae   :  { %v4427_v59 = vadd.f32 %v4426_v38, %v4414_v26  ;;  %v4616_v38 = vsub.f32 1.5, %v4615_v57 }
 0x2b0   :  { %v4617_v62 = vmul.f32 %v7586_v13, %v4616_v38 }
 0x2b2   :  { %v4621_v63 = vsel %vm4620_vm12, %v7586_v13, %v4617_v62 }
 0x2b3   :  { %v4439_v49 = vpop.f32.mrf.mxu2  ;;  %v4415_v34 = vpop.f32.mrf.mxu0 }
 0x2b4   :  { %v4452_v1 = vpop.f32.mrf.mxu3  ;;  %v4428_v28 = vpop.f32.mrf.mxu1  ;;  %v4440_v52 = vadd.f32 %v4439_v49, %v4427_v59  ;;  %v4634_v34 = vmul.f32 %v4621_v63, %v7938_v22 }
 0x2b5   :  { %v7592_v28 = vld [vmem:[%s7962_s3] sm:$0xf] }
 0x2b6   :  { %v4453_v9 = vadd.f32 %v4452_v1, %v4440_v52  ;;  %v4640_v4 = vperm.slane %v7592_v28, 2  ;;  %v4641_v22 = vperm.slane %v7592_v28, 3 }
 0x2bb   :  { %v4441_v17 = vpop.f32.mrf.mxu2 }
 0x2bc   :  { %v4454_v24 = vpop.f32.mrf.mxu3  ;;  %v7593_v17 = vld [vmem:[%s7963_s4] sm:$0xf] }
 0x2bd   :  { %v4654_v24 = vperm.slane %v7593_v17, 2  ;;  %v4655_v29 = vperm.slane %v7593_v17, 3 }
 0x2cb   :  { %v4465_v10 = vpop.f32.mrf.mxu0 }
 0x2cc   :  { %v4478_v2 = vpop.f32.mrf.mxu1  ;;  %v4466_v11 = vadd.f32 %v4465_v10, %v4453_v9 }
 0x2ce   :  { %v4479_v27 = vadd.f32 %v4478_v2, %v4466_v11 }
 0x2d3   :  { %v4491_v14 = vpop.f32.mrf.mxu2  ;;  %v4467_v41 = vpop.f32.mrf.mxu0 }
 0x2d4   :  { %v4492_v39 = vadd.f32 %v4491_v14, %v4479_v27  ;;  %v4504_v25 = vpop.f32.mrf.mxu3  ;;  %v4480_v31 = vpop.f32.mrf.mxu1 }
 0x2d6   :  { %v4505_v53 = vadd.f32 %v4504_v25, %v4492_v39 }
 0x2d8   :  { %v4530_v3 = vsel %vm4508_vm0, %v4505_v53, 0.0 }
 0x2d9   :  { %v4531_v33 = vrot.slane %v4530_v3, 4 }
 0x2db   :  { %v4532_v19 = vadd.f32 %v4531_v33, %v4530_v3  ;;  %v4493_v37 = vpop.f32.mrf.mxu2 }
 0x2dc   :  { %v4506_v8 = vpop.f32.mrf.mxu3 }
 0x2dd   :  { %v4533_v35 = vrot.slane %v4532_v19, 2 }
 0x2df   :  { %v4534_v44 = vadd.f32 %v4533_v35, %v4532_v19 }
 0x2e1   :  { %v4535_v45 = vrot.slane %v4534_v44, 1 }
 0x2e3   :  { %v4536_v55 = vadd.f32 %v4535_v45, %v4534_v44 }
 0x2e5   :  { %v4547_v46 = vmul.f32 %v7804_v21, %v4536_v55 }
 0x2e7   :  { %v4551_v47 = vsub.f32 %v4505_v53, %v4547_v46 }
 0x2e9   :  { %v4555_v51 = vmul.f32 %v4551_v47, %v4551_v47 }
 0x2eb   :  { %v4577_v20 = vsel %vm4508_vm0, %v4555_v51, 0.0 }
 0x2ec   :  { %v4578_v43 = vrot.slane %v4577_v20, 4 }
 0x2ee   :  { %v4579_v48 = vadd.f32 %v4578_v43, %v4577_v20 }
 0x2f0   :  { %v4580_v50 = vrot.slane %v4579_v48, 2 }
 0x2f2   :  { %v4581_v54 = vadd.f32 %v4580_v50, %v4579_v48 }
 0x2f4   :  { %v4582_v56 = vrot.slane %v4581_v54, 1 }
 0x2f6   :  { %v4583_v58 = vadd.f32 %v4582_v56, %v4581_v54 }
 0x2f8   :  { %v4587_v60 = vmul.f32 %v4583_v58, %v7804_v21  ;;  %v4648_v21 = vmul.f32 %v4640_v4, %v4634_v34 }
 0x2fa   :  { %v4591_v61 = vadd.f32 0.8, %v4587_v60  ;;  %v4662_v26 = vadd.f32 %v4654_v24, %v4648_v21 }
 0x2fc   :  { %7587 = vrsqrt.f32 %v4591_v61  ;;  %vm4628_vm14 = vweird.f32 %v4591_v61  ;;  %v4670_v52 = vmul.f32 0.2, %v4662_v26  ;;  %vm4666_vm0 = vcmp.ge.f32.partialorder %v4662_v26, 0.0 }
 0x2fe   :  { %v4674_v10 = vsel %vm4666_vm0, %v4662_v26, %v4670_v52 }
 0x2ff   :  { %v4681_v0 = vrot.slane %v4674_v10, 4 }
 0x302   :  { %v7588_v49 = vpop.eup %7587 }
 0x303   :  { %v4623_v1 = vmul.f32 %v7588_v49, %v4591_v61  ;;  %vm4629_vm13 = vweird.f32 %v7588_v49 }
 0x304   :  { %vm4630_vm15 = vmor %vm4628_vm14, %vm4629_vm13 }
 0x305   :  { %v4624_v6 = vmul.f32 %v7588_v49, %v4623_v1 }
 0x307   :  { %v4625_v7 = vmul.f32 0.5, %v4624_v6 }
 0x309   :  { %v4626_v16 = vsub.f32 1.5, %v4625_v7 }
 0x30b   :  { %v4627_v5 = vmul.f32 %v7588_v49, %v4626_v16 }
 0x30d   :  { %v4631_v40 = vsel %vm4630_vm15, %v7588_v49, %v4627_v5 }
 0x30e   :  { %v4635_v59 = vmul.f32 %v4631_v40, %v4551_v47 }
 0x310   :  { %v4649_v32 = vmul.f32 %v4641_v22, %v4635_v59 }
 0x312   :  { %v4663_v9 = vadd.f32 %v4655_v29, %v4649_v32 }
 0x314   :  { %vm4667_vm1 = vcmp.ge.f32.partialorder %v4663_v9, 0.0  ;;  %v4671_v2 = vmul.f32 0.2, %v4663_v9 }
 0x316   :  { %v4675_v11 = vsel %vm4667_vm1, %v4663_v9, %v4671_v2 }
 0x317   :  { %v4682_v27 = vrot.slane %v4675_v11, 2 }
 0x319   :  { %v4685_v14 = vsel %vm4684_vm2, %v4681_v0, %v4682_v27 }
 0x31a   :  { %v4687_v30 = vsel %vm4686_vm3, %v7915_v12, %v4685_v14 }
 0x31b   :  { %4689 = vst [vmem:[%s7964_s5] sm:$0xff] %v4687_v30 }
 0x31c   :  { %4694 = vsyncpa [#allocation3], 1 }

// kernel: discriminator_forward.9
= control target key start
LH: loop header
LB: loop body
LE: loop exit
PB: predicated region body
PF: predicated region fallthrough
CT: control target
= control target key end

     0   :  { %s5599_s24 = smov 0   ;;  %s6347_s0 = inlined_call_operand.vmem [shape: f32[8,640], index: 0, kind: input, shape index: {}]   ;;  %s6348_s1 = inlined_call_operand.vmem [shape: bf16[640,128], index: 1, kind: input, shape index: {}]   ;;  %s6349_s2 = inlined_call_operand.vmem [shape: f32[1,128], index: 2, kind: input, shape index: {}]   ;;  %s6350_s3 = inlined_call_operand.vmem [shape: bf16[6,128,128], index: 3, kind: input, shape index: {}]   ;;  %s6351_s4 = inlined_call_operand.vmem [shape: f32[6,1,128], index: 4, kind: input, shape index: {}]   ;;  %s6352_s5 = inlined_call_operand.vmem [shape: bf16[6,128,128], index: 5, kind: input, shape index: {}]   ;;  %s6353_s6 = inlined_call_operand.vmem [shape: f32[6,1,128], index: 6, kind: input, shape index: {}]   ;;  %s6354_s7 = inlined_call_operand.vmem [shape: f32[6,1,128], index: 7, kind: input, shape index: {}]   ;;  %s6355_s8 = inlined_call_operand.vmem [shape: f32[6,1,128], index: 8, kind: input, shape index: {}]   ;;  %s6356_s9 = inlined_call_operand.vmem [shape: bf16[6,128,2048], index: 9, kind: input, shape index: {}]   ;;  %s6357_s10 = inlined_call_operand.vmem [shape: f32[6,1,2048], index: 10, kind: input, shape index: {}]   ;;  %s6358_s11 = inlined_call_operand.vmem [shape: bf16[6,2048,128], index: 11, kind: input, shape index: {}]   ;;  %s6359_s12 = inlined_call_operand.vmem [shape: f32[6,1,128], index: 12, kind: input, shape index: {}]   ;;  %s6360_s13 = inlined_call_operand.vmem [shape: f32[6,1,128], index: 13, kind: input, shape index: {}]   ;;  %s6361_s14 = inlined_call_operand.vmem [shape: f32[6,1,128], index: 14, kind: input, shape index: {}]   ;;  %s6362_s15 = inlined_call_operand.vmem [shape: bf16[128,128], index: 15, kind: input, shape index: {}]   ;;  %s6363_s16 = inlined_call_operand.vmem [shape: f32[1,128], index: 16, kind: input, shape index: {}]   ;;  %s6364_s17 = inlined_call_operand.vmem [shape: f32[8,128], index: 17, kind: output, shape index: {}]  }
   0x1   :  { %6369 = sst [smem:[#allocation4_spill]] %s6347_s0 }
   0x2   :  { %6370 = sst [smem:[#allocation5_spill]] %s6348_s1 }
   0x3   :  { %6371 = sst [smem:[#allocation6_spill]] %s6350_s3 }
   0x4   :  { %6372 = sst [smem:[#allocation7_spill]] %s6351_s4 }
   0x5   :  { %6373 = sst [smem:[#allocation8_spill]] %s6352_s5 }
   0x6   :  { %6374 = sst [smem:[#allocation9_spill]] %s6356_s9 }
   0x7   :  { %6375 = sst [smem:[#allocation10_spill]] %s6362_s15 }
   0x8   :  { %6376 = sst [smem:[#allocation11_spill]] %s6363_s16 }
   0x9   :  { %6377 = sst [smem:[#allocation12_spill]] %s6364_s17 }
   0xa LB: > { %6378 = sst [smem:[#allocation3_spill]] %s5506_s24  ;;  %s5605_s25 = sadd.s32 4294967295, %s5506_s24   ;;  %s5506_s24 = sphi %s5599_s24, %s27_s24  }
   0xb   : > { %p3858_p0 = scmp.ge.s32.totalorder %s5506_s24, 1  ;;  %p577_p1 = scmp.lt.s32.totalorder %s5506_s24, 7 }
   0xd   : > { %p578_p2 = pnand %p3858_p0, %p577_p1 }
   0xe   : > { %p664_p3 = scmp.lt.s32.totalorder (!%p578_p2), %s5605_s25, 5  ;;  %s6380_s3 = sld [smem:[#allocation6_spill]] (!%p578_p2) }
   0xf   : > { %581 = sbr.rel (%p578_p2) target bundleno = 1569 (0x621), region = 88  ;;  %s6381_s5 = sld [smem:[#allocation8_spill]] (!%p578_p2) }
  0x10   : > { %s6382_s9 = sld [smem:[#allocation9_spill]] (!%p578_p2)  ;;  %p3868_p4 = scmp.ne.s32.totalorder (!%p578_p2), %s5605_s25, 0 }
  0x14   : > { %s5611_s26 = scalar_select %p664_p3, %s5605_s25, 5 }
  0x15   : > { %s6383_s24 = sld [smem:[#allocation5_spill]] (!%p3868_p4) }
  0x16   : > { %s5152_s27 = sshll.u32 %s5611_s26, 6  ;;  %s5154_s30 = sshll.u32 %s5611_s26, 10 }
  0x17   : > { %s5621_s19 = scalar_lea.vmem %s6380_s3, %s5152_s27  ;;  %s5626_s21 = scalar_lea.vmem %s6381_s5, %s5152_s27 }
  0x18   : > { %s5644_s4 = scalar_lea.vmem %s6382_s9, %s5154_s30  ;;  %s3865_s27 = sshll.u32 %s5611_s26, 4 }
  0x19   : > { %s5650_s22 = scalar_lea.vmem %s6357_s10, %s3865_s27  ;;  %s5655_s16 = scalar_lea.vmem %s6358_s11, %s5154_s30 }
  0x1a   : > { %s702_s29 = scalar_lea.vmem %s6359_s12, %s5611_s26  ;;  %s705_s3 = scalar_lea.vmem %s6360_s13, %s5611_s26 }
  0x1b   : > { %s708_s9 = scalar_lea.vmem %s6361_s14, %s5611_s26  ;;  %712 = sbr.rel (%p3868_p4) target bundleno = 230 (0xe6), region = 92 }
  0x1c   : > { %s6384_s20 = smov (!%p3868_p4), %s6383_s24  ;;  %s6385_s28 = sld [smem:[#allocation4_spill]] (!%p3868_p4) }
  0x20   : > { %v5163_v0 = vld [vmem:[%s6383_s24 + $0x38] sm:$0xff]  ;;  %v5162_v3 = vld [vmem:[%s6384_s20 + $0x30] sm:$0xff]  ;;  %v5161_v8 = vld [vmem:[%s6384_s20 + $0x28] sm:$0xff] }
  0x21   : > { %v5179_v1 = vld [vmem:[%s6384_s20 + $0xb8] sm:$0xff]  ;;  %1047 = vmatpush.bf16.msra.mxu0 %v5163_v0  ;;  %v5178_v5 = vld [vmem:[%s6384_s20 + $0xb0] sm:$0xff]  ;;  %v5177_v9 = vld [vmem:[%s6384_s20 + $0xa8] sm:$0xff] }
  0x22   : > { %v5187_v2 = vld [vmem:[%s6384_s20 + $0xf8] sm:$0xff]  ;;  %1073 = vmatpush.bf16.msra.mxu2 %v5179_v1  ;;  %v5186_v6 = vld [vmem:[%s6384_s20 + $0xf0] sm:$0xff]  ;;  %v5185_v10 = vld [vmem:[%s6384_s20 + $0xe8] sm:$0xff] }
  0x23   : > { %v5171_v4 = vld [vmem:[%s6384_s20 + $0x78] sm:$0xff]  ;;  %1086 = vmatpush.bf16.msra.mxu3 %v5187_v2  ;;  %v5170_v7 = vld [vmem:[%s6384_s20 + $0x70] sm:$0xff]  ;;  %v5169_v11 = vld [vmem:[%s6384_s20 + $0x68] sm:$0xff] }
  0x24   : > { %1060 = vmatpush.bf16.msra.mxu1 %v5171_v4  ;;  %v5160_v12 = vld [vmem:[%s6384_s20 + $0x20] sm:$0xff]  ;;  %v5159_v16 = vld [vmem:[%s6384_s20 + $0x18] sm:$0xff]  ;;  %v5158_v20 = vld [vmem:[%s6384_s20 + $0x10] sm:$0xff] }
  0x25   : > { %1048 = vmatpush.bf16.msra.mxu0 %v5162_v3  ;;  %v5176_v13 = vld [vmem:[%s6384_s20 + $0xa0] sm:$0xff]  ;;  %v5175_v17 = vld [vmem:[%s6384_s20 + $0x98] sm:$0xff]  ;;  %v5174_v21 = vld [vmem:[%s6384_s20 + $0x90] sm:$0xff] }
  0x26   : > { %1074 = vmatpush.bf16.msra.mxu2 %v5178_v5  ;;  %v5184_v14 = vld [vmem:[%s6384_s20 + $0xe0] sm:$0xff]  ;;  %v5183_v18 = vld [vmem:[%s6384_s20 + $0xd8] sm:$0xff]  ;;  %v5182_v22 = vld [vmem:[%s6384_s20 + $0xd0] sm:$0xff] }
  0x27   : > { %1087 = vmatpush.bf16.msra.mxu3 %v5186_v6  ;;  %v5168_v15 = vld [vmem:[%s6384_s20 + $0x60] sm:$0xff]  ;;  %v5167_v19 = vld [vmem:[%s6384_s20 + $0x58] sm:$0xff]  ;;  %v5166_v23 = vld [vmem:[%s6384_s20 + $0x50] sm:$0xff] }
  0x28   : > { %1061 = vmatpush.bf16.msra.mxu1 %v5170_v7  ;;  %v5157_v24 = vld [vmem:[%s6384_s20 + $0x8] sm:$0xff]  ;;  %v5156_v28 = vld [vmem:[%s6384_s20] sm:$0xff]  ;;  %v5195_v30 = vld [vmem:[%s6384_s20 + $0x138] sm:$0xff] }
  0x29   : > { %1049 = vmatpush.bf16.msra.mxu0 %v5161_v8  ;;  %v5173_v25 = vld [vmem:[%s6384_s20 + $0x88] sm:$0xff]  ;;  %v713_v29 = vld [vmem:[%s6385_s28] sm:$0xff]  ;;  %v715_v32 = vld [vmem:[%s6385_s28 + $0x10] sm:$0xff] }
  0x2a   : > { %1075 = vmatpush.bf16.msra.mxu2 %v5177_v9  ;;  %v5181_v26 = vld [vmem:[%s6384_s20 + $0xc8] sm:$0xff]  ;;  %v5172_v31 = vld [vmem:[%s6384_s20 + $0x80] sm:$0xff]  ;;  %v716_v35 = vld [vmem:[%s6385_s28 + $0x18] sm:$0xff]  ;;  %v718_v36 = vpack.c.bf16 %v713_v29, %v713_v29  ;;  %v720_v38 = vpack.c.bf16 %v715_v32, %v715_v32 }
  0x2b   : > { %1088 = vmatpush.bf16.msra.mxu3 %v5185_v10  ;;  %v5165_v27 = vld [vmem:[%s6384_s20 + $0x48] sm:$0xff]  ;;  %v5180_v33 = vld [vmem:[%s6384_s20 + $0xc0] sm:$0xff]  ;;  %v5194_v39 = vld [vmem:[%s6384_s20 + $0x130] sm:$0xff]  ;;  %v721_v40 = vpack.c.bf16 %v716_v35, %v716_v35 }
  0x2c   : > { %1062 = vmatpush.bf16.msra.mxu1 %v5169_v11  ;;  %v5164_v34 = vld [vmem:[%s6384_s20 + $0x40] sm:$0xff]  ;;  %v714_v37 = vld [vmem:[%s6385_s28 + $0x8] sm:$0xff]  ;;  %v5191_v44 = vld [vmem:[%s6384_s20 + $0x118] sm:$0xff] }
  0x2d   : > { %1050 = vmatpush.bf16.msra.mxu0 %v5160_v12  ;;  %v719_v41 = vpack.c.bf16 %v714_v37, %v714_v37  ;;  %v5193_v42 = vld [vmem:[%s6384_s20 + $0x128] sm:$0xff]  ;;  %v5192_v43 = vld [vmem:[%s6384_s20 + $0x120] sm:$0xff]  ;;  %v5190_v45 = vld [vmem:[%s6384_s20 + $0x110] sm:$0xff] }
  0x2e   : > { %1076 = vmatpush.bf16.msra.mxu2 %v5176_v13  ;;  %v5189_v46 = vld [vmem:[%s6384_s20 + $0x108] sm:$0xff]  ;;  %v5188_v47 = vld [vmem:[%s6384_s20 + $0x100] sm:$0xff] }
  0x2f   : > { %1089 = vmatpush.bf16.msra.mxu3 %v5184_v14  ;;  %v717_v48 = vld [vmem:[%s6385_s28 + $0x20] sm:$0xff] }
  0x30   : > { %1063 = vmatpush.bf16.msra.mxu1 %v5168_v15  ;;  %v722_v49 = vpack.c.bf16 %v717_v48, %v717_v48  ;;  %v5485_v56 = vld [vmem:[%s6349_s2] ss:$0 sm:$0xff] }
  0x31   : > { %1051 = vmatpush.bf16.msra.mxu0 %v5159_v16 }
  0x32   : > { %1077 = vmatpush.bf16.msra.mxu2 %v5175_v17 }
  0x33   : > { %1090 = vmatpush.bf16.msra.mxu3 %v5183_v18 }
  0x34   : > { %1064 = vmatpush.bf16.msra.mxu1 %v5167_v19 }
  0x35   : > { %1052 = vmatpush.bf16.msra.mxu0 %v5158_v20 }
  0x36   : > { %1078 = vmatpush.bf16.msra.mxu2 %v5174_v21 }
  0x37   : > { %1091 = vmatpush.bf16.msra.mxu3 %v5182_v22 }
  0x38   : > { %1065 = vmatpush.bf16.msra.mxu1 %v5166_v23 }
  0x39   : > { %1053 = vmatpush.bf16.msra.mxu0 %v5157_v24 }
  0x3a   : > { %1079 = vmatpush.bf16.msra.mxu2 %v5173_v25 }
  0x3b   : > { %1092 = vmatpush.bf16.msra.mxu3 %v5181_v26 }
  0x3c   : > { %1066 = vmatpush.bf16.msra.mxu1 %v5165_v27 }
  0x3d   : > { %1054 = vmatpush.bf16.msra.mxu0 %v5156_v28 }
  0x3e   : > { %1080 = vmatpush.bf16.msra.mxu2 %v5172_v31 }
  0x3f   : > { %1093 = vmatpush.bf16.msra.mxu3 %v5180_v33 }
  0x40   : > { %1067 = vmatpush.bf16.msra.mxu1 %v5164_v34  ;;  %1055 = vmatmul.bf16.vlgmr.msra.gmra.mxu0 %v718_v36 }
  0x41   : > { %1099 = vmatpush.bf16.msrb.mxu0 %v5195_v30  ;;  %1081 = vmatmul.bf16.vlgmr.msra.gmra.mxu2 %v720_v38 }
  0x42   : > { %1094 = vmatmul.bf16.vlgmr.msra.gmra.mxu3 %v721_v40 }
  0x43   : > { %1068 = vmatmul.bf16.vlgmr.msra.gmra.mxu1 %v719_v41 }
  0x45   : > { %1100 = vmatpush.bf16.msrb.mxu0 %v5194_v39 }
  0x49   : > { %1101 = vmatpush.bf16.msrb.mxu0 %v5193_v42 }
  0x4d   : > { %1102 = vmatpush.bf16.msrb.mxu0 %v5192_v43 }
  0x51   : > { %1103 = vmatpush.bf16.msrb.mxu0 %v5191_v44 }
  0x55   : > { %1104 = vmatpush.bf16.msrb.mxu0 %v5190_v45 }
  0x59   : > { %1105 = vmatpush.bf16.msrb.mxu0 %v5189_v46 }
  0x5d   : > { %1106 = vmatpush.bf16.msrb.mxu0 %v5188_v47 }
  0x60   : > { %1107 = vmatmul.bf16.vlgmr.msrb.gmra.mxu0 %v722_v49 }
  0xbd   : > { %v1056_v50 = vpop.f32.mrf.mxu0 }
  0xbe   : > { %v1057_v58 = vadd.f32 %v5485_v56, %v1056_v50 }
  0xc0   : > { %v1069_v51 = vpop.f32.mrf.mxu1 }
  0xc1   : > { %v1070_v60 = vadd.f32 %v1069_v51, %v1057_v58 }
  0xc4   : > { %v1082_v52 = vpop.f32.mrf.mxu2 }
  0xc5   : > { %v1058_v53 = vpop.f32.mrf.mxu0  ;;  %v1095_v54 = vpop.f32.mrf.mxu3  ;;  %v1083_v61 = vadd.f32 %v1082_v52, %v1070_v60 }
  0xc7   : > { %v1096_v62 = vadd.f32 %v1095_v54, %v1083_v61 }
  0xc8   : > { %v1071_v55 = vpop.f32.mrf.mxu1 }
  0xcc   : > { %v1084_v57 = vpop.f32.mrf.mxu2 }
  0xcd   : > { %v1097_v59 = vpop.f32.mrf.mxu3 }
  0xdd   : > { %v1108_v63 = vpop.f32.mrf.mxu0 }
  0xde   : > { %v1109_v0 = vadd.f32 %v1108_v63, %v1096_v62 }
  0xe0   : > { %1112 = vst [vmem:[#allocation2] sm:$0xff] %v1109_v0 }
  0xe5   : > { %v1110_v1 = vpop.f32.mrf.mxu0 }
  0xe6 PF: > { %v5203_v2 = vld [vmem:[%s5621_s19 + $0x38] sm:$0xff]  ;;  %v5202_v3 = vld [vmem:[%s5621_s19 + $0x30] sm:$0xff]  ;;  %v5201_v5 = vld [vmem:[%s5621_s19 + $0x28] sm:$0xff]  ;;  %s6386_s27 = sld [smem:[#allocation7_spill]]  ;;  %s6388_s30 = scalar_lea.vmem %s6353_s6, %s5611_s26  ;;  %v5508_v30 = vmov 128.0  }
  0xe7   : > { %1183 = vmatpush.bf16.msra.mxu0 %v5203_v2  ;;  %v5211_v4 = vld [vmem:[%s5626_s21 + $0x38] sm:$0xff]  ;;  %v5210_v6 = vld [vmem:[%s5626_s21 + $0x30] sm:$0xff]  ;;  %v5209_v7 = vld [vmem:[%s5626_s21 + $0x28] sm:$0xff]  ;;  %5493 = vrcp.f32 %v5508_v30  ;;  %s6389_s17 = scalar_lea.vmem %s6354_s7, %s5611_s26  ;;  %s6390_s5 = scalar_lea.vmem %s6355_s8, %s5611_s26 }
  0xe8   : > { %1265 = vmatpush.bf16.msra.mxu1 %v5211_v4  ;;  %v5200_v8 = vld [vmem:[%s5621_s19 + $0x20] sm:$0xff]  ;;  %v5199_v10 = vld [vmem:[%s5621_s19 + $0x18] sm:$0xff]  ;;  %v5198_v12 = vld [vmem:[%s5621_s19 + $0x10] sm:$0xff]  ;;  %p5117_p5 = scmp.ne.s32.totalorder %s5605_s25, 5 }
  0xe9   : > { %v5208_v9 = vld [vmem:[%s5626_s21 + $0x20] sm:$0xff]  ;;  %v5207_v11 = vld [vmem:[%s5626_s21 + $0x18] sm:$0xff]  ;;  %v5206_v13 = vld [vmem:[%s5626_s21 + $0x10] sm:$0xff]  ;;  %s6391_s24 = sld [smem:[#allocation10_spill]] (!%p5117_p5) }
  0xea   : > { %v5197_v14 = vld [vmem:[%s5621_s19 + $0x8] sm:$0xff]  ;;  %v5196_v16 = vld [vmem:[%s5621_s19] sm:$0xff] }
  0xeb   : > { %1184 = vmatpush.bf16.msra.mxu0 %v5202_v3  ;;  %v5205_v15 = vld [vmem:[%s5626_s21 + $0x8] sm:$0xff]  ;;  %v1113_v17 = vld [vmem:[#allocation2] sm:$0xff] }
  0xec   : > { %1266 = vmatpush.bf16.msra.mxu1 %v5210_v6  ;;  %v1114_v18 = vpack.c.bf16 %v1113_v17, %v1113_v17  ;;  %v5204_v19 = vld [vmem:[%s5626_s21] sm:$0xff]  ;;  %s6387_s1 = scalar_lea.vmem %s6386_s27, %s5611_s26  ;;  %v4551_v38 = vld [vmem:[%s5644_s4 + $0x388] sm:$0xf]  ;;  %v5325_v42 = vld [vmem:[%s5644_s4 + $0x38c] sm:$0xf] }
  0xed   : > { %v5486_v20 = vld [vmem:[%s6387_s1] ss:$0 sm:$0xff]  ;;  %v5837_v31 = vpop.eup %5493  ;;  %v5324_v35 = vld [vmem:[%s5644_s4 + $0x384] sm:$0xf]  ;;  %v5333_v39 = vld [vmem:[%s5644_s4 + $0x3c4] sm:$0xf0] }
  0xee   : > { %v5487_v25 = vld [vmem:[%s6388_s30] ss:$0 sm:$0xff]  ;;  %v5840_v32 = vmul.f32 128.0, %v5837_v31  ;;  %v4545_v37 = vld [vmem:[%s5644_s4 + $0x3c0] sm:$0xf0]  ;;  %v4552_v41 = vor.u32 %v5333_v39, %v4551_v38  ;;  %vm1286_vm0 = vweird.f32 %v5837_v31  ;;  %s6393_s1 = sld [smem:[#allocation11_spill]] (!%p5117_p5) }
  0xef   : > { %1185 = vmatpush.bf16.msra.mxu0 %v5201_v5  ;;  %v4543_v33 = vld [vmem:[%s5644_s4 + $0x380] sm:$0xf]  ;;  %v4548_v40 = vor.u32 %v5324_v35, %v4545_v37  ;;  %v4553_v43 = vld [vmem:[%s5644_s4 + $0x3c8] sm:$0xf0]  ;;  %v5308_v47 = vld [vmem:[%s5644_s4 + $0x304] sm:$0xf]  ;;  %s6392_s30 = smov (!%p5117_p5), %s6391_s24 }
  0xf0   : > { %1267 = vmatpush.bf16.msra.mxu1 %v5209_v7  ;;  %v5332_v34 = vld [vmem:[%s5644_s4 + $0x3bc] sm:$0xf0]  ;;  %v4556_v45 = vor.u32 %v5325_v42, %v4553_v43  ;;  %v4481_v48 = vld [vmem:[%s5644_s4 + $0x340] sm:$0xf0]  ;;  %v4487_v51 = vld [vmem:[%s5644_s4 + $0x308] sm:$0xf] }
  0xf1   : > { %v4544_v36 = vor.u32 %v5332_v34, %v4543_v33  ;;  %v4479_v44 = vld [vmem:[%s5644_s4 + $0x300] sm:$0xf]  ;;  %2134 = vmatpush.bf16.msra.mxu3 %v4548_v40  ;;  %v4484_v50 = vor.u32 %v5308_v47, %v4481_v48  ;;  %v5317_v52 = vld [vmem:[%s5644_s4 + $0x344] sm:$0xf0]  ;;  %v5309_v53 = vld [vmem:[%s5644_s4 + $0x30c] sm:$0xf] }
  0xf2   : > { %v5316_v46 = vld [vmem:[%s5644_s4 + $0x33c] sm:$0xf0]  ;;  %v4488_v54 = vor.u32 %v5317_v52, %v4487_v51  ;;  %v4489_v55 = vld [vmem:[%s5644_s4 + $0x348] sm:$0xf0]  ;;  %v5292_v59 = vld [vmem:[%s5644_s4 + $0x284] sm:$0xf] }
  0xf3   : > { %1186 = vmatpush.bf16.msra.mxu0 %v5200_v8  ;;  %2121 = vmatpush.bf16.msra.mxu2 %v4544_v36  ;;  %v4480_v49 = vor.u32 %v5316_v46, %v4479_v44  ;;  %v4415_v56 = vld [vmem:[%s5644_s4 + $0x280] sm:$0xf]  ;;  %v4492_v58 = vor.u32 %v5309_v53, %v4489_v55  ;;  %v4417_v60 = vld [vmem:[%s5644_s4 + $0x2c0] sm:$0xf0]  ;;  %v4423_v61 = vld [vmem:[%s5644_s4 + $0x288] sm:$0xf] }
  0xf4   : > { %1268 = vmatpush.bf16.msra.mxu1 %v5208_v9  ;;  %v5300_v57 = vld [vmem:[%s5644_s4 + $0x2bc] sm:$0xf0]  ;;  %v5301_v63 = vld [vmem:[%s5644_s4 + $0x2c4] sm:$0xf0]  ;;  %v5293_v0 = vld [vmem:[%s5644_s4 + $0x28c] sm:$0xf]  ;;  %v4420_v2 = vor.u32 %v5292_v59, %v4417_v60 }
  0xf5   : > { %v4416_v62 = vor.u32 %v5300_v57, %v4415_v56  ;;  %v4425_v1 = vld [vmem:[%s5644_s4 + $0x2c8] sm:$0xf0]  ;;  %2135 = vmatpush.bf16.msra.mxu3 %v4484_v50  ;;  %v4424_v3 = vor.u32 %v5301_v63, %v4423_v61  ;;  %v4351_v4 = vld [vmem:[%s5644_s4 + $0x200] sm:$0xf]  ;;  %v5276_v6 = vld [vmem:[%s5644_s4 + $0x204] sm:$0xf] }
  0xf6   : > { %v5284_v5 = vld [vmem:[%s5644_s4 + $0x23c] sm:$0xf0]  ;;  %v4428_v7 = vor.u32 %v5293_v0, %v4425_v1  ;;  %v4353_v8 = vld [vmem:[%s5644_s4 + $0x240] sm:$0xf0]  ;;  %v4359_v9 = vld [vmem:[%s5644_s4 + $0x208] sm:$0xf] }
  0xf7   : > { %1187 = vmatpush.bf16.msra.mxu0 %v5199_v10  ;;  %2122 = vmatpush.bf16.msra.mxu2 %v4480_v49  ;;  %v5285_v10 = vld [vmem:[%s5644_s4 + $0x244] sm:$0xf0]  ;;  %v5252_v33 = vld [vmem:[%s5644_s4 + $0x13c] sm:$0xf0]  ;;  %v5244_v34 = vld [vmem:[%s5644_s4 + $0x104] sm:$0xf] }
  0xf8   : > { %1269 = vmatpush.bf16.msra.mxu1 %v5207_v11  ;;  %v5277_v11 = vld [vmem:[%s5644_s4 + $0x20c] sm:$0xf]  ;;  %v4225_v36 = vld [vmem:[%s5644_s4 + $0x140] sm:$0xf0]  ;;  %v4231_v37 = vld [vmem:[%s5644_s4 + $0x108] sm:$0xf] }
  0xf9   : > { %2136 = vmatpush.bf16.msra.mxu3 %v4420_v2  ;;  %v5253_v38 = vld [vmem:[%s5644_s4 + $0x144] sm:$0xf0]  ;;  %v5245_v39 = vld [vmem:[%s5644_s4 + $0x10c] sm:$0xf]  ;;  %v4228_v43 = vor.u32 %v5244_v34, %v4225_v36  ;;  %v5236_v46 = vld [vmem:[%s5644_s4 + $0xbc] sm:$0xf0] }
  0xfa   : > { %v4233_v40 = vld [vmem:[%s5644_s4 + $0x148] sm:$0xf0]  ;;  %v4232_v44 = vor.u32 %v5253_v38, %v4231_v37  ;;  %v5228_v47 = vld [vmem:[%s5644_s4 + $0x84] sm:$0xf]  ;;  %v4167_v50 = vld [vmem:[%s5644_s4 + $0x88] sm:$0xf] }
  0xfb   : > { %1188 = vmatpush.bf16.msra.mxu0 %v5198_v12  ;;  %v4361_v12 = vld [vmem:[%s5644_s4 + $0x248] sm:$0xf0]  ;;  %2123 = vmatpush.bf16.msra.mxu2 %v4416_v62  ;;  %v4236_v48 = vor.u32 %v5245_v39, %v4233_v40  ;;  %v4161_v49 = vld [vmem:[%s5644_s4 + $0xc0] sm:$0xf0]  ;;  %v5237_v51 = vld [vmem:[%s5644_s4 + $0xc4] sm:$0xf0] }
  0xfc   : > { %1270 = vmatpush.bf16.msra.mxu1 %v5206_v13  ;;  %v1283_v13 = vsub.f32 1.0, %v5840_v32  ;;  %v4223_v32 = vld [vmem:[%s5644_s4 + $0x100] sm:$0xf]  ;;  %v5229_v52 = vld [vmem:[%s5644_s4 + $0x8c] sm:$0xf]  ;;  %v4164_v56 = vor.u32 %v5228_v47, %v4161_v49  ;;  %v4168_v57 = vor.u32 %v5237_v51, %v4167_v50 }
  0xfd   : > { %v4224_v42 = vor.u32 %v5252_v33, %v4223_v32  ;;  %v4169_v53 = vld [vmem:[%s5644_s4 + $0xc8] sm:$0xf0]  ;;  %v4095_v62 = vld [vmem:[%s5644_s4] sm:$0xf]  ;;  %v5212_v0 = vld [vmem:[%s5644_s4 + $0x4] sm:$0xf] }
  0xfe   : > { %v4172_v59 = vor.u32 %v5229_v52, %v4169_v53  ;;  %v5220_v63 = vld [vmem:[%s5644_s4 + $0x3c] sm:$0xf0]  ;;  %v4097_v2 = vld [vmem:[%s5644_s4 + $0x40] sm:$0xf0]  ;;  %v4505_v32 = vld [vmem:[%s5644_s4 + $0x358] sm:$0xf0] }
  0xff   : > { %1189 = vmatpush.bf16.msra.mxu0 %v5197_v14  ;;  %v4352_v14 = vor.u32 %v5284_v5, %v4351_v4  ;;  %v4096_v1 = vor.u32 %v5220_v63, %v4095_v62  ;;  %v4100_v4 = vor.u32 %v5212_v0, %v4097_v2  ;;  %v5302_v36 = vld [vmem:[%s5644_s4 + $0x2cc] sm:$0xf0]  ;;  %v5294_v37 = vld [vmem:[%s5644_s4 + $0x294] sm:$0xf]  ;;  %v4439_v40 = vld [vmem:[%s5644_s4 + $0x298] sm:$0xf] }
 0x100   : > { %1271 = vmatpush.bf16.msra.mxu1 %v5205_v15  ;;  %v4356_v15 = vor.u32 %v5276_v6, %v4353_v8  ;;  %v5213_v6 = vld [vmem:[%s5644_s4 + $0xc] sm:$0xf]  ;;  %v4559_v8 = vld [vmem:[%s5644_s4 + $0x390] sm:$0xf]  ;;  %v4433_v39 = vld [vmem:[%s5644_s4 + $0x2d0] sm:$0xf0] }
 0x101   : > { %2124 = vmatpush.bf16.msra.mxu2 %v4352_v14  ;;  %v4367_v47 = vld [vmem:[%s5644_s4 + $0x210] sm:$0xf]  ;;  %v5278_v49 = vld [vmem:[%s5644_s4 + $0x214] sm:$0xf]  ;;  %v4375_v52 = vld [vmem:[%s5644_s4 + $0x218] sm:$0xf] }
 0x102   : > { %2137 = vmatpush.bf16.msra.mxu3 %v4356_v15  ;;  %v4567_v15 = vld [vmem:[%s5644_s4 + $0x398] sm:$0xf]  ;;  %v4369_v51 = vld [vmem:[%s5644_s4 + $0x250] sm:$0xf0] }
 0x103   : > { %1190 = vmatpush.bf16.msra.mxu0 %v5196_v16  ;;  %v4360_v16 = vor.u32 %v5285_v10, %v4359_v9  ;;  %v5334_v10 = vld [vmem:[%s5644_s4 + $0x3cc] sm:$0xf0]  ;;  %v5287_v53 = vld [vmem:[%s5644_s4 + $0x254] sm:$0xf0]  ;;  %v5262_v62 = vld [vmem:[%s5644_s4 + $0x194] sm:$0xf] }
 0x104   : > { %1272 = vmatpush.bf16.msra.mxu1 %v5204_v19  ;;  %v5260_v19 = vld [vmem:[%s5644_s4 + $0x184] sm:$0xf]  ;;  %v4305_v0 = vld [vmem:[%s5644_s4 + $0x1d0] sm:$0xf0]  ;;  %v5271_v2 = vld [vmem:[%s5644_s4 + $0x1d4] sm:$0xf0] }
 0x106   : > { %1191 = vmatmul.bf16.vlgmr.msra.gmra.mxu0 %v1114_v18  ;;  %v5268_v18 = vld [vmem:[%s5644_s4 + $0x1bc] sm:$0xf0] }
 0x107   : > { %2147 = vmatpush.bf16.msrb.mxu0 %v4552_v41 }
 0x108   : > { %2160 = vmatpush.bf16.msrb.mxu1 %v4556_v45  ;;  %v4159_v45 = vld [vmem:[%s5644_s4 + $0x80] sm:$0xf] }
 0x109   : > { %v4160_v55 = vor.u32 %v5236_v46, %v4159_v45  ;;  %v4441_v45 = vld [vmem:[%s5644_s4 + $0x2d8] sm:$0xf0] }
 0x10b   : > { %2148 = vmatpush.bf16.msrb.mxu0 %v4488_v54 }
 0x10c   : > { %2161 = vmatpush.bf16.msrb.mxu1 %v4492_v58 }
 0x10f   : > { %2149 = vmatpush.bf16.msrb.mxu0 %v4424_v3  ;;  %v4103_v3 = vld [vmem:[%s5644_s4 + $0x8] sm:$0xf] }
 0x110   : > { %2162 = vmatpush.bf16.msrb.mxu1 %v4428_v7  ;;  %v4105_v7 = vld [vmem:[%s5644_s4 + $0x48] sm:$0xf0] }
 0x111   : > { %v4108_v9 = vor.u32 %v5213_v6, %v4105_v7  ;;  %v4239_v7 = vld [vmem:[%s5644_s4 + $0x110] sm:$0xf] }
 0x113   : > { %2150 = vmatpush.bf16.msrb.mxu0 %v4360_v16  ;;  %v5335_v16 = vld [vmem:[%s5644_s4 + $0x3d4] sm:$0xf0] }
 0x183   : > { %v1192_v21 = vpop.f32.mrf.mxu0 }
 0x184   : > { %v1193_v22 = vadd.f32 %v5486_v20, %v1192_v21  ;;  %v4364_v20 = vor.u32 %v5277_v11, %v4361_v12  ;;  %v4289_v21 = vld [vmem:[%s5644_s4 + $0x1c0] sm:$0xf0]  ;;  %v5326_v11 = vld [vmem:[%s5644_s4 + $0x394] sm:$0xf] }
 0x185   : > { %v4561_v12 = vld [vmem:[%s5644_s4 + $0x3d0] sm:$0xf0] }
 0x186   : > { %v1196_v23 = vpack.c.bf16 %v1193_v22, %v1193_v22  ;;  %v4295_v22 = vld [vmem:[%s5644_s4 + $0x188] sm:$0xf]  ;;  %2163 = vmatpush.bf16.msrb.mxu1 %v4364_v20  ;;  %v4564_v14 = vor.u32 %v5326_v11, %v4561_v12  ;;  %v4495_v20 = vld [vmem:[%s5644_s4 + $0x310] sm:$0xf]  ;;  %v4241_v11 = vld [vmem:[%s5644_s4 + $0x150] sm:$0xf0] }
 0x187   : > { %v4247_v12 = vld [vmem:[%s5644_s4 + $0x118] sm:$0xf] }
 0x188   : > { %1273 = vmatmul.bf16.vlgmr.msra.gmra.mxu1 %v1196_v23  ;;  %v5269_v23 = vld [vmem:[%s5644_s4 + $0x1c4] sm:$0xf0] }
 0x189   : > { %v4296_v30 = vor.u32 %v5269_v23, %v4295_v22 }
 0x18b   : > { %v1194_v24 = vpop.f32.mrf.mxu0  ;;  %2151 = vmatpush.bf16.msrb.mxu0 %v4296_v30  ;;  %v5311_v30 = vld [vmem:[%s5644_s4 + $0x31c] sm:$0xf] }
 0x18c   : > { %v5261_v24 = vld [vmem:[%s5644_s4 + $0x18c] sm:$0xf]  ;;  %v4508_v34 = vor.u32 %v5311_v30, %v4505_v32  ;;  %v4185_v30 = vld [vmem:[%s5644_s4 + $0xd8] sm:$0xf0] }
 0x18f   : > { %2152 = vmatpush.bf16.msrb.mxu0 %v4232_v44  ;;  %v5295_v44 = vld [vmem:[%s5644_s4 + $0x29c] sm:$0xf] }
 0x190   : > { %v4444_v46 = vor.u32 %v5295_v44, %v4441_v45 }
 0x193   : > { %2153 = vmatpush.bf16.msrb.mxu0 %v4168_v57  ;;  %v5279_v57 = vld [vmem:[%s5644_s4 + $0x21c] sm:$0xf] }
 0x205   : > { %v1274_v26 = vpop.f32.mrf.mxu1 }
 0x206   : > { %v1275_v27 = vadd.f32 %v5487_v25, %v1274_v26  ;;  %v4297_v25 = vld [vmem:[%s5644_s4 + $0x1c8] sm:$0xf0]  ;;  %v1284_v26 = vmul.f32 %v5837_v31, %v1283_v13  ;;  %v4560_v13 = vor.u32 %v5334_v10, %v4559_v8  ;;  %v5254_v8 = vld [vmem:[%s5644_s4 + $0x14c] sm:$0xf0] }
 0x207   : > { %v4300_v35 = vor.u32 %v5261_v24, %v4297_v25  ;;  %v5310_v24 = vld [vmem:[%s5644_s4 + $0x314] sm:$0xf]  ;;  %v4240_v10 = vor.u32 %v5254_v8, %v4239_v7  ;;  %v5320_v7 = vld [vmem:[%s5644_s4 + $0x35c] sm:$0xf0] }
 0x208   : > { %v5834_v28 = vadd.f32 %v1275_v27, %v1113_v17  ;;  %v4287_v17 = vld [vmem:[%s5644_s4 + $0x180] sm:$0xf]  ;;  %v1285_v41 = vadd.f32 %v5837_v31, %v1284_v26  ;;  %v4497_v25 = vld [vmem:[%s5644_s4 + $0x350] sm:$0xf0]  ;;  %v4503_v26 = vld [vmem:[%s5644_s4 + $0x318] sm:$0xf] }
 0x209   : > { %v4288_v27 = vor.u32 %v5268_v18, %v4287_v17  ;;  %2164 = vmatpush.bf16.msrb.mxu1 %v4300_v35  ;;  %v5327_v17 = vld [vmem:[%s5644_s4 + $0x39c] sm:$0xf]  ;;  %v4568_v18 = vor.u32 %v5335_v16, %v4567_v15  ;;  %v4431_v35 = vld [vmem:[%s5644_s4 + $0x290] sm:$0xf] }
 0x20a   : > { %1279 = vadd.xlane.f32.xlu0 %v5834_v28  ;;  %v5903_v54 = vsel %vm1286_vm0, %v5837_v31, %v1285_v41  ;;  %v4432_v38 = vor.u32 %v5302_v36, %v4431_v35  ;;  %v5303_v41 = vld [vmem:[%s5644_s4 + $0x2d4] sm:$0xf0]  ;;  %v5247_v16 = vld [vmem:[%s5644_s4 + $0x11c] sm:$0xf]  ;;  %v5214_v35 = vld [vmem:[%s5644_s4 + $0x14] sm:$0xf] }
 0x20b   : > { %2125 = vmatpush.bf16.msra.mxu2 %v4288_v27  ;;  %v4500_v27 = vor.u32 %v5310_v24, %v4497_v25  ;;  %v4183_v24 = vld [vmem:[%s5644_s4 + $0x98] sm:$0xf] }
 0x20c   : > { %v5239_v25 = vld [vmem:[%s5644_s4 + $0xd4] sm:$0xf0] }
 0x20d   : > { %v1276_v29 = vpop.f32.mrf.mxu1  ;;  %2165 = vmatpush.bf16.msrb.mxu1 %v4236_v48  ;;  %v5286_v48 = vld [vmem:[%s5644_s4 + $0x24c] sm:$0xf0] }
 0x20e   : > { %v4292_v29 = vor.u32 %v5260_v19, %v4289_v21  ;;  %v4569_v19 = vld [vmem:[%s5644_s4 + $0x3d8] sm:$0xf0]  ;;  %v5318_v21 = vld [vmem:[%s5644_s4 + $0x34c] sm:$0xf0]  ;;  %v4368_v50 = vor.u32 %v5286_v48, %v4367_v47 }
 0x20f   : > { %2126 = vmatpush.bf16.msra.mxu2 %v4224_v42  ;;  %v4572_v22 = vor.u32 %v5327_v17, %v4569_v19  ;;  %v4496_v23 = vor.u32 %v5318_v21, %v4495_v20  ;;  %v4436_v42 = vor.u32 %v5294_v37, %v4433_v39  ;;  %v4249_v17 = vld [vmem:[%s5644_s4 + $0x158] sm:$0xf0]  ;;  %v4175_v19 = vld [vmem:[%s5644_s4 + $0x90] sm:$0xf]  ;;  %v5230_v21 = vld [vmem:[%s5644_s4 + $0x94] sm:$0xf] }
 0x210   : > { %2138 = vmatpush.bf16.msra.mxu3 %v4292_v29  ;;  %v5319_v29 = vld [vmem:[%s5644_s4 + $0x354] sm:$0xf0]  ;;  %v5238_v20 = vld [vmem:[%s5644_s4 + $0xcc] sm:$0xf0]  ;;  %v4113_v37 = vld [vmem:[%s5644_s4 + $0x50] sm:$0xf0] }
 0x211   : > { %2166 = vmatpush.bf16.msrb.mxu1 %v4172_v59  ;;  %v4504_v33 = vor.u32 %v5319_v29, %v4503_v26  ;;  %v5231_v29 = vld [vmem:[%s5644_s4 + $0x9c] sm:$0xf]  ;;  %v5223_v39 = vld [vmem:[%s5644_s4 + $0x54] sm:$0xf0] }
 0x212   : > { %v4188_v32 = vor.u32 %v5231_v29, %v4185_v30 }
 0x213   : > { %2127 = vmatpush.bf16.msra.mxu2 %v4160_v55  ;;  %v4372_v55 = vor.u32 %v5278_v49, %v4369_v51 }
 0x214   : > { %2139 = vmatpush.bf16.msra.mxu3 %v4228_v43  ;;  %v4440_v43 = vor.u32 %v5303_v41, %v4439_v40  ;;  %v4116_v40 = vor.u32 %v5214_v35, %v4113_v37  ;;  %v4385_v37 = vld [vmem:[%s5644_s4 + $0x260] sm:$0xf0] }
 0x215   : > { %2167 = vmatpush.bf16.msrb.mxu1 %v4108_v9  ;;  %v5246_v9 = vld [vmem:[%s5644_s4 + $0x114] sm:$0xf] }
 0x217   : > { %2128 = vmatpush.bf16.msra.mxu2 %v4096_v1  ;;  %v4311_v1 = vld [vmem:[%s5644_s4 + $0x198] sm:$0xf] }
 0x218   : > { %2140 = vmatpush.bf16.msra.mxu3 %v4164_v56  ;;  %v4376_v56 = vor.u32 %v5287_v53, %v4375_v52 }
 0x219   : > { %2212 = vmatpush.bf16.msra.mxu1 %v4572_v22  ;;  %v4176_v22 = vor.u32 %v5238_v20, %v4175_v19  ;;  %v5304_v19 = vld [vmem:[%s5644_s4 + $0x2dc] sm:$0xf0] }
 0x21b   : > { %2173 = vmatpush.bf16.msrb.mxu2 %v4560_v13  ;;  %v5255_v13 = vld [vmem:[%s5644_s4 + $0x154] sm:$0xf0] }
 0x21c   : > { %2141 = vmatpush.bf16.msra.mxu3 %v4100_v4  ;;  %v5263_v4 = vld [vmem:[%s5644_s4 + $0x19c] sm:$0xf]  ;;  %v4248_v15 = vor.u32 %v5255_v13, %v4247_v12  ;;  %v4519_v12 = vld [vmem:[%s5644_s4 + $0x328] sm:$0xf] }
 0x21d   : > { %2213 = vmatpush.bf16.msra.mxu1 %v4508_v34  ;;  %v5222_v34 = vld [vmem:[%s5644_s4 + $0x4c] sm:$0xf0]  ;;  %v5321_v13 = vld [vmem:[%s5644_s4 + $0x364] sm:$0xf0] }
 0x21e   : > { %v4520_v20 = vor.u32 %v5321_v13, %v4519_v12  ;;  %v5241_v12 = vld [vmem:[%s5644_s4 + $0xe4] sm:$0xf0]  ;;  %v5233_v13 = vld [vmem:[%s5644_s4 + $0xac] sm:$0xf] }
 0x21f   : > { %2174 = vmatpush.bf16.msrb.mxu2 %v4496_v23  ;;  %v4177_v23 = vld [vmem:[%s5644_s4 + $0xd0] sm:$0xf0] }
 0x220   : > { %2186 = vmatpush.bf16.msrb.mxu3 %v4564_v14  ;;  %v4244_v14 = vor.u32 %v5246_v9, %v4241_v11  ;;  %v4180_v26 = vor.u32 %v5230_v21, %v4177_v23  ;;  %v4513_v11 = vld [vmem:[%s5644_s4 + $0x360] sm:$0xf0] }
 0x221   : > { %2214 = vmatpush.bf16.msra.mxu1 %v4444_v46  ;;  %v4449_v23 = vld [vmem:[%s5644_s4 + $0x2e0] sm:$0xf0] }
 0x223   : > { %2175 = vmatpush.bf16.msrb.mxu2 %v4432_v38  ;;  %v4119_v38 = vld [vmem:[%s5644_s4 + $0x18] sm:$0xf] }
 0x224   : > { %2187 = vmatpush.bf16.msrb.mxu3 %v4500_v27  ;;  %v4184_v27 = vor.u32 %v5239_v25, %v4183_v24  ;;  %v4120_v41 = vor.u32 %v5223_v39, %v4119_v38  ;;  %v4455_v24 = vld [vmem:[%s5644_s4 + $0x2a8] sm:$0xf] }
 0x225   : > { %v5305_v25 = vld [vmem:[%s5644_s4 + $0x2e4] sm:$0xf0] }
 0x226   : > { %v4391_v38 = vld [vmem:[%s5644_s4 + $0x228] sm:$0xf] }
 0x227   : > { %2176 = vmatpush.bf16.msrb.mxu2 %v4368_v50  ;;  %v5289_v39 = vld [vmem:[%s5644_s4 + $0x264] sm:$0xf0] }
 0x228   : > { %2188 = vmatpush.bf16.msrb.mxu3 %v4436_v42  ;;  %v5215_v42 = vld [vmem:[%s5644_s4 + $0x1c] sm:$0xf] }
 0x22c   : > { %2189 = vmatpush.bf16.msrb.mxu3 %v4372_v55  ;;  %v5488_v55 = vld [vmem:[%s6389_s17] ss:$0 sm:$0xff] }
 0x27d   : > { %v1280_v58 = vpop.xlane.xlu0 %1279 }
 0x27e   : > { %v1288_v60 = vmul.f32 %v5903_v54, %v1280_v58  ;;  %v4377_v58 = vld [vmem:[%s5644_s4 + $0x258] sm:$0xf0] }
 0x27f   : > { %v4380_v59 = vor.u32 %v5279_v57, %v4377_v58  ;;  %v5489_v57 = vld [vmem:[%s6390_s5] ss:$0 sm:$0xff] }
 0x280   : > { %v5907_v31 = vsub.f32 %v5834_v28, %v1288_v60  ;;  %v5221_v28 = vld [vmem:[%s5644_s4 + $0x44] sm:$0xf0]  ;;  %v4303_v60 = vld [vmem:[%s5644_s4 + $0x190] sm:$0xf] }
 0x281   : > { %v4104_v5 = vor.u32 %v5221_v28, %v4103_v3  ;;  %v4308_v3 = vor.u32 %v5262_v62, %v4305_v0  ;;  %v4312_v28 = vor.u32 %v5271_v2, %v4311_v1  ;;  %2215 = vmatpush.bf16.msra.mxu1 %v4380_v59  ;;  %v5328_v62 = vld [vmem:[%s5644_s4 + $0x3a4] sm:$0xf]  ;;  %v4583_v0 = vld [vmem:[%s5644_s4 + $0x3a8] sm:$0xf] }
 0x282   : > { %v1290_v61 = vmul.f32 %v5907_v31, %v5907_v31  ;;  %v5337_v2 = vld [vmem:[%s5644_s4 + $0x3e4] sm:$0xf0] }
 0x283   : > { %2154 = vmatpush.bf16.msrb.mxu0 %v4104_v5  ;;  %v4313_v5 = vld [vmem:[%s5644_s4 + $0x1d8] sm:$0xf0]  ;;  %2190 = vmatpush.bf16.msrb.mxu3 %v4308_v3  ;;  %v5329_v3 = vld [vmem:[%s5644_s4 + $0x3ac] sm:$0xf]  ;;  %v4584_v8 = vor.u32 %v5337_v2, %v4583_v0  ;;  %v5257_v0 = vld [vmem:[%s5644_s4 + $0x164] sm:$0xf0] }
 0x284   : > { %1291 = vadd.xlane.f32.xlu0 %v1290_v61  ;;  %v5270_v61 = vld [vmem:[%s5644_s4 + $0x1cc] sm:$0xf0]  ;;  %v4316_v6 = vor.u32 %v5263_v4, %v4313_v5  ;;  %v5249_v2 = vld [vmem:[%s5644_s4 + $0x12c] sm:$0xf] }
 0x285   : > { %v4304_v63 = vor.u32 %v5270_v61, %v4303_v60  ;;  %v4575_v60 = vld [vmem:[%s5644_s4 + $0x3a0] sm:$0xf] }
 0x286   : > { %2216 = vmatpush.bf16.msra.mxu1 %v4316_v6  ;;  %v5336_v61 = vld [vmem:[%s5644_s4 + $0x3dc] sm:$0xf0] }
 0x287   : > { %2199 = vmatpush.bf16.msra.mxu0 %v4568_v18  ;;  %2177 = vmatpush.bf16.msrb.mxu2 %v4304_v63  ;;  %v4252_v18 = vor.u32 %v5247_v16, %v4249_v17  ;;  %v4577_v63 = vld [vmem:[%s5644_s4 + $0x3e0] sm:$0xf0]  ;;  %v4576_v4 = vor.u32 %v5336_v61, %v4575_v60  ;;  %v4511_v6 = vld [vmem:[%s5644_s4 + $0x320] sm:$0xf] }
 0x288   : > { %2191 = vmatpush.bf16.msrb.mxu3 %v4244_v14  ;;  %v4580_v5 = vor.u32 %v5328_v62, %v4577_v63  ;;  %v5313_v14 = vld [vmem:[%s5644_s4 + $0x32c] sm:$0xf]  ;;  %v4512_v16 = vor.u32 %v5320_v7, %v4511_v6  ;;  %v5248_v61 = vld [vmem:[%s5644_s4 + $0x124] sm:$0xf]  ;;  %v4263_v63 = vld [vmem:[%s5644_s4 + $0x128] sm:$0xf] }
 0x289   : > { %v4257_v62 = vld [vmem:[%s5644_s4 + $0x160] sm:$0xf0]  ;;  %v5240_v6 = vld [vmem:[%s5644_s4 + $0xdc] sm:$0xf0]  ;;  %v4264_v7 = vor.u32 %v5257_v0, %v4263_v63  ;;  %v5307_v63 = vld [vmem:[%s5644_s4 + $0x2f4] sm:$0xf0] }
 0x28a   : > { %2217 = vmatpush.bf16.msra.mxu1 %v4252_v18  ;;  %v4447_v18 = vld [vmem:[%s5644_s4 + $0x2a0] sm:$0xf]  ;;  %v5299_v0 = vld [vmem:[%s5644_s4 + $0x2bc] sm:$0xf] }
 0x28b   : > { %2200 = vmatpush.bf16.msra.mxu0 %v4504_v33  ;;  %2178 = vmatpush.bf16.msrb.mxu2 %v4240_v10  ;;  %v4111_v33 = vld [vmem:[%s5644_s4 + $0x10] sm:$0xf]  ;;  %v5312_v10 = vld [vmem:[%s5644_s4 + $0x324] sm:$0xf]  ;;  %v4448_v29 = vor.u32 %v5304_v19, %v4447_v18  ;;  %v5224_v18 = vld [vmem:[%s5644_s4 + $0x5c] sm:$0xf0] }
 0x28c   : > { %2192 = vmatpush.bf16.msrb.mxu3 %v4180_v26  ;;  %v4112_v36 = vor.u32 %v5222_v34, %v4111_v33  ;;  %v4516_v17 = vor.u32 %v5312_v10, %v4513_v11  ;;  %v5297_v26 = vld [vmem:[%s5644_s4 + $0x2ac] sm:$0xf]  ;;  %v5288_v33 = vld [vmem:[%s5644_s4 + $0x25c] sm:$0xf0]  ;;  %v4456_v34 = vor.u32 %v5305_v25, %v4455_v24  ;;  %v4193_v10 = vld [vmem:[%s5644_s4 + $0xe0] sm:$0xf0] }
 0x28d   : > { %v4199_v11 = vld [vmem:[%s5644_s4 + $0xa8] sm:$0xf]  ;;  %v5216_v19 = vld [vmem:[%s5644_s4 + $0x24] sm:$0xf]  ;;  %v5217_v25 = vld [vmem:[%s5644_s4 + $0x2c] sm:$0xf] }
 0x28e   : > { %2218 = vmatpush.bf16.msra.mxu1 %v4188_v32  ;;  %v4383_v32 = vld [vmem:[%s5644_s4 + $0x220] sm:$0xf]  ;;  %v5225_v24 = vld [vmem:[%s5644_s4 + $0x64] sm:$0xf0] }
 0x28f   : > { %2201 = vmatpush.bf16.msra.mxu0 %v4440_v43  ;;  %2179 = vmatpush.bf16.msrb.mxu2 %v4176_v22  ;;  %v4121_v43 = vld [vmem:[%s5644_s4 + $0x58] sm:$0xf0]  ;;  %v5296_v22 = vld [vmem:[%s5644_s4 + $0x2a4] sm:$0xf] }
 0x290   : > { %v4124_v44 = vor.u32 %v5215_v42, %v4121_v43  ;;  %2193 = vmatpush.bf16.msrb.mxu3 %v4116_v40  ;;  %v4452_v30 = vor.u32 %v5296_v22, %v4449_v23  ;;  %v5281_v40 = vld [vmem:[%s5644_s4 + $0x22c] sm:$0xf]  ;;  %v4384_v42 = vor.u32 %v5288_v33, %v4383_v32  ;;  %v4135_v23 = vld [vmem:[%s5644_s4 + $0x28] sm:$0xf]  ;;  %v4593_v32 = vld [vmem:[%s5644_s4 + $0x3f0] sm:$0xf0] }
 0x291   : > { %v4599_v33 = vld [vmem:[%s5644_s4 + $0x3b8] sm:$0xf] }
 0x292   : > { %2219 = vmatpush.bf16.msra.mxu1 %v4124_v44  ;;  %v4319_v44 = vld [vmem:[%s5644_s4 + $0x1a0] sm:$0xf] }
 0x293   : > { %2202 = vmatpush.bf16.msra.mxu0 %v4376_v56  ;;  %2180 = vmatpush.bf16.msrb.mxu2 %v4112_v36  ;;  %v5280_v36 = vld [vmem:[%s5644_s4 + $0x224] sm:$0xf] }
 0x294   : > { %v4388_v43 = vor.u32 %v5280_v36, %v4385_v37  ;;  %v5339_v36 = vld [vmem:[%s5644_s4 + $0x3f4] sm:$0xf0]  ;;  %v5331_v37 = vld [vmem:[%s5644_s4 + $0x3bc] sm:$0xf] }
 0x297   : > { %2203 = vmatpush.bf16.msra.mxu0 %v4312_v28  ;;  %v4585_v28 = vld [vmem:[%s5644_s4 + $0x3e8] sm:$0xf0] }
 0x298   : > { %v4588_v9 = vor.u32 %v5329_v3, %v4585_v28  ;;  %v4265_v3 = vld [vmem:[%s5644_s4 + $0x168] sm:$0xf0] }
 0x29b   : > { %2204 = vmatpush.bf16.msra.mxu0 %v4248_v15  ;;  %v4521_v15 = vld [vmem:[%s5644_s4 + $0x368] sm:$0xf0] }
 0x29c   : > { %v4524_v21 = vor.u32 %v5313_v14, %v4521_v15  ;;  %v4201_v14 = vld [vmem:[%s5644_s4 + $0xe8] sm:$0xf0]  ;;  %v4127_v15 = vld [vmem:[%s5644_s4 + $0x20] sm:$0xf] }
 0x29d   : > { %v4204_v22 = vor.u32 %v5233_v13, %v4201_v14  ;;  %v4409_v13 = vld [vmem:[%s5644_s4 + $0x278] sm:$0xf0] }
 0x29f   : > { %2205 = vmatpush.bf16.msra.mxu0 %v4184_v27  ;;  %v4457_v27 = vld [vmem:[%s5644_s4 + $0x2e8] sm:$0xf0] }
 0x2a0   : > { %v4460_v35 = vor.u32 %v5297_v26, %v4457_v27  ;;  %v4137_v26 = vld [vmem:[%s5644_s4 + $0x68] sm:$0xf0]  ;;  %v4591_v27 = vld [vmem:[%s5644_s4 + $0x3b0] sm:$0xf] }
 0x2a3   : > { %2206 = vmatpush.bf16.msra.mxu0 %v4120_v41  ;;  %v4393_v41 = vld [vmem:[%s5644_s4 + $0x268] sm:$0xf0] }
 0x2f7   : > { %v1292_v45 = vpop.xlane.xlu0 %1291 }
 0x2f8   : > { %v1293_v46 = vmul.f32 %v1292_v45, %v5903_v54  ;;  %v5272_v45 = vld [vmem:[%s5644_s4 + $0x1dc] sm:$0xf0] }
 0x2fa   : > { %v1294_v47 = vadd.f32 1e-05, %v1293_v46  ;;  %v4392_v46 = vor.u32 %v5289_v39, %v4391_v38  ;;  %v4601_v38 = vld [vmem:[%s5644_s4 + $0x3f8] sm:$0xf0]  ;;  %v4136_v39 = vor.u32 %v5225_v24, %v4135_v23  ;;  %v5275_v23 = vld [vmem:[%s5644_s4 + $0x1f4] sm:$0xf0] }
 0x2fb   : > { %v5267_v24 = vld [vmem:[%s5644_s4 + $0x1bc] sm:$0xf] }
 0x2fc   : > { %5495 = vrsqrt.f32 %v1294_v47  ;;  %vm1301_vm2 = vweird.f32 %v1294_v47 }
 0x302   : > { %v5496_v48 = vpop.eup %5495 }
 0x303   : > { %v1296_v49 = vmul.f32 %v5496_v48, %v1294_v47  ;;  %vm1302_vm1 = vweird.f32 %v5496_v48  ;;  %v4396_v47 = vor.u32 %v5281_v40, %v4393_v41  ;;  %v4140_v40 = vor.u32 %v5217_v25, %v4137_v26  ;;  %v4345_v25 = vld [vmem:[%s5644_s4 + $0x1f8] sm:$0xf0] }
 0x304   : > { %vm1303_vm3 = vmor %vm1301_vm2, %vm1302_vm1 }
 0x305   : > { %v1297_v50 = vmul.f32 %v5496_v48, %v1296_v49  ;;  %v4321_v49 = vld [vmem:[%s5644_s4 + $0x1e0] sm:$0xf0] }
 0x307   : > { %v1298_v51 = vmul.f32 0.5, %v1297_v50  ;;  %v4327_v50 = vld [vmem:[%s5644_s4 + $0x1a8] sm:$0xf] }
 0x309   : > { %v1299_v52 = vsub.f32 1.5, %v1298_v51  ;;  %v5273_v51 = vld [vmem:[%s5644_s4 + $0x1e4] sm:$0xf0] }
 0x30b   : > { %v1300_v53 = vmul.f32 %v5496_v48, %v1299_v52  ;;  %v5265_v52 = vld [vmem:[%s5644_s4 + $0x1ac] sm:$0xf] }
 0x30d   : > { %v1304_v56 = vsel %vm1303_vm3, %v5496_v48, %v1300_v53  ;;  %v5264_v48 = vld [vmem:[%s5644_s4 + $0x1a4] sm:$0xf]  ;;  %v4329_v53 = vld [vmem:[%s5644_s4 + $0x1e8] sm:$0xf0] }
 0x30e   : > { %v1305_v58 = vmul.f32 %v1304_v56, %v5907_v31  ;;  %v4324_v56 = vor.u32 %v5264_v48, %v4321_v49  ;;  %v4332_v60 = vor.u32 %v5265_v52, %v4329_v53  ;;  %v4529_v48 = vld [vmem:[%s5644_s4 + $0x370] sm:$0xf0]  ;;  %v4535_v49 = vld [vmem:[%s5644_s4 + $0x338] sm:$0xf]  ;;  %v4537_v52 = vld [vmem:[%s5644_s4 + $0x378] sm:$0xf0] }
 0x310   : > { %v1310_v59 = vmul.f32 %v5488_v55, %v1305_v58  ;;  %v4320_v55 = vor.u32 %v5272_v45, %v4319_v44  ;;  %v5256_v58 = vld [vmem:[%s5644_s4 + $0x15c] sm:$0xf0]  ;;  %v5322_v44 = vld [vmem:[%s5644_s4 + $0x36c] sm:$0xf0]  ;;  %v4600_v45 = vor.u32 %v5339_v36, %v4599_v33  ;;  %v4348_v33 = vor.u32 %v5267_v24, %v4345_v25  ;;  %v4279_v36 = vld [vmem:[%s5644_s4 + $0x138] sm:$0xf] }
 0x311   : > { %v5358_v24 = vld [vmem:[%s5655_s16 + $0x90] sm:$0xff] }
 0x312   : > { %v6000_v1 = vadd.f32 %v5489_v57, %v1310_v59  ;;  %v4255_v57 = vld [vmem:[%s5644_s4 + $0x120] sm:$0xf]  ;;  %v4328_v59 = vor.u32 %v5273_v51, %v4327_v50  ;;  %v5323_v50 = vld [vmem:[%s5644_s4 + $0x374] sm:$0xf0]  ;;  %v5315_v51 = vld [vmem:[%s5644_s4 + $0x33c] sm:$0xf] }
 0x313   : > { %v4256_v28 = vor.u32 %v5256_v58, %v4255_v57  ;;  %v5306_v57 = vld [vmem:[%s5644_s4 + $0x2ec] sm:$0xf0]  ;;  %v4536_v58 = vor.u32 %v5323_v50, %v4535_v49  ;;  %v5243_v49 = vld [vmem:[%s5644_s4 + $0xf4] sm:$0xf0]  ;;  %v5235_v50 = vld [vmem:[%s5644_s4 + $0xbc] sm:$0xf] }
 0x314   : > { %v6007_v31 = vpack.c.bf16 %v6000_v1, %v6000_v1  ;;  %v5366_v25 = vld [vmem:[%s5655_s16 + $0xd0] sm:$0xff] }
 0x316   : > { %2129 = vmatmul.bf16.vlgmr.msra.gmra.mxu2 %v6007_v31  ;;  %2142 = vmatmul.bf16.vlgmr.msra.gmra.mxu3 %v6007_v31 }
 0x317   : > { %2155 = vmatmul.bf16.vlgmr.msrb.gmra.mxu0 %v6007_v31  ;;  %2168 = vmatmul.bf16.vlgmr.msrb.gmra.mxu1 %v6007_v31 }
 0x318   : > { %2225 = vmatpush.bf16.msra.mxu2 %v4576_v4  ;;  %2238 = vmatpush.bf16.msra.mxu3 %v4580_v5  ;;  %v4260_v4 = vor.u32 %v5248_v61, %v4257_v62  ;;  %v4191_v5 = vld [vmem:[%s5644_s4 + $0xa0] sm:$0xf]  ;;  %v4465_v61 = vld [vmem:[%s5644_s4 + $0x2f0] sm:$0xf0]  ;;  %v4471_v62 = vld [vmem:[%s5644_s4 + $0x2b8] sm:$0xf] }
 0x319   : > { %2251 = vmatpush.bf16.msrb.mxu0 %v4584_v8  ;;  %2264 = vmatpush.bf16.msrb.mxu1 %v4588_v9  ;;  %v4268_v8 = vor.u32 %v5249_v2, %v4265_v3  ;;  %v5232_v9 = vld [vmem:[%s5644_s4 + $0xa4] sm:$0xf]  ;;  %v4473_v2 = vld [vmem:[%s5644_s4 + $0x2f8] sm:$0xf0] }
 0x31c   : > { %2226 = vmatpush.bf16.msra.mxu2 %v4512_v16  ;;  %2239 = vmatpush.bf16.msra.mxu3 %v4516_v17  ;;  %v4192_v16 = vor.u32 %v5240_v6, %v4191_v5  ;;  %v4196_v17 = vor.u32 %v5232_v9, %v4193_v10  ;;  %v5290_v5 = vld [vmem:[%s5644_s4 + $0x26c] sm:$0xf0]  ;;  %v4472_v6 = vor.u32 %v5307_v63, %v4471_v62  ;;  %v4401_v9 = vld [vmem:[%s5644_s4 + $0x270] sm:$0xf0]  ;;  %v4407_v10 = vld [vmem:[%s5644_s4 + $0x238] sm:$0xf] }
 0x31d   : > { %2252 = vmatpush.bf16.msrb.mxu0 %v4520_v20  ;;  %2265 = vmatpush.bf16.msrb.mxu1 %v4524_v21  ;;  %v4129_v20 = vld [vmem:[%s5644_s4 + $0x60] sm:$0xf0]  ;;  %v4200_v21 = vor.u32 %v5241_v12, %v4199_v11  ;;  %v5291_v11 = vld [vmem:[%s5644_s4 + $0x274] sm:$0xf0]  ;;  %v5283_v12 = vld [vmem:[%s5644_s4 + $0x23c] sm:$0xf] }
 0x31e   : > { %v5227_v62 = vld [vmem:[%s5644_s4 + $0x74] sm:$0xf0]  ;;  %v5219_v63 = vld [vmem:[%s5644_s4 + $0x3c] sm:$0xf] }
 0x320   : > { %2227 = vmatpush.bf16.msra.mxu2 %v4448_v29  ;;  %2240 = vmatpush.bf16.msra.mxu3 %v4452_v30  ;;  %v5338_v29 = vld [vmem:[%s5644_s4 + $0x3ec] sm:$0xf0]  ;;  %v5330_v30 = vld [vmem:[%s5644_s4 + $0x3b4] sm:$0xf] }
 0x321   : > { %2253 = vmatpush.bf16.msrb.mxu0 %v4456_v34  ;;  %2266 = vmatpush.bf16.msrb.mxu1 %v4460_v35  ;;  %v4128_v34 = vor.u32 %v5224_v18, %v4127_v15  ;;  %v4132_v35 = vor.u32 %v5216_v19, %v4129_v20  ;;  %v4592_v41 = vor.u32 %v5338_v29, %v4591_v27  ;;  %v5266_v20 = vld [vmem:[%s5644_s4 + $0x1b4] sm:$0xf]  ;;  %v4271_v29 = vld [vmem:[%s5644_s4 + $0x130] sm:$0xf] }
 0x322   : > { %v4408_v18 = vor.u32 %v5291_v11, %v4407_v10  ;;  %v4412_v19 = vor.u32 %v5283_v12, %v4409_v13  ;;  %v5370_v10 = vld [vmem:[%s5655_s16 + $0xf0] sm:$0xff]  ;;  %v5361_v13 = vld [vmem:[%s5655_s16 + $0xa8] sm:$0xff] }
 0x323   : > { %v5346_v11 = vld [vmem:[%s5655_s16 + $0x30] sm:$0xff] }
 0x324   : > { %2228 = vmatpush.bf16.msra.mxu2 %v4384_v42  ;;  %2241 = vmatpush.bf16.msra.mxu3 %v4388_v43  ;;  %v4596_v42 = vor.u32 %v5330_v30, %v4593_v32  ;;  %v4527_v43 = vld [vmem:[%s5644_s4 + $0x330] sm:$0xf] }
 0x325   : > { %2254 = vmatpush.bf16.msrb.mxu0 %v4392_v46  ;;  %2267 = vmatpush.bf16.msrb.mxu1 %v4396_v47  ;;  %v4604_v46 = vor.u32 %v5331_v37, %v4601_v38  ;;  %v5314_v47 = vld [vmem:[%s5644_s4 + $0x334] sm:$0xf]  ;;  %v4528_v53 = vor.u32 %v5322_v44, %v4527_v43  ;;  %v5258_v30 = vld [vmem:[%s5644_s4 + $0x16c] sm:$0xf0]  ;;  %v5259_v37 = vld [vmem:[%s5644_s4 + $0x174] sm:$0xf0] }
 0x326   : > { %2181 = vmatmul.bf16.vlgmr.msrb.gmra.mxu2 %v6007_v31  ;;  %2194 = vmatmul.bf16.vlgmr.msrb.gmra.mxu3 %v6007_v31  ;;  %v5251_v38 = vld [vmem:[%s5644_s4 + $0x13c] sm:$0xf]  ;;  %v5242_v43 = vld [vmem:[%s5644_s4 + $0xec] sm:$0xf0]  ;;  %v4280_v44 = vor.u32 %v5259_v37, %v4279_v36 }
 0x327   : > { %2207 = vmatmul.bf16.vlgmr.msra.gmra.mxu0 %v6007_v31  ;;  %2220 = vmatmul.bf16.vlgmr.msra.gmra.mxu1 %v6007_v31  ;;  %v5354_v12 = vld [vmem:[%s5655_s16 + $0x70] sm:$0xff]  ;;  %v5395_v36 = vld [vmem:[%s5655_s16 + $0x1b8] sm:$0xff] }
 0x328   : > { %2229 = vmatpush.bf16.msra.mxu2 %v4320_v55  ;;  %2242 = vmatpush.bf16.msra.mxu3 %v4324_v56  ;;  %v4532_v55 = vor.u32 %v5314_v47, %v4529_v48  ;;  %v4463_v56 = vld [vmem:[%s5644_s4 + $0x2b0] sm:$0xf]  ;;  %v4209_v47 = vld [vmem:[%s5644_s4 + $0xf0] sm:$0xf0]  ;;  %v4215_v48 = vld [vmem:[%s5644_s4 + $0xb8] sm:$0xf] }
 0x329   : > { %2255 = vmatpush.bf16.msrb.mxu0 %v4328_v59  ;;  %2268 = vmatpush.bf16.msrb.mxu1 %v4332_v60  ;;  %v4540_v59 = vor.u32 %v5315_v51, %v4537_v52  ;;  %v5298_v60 = vld [vmem:[%s5644_s4 + $0x2b4] sm:$0xf]  ;;  %v4464_v3 = vor.u32 %v5306_v57, %v4463_v56  ;;  %v4217_v51 = vld [vmem:[%s5644_s4 + $0xf8] sm:$0xf0]  ;;  %v5226_v56 = vld [vmem:[%s5644_s4 + $0x6c] sm:$0xf0]  ;;  %v4216_v57 = vor.u32 %v5243_v49, %v4215_v48 }
 0x32a   : > { %v5403_v37 = vld [vmem:[%s5655_s16 + $0x1f8] sm:$0xff]  ;;  %v5377_v48 = vld [vmem:[%s5655_s16 + $0x128] sm:$0xff] }
 0x32b   : > { %v5385_v49 = vld [vmem:[%s5655_s16 + $0x168] sm:$0xff] }
 0x32c   : > { %2230 = vmatpush.bf16.msra.mxu2 %v4256_v28  ;;  %2243 = vmatpush.bf16.msra.mxu3 %v4260_v4  ;;  %v4468_v28 = vor.u32 %v5298_v60, %v4465_v61  ;;  %v4399_v4 = vld [vmem:[%s5644_s4 + $0x230] sm:$0xf]  ;;  %v4145_v60 = vld [vmem:[%s5644_s4 + $0x70] sm:$0xf0]  ;;  %v4151_v61 = vld [vmem:[%s5644_s4 + $0x38] sm:$0xf] }
 0x32d   : > { %2256 = vmatpush.bf16.msrb.mxu0 %v4264_v7  ;;  %2269 = vmatpush.bf16.msrb.mxu1 %v4268_v8  ;;  %v4476_v7 = vor.u32 %v5299_v0, %v4473_v2  ;;  %v5282_v8 = vld [vmem:[%s5644_s4 + $0x234] sm:$0xf]  ;;  %v4400_v14 = vor.u32 %v5290_v5, %v4399_v4  ;;  %v4153_v0 = vld [vmem:[%s5644_s4 + $0x78] sm:$0xf0] }
 0x32e   : > { %v4404_v15 = vor.u32 %v5282_v8, %v4401_v9  ;;  %v4156_v4 = vor.u32 %v5219_v63, %v4153_v0  ;;  %v5363_v5 = vld [vmem:[%s5655_s16 + $0xb8] sm:$0xff]  ;;  %v5362_v9 = vld [vmem:[%s5655_s16 + $0xb0] sm:$0xff]  ;;  %v5389_v63 = vld [vmem:[%s5655_s16 + $0x188] sm:$0xff] }
 0x32f   : > { %v5355_v8 = vld [vmem:[%s5655_s16 + $0x78] sm:$0xff]  ;;  %v5397_v0 = vld [vmem:[%s5655_s16 + $0x1c8] sm:$0xff] }
 0x330   : > { %2231 = vmatpush.bf16.msra.mxu2 %v4192_v16  ;;  %2244 = vmatpush.bf16.msra.mxu3 %v4196_v17  ;;  %v4335_v16 = vld [vmem:[%s5644_s4 + $0x1b0] sm:$0xf] }
 0x331   : > { %2257 = vmatpush.bf16.msrb.mxu0 %v4200_v21  ;;  %2270 = vmatpush.bf16.msrb.mxu1 %v4204_v22  ;;  %v5274_v17 = vld [vmem:[%s5644_s4 + $0x1ec] sm:$0xf0]  ;;  %v4337_v21 = vld [vmem:[%s5644_s4 + $0x1f0] sm:$0xf0]  ;;  %v4343_v22 = vld [vmem:[%s5644_s4 + $0x1b8] sm:$0xf] }
 0x332   : > { %v4336_v26 = vor.u32 %v5274_v17, %v4335_v16  ;;  %v4340_v27 = vor.u32 %v5266_v20, %v4337_v21  ;;  %v4344_v32 = vor.u32 %v5275_v23, %v4343_v22  ;;  %v5353_v16 = vld [vmem:[%s5655_s16 + $0x68] sm:$0xff]  ;;  %v5368_v17 = vld [vmem:[%s5655_s16 + $0xe0] sm:$0xff]  ;;  %v5359_v20 = vld [vmem:[%s5655_s16 + $0x98] sm:$0xff] }
 0x333   : > { %v5367_v21 = vld [vmem:[%s5655_s16 + $0xd8] sm:$0xff] }
 0x334   : > { %2232 = vmatpush.bf16.msra.mxu2 %v4128_v34  ;;  %2245 = vmatpush.bf16.msra.mxu3 %v4132_v35  ;;  %v5250_v34 = vld [vmem:[%s5644_s4 + $0x134] sm:$0xf]  ;;  %v5343_v22 = vld [vmem:[%s5655_s16 + $0x18] sm:$0xff] }
 0x335   : > { %2258 = vmatpush.bf16.msrb.mxu0 %v4136_v39  ;;  %2271 = vmatpush.bf16.msrb.mxu1 %v4140_v40  ;;  %v4273_v35 = vld [vmem:[%s5644_s4 + $0x170] sm:$0xf0]  ;;  %v4281_v39 = vld [vmem:[%s5644_s4 + $0x178] sm:$0xf0]  ;;  %v4272_v40 = vor.u32 %v5258_v30, %v4271_v29  ;;  %v5357_v29 = vld [vmem:[%s5655_s16 + $0x88] sm:$0xff] }
 0x336   : > { %v5351_v23 = vld [vmem:[%s5655_s16 + $0x58] sm:$0xff]  ;;  %v5365_v30 = vld [vmem:[%s5655_s16 + $0xc8] sm:$0xff] }
 0x337   : > { %2233 = vmatmul.bf16.vlgmr.msra.gmra.mxu2 %v6007_v31  ;;  %2246 = vmatmul.bf16.vlgmr.msra.gmra.mxu3 %v6007_v31 }
 0x338   : > { %2277 = vmatpush.bf16.msrb.mxu2 %v4592_v41  ;;  %2290 = vmatpush.bf16.msrb.mxu3 %v4596_v42  ;;  %v4276_v41 = vor.u32 %v5250_v34, %v4273_v35  ;;  %v4207_v42 = vld [vmem:[%s5644_s4 + $0xb0] sm:$0xf]  ;;  %v5356_v34 = vld [vmem:[%s5655_s16 + $0x80] sm:$0xff] }
 0x339   : > { %2303 = vmatpush.bf16.msra.mxu0 %v4600_v45  ;;  %2316 = vmatpush.bf16.msra.mxu1 %v4604_v46  ;;  %v4284_v45 = vor.u32 %v5251_v38, %v4281_v39  ;;  %v5234_v46 = vld [vmem:[%s5644_s4 + $0xb4] sm:$0xf]  ;;  %v4208_v52 = vor.u32 %v5242_v43, %v4207_v42  ;;  %v5364_v35 = vld [vmem:[%s5655_s16 + $0xc0] sm:$0xff] }
 0x33a   : > { %2259 = vmatmul.bf16.vlgmr.msrb.gmra.mxu0 %v6007_v31  ;;  %2272 = vmatmul.bf16.vlgmr.msrb.gmra.mxu1 %v6007_v31  ;;  %v5340_v38 = vld [vmem:[%s5655_s16] sm:$0xff]  ;;  %v5394_v42 = vld [vmem:[%s5655_s16 + $0x1b0] sm:$0xff] }
 0x33b   : > { %v5348_v39 = vld [vmem:[%s5655_s16 + $0x40] sm:$0xff]  ;;  %v5402_v43 = vld [vmem:[%s5655_s16 + $0x1f0] sm:$0xff] }
 0x33c   : > { %2278 = vmatpush.bf16.msrb.mxu2 %v4528_v53  ;;  %2291 = vmatpush.bf16.msrb.mxu3 %v4532_v55  ;;  %v4212_v53 = vor.u32 %v5234_v46, %v4209_v47  ;;  %v4143_v55 = vld [vmem:[%s5644_s4 + $0x30] sm:$0xf]  ;;  %v5393_v46 = vld [vmem:[%s5655_s16 + $0x1a8] sm:$0xff] }
 0x33d   : > { %2304 = vmatpush.bf16.msra.mxu0 %v4536_v58  ;;  %2317 = vmatpush.bf16.msra.mxu1 %v4540_v59  ;;  %v4220_v58 = vor.u32 %v5235_v50, %v4217_v51  ;;  %v5218_v59 = vld [vmem:[%s5644_s4 + $0x34] sm:$0xf]  ;;  %v4144_v2 = vor.u32 %v5226_v56, %v4143_v55  ;;  %v5401_v47 = vld [vmem:[%s5655_s16 + $0x1e8] sm:$0xff]  ;;  %v5392_v50 = vld [vmem:[%s5655_s16 + $0x1a0] sm:$0xff] }
 0x33e   : > { %v5400_v51 = vld [vmem:[%s5655_s16 + $0x1e0] sm:$0xff]  ;;  %v5391_v55 = vld [vmem:[%s5655_s16 + $0x198] sm:$0xff] }
 0x33f   : > { %v5399_v56 = vld [vmem:[%s5655_s16 + $0x1d8] sm:$0xff] }
 0x340   : > { %2279 = vmatpush.bf16.msrb.mxu2 %v4464_v3  ;;  %2292 = vmatpush.bf16.msrb.mxu3 %v4468_v28  ;;  %v4148_v3 = vor.u32 %v5218_v59, %v4145_v60  ;;  %v4152_v28 = vor.u32 %v5227_v62, %v4151_v61  ;;  %v5390_v59 = vld [vmem:[%s5655_s16 + $0x190] sm:$0xff] }
 0x341   : > { %2305 = vmatpush.bf16.msra.mxu0 %v4472_v6  ;;  %2318 = vmatpush.bf16.msra.mxu1 %v4476_v7  ;;  %v5371_v6 = vld [vmem:[%s5655_s16 + $0xf8] sm:$0xff]  ;;  %v5398_v60 = vld [vmem:[%s5655_s16 + $0x1d0] sm:$0xff] }
 0x342   : > { %v5347_v7 = vld [vmem:[%s5655_s16 + $0x38] sm:$0xff]  ;;  %v5374_v61 = vld [vmem:[%s5655_s16 + $0x110] sm:$0xff] }
 0x343   : > { %v5382_v62 = vld [vmem:[%s5655_s16 + $0x150] sm:$0xff] }
 0x344   : > { %2280 = vmatpush.bf16.msrb.mxu2 %v4400_v14  ;;  %2293 = vmatpush.bf16.msrb.mxu3 %v4404_v15  ;;  %v5369_v14 = vld [vmem:[%s5655_s16 + $0xe8] sm:$0xff] }
 0x345   : > { %2306 = vmatpush.bf16.msra.mxu0 %v4408_v18  ;;  %2319 = vmatpush.bf16.msra.mxu1 %v4412_v19  ;;  %v5345_v15 = vld [vmem:[%s5655_s16 + $0x28] sm:$0xff]  ;;  %v5344_v18 = vld [vmem:[%s5655_s16 + $0x20] sm:$0xff] }
 0x346   : > { %v5352_v19 = vld [vmem:[%s5655_s16 + $0x60] sm:$0xff] }
 0x348   : > { %2281 = vmatpush.bf16.msrb.mxu2 %v4336_v26  ;;  %2294 = vmatpush.bf16.msrb.mxu3 %v4340_v27  ;;  %v5342_v26 = vld [vmem:[%s5655_s16 + $0x10] sm:$0xff] }
 0x349   : > { %2307 = vmatpush.bf16.msra.mxu0 %v4344_v32  ;;  %2320 = vmatpush.bf16.msra.mxu1 %v4348_v33  ;;  %v5350_v27 = vld [vmem:[%s5655_s16 + $0x50] sm:$0xff]  ;;  %v5341_v32 = vld [vmem:[%s5655_s16 + $0x8] sm:$0xff] }
 0x34a   : > { %v5349_v33 = vld [vmem:[%s5655_s16 + $0x48] sm:$0xff] }
 0x34c   : > { %2282 = vmatpush.bf16.msrb.mxu2 %v4272_v40  ;;  %2295 = vmatpush.bf16.msrb.mxu3 %v4276_v41  ;;  %v5379_v40 = vld [vmem:[%s5655_s16 + $0x138] sm:$0xff] }
 0x34d   : > { %2308 = vmatpush.bf16.msra.mxu0 %v4280_v44  ;;  %2321 = vmatpush.bf16.msra.mxu1 %v4284_v45  ;;  %v5387_v41 = vld [vmem:[%s5655_s16 + $0x178] sm:$0xff]  ;;  %v5378_v44 = vld [vmem:[%s5655_s16 + $0x130] sm:$0xff] }
 0x34e   : > { %v5386_v45 = vld [vmem:[%s5655_s16 + $0x170] sm:$0xff] }
 0x350   : > { %2283 = vmatpush.bf16.msrb.mxu2 %v4208_v52  ;;  %2296 = vmatpush.bf16.msrb.mxu3 %v4212_v53  ;;  %v5376_v52 = vld [vmem:[%s5655_s16 + $0x120] sm:$0xff] }
 0x351   : > { %2309 = vmatpush.bf16.msra.mxu0 %v4216_v57  ;;  %2322 = vmatpush.bf16.msra.mxu1 %v4220_v58  ;;  %v5384_v53 = vld [vmem:[%s5655_s16 + $0x160] sm:$0xff]  ;;  %v5375_v57 = vld [vmem:[%s5655_s16 + $0x118] sm:$0xff] }
 0x352   : > { %v5383_v58 = vld [vmem:[%s5655_s16 + $0x158] sm:$0xff] }
 0x354   : > { %2284 = vmatpush.bf16.msrb.mxu2 %v4144_v2  ;;  %2297 = vmatpush.bf16.msrb.mxu3 %v4148_v3  ;;  %v5373_v2 = vld [vmem:[%s5655_s16 + $0x108] sm:$0xff] }
 0x355   : > { %2310 = vmatpush.bf16.msra.mxu0 %v4152_v28  ;;  %2323 = vmatpush.bf16.msra.mxu1 %v4156_v4  ;;  %v5381_v3 = vld [vmem:[%s5655_s16 + $0x148] sm:$0xff]  ;;  %v5388_v28 = vld [vmem:[%s5655_s16 + $0x180] sm:$0xff] }
 0x356   : > { %v5396_v4 = vld [vmem:[%s5655_s16 + $0x1c0] sm:$0xff] }
 0x357   : > { %2285 = vmatmul.bf16.vlgmr.msrb.gmra.mxu2 %v6007_v31  ;;  %2298 = vmatmul.bf16.vlgmr.msrb.gmra.mxu3 %v6007_v31 }
 0x358   : > { %2311 = vmatmul.bf16.vlgmr.msra.gmra.mxu0 %v6007_v31  ;;  %2324 = vmatmul.bf16.vlgmr.msra.gmra.mxu1 %v6007_v31  ;;  %v5360_v31 = vld [vmem:[%s5655_s16 + $0xa0] sm:$0xff] }
 0x359   : > { %3415 = vmatpush.bf16.msrb.mxu0 %v5363_v5  ;;  %3428 = vmatpush.bf16.msrb.mxu1 %v5371_v6  ;;  %v5372_v5 = vld [vmem:[%s5655_s16 + $0x100] sm:$0xff] }
 0x35a   : > { %3389 = vmatpush.bf16.msra.mxu2 %v5347_v7  ;;  %3402 = vmatpush.bf16.msra.mxu3 %v5355_v8  ;;  %v5380_v6 = vld [vmem:[%s5655_s16 + $0x140] sm:$0xff] }
 0x35b   : > { %v6210_v7 = vld [vmem:[%s5650_s22] sm:$0xff] }
 0x35c   : > { %v1451_v8 = vperm.slane %v6210_v7, 2 }
 0x35d   : > { %3416 = vmatpush.bf16.msrb.mxu0 %v5362_v9  ;;  %3429 = vmatpush.bf16.msrb.mxu1 %v5370_v10  ;;  %v1452_v9 = vperm.slane %v6210_v7, 3 }
 0x35e   : > { %3390 = vmatpush.bf16.msra.mxu2 %v5346_v11  ;;  %3403 = vmatpush.bf16.msra.mxu3 %v5354_v12 }
 0x361   : > { %3417 = vmatpush.bf16.msrb.mxu0 %v5361_v13  ;;  %3430 = vmatpush.bf16.msrb.mxu1 %v5369_v14  ;;  %v1449_v14 = vperm.slane %v6210_v7, 0 }
 0x362   : > { %3391 = vmatpush.bf16.msra.mxu2 %v5345_v15  ;;  %3404 = vmatpush.bf16.msra.mxu3 %v5353_v16  ;;  %v1450_v15 = vperm.slane %v6210_v7, 1 }
 0x365   : > { %3418 = vmatpush.bf16.msrb.mxu0 %v5360_v31  ;;  %3431 = vmatpush.bf16.msrb.mxu1 %v5368_v17  ;;  %v5427_v17 = vld [vmem:[%s5655_s16 + $0x2b8] sm:$0xff] }
 0x366   : > { %3392 = vmatpush.bf16.msra.mxu2 %v5344_v18  ;;  %3405 = vmatpush.bf16.msra.mxu3 %v5352_v19  ;;  %v5435_v18 = vld [vmem:[%s5655_s16 + $0x2f8] sm:$0xff] }
 0x369   : > { %3419 = vmatpush.bf16.msrb.mxu0 %v5359_v20  ;;  %3432 = vmatpush.bf16.msrb.mxu1 %v5367_v21 }
 0x36a   : > { %3393 = vmatpush.bf16.msra.mxu2 %v5343_v22  ;;  %3406 = vmatpush.bf16.msra.mxu3 %v5351_v23 }
 0x36d   : > { %3420 = vmatpush.bf16.msrb.mxu0 %v5358_v24  ;;  %3433 = vmatpush.bf16.msrb.mxu1 %v5366_v25 }
 0x36e   : > { %3394 = vmatpush.bf16.msra.mxu2 %v5342_v26  ;;  %3407 = vmatpush.bf16.msra.mxu3 %v5350_v27 }
 0x371   : > { %3421 = vmatpush.bf16.msrb.mxu0 %v5357_v29  ;;  %3434 = vmatpush.bf16.msrb.mxu1 %v5365_v30  ;;  %v5426_v30 = vld [vmem:[%s5655_s16 + $0x2b0] sm:$0xff] }
 0x372   : > { %3395 = vmatpush.bf16.msra.mxu2 %v5341_v32  ;;  %3408 = vmatpush.bf16.msra.mxu3 %v5349_v33  ;;  %v5434_v32 = vld [vmem:[%s5655_s16 + $0x2f0] sm:$0xff] }
 0x375   : > { %3422 = vmatpush.bf16.msrb.mxu0 %v5356_v34  ;;  %3435 = vmatpush.bf16.msrb.mxu1 %v5364_v35  ;;  %v5411_v35 = vld [vmem:[%s5655_s16 + $0x238] sm:$0xff] }
 0x376   : > { %3396 = vmatpush.bf16.msra.mxu2 %v5340_v38  ;;  %3409 = vmatpush.bf16.msra.mxu3 %v5348_v39  ;;  %v5433_v38 = vld [vmem:[%s5655_s16 + $0x2e8] sm:$0xff] }
 0x379   : > { %3467 = vmatpush.bf16.msra.mxu0 %v5395_v36  ;;  %3480 = vmatpush.bf16.msra.mxu1 %v5403_v37  ;;  %v5419_v36 = vld [vmem:[%s5655_s16 + $0x278] sm:$0xff]  ;;  %v5425_v37 = vld [vmem:[%s5655_s16 + $0x2a8] sm:$0xff] }
 0x37a   : > { %3441 = vmatpush.bf16.msrb.mxu2 %v5379_v40  ;;  %3454 = vmatpush.bf16.msrb.mxu3 %v5387_v41  ;;  %v1455_v41 = vperm.slane %v6210_v7, 6 }
 0x37d   : > { %3468 = vmatpush.bf16.msra.mxu0 %v5394_v42  ;;  %3481 = vmatpush.bf16.msra.mxu1 %v5402_v43  ;;  %v1456_v42 = vperm.slane %v6210_v7, 7  ;;  %v5410_v43 = vld [vmem:[%s5655_s16 + $0x230] sm:$0xff] }
 0x37e   : > { %3442 = vmatpush.bf16.msrb.mxu2 %v5378_v44  ;;  %3455 = vmatpush.bf16.msrb.mxu3 %v5386_v45  ;;  %v5418_v44 = vld [vmem:[%s5655_s16 + $0x270] sm:$0xff] }
 0x381   : > { %3469 = vmatpush.bf16.msra.mxu0 %v5393_v46  ;;  %3482 = vmatpush.bf16.msra.mxu1 %v5401_v47  ;;  %v5424_v47 = vld [vmem:[%s5655_s16 + $0x2a0] sm:$0xff] }
 0x382   : > { %3443 = vmatpush.bf16.msrb.mxu2 %v5377_v48  ;;  %3456 = vmatpush.bf16.msrb.mxu3 %v5385_v49  ;;  %v5432_v48 = vld [vmem:[%s5655_s16 + $0x2e0] sm:$0xff] }
 0x385   : > { %3470 = vmatpush.bf16.msra.mxu0 %v5392_v50  ;;  %3483 = vmatpush.bf16.msra.mxu1 %v5400_v51  ;;  %v5409_v51 = vld [vmem:[%s5655_s16 + $0x228] sm:$0xff] }
 0x386   : > { %3444 = vmatpush.bf16.msrb.mxu2 %v5376_v52  ;;  %3457 = vmatpush.bf16.msrb.mxu3 %v5384_v53  ;;  %v5417_v52 = vld [vmem:[%s5655_s16 + $0x268] sm:$0xff]  ;;  %v1453_v53 = vperm.slane %v6210_v7, 4 }
 0x389   : > { %3471 = vmatpush.bf16.msra.mxu0 %v5391_v55  ;;  %3484 = vmatpush.bf16.msra.mxu1 %v5399_v56  ;;  %v1454_v55 = vperm.slane %v6210_v7, 5 }
 0x38a   : > { %3445 = vmatpush.bf16.msrb.mxu2 %v5375_v57  ;;  %3458 = vmatpush.bf16.msrb.mxu3 %v5383_v58  ;;  %v5423_v58 = vld [vmem:[%s5655_s16 + $0x298] sm:$0xff] }
 0x38d   : > { %3472 = vmatpush.bf16.msra.mxu0 %v5390_v59  ;;  %3485 = vmatpush.bf16.msra.mxu1 %v5398_v60  ;;  %v5431_v59 = vld [vmem:[%s5655_s16 + $0x2d8] sm:$0xff] }
 0x38e   : > { %3446 = vmatpush.bf16.msrb.mxu2 %v5374_v61  ;;  %3459 = vmatpush.bf16.msrb.mxu3 %v5382_v62 }
 0x391   : > { %3473 = vmatpush.bf16.msra.mxu0 %v5389_v63  ;;  %3486 = vmatpush.bf16.msra.mxu1 %v5397_v0 }
 0x392   : > { %3447 = vmatpush.bf16.msrb.mxu2 %v5373_v2  ;;  %3460 = vmatpush.bf16.msrb.mxu3 %v5381_v3  ;;  %v5408_v3 = vld [vmem:[%s5655_s16 + $0x220] sm:$0xff] }
 0x394   : > { %v2156_v10 = vpop.f32.mrf.mxu0  ;;  %v2169_v11 = vpop.f32.mrf.mxu1 }
 0x395   : > { %3474 = vmatpush.bf16.msra.mxu0 %v5388_v28  ;;  %3487 = vmatpush.bf16.msra.mxu1 %v5396_v4  ;;  %v2157_v12 = vadd.f32 %v2156_v10, %v1451_v8  ;;  %v2170_v13 = vadd.f32 %v2169_v11, %v1452_v9  ;;  %v5416_v28 = vld [vmem:[%s5655_s16 + $0x260] sm:$0xff]  ;;  %v5422_v8 = vld [vmem:[%s5655_s16 + $0x290] sm:$0xff] }
 0x396   : > { %3448 = vmatpush.bf16.msrb.mxu2 %v5372_v5  ;;  %3461 = vmatpush.bf16.msrb.mxu3 %v5380_v6  ;;  %v5430_v9 = vld [vmem:[%s5655_s16 + $0x2d0] sm:$0xff] }
 0x397   : > { %v2331_v16 = vmax.f32 %v2157_v12, 0.0  ;;  %v2332_v31 = vmax.f32 %v2170_v13, 0.0  ;;  %v5407_v12 = vld [vmem:[%s5655_s16 + $0x218] sm:$0xff] }
 0x398   : > { %v5415_v13 = vld [vmem:[%s5655_s16 + $0x258] sm:$0xff] }
 0x399   : > { %v2347_v19 = vpack.c.bf16 %v2331_v16, %v2331_v16  ;;  %v2348_v20 = vpack.c.bf16 %v2332_v31, %v2332_v31  ;;  %v2130_v21 = vpop.f32.mrf.mxu2  ;;  %v2143_v22 = vpop.f32.mrf.mxu3  ;;  %v6245_v16 = vld [vmem:[%s5650_s22 + $0x8] sm:$0xff] }
 0x39a   : > { %v2131_v23 = vadd.f32 %v2130_v21, %v1449_v14  ;;  %v2144_v24 = vadd.f32 %v2143_v22, %v1450_v15  ;;  %v5421_v14 = vld [vmem:[%s5655_s16 + $0x288] sm:$0xff]  ;;  %v1460_v21 = vperm.slane %v6245_v16, 3  ;;  %v5420_v22 = vld [vmem:[%s5655_s16 + $0x280] sm:$0xff] }
 0x39b   : > { %3423 = vmatmul.bf16.vlgmr.msrb.gmra.mxu0 %v2347_v19  ;;  %3436 = vmatmul.bf16.vlgmr.msrb.gmra.mxu1 %v2348_v20  ;;  %v5429_v15 = vld [vmem:[%s5655_s16 + $0x2c8] sm:$0xff]  ;;  %v5414_v19 = vld [vmem:[%s5655_s16 + $0x250] sm:$0xff]  ;;  %v1459_v20 = vperm.slane %v6245_v16, 2 }
 0x39c   : > { %v2329_v25 = vmax.f32 %v2131_v23, 0.0  ;;  %v2330_v26 = vmax.f32 %v2144_v24, 0.0  ;;  %3519 = vmatpush.bf16.msrb.mxu0 %v5427_v17  ;;  %3532 = vmatpush.bf16.msrb.mxu1 %v5435_v18  ;;  %v2158_v27 = vpop.f32.mrf.mxu0  ;;  %v2171_v29 = vpop.f32.mrf.mxu1  ;;  %v5406_v18 = vld [vmem:[%s5655_s16 + $0x210] sm:$0xff]  ;;  %v5428_v23 = vld [vmem:[%s5655_s16 + $0x2c0] sm:$0xff]  ;;  %v5459_v24 = vld [vmem:[%s5655_s16 + $0x3b8] sm:$0xff] }
 0x39d   : > { %v5405_v29 = vld [vmem:[%s5655_s16 + $0x208] sm:$0xff] }
 0x39e   : > { %v2345_v33 = vpack.c.bf16 %v2329_v25, %v2329_v25  ;;  %v2346_v34 = vpack.c.bf16 %v2330_v26, %v2330_v26  ;;  %v5467_v25 = vld [vmem:[%s5655_s16 + $0x3f8] sm:$0xff] }
 0x3a0   : > { %3520 = vmatpush.bf16.msrb.mxu0 %v5426_v30  ;;  %3533 = vmatpush.bf16.msrb.mxu1 %v5434_v32  ;;  %v5413_v30 = vld [vmem:[%s5655_s16 + $0x248] sm:$0xff] }
 0x3a1   : > { %3397 = vmatmul.bf16.vlgmr.msra.gmra.mxu2 %v2345_v33  ;;  %3410 = vmatmul.bf16.vlgmr.msra.gmra.mxu3 %v2346_v34  ;;  %v2132_v39 = vpop.f32.mrf.mxu2  ;;  %v2145_v40 = vpop.f32.mrf.mxu3  ;;  %v1457_v34 = vperm.slane %v6245_v16, 0 }
 0x3a2   : > { %3493 = vmatpush.bf16.msra.mxu2 %v5411_v35  ;;  %3506 = vmatpush.bf16.msra.mxu3 %v5419_v36  ;;  %v1458_v35 = vperm.slane %v6245_v16, 1  ;;  %v5466_v39 = vld [vmem:[%s5655_s16 + $0x3f0] sm:$0xff] }
 0x3a4   : > { %3521 = vmatpush.bf16.msrb.mxu0 %v5425_v37  ;;  %3534 = vmatpush.bf16.msrb.mxu1 %v5433_v38  ;;  %v2208_v45 = vpop.f32.mrf.mxu0  ;;  %v2221_v46 = vpop.f32.mrf.mxu1  ;;  %v5458_v38 = vld [vmem:[%s5655_s16 + $0x3b0] sm:$0xff] }
 0x3a5   : > { %v2209_v49 = vadd.f32 %v2208_v45, %v1455_v41  ;;  %v2222_v50 = vadd.f32 %v2221_v46, %v1456_v42  ;;  %v5412_v45 = vld [vmem:[%s5655_s16 + $0x240] sm:$0xff] }
 0x3a6   : > { %3494 = vmatpush.bf16.msra.mxu2 %v5410_v43  ;;  %3507 = vmatpush.bf16.msra.mxu3 %v5418_v44  ;;  %v5404_v44 = vld [vmem:[%s5655_s16 + $0x200] sm:$0xff] }
 0x3a7   : > { %v2335_v56 = vmax.f32 %v2209_v49, 0.0  ;;  %v2336_v57 = vmax.f32 %v2222_v50, 0.0  ;;  %v5451_v49 = vld [vmem:[%s5655_s16 + $0x378] sm:$0xff] }
 0x3a8   : > { %3522 = vmatpush.bf16.msrb.mxu0 %v5424_v47  ;;  %3535 = vmatpush.bf16.msrb.mxu1 %v5432_v48  ;;  %v5443_v48 = vld [vmem:[%s5655_s16 + $0x338] sm:$0xff] }
 0x3a9   : > { %v2351_v60 = vpack.c.bf16 %v2335_v56, %v2335_v56  ;;  %v2352_v61 = vpack.c.bf16 %v2336_v57, %v2336_v57  ;;  %v2182_v62 = vpop.f32.mrf.mxu2  ;;  %v2195_v63 = vpop.f32.mrf.mxu3  ;;  %v5465_v56 = vld [vmem:[%s5655_s16 + $0x3e8] sm:$0xff] }
 0x3aa   : > { %3495 = vmatpush.bf16.msra.mxu2 %v5409_v51  ;;  %3508 = vmatpush.bf16.msra.mxu3 %v5417_v52  ;;  %v2183_v0 = vadd.f32 %v2182_v62, %v1453_v53  ;;  %v2196_v2 = vadd.f32 %v2195_v63, %v1454_v55  ;;  %v5457_v55 = vld [vmem:[%s5655_s16 + $0x3a8] sm:$0xff]  ;;  %v5464_v62 = vld [vmem:[%s5655_s16 + $0x3e0] sm:$0xff] }
 0x3ab   : > { %3475 = vmatmul.bf16.vlgmr.msra.gmra.mxu0 %v2351_v60  ;;  %3488 = vmatmul.bf16.vlgmr.msra.gmra.mxu1 %v2352_v61  ;;  %v5450_v60 = vld [vmem:[%s5655_s16 + $0x370] sm:$0xff]  ;;  %v5456_v61 = vld [vmem:[%s5655_s16 + $0x3a0] sm:$0xff] }
 0x3ac   : > { %v2333_v4 = vmax.f32 %v2183_v0, 0.0  ;;  %v2334_v5 = vmax.f32 %v2196_v2, 0.0  ;;  %3523 = vmatpush.bf16.msrb.mxu0 %v5423_v58  ;;  %3536 = vmatpush.bf16.msrb.mxu1 %v5431_v59  ;;  %v2210_v6 = vpop.f32.mrf.mxu0  ;;  %v2223_v7 = vpop.f32.mrf.mxu1  ;;  %v5442_v59 = vld [vmem:[%s5655_s16 + $0x330] sm:$0xff]  ;;  %v5441_v2 = vld [vmem:[%s5655_s16 + $0x328] sm:$0xff] }
 0x3ad   : > { %v5448_v6 = vld [vmem:[%s5655_s16 + $0x360] sm:$0xff]  ;;  %v5454_v7 = vld [vmem:[%s5655_s16 + $0x390] sm:$0xff] }
 0x3ae   : > { %v2349_v10 = vpack.c.bf16 %v2333_v4, %v2333_v4  ;;  %v2350_v11 = vpack.c.bf16 %v2334_v5, %v2334_v5  ;;  %3496 = vmatpush.bf16.msra.mxu2 %v5408_v3  ;;  %3509 = vmatpush.bf16.msra.mxu3 %v5416_v28  ;;  %v5449_v3 = vld [vmem:[%s5655_s16 + $0x368] sm:$0xff]  ;;  %v5455_v28 = vld [vmem:[%s5655_s16 + $0x398] sm:$0xff]  ;;  %v5440_v5 = vld [vmem:[%s5655_s16 + $0x320] sm:$0xff] }
 0x3af   : > { %v5463_v4 = vld [vmem:[%s5655_s16 + $0x3d8] sm:$0xff] }
 0x3b0   : > { %3524 = vmatpush.bf16.msrb.mxu0 %v5422_v8  ;;  %3537 = vmatpush.bf16.msrb.mxu1 %v5430_v9  ;;  %v5462_v8 = vld [vmem:[%s5655_s16 + $0x3d0] sm:$0xff]  ;;  %v5439_v9 = vld [vmem:[%s5655_s16 + $0x318] sm:$0xff] }
 0x3b1   : > { %3449 = vmatmul.bf16.vlgmr.msrb.gmra.mxu2 %v2349_v10  ;;  %3462 = vmatmul.bf16.vlgmr.msrb.gmra.mxu3 %v2350_v11  ;;  %v2184_v31 = vpop.f32.mrf.mxu2  ;;  %v2197_v17 = vpop.f32.mrf.mxu3  ;;  %v5447_v10 = vld [vmem:[%s5655_s16 + $0x358] sm:$0xff]  ;;  %v5453_v11 = vld [vmem:[%s5655_s16 + $0x388] sm:$0xff] }
 0x3b2   : > { %3497 = vmatpush.bf16.msra.mxu2 %v5407_v12  ;;  %3510 = vmatpush.bf16.msra.mxu3 %v5415_v13  ;;  %v5461_v12 = vld [vmem:[%s5655_s16 + $0x3c8] sm:$0xff]  ;;  %v1463_v13 = vperm.slane %v6245_v16, 6  ;;  %v5446_v31 = vld [vmem:[%s5655_s16 + $0x350] sm:$0xff]  ;;  %v5452_v17 = vld [vmem:[%s5655_s16 + $0x380] sm:$0xff] }
 0x3b4   : > { %3525 = vmatpush.bf16.msrb.mxu0 %v5421_v14  ;;  %3538 = vmatpush.bf16.msrb.mxu1 %v5429_v15  ;;  %v1464_v14 = vperm.slane %v6245_v16, 7  ;;  %v5438_v15 = vld [vmem:[%s5655_s16 + $0x310] sm:$0xff] }
 0x3b6   : > { %3498 = vmatpush.bf16.msra.mxu2 %v5406_v18  ;;  %3511 = vmatpush.bf16.msra.mxu3 %v5414_v19  ;;  %v5460_v18 = vld [vmem:[%s5655_s16 + $0x3c0] sm:$0xff] }
 0x3b7   : > { %v2260_v26 = vpop.f32.mrf.mxu0  ;;  %v2273_v27 = vpop.f32.mrf.mxu1 }
 0x3b8   : > { %v2261_v32 = vadd.f32 %v2260_v26, %v1459_v20  ;;  %v2274_v33 = vadd.f32 %v2273_v27, %v1460_v21  ;;  %3526 = vmatpush.bf16.msrb.mxu0 %v5420_v22  ;;  %3539 = vmatpush.bf16.msrb.mxu1 %v5428_v23  ;;  %v5437_v23 = vld [vmem:[%s5655_s16 + $0x308] sm:$0xff]  ;;  %v1462_v26 = vperm.slane %v6245_v16, 5 }
 0x3ba   : > { %v2339_v36 = vmax.f32 %v2261_v32, 0.0  ;;  %v2340_v37 = vmax.f32 %v2274_v33, 0.0  ;;  %3499 = vmatpush.bf16.msra.mxu2 %v5405_v29  ;;  %3512 = vmatpush.bf16.msra.mxu3 %v5413_v30  ;;  %v2234_v42 = vpop.f32.mrf.mxu2  ;;  %v2247_v43 = vpop.f32.mrf.mxu3 }
 0x3bb   : > { %v2235_v46 = vadd.f32 %v2234_v42, %v1457_v34  ;;  %v2248_v47 = vadd.f32 %v2247_v43, %v1458_v35  ;;  %v5436_v35 = vld [vmem:[%s5655_s16 + $0x300] sm:$0xff] }
 0x3bc   : > { %3571 = vmatpush.bf16.msra.mxu0 %v5459_v24  ;;  %3584 = vmatpush.bf16.msra.mxu1 %v5467_v25  ;;  %v2355_v40 = vpack.c.bf16 %v2339_v36, %v2339_v36  ;;  %v2356_v41 = vpack.c.bf16 %v2340_v37, %v2340_v37  ;;  %v5445_v24 = vld [vmem:[%s5655_s16 + $0x348] sm:$0xff]  ;;  %v1461_v25 = vperm.slane %v6245_v16, 4  ;;  %v5444_v36 = vld [vmem:[%s5655_s16 + $0x340] sm:$0xff] }
 0x3bd   : > { %v2337_v50 = vmax.f32 %v2235_v46, 0.0  ;;  %v2338_v51 = vmax.f32 %v2248_v47, 0.0 }
 0x3be   : > { %3527 = vmatmul.bf16.vlgmr.msrb.gmra.mxu0 %v2355_v40  ;;  %3540 = vmatmul.bf16.vlgmr.msrb.gmra.mxu1 %v2356_v41 }
 0x3bf   : > { %v2262_v52 = vpop.f32.mrf.mxu0  ;;  %v2275_v53 = vpop.f32.mrf.mxu1  ;;  %3500 = vmatpush.bf16.msra.mxu2 %v5404_v44  ;;  %3513 = vmatpush.bf16.msra.mxu3 %v5412_v45  ;;  %v2353_v57 = vpack.c.bf16 %v2337_v50, %v2337_v50  ;;  %v2354_v58 = vpack.c.bf16 %v2338_v51, %v2338_v51 }
 0x3c0   : > { %3572 = vmatpush.bf16.msra.mxu0 %v5458_v38  ;;  %3585 = vmatpush.bf16.msra.mxu1 %v5466_v39 }
 0x3c2   : > { %3501 = vmatmul.bf16.vlgmr.msra.gmra.mxu2 %v2353_v57  ;;  %3514 = vmatmul.bf16.vlgmr.msra.gmra.mxu3 %v2354_v58  ;;  %v2236_v63 = vpop.f32.mrf.mxu2  ;;  %v2249_v0 = vpop.f32.mrf.mxu3 }
 0x3c3   : > { %3545 = vmatpush.bf16.msrb.mxu2 %v5443_v48  ;;  %3558 = vmatpush.bf16.msrb.mxu3 %v5451_v49 }
 0x3c4   : > { %3573 = vmatpush.bf16.msra.mxu0 %v5457_v55  ;;  %3586 = vmatpush.bf16.msra.mxu1 %v5465_v56 }
 0x3c7   : > { %3546 = vmatpush.bf16.msrb.mxu2 %v5442_v59  ;;  %3559 = vmatpush.bf16.msrb.mxu3 %v5450_v60 }
 0x3c8   : > { %3574 = vmatpush.bf16.msra.mxu0 %v5456_v61  ;;  %3587 = vmatpush.bf16.msra.mxu1 %v5464_v62  ;;  %v5490_v61 = vld [vmem:[%s702_s29] ss:$0 sm:$0xff] }
 0x3cb   : > { %3547 = vmatpush.bf16.msrb.mxu2 %v5441_v2  ;;  %3560 = vmatpush.bf16.msrb.mxu3 %v5449_v3 }
 0x3cc   : > { %3575 = vmatpush.bf16.msra.mxu0 %v5455_v28  ;;  %3588 = vmatpush.bf16.msra.mxu1 %v5463_v4 }
 0x3cf   : > { %3548 = vmatpush.bf16.msrb.mxu2 %v5440_v5  ;;  %3561 = vmatpush.bf16.msrb.mxu3 %v5448_v6 }
 0x3d0   : > { %3576 = vmatpush.bf16.msra.mxu0 %v5454_v7  ;;  %3589 = vmatpush.bf16.msra.mxu1 %v5462_v8 }
 0x3d3   : > { %3549 = vmatpush.bf16.msrb.mxu2 %v5439_v9  ;;  %3562 = vmatpush.bf16.msrb.mxu3 %v5447_v10 }
 0x3d4   : > { %3577 = vmatpush.bf16.msra.mxu0 %v5453_v11  ;;  %3590 = vmatpush.bf16.msra.mxu1 %v5461_v12 }
 0x3d5   : > { %v2312_v19 = vpop.f32.mrf.mxu0  ;;  %v2325_v20 = vpop.f32.mrf.mxu1 }
 0x3d6   : > { %v2313_v21 = vadd.f32 %v2312_v19, %v1463_v13  ;;  %v2326_v22 = vadd.f32 %v2325_v20, %v1464_v14 }
 0x3d7   : > { %3550 = vmatpush.bf16.msrb.mxu2 %v5438_v15  ;;  %3563 = vmatpush.bf16.msrb.mxu3 %v5446_v31 }
 0x3d8   : > { %v2343_v27 = vmax.f32 %v2313_v21, 0.0  ;;  %v2344_v29 = vmax.f32 %v2326_v22, 0.0  ;;  %3578 = vmatpush.bf16.msra.mxu0 %v5452_v17  ;;  %3591 = vmatpush.bf16.msra.mxu1 %v5460_v18 }
 0x3da   : > { %v2359_v30 = vpack.c.bf16 %v2343_v27, %v2343_v27  ;;  %v2360_v32 = vpack.c.bf16 %v2344_v29, %v2344_v29  ;;  %v2286_v33 = vpop.f32.mrf.mxu2  ;;  %v2299_v34 = vpop.f32.mrf.mxu3 }
 0x3db   : > { %3551 = vmatpush.bf16.msrb.mxu2 %v5437_v23  ;;  %3564 = vmatpush.bf16.msrb.mxu3 %v5445_v24  ;;  %v2287_v37 = vadd.f32 %v2286_v33, %v1461_v25  ;;  %v2300_v38 = vadd.f32 %v2299_v34, %v1462_v26 }
 0x3dc   : > { %3579 = vmatmul.bf16.vlgmr.msra.gmra.mxu0 %v2359_v30  ;;  %3592 = vmatmul.bf16.vlgmr.msra.gmra.mxu1 %v2360_v32 }
 0x3dd   : > { %v2341_v39 = vmax.f32 %v2287_v37, 0.0  ;;  %v2342_v40 = vmax.f32 %v2300_v38, 0.0  ;;  %v2314_v41 = vpop.f32.mrf.mxu0  ;;  %v2327_v16 = vpop.f32.mrf.mxu1 }
 0x3df   : > { %3552 = vmatpush.bf16.msrb.mxu2 %v5436_v35  ;;  %3565 = vmatpush.bf16.msrb.mxu3 %v5444_v36  ;;  %v2357_v42 = vpack.c.bf16 %v2341_v39, %v2341_v39  ;;  %v2358_v43 = vpack.c.bf16 %v2342_v40, %v2342_v40 }
 0x3e2   : > { %3553 = vmatmul.bf16.vlgmr.msrb.gmra.mxu2 %v2357_v42  ;;  %3566 = vmatmul.bf16.vlgmr.msrb.gmra.mxu3 %v2358_v43  ;;  %v2288_v44 = vpop.f32.mrf.mxu2  ;;  %v2301_v45 = vpop.f32.mrf.mxu3 }
 0x418   : > { %v3424_v46 = vpop.f32.mrf.mxu0  ;;  %v3437_v47 = vpop.f32.mrf.mxu1 }
 0x420   : > { %v3426_v48 = vpop.f32.mrf.mxu0  ;;  %v3439_v49 = vpop.f32.mrf.mxu1 }
 0x424   : > { %v3398_v50 = vpop.f32.mrf.mxu2  ;;  %v3411_v51 = vpop.f32.mrf.mxu3 }
 0x425   : > { %v3399_v62 = vadd.f32 %v5490_v61, %v3398_v50 }
 0x427   : > { %v3412_v28 = vadd.f32 %v3411_v51, %v3399_v62 }
 0x428   : > { %v3476_v52 = vpop.f32.mrf.mxu0  ;;  %v3489_v53 = vpop.f32.mrf.mxu1 }
 0x429   : > { %v3425_v4 = vadd.f32 %v3424_v46, %v3412_v28  ;;  %v5491_v46 = vld [vmem:[%s705_s3] ss:$0 sm:$0xff]  ;;  %s6394_s3 = sld [smem:[#allocation12_spill]] (!%p5117_p5) }
 0x42b   : > { %v3438_v7 = vadd.f32 %v3437_v47, %v3425_v4 }
 0x42c   : > { %v3400_v55 = vpop.f32.mrf.mxu2  ;;  %v3413_v56 = vpop.f32.mrf.mxu3 }
 0x430   : > { %v3478_v57 = vpop.f32.mrf.mxu0  ;;  %v3491_v58 = vpop.f32.mrf.mxu1 }
 0x434   : > { %v3450_v59 = vpop.f32.mrf.mxu2  ;;  %v3463_v60 = vpop.f32.mrf.mxu3 }
 0x435   : > { %v3451_v10 = vadd.f32 %v3450_v59, %v3438_v7 }
 0x437   : > { %v3464_v11 = vadd.f32 %v3463_v60, %v3451_v10 }
 0x439   : > { %v3477_v14 = vadd.f32 %v3476_v52, %v3464_v11 }
 0x43b   : > { %v3528_v63 = vpop.f32.mrf.mxu0  ;;  %v3541_v0 = vpop.f32.mrf.mxu1  ;;  %v3490_v15 = vadd.f32 %v3489_v53, %v3477_v14 }
 0x43c   : > { %v3452_v2 = vpop.f32.mrf.mxu2  ;;  %v3465_v3 = vpop.f32.mrf.mxu3 }
 0x443   : > { %v3530_v5 = vpop.f32.mrf.mxu0  ;;  %v3543_v6 = vpop.f32.mrf.mxu1 }
 0x445   : > { %v3502_v8 = vpop.f32.mrf.mxu2  ;;  %v3515_v9 = vpop.f32.mrf.mxu3 }
 0x446   : > { %v3503_v31 = vadd.f32 %v3502_v8, %v3490_v15 }
 0x448   : > { %v3516_v19 = vadd.f32 %v3515_v9, %v3503_v31 }
 0x44a   : > { %v3529_v20 = vadd.f32 %v3528_v63, %v3516_v19 }
 0x44c   : > { %v3542_v23 = vadd.f32 %v3541_v0, %v3529_v20 }
 0x44d   : > { %v3504_v12 = vpop.f32.mrf.mxu2  ;;  %v3517_v13 = vpop.f32.mrf.mxu3 }
 0x459   : > { %v3580_v17 = vpop.f32.mrf.mxu0  ;;  %v3593_v18 = vpop.f32.mrf.mxu1 }
 0x461   : > { %v3582_v21 = vpop.f32.mrf.mxu0  ;;  %v3595_v22 = vpop.f32.mrf.mxu1 }
 0x465   : > { %v3554_v24 = vpop.f32.mrf.mxu2  ;;  %v3567_v25 = vpop.f32.mrf.mxu3 }
 0x466   : > { %v3555_v26 = vadd.f32 %v3554_v24, %v3542_v23 }
 0x468   : > { %v3568_v27 = vadd.f32 %v3567_v25, %v3555_v26 }
 0x46a   : > { %v3581_v29 = vadd.f32 %v3580_v17, %v3568_v27 }
 0x46c   : > { %v3594_v30 = vadd.f32 %v3593_v18, %v3581_v29 }
 0x46d   : > { %v3556_v32 = vpop.f32.mrf.mxu2  ;;  %v3569_v33 = vpop.f32.mrf.mxu3 }
 0x46e   : > { %v3597_v34 = vadd.f32 %v3594_v30, %v6000_v1 }
 0x470   : > { %3598 = vadd.xlane.f32.xlu1 %v3597_v34 }
 0x4e3   : > { %v3599_v35 = vpop.xlane.xlu1 %3598 }
 0x4e4   : > { %v3600_v36 = vmul.f32 %v3599_v35, %v5903_v54 }
 0x4e6   : > { %v3601_v37 = vsub.f32 %v3597_v34, %v3600_v36 }
 0x4e8   : > { %v3602_v38 = vmul.f32 %v3601_v37, %v3601_v37 }
 0x4ea   : > { %3603 = vadd.xlane.f32.xlu1 %v3602_v38 }
 0x55d   : > { %v3604_v39 = vpop.xlane.xlu1 %3603 }
 0x55e   : > { %v3605_v40 = vmul.f32 %v3604_v39, %v5903_v54  ;;  %v5492_v54 = vld [vmem:[%s708_s9] ss:$0 sm:$0xff] }
 0x560   : > { %v3606_v41 = vadd.f32 1e-05, %v3605_v40 }
 0x562   : > { %5497 = vrsqrt.f32 %v3606_v41  ;;  %vm3613_vm5 = vweird.f32 %v3606_v41 }
 0x568   : > { %v5498_v16 = vpop.eup %5497 }
 0x569   : > { %v3608_v42 = vmul.f32 %v5498_v16, %v3606_v41  ;;  %vm3614_vm4 = vweird.f32 %v5498_v16 }
 0x56a   : > { %vm3615_vm6 = vmor %vm3613_vm5, %vm3614_vm4 }
 0x56b   : > { %v3609_v43 = vmul.f32 %v5498_v16, %v3608_v42 }
 0x56d   : > { %v3610_v44 = vmul.f32 0.5, %v3609_v43 }
 0x56f   : > { %v3611_v45 = vsub.f32 1.5, %v3610_v44 }
 0x571   : > { %v3612_v1 = vmul.f32 %v5498_v16, %v3611_v45 }
 0x573   : > { %v3616_v47 = vsel %vm3615_vm6, %v5498_v16, %v3612_v1 }
 0x574   : > { %v3617_v48 = vmul.f32 %v3616_v47, %v3601_v37 }
 0x576   : > { %v3622_v49 = vmul.f32 %v5491_v46, %v3617_v48  ;;  %3632 = sbr.rel (%p5117_p5) target bundleno = 1569 (0x621), region = 96 }
 0x578   : > { %v3627_v50 = vadd.f32 %v5492_v54, %v3622_v49 }
 0x57a   : > { %3628 = vst [vmem:[#allocation2] sm:$0xff] %v3627_v50 }
 0x57b   : > { %v5475_v51 = vld [vmem:[%s6391_s24 + $0x38] sm:$0xff]  ;;  %v5474_v52 = vld [vmem:[%s6392_s30 + $0x30] sm:$0xff]  ;;  %v5473_v53 = vld [vmem:[%s6392_s30 + $0x28] sm:$0xff]  ;;  %v3633_v60 = vpack.c.bf16 %v3627_v50, %v3627_v50 }
 0x57c   : > { %3702 = vmatpush.bf16.msra.mxu0 %v5475_v51  ;;  %v5472_v55 = vld [vmem:[%s6392_s30 + $0x20] sm:$0xff]  ;;  %v5471_v56 = vld [vmem:[%s6392_s30 + $0x18] sm:$0xff]  ;;  %v5470_v57 = vld [vmem:[%s6392_s30 + $0x10] sm:$0xff] }
 0x57d   : > { %v5469_v58 = vld [vmem:[%s6392_s30 + $0x8] sm:$0xff]  ;;  %v5468_v59 = vld [vmem:[%s6392_s30] sm:$0xff] }
 0x57e   : > { %v5499_v61 = vld [vmem:[%s6393_s1] ss:$0 sm:$0xff] }
 0x580   : > { %3703 = vmatpush.bf16.msra.mxu0 %v5474_v52 }
 0x584   : > { %3704 = vmatpush.bf16.msra.mxu0 %v5473_v53 }
 0x588   : > { %3705 = vmatpush.bf16.msra.mxu0 %v5472_v55 }
 0x58c   : > { %3706 = vmatpush.bf16.msra.mxu0 %v5471_v56 }
 0x590   : > { %3707 = vmatpush.bf16.msra.mxu0 %v5470_v57 }
 0x594   : > { %3708 = vmatpush.bf16.msra.mxu0 %v5469_v58 }
 0x598   : > { %3709 = vmatpush.bf16.msra.mxu0 %v5468_v59 }
 0x59b   : > { %3710 = vmatmul.bf16.vlgmr.msra.gmra.mxu0 %v3633_v60 }
 0x618   : > { %v3711_v62 = vpop.f32.mrf.mxu0 }
 0x619   : > { %v3712_v63 = vadd.f32 %v5499_v61, %v3711_v62 }
 0x61b   : > { %3715 = vst [vmem:[%s6394_s3] sm:$0xff] %v3712_v63 }
 0x620   : > { %v3713_v0 = vpop.f32.mrf.mxu0 }
 0x621 PF: > { %s6395_s21 = sld [smem:[#allocation3_spill]] }
 0x627   : > { %s27_s24 = sadd.s32 1, %s6395_s21  }
 0x628   : > { %p24_p6 = scmp.ge.s32.totalorder %s27_s24, 8  }
 0x62a   :  { %26 = sbr.rel (!%p24_p6) target bundleno = 10 (0xa), region = 155 }

</bundles_post_ra>
